<compile_context>
chip_gen: v6e
topology: v6e:2x2x1
jax: 0.10.0
libtpu: 0.0.40
codegen_flags: <defaults>
</compile_context>

<pallas_src>
import numpy as np
import jax
import jax.numpy as jnp
from jax.experimental import pallas as pl
from jax.experimental.pallas import tpu as pltpu


# ----------------------------- Pallas kernel ------------------------------ #

def _make_gemm_kernel(activation):
    """Single-shot GEMM with fused epilogue: act(X @ W + b)."""
    def kernel(x_ref, w_ref, b_ref, o_ref):
        z = jnp.dot(x_ref[...], w_ref[...], preferred_element_type=jnp.float32)
        z = z + b_ref[...]
        if activation == "relu":
            z = jnp.maximum(z, 0.0)
        elif activation == "sigmoid":
            z = jax.nn.sigmoid(z)
        o_ref[...] = z.astype(o_ref.dtype)
    return kernel


def _round_up(v, m):
    return (v + m - 1) // m * m


def fused_matmul(x, w, bias, activation, *, out_dtype=jnp.float32,
                 tm=512, tn=512):
    """act(x @ w + bias), single full-K Pallas TPU GEMM (bf16 in, f32 acc)."""
    M, K = x.shape
    N = w.shape[1]
    tm = min(tm, _round_up(M, 8))        # keep sublane dim a multiple of 8
    tn = min(tn, _round_up(N, 128))      # keep lane dim a multiple of 128
    Mp, Np = _round_up(M, tm), _round_up(N, tn)

    xp = x.astype(jnp.bfloat16)
    wp = w.astype(jnp.bfloat16)
    bp = bias.astype(jnp.float32).reshape(1, -1)
    if Mp != M:
        xp = jnp.pad(xp, ((0, Mp - M), (0, 0)))
    if Np != N:
        wp = jnp.pad(wp, ((0, 0), (0, Np - N)))
        bp = jnp.pad(bp, ((0, 0), (0, Np - N)))

    grid = (Mp // tm, Np // tn)
    out = pl.pallas_call(
        _make_gemm_kernel(activation),
        out_shape=jax.ShapeDtypeStruct((Mp, Np), out_dtype),
        grid_spec=pltpu.PrefetchScalarGridSpec(
            num_scalar_prefetch=0,
            grid=grid,
            in_specs=[
                pl.BlockSpec((tm, K), lambda i, j: (i, 0)),
                pl.BlockSpec((K, tn), lambda i, j: (0, j)),
                pl.BlockSpec((1, tn), lambda i, j: (0, j)),
            ],
            out_specs=pl.BlockSpec((tm, tn), lambda i, j: (i, j)),
        ),
        compiler_params=pltpu.CompilerParams(
            dimension_semantics=("parallel", "parallel"),
            vmem_limit_bytes=32 * 1024 * 1024),
    )(xp, wp, bp)
    if (Mp, Np) != (M, N):
        out = out[:M, :N]
    return out


# -------------------- ConvTranspose via 4-phase GEMM ----------------------- #

def conv_transpose_bn_act(x, w, b, bn, activation, out_dtype=jnp.bfloat16):
    """ConvTranspose2d(k=3, s=2, p=1, op=1) + (optional eval-mode BN) + act.

    x: (B, H, W, Cin) NHWC;  w: (Cin, Cout, 3, 3) PyTorch ConvTranspose layout.
    Returns (B, 2H, 2W, Cout) NHWC.
    """
    B, H, W_, Cin = x.shape
    Cout = w.shape[1]

    # Fold eval-mode BatchNorm affine into the conv weights / bias.
    if bn is None:
        scale = jnp.ones((Cout,), jnp.float32)
        shift = jnp.zeros((Cout,), jnp.float32)
    else:
        gamma, beta, mean, var = bn
        scale = gamma / jnp.sqrt(var + 1e-5)
        shift = beta - mean * scale
    b_eff = b * scale + shift

    # 4-phase (sub-pixel) block weight: rows = 2x2 input taps, cols = output
    # phases [EE, EO, OE, OO]; stride-2 transposed conv has only these 9
    # non-zero (tap, phase) combinations out of 16.
    wk = lambda ky, kx: w[:, :, ky, kx] * scale[None, :]
    zb = jnp.zeros((Cin, Cout), w.dtype)
    w_big = jnp.block([
        # tap x[r, c]
        [wk(1, 1), wk(1, 2), wk(2, 1), wk(2, 2)],
        # tap x[r, c+1]
        [zb,       wk(1, 0), zb,       wk(2, 0)],
        # tap x[r+1, c]
        [zb,       zb,       wk(0, 1), wk(0, 2)],
        # tap x[r+1, c+1]
        [zb,       zb,       zb,       wk(0, 0)],
    ])                                            # (4*Cin, 4*Cout)
    b_big = jnp.tile(b_eff, 4)                    # (4*Cout,)

    # im2col over the 2x2 neighbourhood (zero-padded at bottom/right edge).
    xp = jnp.pad(x, ((0, 0), (0, 1), (0, 1), (0, 0)))
    pat = jnp.concatenate(
        [x, xp[:, :H, 1:, :], xp[:, 1:, :W_, :], xp[:, 1:, 1:, :]], axis=-1
    ).reshape(B * H * W_, 4 * Cin)

    y = fused_matmul(pat, w_big, b_big, activation, out_dtype=out_dtype)
    # pixel-shuffle the 4 phases back into the (2H, 2W) output grid
    y = y.reshape(B, H, W_, 2, 2, Cout)
    return y.transpose(0, 1, 3, 2, 4, 5).reshape(B, 2 * H, 2 * W_, Cout)


# ------------------------------ Decoder model ------------------------------ #

def init_params(key, n_dim_latent):
    ks = jax.random.split(key, 24)

    def rnd(k, shape, s=0.05):
        return (s * jax.random.normal(k, shape)).astype(jnp.float32)

    p = {}
    p["lin1_w"] = rnd(ks[0], (n_dim_latent, 1024))
    p["lin1_b"] = rnd(ks[1], (1024,))
    p["lin2_w"] = rnd(ks[2], (1024, 4608))
    p["lin2_b"] = rnd(ks[3], (4608,))
    p["tc1_w"] = rnd(ks[4], (128, 128, 3, 3))
    p["tc1_b"] = rnd(ks[5], (128,))
    p["tc2_w"] = rnd(ks[6], (128, 64, 3, 3))
    p["tc2_b"] = rnd(ks[7], (64,))
    p["tc3_w"] = rnd(ks[8], (64, 32, 3, 3))
    p["tc3_b"] = rnd(ks[9], (32,))
    p["tc4_w"] = rnd(ks[10], (32, 3, 3, 3))
    p["tc4_b"] = rnd(ks[11], (3,))
    # BatchNorm2d params: (gamma, beta, running_mean, running_var)
    idx = 12
    for name, c in (("bn1", 128), ("bn2", 64), ("bn3", 32)):
        gamma = 1.0 + rnd(ks[idx], (c,))
        beta = rnd(ks[idx + 1], (c,))
        mean = rnd(ks[idx + 2], (c,), 0.1)
        var = 1.0 + jnp.abs(rnd(ks[idx + 3], (c,), 0.1))
        p[name] = (gamma, beta, mean, var)
        idx += 4
    return p


def decoder_forward(params, x):
    # x: (B, n_dim_latent)
    # lin1 is ~65 KFLOP: plain jnp beats a pallas_call launch + M/K padding.
    h = jax.nn.relu(x @ params["lin1_w"] + params["lin1_b"])
    h = fused_matmul(h, params["lin2_w"], params["lin2_b"], "relu",
                     out_dtype=jnp.float32, tm=8, tn=512)
    B = x.shape[0]
    # matches x.view(B, 128, 6, 6); then go channels-last once and stay NHWC.
    h = h.reshape(B, 128, 6, 6).transpose(0, 2, 3, 1).astype(jnp.bfloat16)
    # TODO(synk): BatchNorm2d is applied in eval mode (running statistics);
    # training-mode batch statistics over (N, H, W) are not computed.
    h = conv_transpose_bn_act(h, params["tc1_w"], params["tc1_b"], params["bn1"], "relu")
    h = conv_transpose_bn_act(h, params["tc2_w"], params["tc2_b"], params["bn2"], "relu")
    h = conv_transpose_bn_act(h, params["tc3_w"], params["tc3_b"], params["bn3"], "relu")
    h = conv_transpose_bn_act(h, params["tc4_w"], params["tc4_b"], None, "sigmoid",
                              out_dtype=jnp.float32)
    return h.transpose(0, 3, 1, 2)                 # single NHWC -> NCHW at the end


# --------------------------- pure-JAX reference ---------------------------- #

def _conv_transpose_ref(x, w, b):
    w_conv = jnp.flip(w, axis=(2, 3)).transpose(1, 0, 2, 3)   # (Cout, Cin, 3, 3)
    y = jax.lax.conv_general_dilated(
        x, w_conv, window_strides=(1, 1), padding=[(1, 2), (1, 2)],
        lhs_dilation=(2, 2), dimension_numbers=("NCHW", "OIHW", "NCHW"))
    return y + b[None, :, None, None]


def decoder_ref(params, x):
    h = jax.nn.relu(x @ params["lin1_w"] + params["lin1_b"])
    h = jax.nn.relu(h @ params["lin2_w"] + params["lin2_b"])
    B = x.shape[0]
    h = h.reshape(B, 128, 6, 6)

    def bn(z, p):
        g, bt, m, v = p
        inv = g / jnp.sqrt(v + 1e-5)
        return z * inv[None, :, None, None] + (bt - m * inv)[None, :, None, None]

    h = jax.nn.relu(bn(_conv_transpose_ref(h, params["tc1_w"], params["tc1_b"]), params["bn1"]))
    h = jax.nn.relu(bn(_conv_transpose_ref(h, params["tc2_w"], params["tc2_b"]), params["bn2"]))
    h = jax.nn.relu(bn(_conv_transpose_ref(h, params["tc3_w"], params["tc3_b"]), params["bn3"]))
    h = jax.nn.sigmoid(_conv_transpose_ref(h, params["tc4_w"], params["tc4_b"]))
    return h


# ---------------------------------- main ----------------------------------- #

if __name__ == "__main__":
    key = jax.random.PRNGKey(0)
    n_dim_latent = 32
    batch = 2
    pkey, xkey = jax.random.split(key)
    params = init_params(pkey, n_dim_latent)
    x = jax.random.normal(xkey, (batch, n_dim_latent), jnp.float32)

    fwd = jax.jit(decoder_forward)
    out = jax.block_until_ready(fwd(params, x))
    assert out.shape == (batch, 3, 96, 96), out.shape

    ref = jax.block_until_ready(decoder_ref(params, x))
    np.testing.assert_allclose(np.asarray(out), np.asarray(ref), rtol=2e-2, atol=2e-2)

    print("KERNEL_OK")
</pallas_src>

<mosaic_0001>
module attributes {stable_mosaic.version = 11 : i64} {
  func.func @kernel(%arg0: i32, %arg1: i32, %arg2: memref<8x1024xbf16, #tpu.memory_space<vmem>>, %arg3: memref<1024x512xbf16, #tpu.memory_space<vmem>>, %arg4: memref<1x512xf32, #tpu.memory_space<vmem>>, %arg5: memref<8x512xf32, #tpu.memory_space<vmem>>) attributes {dimension_semantics = [#tpu.dimension_semantics<parallel>, #tpu.dimension_semantics<parallel>], iteration_bounds = array<i64: 1, 9>, scalar_prefetch = 0 : i64, scratch_operands = 0 : i64, tpu.core_type = #tpu.core_type<tc>, window_params = [{transform_indices = @transform_0, window_bounds = array<i64: 8, 1024>}, {transform_indices = @transform_1, window_bounds = array<i64: 1024, 512>}, {transform_indices = @transform_2, window_bounds = array<i64: 1, 512>}, {transform_indices = @transform_3, window_bounds = array<i64: 8, 512>}]} {
    %c0 = arith.constant 0 : index
    %c0_0 = arith.constant 0 : index
    %0 = vector.load %arg2[%c0, %c0_0] : memref<8x1024xbf16, #tpu.memory_space<vmem>>, vector<8x1024xbf16>
    %c0_1 = arith.constant 0 : index
    %c0_2 = arith.constant 0 : index
    %1 = vector.load %arg3[%c0_1, %c0_2] : memref<1024x512xbf16, #tpu.memory_space<vmem>>, vector<1024x512xbf16>
    %cst = arith.constant dense<0.000000e+00> : vector<8x512xf32>
    %2 = tpu.matmul %0, %1, %cst {dimension_numbers = #tpu.dot_dimension_numbers<[1], [0], [0], [1], [0, 0, 1, 1], [], []>} : vector<8x1024xbf16>, vector<1024x512xbf16>, vector<8x512xf32> -> vector<8x512xf32>
    %c0_3 = arith.constant 0 : index
    %c0_4 = arith.constant 0 : index
    %3 = vector.load %arg4[%c0_3, %c0_4] : memref<1x512xf32, #tpu.memory_space<vmem>>, vector<1x512xf32>
    %4 = vector.broadcast %3 : vector<1x512xf32> to vector<8x512xf32>
    %5 = arith.addf %2, %4 : vector<8x512xf32>
    %cst_5 = arith.constant 0.000000e+00 : f32
    %6 = vector.broadcast %cst_5 : f32 to vector<8x512xf32>
    %7 = arith.maximumf %5, %6 : vector<8x512xf32>
    %c0_6 = arith.constant 0 : index
    %c0_7 = arith.constant 0 : index
    %8 = vector.load %arg5[%c0_6, %c0_7] : memref<8x512xf32, #tpu.memory_space<vmem>>, vector<8x512xf32>
    tpu.vector_store %arg5[%c0_6, %c0_7], %7 {strides = array<i32>} : memref<8x512xf32, #tpu.memory_space<vmem>>, vector<8x512xf32>,
    return
  }
  func.func @transform_0(%arg0: i32, %arg1: i32) -> (i32, i32) {
    %c0_i32 = arith.constant 0 : i32
    %c0_i32_0 = arith.constant 0 : i32
    return %arg0, %c0_i32 : i32, i32
  }
  func.func @transform_1(%arg0: i32, %arg1: i32) -> (i32, i32) {
    %c0_i32 = arith.constant 0 : i32
    %c0_i32_0 = arith.constant 0 : i32
    return %c0_i32, %arg1 : i32, i32
  }
  func.func @transform_2(%arg0: i32, %arg1: i32) -> (i32, i32) {
    %c0_i32 = arith.constant 0 : i32
    %c0_i32_0 = arith.constant 0 : i32
    return %c0_i32, %arg1 : i32, i32
  }
  func.func @transform_3(%arg0: i32, %arg1: i32) -> (i32, i32) {
    %c0_i32 = arith.constant 0 : i32
    return %arg0, %arg1 : i32, i32
  }
}

module attributes {stable_mosaic.version = 11 : i64} {
  func.func @kernel(%arg0: i32, %arg1: i32, %arg2: memref<72x512xbf16, #tpu.memory_space<vmem>>, %arg3: memref<512x512xbf16, #tpu.memory_space<vmem>>, %arg4: memref<1x512xf32, #tpu.memory_space<vmem>>, %arg5: memref<72x512xbf16, #tpu.memory_space<vmem>>) attributes {dimension_semantics = [#tpu.dimension_semantics<parallel>, #tpu.dimension_semantics<parallel>], iteration_bounds = array<i64: 1, 1>, scalar_prefetch = 0 : i64, scratch_operands = 0 : i64, tpu.core_type = #tpu.core_type<tc>, window_params = [{transform_indices = @transform_0, window_bounds = array<i64: 72, 512>}, {transform_indices = @transform_1, window_bounds = array<i64: 512, 512>}, {transform_indices = @transform_2, window_bounds = array<i64: 1, 512>}, {transform_indices = @transform_3, window_bounds = array<i64: 72, 512>}]} {
    %c0 = arith.constant 0 : index
    %c0_0 = arith.constant 0 : index
    %0 = vector.load %arg2[%c0, %c0_0] : memref<72x512xbf16, #tpu.memory_space<vmem>>, vector<72x512xbf16>
    %c0_1 = arith.constant 0 : index
    %c0_2 = arith.constant 0 : index
    %1 = vector.load %arg3[%c0_1, %c0_2] : memref<512x512xbf16, #tpu.memory_space<vmem>>, vector<512x512xbf16>
    %cst = arith.constant dense<0.000000e+00> : vector<72x512xf32>
    %2 = tpu.matmul %0, %1, %cst {dimension_numbers = #tpu.dot_dimension_numbers<[1], [0], [0], [1], [0, 0, 1, 1], [], []>} : vector<72x512xbf16>, vector<512x512xbf16>, vector<72x512xf32> -> vector<72x512xf32>
    %c0_3 = arith.constant 0 : index
    %c0_4 = arith.constant 0 : index
    %3 = vector.load %arg4[%c0_3, %c0_4] : memref<1x512xf32, #tpu.memory_space<vmem>>, vector<1x512xf32>
    %4 = vector.broadcast %3 : vector<1x512xf32> to vector<72x512xf32>
    %5 = arith.addf %2, %4 : vector<72x512xf32>
    %cst_5 = arith.constant 0.000000e+00 : f32
    %6 = vector.broadcast %cst_5 : f32 to vector<72x512xf32>
    %7 = arith.maximumf %5, %6 : vector<72x512xf32>
    %8 = arith.truncf %7 : vector<72x512xf32> to vector<72x512xbf16>
    %c0_6 = arith.constant 0 : index
    %c0_7 = arith.constant 0 : index
    %9 = vector.load %arg5[%c0_6, %c0_7] : memref<72x512xbf16, #tpu.memory_space<vmem>>, vector<72x512xbf16>
    tpu.vector_store %arg5[%c0_6, %c0_7], %8 {strides = array<i32>} : memref<72x512xbf16, #tpu.memory_space<vmem>>, vector<72x512xbf16>,
    return
  }
  func.func @transform_0(%arg0: i32, %arg1: i32) -> (i32, i32) {
    %c0_i32 = arith.constant 0 : i32
    %c0_i32_0 = arith.constant 0 : i32
    return %arg0, %c0_i32 : i32, i32
  }
  func.func @transform_1(%arg0: i32, %arg1: i32) -> (i32, i32) {
    %c0_i32 = arith.constant 0 : i32
    %c0_i32_0 = arith.constant 0 : i32
    return %c0_i32, %arg1 : i32, i32
  }
  func.func @transform_2(%arg0: i32, %arg1: i32) -> (i32, i32) {
    %c0_i32 = arith.constant 0 : i32
    %c0_i32_0 = arith.constant 0 : i32
    return %c0_i32, %arg1 : i32, i32
  }
  func.func @transform_3(%arg0: i32, %arg1: i32) -> (i32, i32) {
    %c0_i32 = arith.constant 0 : i32
    return %arg0, %arg1 : i32, i32
  }
}

module attributes {stable_mosaic.version = 11 : i64} {
  func.func @kernel(%arg0: i32, %arg1: i32, %arg2: memref<288x512xbf16, #tpu.memory_space<vmem>>, %arg3: memref<512x256xbf16, #tpu.memory_space<vmem>>, %arg4: memref<1x256xf32, #tpu.memory_space<vmem>>, %arg5: memref<288x256xbf16, #tpu.memory_space<vmem>>) attributes {dimension_semantics = [#tpu.dimension_semantics<parallel>, #tpu.dimension_semantics<parallel>], iteration_bounds = array<i64: 1, 1>, scalar_prefetch = 0 : i64, scratch_operands = 0 : i64, tpu.core_type = #tpu.core_type<tc>, window_params = [{transform_indices = @transform_0, window_bounds = array<i64: 288, 512>}, {transform_indices = @transform_1, window_bounds = array<i64: 512, 256>}, {transform_indices = @transform_2, window_bounds = array<i64: 1, 256>}, {transform_indices = @transform_3, window_bounds = array<i64: 288, 256>}]} {
    %c0 = arith.constant 0 : index
    %c0_0 = arith.constant 0 : index
    %0 = vector.load %arg2[%c0, %c0_0] : memref<288x512xbf16, #tpu.memory_space<vmem>>, vector<288x512xbf16>
    %c0_1 = arith.constant 0 : index
    %c0_2 = arith.constant 0 : index
    %1 = vector.load %arg3[%c0_1, %c0_2] : memref<512x256xbf16, #tpu.memory_space<vmem>>, vector<512x256xbf16>
    %cst = arith.constant dense<0.000000e+00> : vector<288x256xf32>
    %2 = tpu.matmul %0, %1, %cst {dimension_numbers = #tpu.dot_dimension_numbers<[1], [0], [0], [1], [0, 0, 1, 1], [], []>} : vector<288x512xbf16>, vector<512x256xbf16>, vector<288x256xf32> -> vector<288x256xf32>
    %c0_3 = arith.constant 0 : index
    %c0_4 = arith.constant 0 : index
    %3 = vector.load %arg4[%c0_3, %c0_4] : memref<1x256xf32, #tpu.memory_space<vmem>>, vector<1x256xf32>
    %4 = vector.broadcast %3 : vector<1x256xf32> to vector<288x256xf32>
    %5 = arith.addf %2, %4 : vector<288x256xf32>
    %cst_5 = arith.constant 0.000000e+00 : f32
    %6 = vector.broadcast %cst_5 : f32 to vector<288x256xf32>
    %7 = arith.maximumf %5, %6 : vector<288x256xf32>
    %8 = arith.truncf %7 : vector<288x256xf32> to vector<288x256xbf16>
    %c0_6 = arith.constant 0 : index
    %c0_7 = arith.constant 0 : index
    %9 = vector.load %arg5[%c0_6, %c0_7] : memref<288x256xbf16, #tpu.memory_space<vmem>>, vector<288x256xbf16>
    tpu.vector_store %arg5[%c0_6, %c0_7], %8 {strides = array<i32>} : memref<288x256xbf16, #tpu.memory_space<vmem>>, vector<288x256xbf16>,
    return
  }
  func.func @transform_0(%arg0: i32, %arg1: i32) -> (i32, i32) {
    %c0_i32 = arith.constant 0 : i32
    %c0_i32_0 = arith.constant 0 : i32
    return %arg0, %c0_i32 : i32, i32
  }
  func.func @transform_1(%arg0: i32, %arg1: i32) -> (i32, i32) {
    %c0_i32 = arith.constant 0 : i32
    %c0_i32_0 = arith.constant 0 : i32
    return %c0_i32, %arg1 : i32, i32
  }
  func.func @transform_2(%arg0: i32, %arg1: i32) -> (i32, i32) {
    %c0_i32 = arith.constant 0 : i32
    %c0_i32_0 = arith.constant 0 : i32
    return %c0_i32, %arg1 : i32, i32
  }
  func.func @transform_3(%arg0: i32, %arg1: i32) -> (i32, i32) {
    %c0_i32 = arith.constant 0 : i32
    return %arg0, %arg1 : i32, i32
  }
}

module attributes {stable_mosaic.version = 11 : i64} {
  func.func @kernel(%arg0: i32, %arg1: i32, %arg2: memref<512x256xbf16, #tpu.memory_space<vmem>>, %arg3: memref<256x128xbf16, #tpu.memory_space<vmem>>, %arg4: memref<1x128xf32, #tpu.memory_space<vmem>>, %arg5: memref<512x128xbf16, #tpu.memory_space<vmem>>) attributes {dimension_semantics = [#tpu.dimension_semantics<parallel>, #tpu.dimension_semantics<parallel>], iteration_bounds = array<i64: 3, 1>, scalar_prefetch = 0 : i64, scratch_operands = 0 : i64, tpu.core_type = #tpu.core_type<tc>, window_params = [{transform_indices = @transform_0, window_bounds = array<i64: 512, 256>}, {transform_indices = @transform_1, window_bounds = array<i64: 256, 128>}, {transform_indices = @transform_2, window_bounds = array<i64: 1, 128>}, {transform_indices = @transform_3, window_bounds = array<i64: 512, 128>}]} {
    %c0 = arith.constant 0 : index
    %c0_0 = arith.constant 0 : index
    %0 = vector.load %arg2[%c0, %c0_0] : memref<512x256xbf16, #tpu.memory_space<vmem>>, vector<512x256xbf16>
    %c0_1 = arith.constant 0 : index
    %c0_2 = arith.constant 0 : index
    %1 = vector.load %arg3[%c0_1, %c0_2] : memref<256x128xbf16, #tpu.memory_space<vmem>>, vector<256x128xbf16>
    %cst = arith.constant dense<0.000000e+00> : vector<512x128xf32>
    %2 = tpu.matmul %0, %1, %cst {dimension_numbers = #tpu.dot_dimension_numbers<[1], [0], [0], [1], [0, 0, 1, 1], [], []>} : vector<512x256xbf16>, vector<256x128xbf16>, vector<512x128xf32> -> vector<512x128xf32>
    %c0_3 = arith.constant 0 : index
    %c0_4 = arith.constant 0 : index
    %3 = vector.load %arg4[%c0_3, %c0_4] : memref<1x128xf32, #tpu.memory_space<vmem>>, vector<1x128xf32>
    %4 = vector.broadcast %3 : vector<1x128xf32> to vector<512x128xf32>
    %5 = arith.addf %2, %4 : vector<512x128xf32>
    %cst_5 = arith.constant 0.000000e+00 : f32
    %6 = vector.broadcast %cst_5 : f32 to vector<512x128xf32>
    %7 = arith.maximumf %5, %6 : vector<512x128xf32>
    %8 = arith.truncf %7 : vector<512x128xf32> to vector<512x128xbf16>
    %c0_6 = arith.constant 0 : index
    %c0_7 = arith.constant 0 : index
    %9 = vector.load %arg5[%c0_6, %c0_7] : memref<512x128xbf16, #tpu.memory_space<vmem>>, vector<512x128xbf16>
    tpu.vector_store %arg5[%c0_6, %c0_7], %8 {strides = array<i32>} : memref<512x128xbf16, #tpu.memory_space<vmem>>, vector<512x128xbf16>,
    return
  }
  func.func @transform_0(%arg0: i32, %arg1: i32) -> (i32, i32) {
    %c0_i32 = arith.constant 0 : i32
    %c0_i32_0 = arith.constant 0 : i32
    return %arg0, %c0_i32 : i32, i32
  }
  func.func @transform_1(%arg0: i32, %arg1: i32) -> (i32, i32) {
    %c0_i32 = arith.constant 0 : i32
    %c0_i32_0 = arith.constant 0 : i32
    return %c0_i32, %arg1 : i32, i32
  }
  func.func @transform_2(%arg0: i32, %arg1: i32) -> (i32, i32) {
    %c0_i32 = arith.constant 0 : i32
    %c0_i32_0 = arith.constant 0 : i32
    return %c0_i32, %arg1 : i32, i32
  }
  func.func @transform_3(%arg0: i32, %arg1: i32) -> (i32, i32) {
    %c0_i32 = arith.constant 0 : i32
    return %arg0, %arg1 : i32, i32
  }
}

module attributes {stable_mosaic.version = 11 : i64} {
  func.func @kernel(%arg0: i32, %arg1: i32, %arg2: memref<512x128xbf16, #tpu.memory_space<vmem>>, %arg3: memref<128x128xbf16, #tpu.memory_space<vmem>>, %arg4: memref<1x128xf32, #tpu.memory_space<vmem>>, %arg5: memref<512x128xf32, #tpu.memory_space<vmem>>) attributes {dimension_semantics = [#tpu.dimension_semantics<parallel>, #tpu.dimension_semantics<parallel>], iteration_bounds = array<i64: 9, 1>, scalar_prefetch = 0 : i64, scratch_operands = 0 : i64, tpu.core_type = #tpu.core_type<tc>, window_params = [{transform_indices = @transform_0, window_bounds = array<i64: 512, 128>}, {transform_indices = @transform_1, window_bounds = array<i64: 128, 128>}, {transform_indices = @transform_2, window_bounds = array<i64: 1, 128>}, {transform_indices = @transform_3, window_bounds = array<i64: 512, 128>}]} {
    %c0 = arith.constant 0 : index
    %c0_0 = arith.constant 0 : index
    %0 = vector.load %arg2[%c0, %c0_0] : memref<512x128xbf16, #tpu.memory_space<vmem>>, vector<512x128xbf16>
    %c0_1 = arith.constant 0 : index
    %c0_2 = arith.constant 0 : index
    %1 = vector.load %arg3[%c0_1, %c0_2] : memref<128x128xbf16, #tpu.memory_space<vmem>>, vector<128x128xbf16>
    %cst = arith.constant dense<0.000000e+00> : vector<512x128xf32>
    %2 = tpu.matmul %0, %1, %cst {dimension_numbers = #tpu.dot_dimension_numbers<[1], [0], [0], [1], [0, 0, 1, 1], [], []>} : vector<512x128xbf16>, vector<128x128xbf16>, vector<512x128xf32> -> vector<512x128xf32>
    %c0_3 = arith.constant 0 : index
    %c0_4 = arith.constant 0 : index
    %3 = vector.load %arg4[%c0_3, %c0_4] : memref<1x128xf32, #tpu.memory_space<vmem>>, vector<1x128xf32>
    %4 = vector.broadcast %3 : vector<1x128xf32> to vector<512x128xf32>
    %5 = arith.addf %2, %4 : vector<512x128xf32>
    %6 = arith.negf %5 : vector<512x128xf32>
    %7 = math.exp %6 : vector<512x128xf32>
    %cst_5 = arith.constant 1.000000e+00 : f32
    %8 = vector.broadcast %cst_5 : f32 to vector<512x128xf32>
    %9 = arith.addf %8, %7 : vector<512x128xf32>
    %10 = arith.divf %8, %9 : vector<512x128xf32>
    %c0_6 = arith.constant 0 : index
    %c0_7 = arith.constant 0 : index
    %11 = vector.load %arg5[%c0_6, %c0_7] : memref<512x128xf32, #tpu.memory_space<vmem>>, vector<512x128xf32>
    tpu.vector_store %arg5[%c0_6, %c0_7], %10 {strides = array<i32>} : memref<512x128xf32, #tpu.memory_space<vmem>>, vector<512x128xf32>,
    return
  }
  func.func @transform_0(%arg0: i32, %arg1: i32) -> (i32, i32) {
    %c0_i32 = arith.constant 0 : i32
    %c0_i32_0 = arith.constant 0 : i32
    return %arg0, %c0_i32 : i32, i32
  }
  func.func @transform_1(%arg0: i32, %arg1: i32) -> (i32, i32) {
    %c0_i32 = arith.constant 0 : i32
    %c0_i32_0 = arith.constant 0 : i32
    return %c0_i32, %arg1 : i32, i32
  }
  func.func @transform_2(%arg0: i32, %arg1: i32) -> (i32, i32) {
    %c0_i32 = arith.constant 0 : i32
    %c0_i32_0 = arith.constant 0 : i32
    return %c0_i32, %arg1 : i32, i32
  }
  func.func @transform_3(%arg0: i32, %arg1: i32) -> (i32, i32) {
    %c0_i32 = arith.constant 0 : i32
    return %arg0, %arg1 : i32, i32
  }
}

</mosaic_0001>

<bundles_post_ra>
// kernel: tile.33
= control target key start
LH: loop header
LB: loop body
LE: loop exit
PB: predicated region body
PF: predicated region fallthrough
CT: control target
= control target key end

     0   :  { %s22_s0 = inlined_call_operand.vmem [shape: f32[32], index: 0, kind: input, shape index: {}]   ;;  %s23_s1 = inlined_call_operand.vmem [shape: f32[4,32], index: 1, kind: output, shape index: {}]  }
   0x1   :  { %v4_v0 = vld [vmem:[%s22_s0] ss:$0 sm:$0xff] }
   0x2   :  { %5 = vst [vmem:[%s23_s1] sm:$0xf] %v4_v0 }

// kernel: tile.34
= control target key start
LH: loop header
LB: loop body
LE: loop exit
PB: predicated region body
PF: predicated region fallthrough
CT: control target
= control target key end

     0   :  { %vm8_vm0 = vcmask 261120   ;;  %s40_s8 = smov 32   ;;  %s41_s9 = smov 64   ;;  %vm14_vm1 = vcmask 1048320   ;;  %vm20_vm2 = vcmask 785920   ;;  %vm26_vm3 = vcmask 523520   ;;  %s58_s0 = inlined_call_operand.vmem [shape: f32[4,32], index: 0, kind: input, shape index: {}]   ;;  %s59_s1 = inlined_call_operand.vmem [shape: f32[1,128], index: 1, kind: output, shape index: {}]  }
   0x1   :  { %v5_v0 = vld [vmem:[%s58_s0] sm:$0xf]  ;;  %s39_s0 = smov 96  }
   0x2   :  { %6 = vst [vmem:[#allocation1] sm:$0xf] %v5_v0 }
   0x9   :  { %v11_v1 = vld [vmem:[#allocation1 + $0x3] sm:$0x1]   ;;  %v23_v2 = vld [vmem:[#allocation1 + $0x1] sm:$0x1]   ;;  %v7_v3 = vld [vmem:[#allocation1] sm:$0x1]  }
   0xa   :  { %12 = vrot.lane.b32.xlu0 %v11_v1, %s39_s0  ;;  %24 = vrot.lane.b32.xlu1 %v23_v2, %s40_s8  ;;  %v17_v4 = vld [vmem:[#allocation1 + $0x2] sm:$0x1]   ;;  %9 = vst.msk [vmem:[#allocation0] sm:$0x1] %vm8_vm0, %v7_v3  }
   0xe   :  { %18 = vrot.lane.b32.xlu0 %v17_v4, %s41_s9 }
  0x7c   :  { %v13_v5 = vpop.permute.xlu0 %12   ;;  %v25_v6 = vpop.permute.xlu1 %24  }
  0x7d   :  { %15 = vst.msk [vmem:[#allocation0] sm:$0x1] %vm14_vm1, %v13_v5  }
  0x80   :  { %v19_v7 = vpop.permute.xlu0 %18  }
  0x81   :  { %21 = vst.msk [vmem:[#allocation0] sm:$0x1] %vm20_vm2, %v19_v7  }
  0x82   :  { %27 = vst.msk [vmem:[#allocation0] sm:$0x1] %vm26_vm3, %v25_v6  }
  0x89   :  { %v32_v8 = vld [vmem:[#allocation0] sm:$0x1] }
  0x8a   :  { %35 = vst [vmem:[%s59_s1] sm:$0x1] %v32_v8 }

// kernel: tile.28
= control target key start
LH: loop header
LB: loop body
LE: loop exit
PB: predicated region body
PF: predicated region fallthrough
CT: control target
= control target key end

     0   :  { %s22_s0 = inlined_call_operand.vmem [shape: f32[64], index: 0, kind: input, shape index: {}]   ;;  %s23_s1 = inlined_call_operand.vmem [shape: f32[4,64], index: 1, kind: output, shape index: {}]  }
   0x1   :  { %v4_v0 = vld [vmem:[%s22_s0] ss:$0 sm:$0xff] }
   0x2   :  { %5 = vst [vmem:[%s23_s1] sm:$0xf] %v4_v0 }

// kernel: tile.23
= control target key start
LH: loop header
LB: loop body
LE: loop exit
PB: predicated region body
PF: predicated region fallthrough
CT: control target
= control target key end

     0   :  { %s22_s0 = inlined_call_operand.vmem [shape: f32[128], index: 0, kind: input, shape index: {}]   ;;  %s23_s1 = inlined_call_operand.vmem [shape: f32[4,128], index: 1, kind: output, shape index: {}]  }
   0x1   :  { %v4_v0 = vld [vmem:[%s22_s0] ss:$0 sm:$0xff] }
   0x2   :  { %5 = vst [vmem:[%s23_s1] sm:$0xf] %v4_v0 }

// kernel: tile.29
= control target key start
LH: loop header
LB: loop body
LE: loop exit
PB: predicated region body
PF: predicated region fallthrough
CT: control target
= control target key end

     0   :  { %s7_s8 = smov 3  ;;  %vm9_vm0 = vcmask 523264   ;;  %s34_s9 = smov 64   ;;  %vm16_vm1 = vcmask 1048064   ;;  %s54_s0 = inlined_call_operand.vmem [shape: f32[4,64], index: 0, kind: input, shape index: {}]   ;;  %s55_s1 = inlined_call_operand.vmem [shape: f32[1,256], index: 1, kind: output, shape index: {}]  }
   0x1   :  { %v5_v0 = vld [vmem:[%s54_s0] sm:$0xf]  ;;  %s12_s0 = smov 3 }
   0x2   :  { %6 = vst [vmem:[#allocation1] sm:$0xf] %v5_v0 }
   0x9   :  { %v13_v1 = vld [vmem:[#allocation1 + $0x1] ss:$2 sm:%s12_s0]   ;;  %v8_v2 = vld [vmem:[#allocation1] ss:$2 sm:%s7_s8]  }
   0xa   :  { %14 = vrot.lane.b32.xlu0 %v13_v1, %s34_s9  ;;  %10 = vst.msk [vmem:[#allocation0] ss:$8 sm:$0x3] %vm9_vm0, %v8_v2  }
  0x7c   :  { %v15_v3 = vpop.permute.xlu0 %14  }
  0x7d   :  { %17 = vst.msk [vmem:[#allocation0] ss:$8 sm:$0x3] %vm16_vm1, %v15_v3  }
  0x84   :  { %v22_v4 = vld [vmem:[#allocation0] sm:$0x1]  ;;  %v27_v5 = vld [vmem:[#allocation0 + $0x8] sm:$0x1] }
  0x85   :  { %25 = vst [vmem:[%s55_s1] sm:$0x1] %v22_v4  ;;  %32 = vst [vmem:[%s55_s1 + $0x1] sm:$0x1] %v27_v5 }

// kernel: tile.38
= control target key start
LH: loop header
LB: loop body
LE: loop exit
PB: predicated region body
PF: predicated region fallthrough
CT: control target
= control target key end

     0   :  { %2 = vsyncpa [#allocation1], 0  ;;  %s42_s6 = smov [#allocation0]   ;;  %s59_s0 = inlined_call_operand.hbm [shape: f32[3], index: 0, kind: input, shape index: {}]   ;;  %s60_s1 = inlined_call_operand.vmem [shape: f32[4,3], index: 1, kind: output, shape index: {}]  }
   0x1   :  { %s9_s7 = sshll.u32 %s42_s6, 4  ;;  %s10_s7 = int_to_ptr.vmem [resolvable:$true] %s9_s7 }
   0x2   :  { %s28_s8 = scalar_lea.vmem %s10_s7, 16  ;;  %s32_s9 = scalar_lea.vmem %s10_s7, 32 }
   0x3   :  { %p29_p0 = scmp.ne.s32.totalorder %s10_s7, %s28_s8  ;;  %p33_p1 = scmp.lt.s32.totalorder %s10_s7, %s10_s7 }
   0x4   :  { %p34_p2 = scmp.lt.s32.totalorder %s32_s9, %s28_s8 }
   0x6   :  { %p35_p3 = por %p34_p2, %p33_p1 }
   0x8   :  { %p36_p4 = pnand %p35_p3, %p29_p0 }
   0xa   :  { %39 = shalt.err (!%p36_p4)
}
   0xb   :  { %12 = dma.hbm_to_vmem [thread:$0]  %s59_s0, 16, %s10_s7, [#allocation1]  }
   0xc   :  { %40 = dma.done.wait [#allocation1], 16  }
   0xd   :  { %41 = vsyncadd [#allocation1], 4294967280  ;;  %v16_v0 = vld [vmem:[#allocation0] ss:$0 sm:$0xff] }
   0xe   :  { %17 = vst [vmem:[%s60_s1] sm:$0xf] %v16_v0 }
   0xf   :  { %18 = vsyncpa [#allocation1], 1 }

// kernel: tile.39
= control target key start
LH: loop header
LB: loop body
LE: loop exit
PB: predicated region body
PF: predicated region fallthrough
CT: control target
= control target key end

     0   :  { %vm8_vm0 = vcmask 23552   ;;  %s40_s8 = smov 3   ;;  %s41_s9 = smov 6   ;;  %vm14_vm1 = vcmask 97352   ;;  %vm20_vm2 = vcmask 72752   ;;  %vm26_vm3 = vcmask 48152   ;;  %s58_s0 = inlined_call_operand.vmem [shape: f32[4,3], index: 0, kind: input, shape index: {}]   ;;  %s59_s1 = inlined_call_operand.vmem [shape: f32[1,12], index: 1, kind: output, shape index: {}]  }
   0x1   :  { %v5_v0 = vld [vmem:[%s58_s0] sm:$0xf]  ;;  %s39_s0 = smov 9  }
   0x2   :  { %6 = vst [vmem:[#allocation1] sm:$0xf] %v5_v0 }
   0x9   :  { %v11_v1 = vld [vmem:[#allocation1 + $0x3] sm:$0x1]   ;;  %v23_v2 = vld [vmem:[#allocation1 + $0x1] sm:$0x1]   ;;  %v7_v3 = vld [vmem:[#allocation1] sm:$0x1]  }
   0xa   :  { %12 = vrot.lane.b32.xlu0 %v11_v1, %s39_s0  ;;  %24 = vrot.lane.b32.xlu1 %v23_v2, %s40_s8  ;;  %v17_v4 = vld [vmem:[#allocation1 + $0x2] sm:$0x1]   ;;  %9 = vst.msk [vmem:[#allocation0] sm:$0x1] %vm8_vm0, %v7_v3  }
   0xe   :  { %18 = vrot.lane.b32.xlu0 %v17_v4, %s41_s9 }
  0x7c   :  { %v13_v5 = vpop.permute.xlu0 %12   ;;  %v25_v6 = vpop.permute.xlu1 %24  }
  0x7d   :  { %15 = vst.msk [vmem:[#allocation0] sm:$0x1] %vm14_vm1, %v13_v5  }
  0x80   :  { %v19_v7 = vpop.permute.xlu0 %18  }
  0x81   :  { %21 = vst.msk [vmem:[#allocation0] sm:$0x1] %vm20_vm2, %v19_v7  }
  0x82   :  { %27 = vst.msk [vmem:[#allocation0] sm:$0x1] %vm26_vm3, %v25_v6  }
  0x89   :  { %v32_v8 = vld [vmem:[#allocation0] sm:$0x1] }
  0x8a   :  { %35 = vst [vmem:[%s59_s1] sm:$0x1] %v32_v8 }

// kernel: decoder_forward.5
= control target key start
LH: loop header
LB: loop body
LE: loop exit
PB: predicated region body
PF: predicated region fallthrough
CT: control target
= control target key end

     0   :  { %s3573_s12 = smov 0   ;;  %s3575_s13 = smov 0   ;;  %s4489_s0 = inlined_call_operand.vmem [shape: bf16[8,1024], index: 0, kind: input, shape index: {}]   ;;  %s4490_s1 = inlined_call_operand.vmem [shape: bf16[1024,4608], index: 1, kind: input, shape index: {}]   ;;  %s4491_s2 = inlined_call_operand.vmem [shape: f32[1,4608], index: 2, kind: input, shape index: {}]   ;;  %s4492_s3 = inlined_call_operand.vmem [shape: f32[8,4608], index: 3, kind: output, shape index: {}]  }
   0x1   :  { %s3577_s14 = smov 0   ;;  %s3579_s15 = smov 0  }
   0x2   :  { %s3581_s16 = smov 0  }
   0x3 LB: > { %s22_s17 = sadd.s32 1, %s3547_s15  ;;  %p65_p1 = scmp.ne.s32.totalorder %s3539_s13, %s3535_s12  ;;  %s3551_s16 = sphi %s3581_s16, %s13_s16   ;;  %s3547_s15 = sphi %s3579_s15, %s4496_s15   ;;  %s3543_s14 = sphi %s3577_s14, %s4495_s14   ;;  %s3539_s13 = sphi %s3575_s13, %s4494_s13   ;;  %s3535_s12 = sphi %s3573_s12, %s4493_s12  }
   0x4   : > { %p23_p0 = scmp.ge.s32.totalorder %s22_s17, 9  ;;  %p66_p2 = scmp.eq.s32.totalorder %s3551_s16, 0 }
   0x5   : > { %s58_s19 = sadd.s32 1, %s3539_s13  ;;  %p2805_p5 = scmp.ge.s32.totalorder %s3551_s16, 9 }
   0x6   : > { %s4498_s17 = smov (%p23_p0, %s22_s17), 0  ;;  %p67_p3 = por %p66_p2, %p65_p1 }
   0x7   : > { %s55_s18 = ssub.s32 %s3547_s15, %s4498_s17  ;;  %153 = sbr.rel (%p2805_p5) target bundleno = 144 (0x90), region = 20 }
   0x8   : > { %p56_p4 = scmp.eq.s32.totalorder %s55_s18, 0 }
   0xa   : > { %s3608_s20 = scalar_select %p56_p4, %s3539_s13, %s58_s19  }
   0xc   : > { %156 = sbr.rel (!%p67_p3) target bundleno = 144 (0x90), region = 24  ;;  %s158_s21 = sand.u32 (%p67_p3), 1, %s3539_s13  }
   0xd   : > { %s3080_s22 = sshll.u32 (%p67_p3), %s3547_s15, 4  ;;  %s2806_s23 = sshll.u32 (%p67_p3), %s158_s21, 11 }
   0xe   : > { %s3616_s26 = scalar_lea.vmem (%p67_p3), %s4490_s1, %s3080_s22  ;;  %s3621_s27 = scalar_lea.vmem (%p67_p3), [#allocation2], %s2806_s23 }
   0xf   : > { %v176_v0 = vld [vmem:[%s3616_s26] sm:$0xff] (%p67_p3)  ;;  %v178_v1 = vld [vmem:[%s3616_s26 + $0x8] sm:$0xff] (%p67_p3)  ;;  %v180_v2 = vld [vmem:[%s3616_s26 + $0x90] sm:$0xff] (%p67_p3) }
  0x10   : > { %177 = vst [vmem:[%s3621_s27] sm:$0xff] (%p67_p3), %v176_v0  ;;  %179 = vst [vmem:[%s3621_s27 + $0x8] sm:$0xff] (%p67_p3), %v178_v1  ;;  %v182_v3 = vld [vmem:[%s3616_s26 + $0x98] sm:$0xff] (%p67_p3)  ;;  %v184_v4 = vld [vmem:[%s3616_s26 + $0x120] sm:$0xff] (%p67_p3) }
  0x11   : > { %181 = vst [vmem:[%s3621_s27 + $0x10] sm:$0xff] %v180_v2  ;;  %v186_v5 = vld [vmem:[%s3616_s26 + $0x128] sm:$0xff]  ;;  %183 = vst [vmem:[%s3621_s27 + $0x18] sm:$0xff] %v182_v3  ;;  %v188_v6 = vld [vmem:[%s3616_s26 + $0x1b0] sm:$0xff] }
  0x12   : > { %185 = vst [vmem:[%s3621_s27 + $0x20] sm:$0xff] %v184_v4  ;;  %187 = vst [vmem:[%s3621_s27 + $0x28] sm:$0xff] %v186_v5  ;;  %v190_v7 = vld [vmem:[%s3616_s26 + $0x1b8] sm:$0xff]  ;;  %v192_v8 = vld [vmem:[%s3616_s26 + $0x240] sm:$0xff] }
  0x13   : > { %189 = vst [vmem:[%s3621_s27 + $0x30] sm:$0xff] %v188_v6  ;;  %191 = vst [vmem:[%s3621_s27 + $0x38] sm:$0xff] %v190_v7  ;;  %v194_v9 = vld [vmem:[%s3616_s26 + $0x248] sm:$0xff]  ;;  %v196_v10 = vld [vmem:[%s3616_s26 + $0x2d0] sm:$0xff] }
  0x14   : > { %193 = vst [vmem:[%s3621_s27 + $0x40] sm:$0xff] %v192_v8  ;;  %v198_v11 = vld [vmem:[%s3616_s26 + $0x2d8] sm:$0xff]  ;;  %195 = vst [vmem:[%s3621_s27 + $0x48] sm:$0xff] %v194_v9  ;;  %v200_v12 = vld [vmem:[%s3616_s26 + $0x360] sm:$0xff] }
  0x15   : > { %197 = vst [vmem:[%s3621_s27 + $0x50] sm:$0xff] %v196_v10  ;;  %199 = vst [vmem:[%s3621_s27 + $0x58] sm:$0xff] %v198_v11  ;;  %v202_v13 = vld [vmem:[%s3616_s26 + $0x368] sm:$0xff]  ;;  %v204_v14 = vld [vmem:[%s3616_s26 + $0x3f0] sm:$0xff] }
  0x16   : > { %201 = vst [vmem:[%s3621_s27 + $0x60] sm:$0xff] %v200_v12  ;;  %203 = vst [vmem:[%s3621_s27 + $0x68] sm:$0xff] %v202_v13  ;;  %v206_v15 = vld [vmem:[%s3616_s26 + $0x3f8] sm:$0xff]  ;;  %v208_v16 = vld [vmem:[%s3616_s26 + $0x480] sm:$0xff] }
  0x17   : > { %205 = vst [vmem:[%s3621_s27 + $0x70] sm:$0xff] %v204_v14  ;;  %v210_v17 = vld [vmem:[%s3616_s26 + $0x488] sm:$0xff]  ;;  %207 = vst [vmem:[%s3621_s27 + $0x78] sm:$0xff] %v206_v15  ;;  %v212_v18 = vld [vmem:[%s3616_s26 + $0x510] sm:$0xff] }
  0x18   : > { %209 = vst [vmem:[%s3621_s27 + $0x80] sm:$0xff] %v208_v16  ;;  %211 = vst [vmem:[%s3621_s27 + $0x88] sm:$0xff] %v210_v17  ;;  %v214_v19 = vld [vmem:[%s3616_s26 + $0x518] sm:$0xff]  ;;  %v216_v20 = vld [vmem:[%s3616_s26 + $0x5a0] sm:$0xff] }
  0x19   : > { %213 = vst [vmem:[%s3621_s27 + $0x90] sm:$0xff] %v212_v18  ;;  %215 = vst [vmem:[%s3621_s27 + $0x98] sm:$0xff] %v214_v19  ;;  %v218_v21 = vld [vmem:[%s3616_s26 + $0x5a8] sm:$0xff]  ;;  %v220_v22 = vld [vmem:[%s3616_s26 + $0x630] sm:$0xff] }
  0x1a   : > { %217 = vst [vmem:[%s3621_s27 + $0xa0] sm:$0xff] %v216_v20  ;;  %v222_v23 = vld [vmem:[%s3616_s26 + $0x638] sm:$0xff]  ;;  %219 = vst [vmem:[%s3621_s27 + $0xa8] sm:$0xff] %v218_v21  ;;  %v224_v24 = vld [vmem:[%s3616_s26 + $0x6c0] sm:$0xff] }
  0x1b   : > { %221 = vst [vmem:[%s3621_s27 + $0xb0] sm:$0xff] %v220_v22  ;;  %223 = vst [vmem:[%s3621_s27 + $0xb8] sm:$0xff] %v222_v23  ;;  %v226_v25 = vld [vmem:[%s3616_s26 + $0x6c8] sm:$0xff]  ;;  %v228_v26 = vld [vmem:[%s3616_s26 + $0x750] sm:$0xff] }
  0x1c   : > { %225 = vst [vmem:[%s3621_s27 + $0xc0] sm:$0xff] %v224_v24  ;;  %227 = vst [vmem:[%s3621_s27 + $0xc8] sm:$0xff] %v226_v25  ;;  %v230_v27 = vld [vmem:[%s3616_s26 + $0x758] sm:$0xff]  ;;  %v232_v28 = vld [vmem:[%s3616_s26 + $0x7e0] sm:$0xff] }
  0x1d   : > { %229 = vst [vmem:[%s3621_s27 + $0xd0] sm:$0xff] %v228_v26  ;;  %v234_v29 = vld [vmem:[%s3616_s26 + $0x7e8] sm:$0xff]  ;;  %231 = vst [vmem:[%s3621_s27 + $0xd8] sm:$0xff] %v230_v27  ;;  %v236_v30 = vld [vmem:[%s3616_s26 + $0x870] sm:$0xff] }
  0x1e   : > { %233 = vst [vmem:[%s3621_s27 + $0xe0] sm:$0xff] %v232_v28  ;;  %235 = vst [vmem:[%s3621_s27 + $0xe8] sm:$0xff] %v234_v29  ;;  %v238_v31 = vld [vmem:[%s3616_s26 + $0x878] sm:$0xff]  ;;  %v240_v32 = vld [vmem:[%s3616_s26 + $0x900] sm:$0xff] }
  0x1f   : > { %237 = vst [vmem:[%s3621_s27 + $0xf0] sm:$0xff] %v236_v30  ;;  %239 = vst [vmem:[%s3621_s27 + $0xf8] sm:$0xff] %v238_v31  ;;  %v242_v33 = vld [vmem:[%s3616_s26 + $0x908] sm:$0xff]  ;;  %v244_v34 = vld [vmem:[%s3616_s26 + $0x990] sm:$0xff] }
  0x20   : > { %241 = vst [vmem:[%s3621_s27 + $0x100] sm:$0xff] %v240_v32  ;;  %v246_v35 = vld [vmem:[%s3616_s26 + $0x998] sm:$0xff]  ;;  %243 = vst [vmem:[%s3621_s27 + $0x108] sm:$0xff] %v242_v33  ;;  %v248_v36 = vld [vmem:[%s3616_s26 + $0xa20] sm:$0xff] }
  0x21   : > { %245 = vst [vmem:[%s3621_s27 + $0x110] sm:$0xff] %v244_v34  ;;  %247 = vst [vmem:[%s3621_s27 + $0x118] sm:$0xff] %v246_v35  ;;  %v250_v37 = vld [vmem:[%s3616_s26 + $0xa28] sm:$0xff]  ;;  %v252_v38 = vld [vmem:[%s3616_s26 + $0xab0] sm:$0xff] }
  0x22   : > { %249 = vst [vmem:[%s3621_s27 + $0x120] sm:$0xff] %v248_v36  ;;  %251 = vst [vmem:[%s3621_s27 + $0x128] sm:$0xff] %v250_v37  ;;  %v254_v39 = vld [vmem:[%s3616_s26 + $0xab8] sm:$0xff]  ;;  %v256_v40 = vld [vmem:[%s3616_s26 + $0xb40] sm:$0xff] }
  0x23   : > { %253 = vst [vmem:[%s3621_s27 + $0x130] sm:$0xff] %v252_v38  ;;  %v258_v41 = vld [vmem:[%s3616_s26 + $0xb48] sm:$0xff]  ;;  %255 = vst [vmem:[%s3621_s27 + $0x138] sm:$0xff] %v254_v39  ;;  %v260_v42 = vld [vmem:[%s3616_s26 + $0xbd0] sm:$0xff] }
  0x24   : > { %257 = vst [vmem:[%s3621_s27 + $0x140] sm:$0xff] %v256_v40  ;;  %259 = vst [vmem:[%s3621_s27 + $0x148] sm:$0xff] %v258_v41  ;;  %v262_v43 = vld [vmem:[%s3616_s26 + $0xbd8] sm:$0xff]  ;;  %v264_v44 = vld [vmem:[%s3616_s26 + $0xc60] sm:$0xff] }
  0x25   : > { %261 = vst [vmem:[%s3621_s27 + $0x150] sm:$0xff] %v260_v42  ;;  %263 = vst [vmem:[%s3621_s27 + $0x158] sm:$0xff] %v262_v43  ;;  %v266_v45 = vld [vmem:[%s3616_s26 + $0xc68] sm:$0xff]  ;;  %v268_v46 = vld [vmem:[%s3616_s26 + $0xcf0] sm:$0xff] }
  0x26   : > { %265 = vst [vmem:[%s3621_s27 + $0x160] sm:$0xff] %v264_v44  ;;  %v270_v47 = vld [vmem:[%s3616_s26 + $0xcf8] sm:$0xff]  ;;  %267 = vst [vmem:[%s3621_s27 + $0x168] sm:$0xff] %v266_v45  ;;  %v272_v48 = vld [vmem:[%s3616_s26 + $0xd80] sm:$0xff] }
  0x27   : > { %269 = vst [vmem:[%s3621_s27 + $0x170] sm:$0xff] %v268_v46  ;;  %271 = vst [vmem:[%s3621_s27 + $0x178] sm:$0xff] %v270_v47  ;;  %v274_v49 = vld [vmem:[%s3616_s26 + $0xd88] sm:$0xff]  ;;  %v276_v50 = vld [vmem:[%s3616_s26 + $0xe10] sm:$0xff] }
  0x28   : > { %273 = vst [vmem:[%s3621_s27 + $0x180] sm:$0xff] %v272_v48  ;;  %275 = vst [vmem:[%s3621_s27 + $0x188] sm:$0xff] %v274_v49  ;;  %v278_v51 = vld [vmem:[%s3616_s26 + $0xe18] sm:$0xff]  ;;  %v280_v52 = vld [vmem:[%s3616_s26 + $0xea0] sm:$0xff] }
  0x29   : > { %277 = vst [vmem:[%s3621_s27 + $0x190] sm:$0xff] %v276_v50  ;;  %v282_v53 = vld [vmem:[%s3616_s26 + $0xea8] sm:$0xff]  ;;  %279 = vst [vmem:[%s3621_s27 + $0x198] sm:$0xff] %v278_v51  ;;  %v284_v54 = vld [vmem:[%s3616_s26 + $0xf30] sm:$0xff] }
  0x2a   : > { %281 = vst [vmem:[%s3621_s27 + $0x1a0] sm:$0xff] %v280_v52  ;;  %283 = vst [vmem:[%s3621_s27 + $0x1a8] sm:$0xff] %v282_v53  ;;  %v286_v55 = vld [vmem:[%s3616_s26 + $0xf38] sm:$0xff]  ;;  %v288_v56 = vld [vmem:[%s3616_s26 + $0xfc0] sm:$0xff] }
  0x2b   : > { %285 = vst [vmem:[%s3621_s27 + $0x1b0] sm:$0xff] %v284_v54  ;;  %287 = vst [vmem:[%s3621_s27 + $0x1b8] sm:$0xff] %v286_v55  ;;  %v290_v57 = vld [vmem:[%s3616_s26 + $0xfc8] sm:$0xff]  ;;  %v292_v58 = vld [vmem:[%s3616_s26 + $0x1050] sm:$0xff] }
  0x2c   : > { %289 = vst [vmem:[%s3621_s27 + $0x1c0] sm:$0xff] %v288_v56  ;;  %v294_v59 = vld [vmem:[%s3616_s26 + $0x1058] sm:$0xff]  ;;  %291 = vst [vmem:[%s3621_s27 + $0x1c8] sm:$0xff] %v290_v57  ;;  %v296_v60 = vld [vmem:[%s3616_s26 + $0x10e0] sm:$0xff] }
  0x2d   : > { %293 = vst [vmem:[%s3621_s27 + $0x1d0] sm:$0xff] %v292_v58  ;;  %295 = vst [vmem:[%s3621_s27 + $0x1d8] sm:$0xff] %v294_v59  ;;  %v298_v61 = vld [vmem:[%s3616_s26 + $0x10e8] sm:$0xff]  ;;  %v300_v62 = vld [vmem:[%s3616_s26 + $0x1170] sm:$0xff] }
  0x2e   : > { %297 = vst [vmem:[%s3621_s27 + $0x1e0] sm:$0xff] %v296_v60  ;;  %299 = vst [vmem:[%s3621_s27 + $0x1e8] sm:$0xff] %v298_v61  ;;  %v302_v63 = vld [vmem:[%s3616_s26 + $0x1178] sm:$0xff]  ;;  %v304_v0 = vld [vmem:[%s3616_s26 + $0x1200] sm:$0xff] }
  0x2f   : > { %301 = vst [vmem:[%s3621_s27 + $0x1f0] sm:$0xff] %v300_v62  ;;  %v306_v1 = vld [vmem:[%s3616_s26 + $0x1208] sm:$0xff]  ;;  %303 = vst [vmem:[%s3621_s27 + $0x1f8] sm:$0xff] %v302_v63  ;;  %v308_v2 = vld [vmem:[%s3616_s26 + $0x1290] sm:$0xff] }
  0x30   : > { %305 = vst [vmem:[%s3621_s27 + $0x200] sm:$0xff] %v304_v0  ;;  %307 = vst [vmem:[%s3621_s27 + $0x208] sm:$0xff] %v306_v1  ;;  %v310_v3 = vld [vmem:[%s3616_s26 + $0x1298] sm:$0xff]  ;;  %v312_v4 = vld [vmem:[%s3616_s26 + $0x1320] sm:$0xff] }
  0x31   : > { %309 = vst [vmem:[%s3621_s27 + $0x210] sm:$0xff] %v308_v2  ;;  %311 = vst [vmem:[%s3621_s27 + $0x218] sm:$0xff] %v310_v3  ;;  %v314_v5 = vld [vmem:[%s3616_s26 + $0x1328] sm:$0xff]  ;;  %v316_v6 = vld [vmem:[%s3616_s26 + $0x13b0] sm:$0xff] }
  0x32   : > { %313 = vst [vmem:[%s3621_s27 + $0x220] sm:$0xff] %v312_v4  ;;  %v318_v7 = vld [vmem:[%s3616_s26 + $0x13b8] sm:$0xff]  ;;  %315 = vst [vmem:[%s3621_s27 + $0x228] sm:$0xff] %v314_v5  ;;  %v320_v8 = vld [vmem:[%s3616_s26 + $0x1440] sm:$0xff] }
  0x33   : > { %317 = vst [vmem:[%s3621_s27 + $0x230] sm:$0xff] %v316_v6  ;;  %319 = vst [vmem:[%s3621_s27 + $0x238] sm:$0xff] %v318_v7  ;;  %v322_v9 = vld [vmem:[%s3616_s26 + $0x1448] sm:$0xff]  ;;  %v324_v10 = vld [vmem:[%s3616_s26 + $0x14d0] sm:$0xff] }
  0x34   : > { %321 = vst [vmem:[%s3621_s27 + $0x240] sm:$0xff] %v320_v8  ;;  %323 = vst [vmem:[%s3621_s27 + $0x248] sm:$0xff] %v322_v9  ;;  %v326_v11 = vld [vmem:[%s3616_s26 + $0x14d8] sm:$0xff]  ;;  %v328_v12 = vld [vmem:[%s3616_s26 + $0x1560] sm:$0xff] }
  0x35   : > { %325 = vst [vmem:[%s3621_s27 + $0x250] sm:$0xff] %v324_v10  ;;  %v330_v13 = vld [vmem:[%s3616_s26 + $0x1568] sm:$0xff]  ;;  %327 = vst [vmem:[%s3621_s27 + $0x258] sm:$0xff] %v326_v11  ;;  %v332_v14 = vld [vmem:[%s3616_s26 + $0x15f0] sm:$0xff] }
  0x36   : > { %329 = vst [vmem:[%s3621_s27 + $0x260] sm:$0xff] %v328_v12  ;;  %331 = vst [vmem:[%s3621_s27 + $0x268] sm:$0xff] %v330_v13  ;;  %v334_v15 = vld [vmem:[%s3616_s26 + $0x15f8] sm:$0xff]  ;;  %v336_v16 = vld [vmem:[%s3616_s26 + $0x1680] sm:$0xff] }
  0x37   : > { %333 = vst [vmem:[%s3621_s27 + $0x270] sm:$0xff] %v332_v14  ;;  %335 = vst [vmem:[%s3621_s27 + $0x278] sm:$0xff] %v334_v15  ;;  %v338_v17 = vld [vmem:[%s3616_s26 + $0x1688] sm:$0xff]  ;;  %v340_v18 = vld [vmem:[%s3616_s26 + $0x1710] sm:$0xff] }
  0x38   : > { %337 = vst [vmem:[%s3621_s27 + $0x280] sm:$0xff] %v336_v16  ;;  %v342_v19 = vld [vmem:[%s3616_s26 + $0x1718] sm:$0xff]  ;;  %339 = vst [vmem:[%s3621_s27 + $0x288] sm:$0xff] %v338_v17  ;;  %v344_v20 = vld [vmem:[%s3616_s26 + $0x17a0] sm:$0xff] }
  0x39   : > { %341 = vst [vmem:[%s3621_s27 + $0x290] sm:$0xff] %v340_v18  ;;  %343 = vst [vmem:[%s3621_s27 + $0x298] sm:$0xff] %v342_v19  ;;  %v346_v21 = vld [vmem:[%s3616_s26 + $0x17a8] sm:$0xff]  ;;  %v348_v22 = vld [vmem:[%s3616_s26 + $0x1830] sm:$0xff] }
  0x3a   : > { %345 = vst [vmem:[%s3621_s27 + $0x2a0] sm:$0xff] %v344_v20  ;;  %347 = vst [vmem:[%s3621_s27 + $0x2a8] sm:$0xff] %v346_v21  ;;  %v350_v23 = vld [vmem:[%s3616_s26 + $0x1838] sm:$0xff]  ;;  %v352_v24 = vld [vmem:[%s3616_s26 + $0x18c0] sm:$0xff] }
  0x3b   : > { %349 = vst [vmem:[%s3621_s27 + $0x2b0] sm:$0xff] %v348_v22  ;;  %v354_v25 = vld [vmem:[%s3616_s26 + $0x18c8] sm:$0xff]  ;;  %351 = vst [vmem:[%s3621_s27 + $0x2b8] sm:$0xff] %v350_v23  ;;  %v356_v26 = vld [vmem:[%s3616_s26 + $0x1950] sm:$0xff] }
  0x3c   : > { %353 = vst [vmem:[%s3621_s27 + $0x2c0] sm:$0xff] %v352_v24  ;;  %355 = vst [vmem:[%s3621_s27 + $0x2c8] sm:$0xff] %v354_v25  ;;  %v358_v27 = vld [vmem:[%s3616_s26 + $0x1958] sm:$0xff]  ;;  %v360_v28 = vld [vmem:[%s3616_s26 + $0x19e0] sm:$0xff] }
  0x3d   : > { %357 = vst [vmem:[%s3621_s27 + $0x2d0] sm:$0xff] %v356_v26  ;;  %359 = vst [vmem:[%s3621_s27 + $0x2d8] sm:$0xff] %v358_v27  ;;  %v362_v29 = vld [vmem:[%s3616_s26 + $0x19e8] sm:$0xff]  ;;  %v364_v30 = vld [vmem:[%s3616_s26 + $0x1a70] sm:$0xff] }
  0x3e   : > { %361 = vst [vmem:[%s3621_s27 + $0x2e0] sm:$0xff] %v360_v28  ;;  %v366_v31 = vld [vmem:[%s3616_s26 + $0x1a78] sm:$0xff]  ;;  %363 = vst [vmem:[%s3621_s27 + $0x2e8] sm:$0xff] %v362_v29  ;;  %v368_v32 = vld [vmem:[%s3616_s26 + $0x1b00] sm:$0xff] }
  0x3f   : > { %365 = vst [vmem:[%s3621_s27 + $0x2f0] sm:$0xff] %v364_v30  ;;  %367 = vst [vmem:[%s3621_s27 + $0x2f8] sm:$0xff] %v366_v31  ;;  %v370_v33 = vld [vmem:[%s3616_s26 + $0x1b08] sm:$0xff]  ;;  %v372_v34 = vld [vmem:[%s3616_s26 + $0x1b90] sm:$0xff] }
  0x40   : > { %369 = vst [vmem:[%s3621_s27 + $0x300] sm:$0xff] %v368_v32  ;;  %371 = vst [vmem:[%s3621_s27 + $0x308] sm:$0xff] %v370_v33  ;;  %v374_v35 = vld [vmem:[%s3616_s26 + $0x1b98] sm:$0xff]  ;;  %v376_v36 = vld [vmem:[%s3616_s26 + $0x1c20] sm:$0xff] }
  0x41   : > { %373 = vst [vmem:[%s3621_s27 + $0x310] sm:$0xff] %v372_v34  ;;  %v378_v37 = vld [vmem:[%s3616_s26 + $0x1c28] sm:$0xff]  ;;  %375 = vst [vmem:[%s3621_s27 + $0x318] sm:$0xff] %v374_v35  ;;  %v380_v38 = vld [vmem:[%s3616_s26 + $0x1cb0] sm:$0xff] }
  0x42   : > { %377 = vst [vmem:[%s3621_s27 + $0x320] sm:$0xff] %v376_v36  ;;  %379 = vst [vmem:[%s3621_s27 + $0x328] sm:$0xff] %v378_v37  ;;  %v382_v39 = vld [vmem:[%s3616_s26 + $0x1cb8] sm:$0xff]  ;;  %v384_v40 = vld [vmem:[%s3616_s26 + $0x1d40] sm:$0xff] }
  0x43   : > { %381 = vst [vmem:[%s3621_s27 + $0x330] sm:$0xff] %v380_v38  ;;  %383 = vst [vmem:[%s3621_s27 + $0x338] sm:$0xff] %v382_v39  ;;  %v386_v41 = vld [vmem:[%s3616_s26 + $0x1d48] sm:$0xff]  ;;  %v388_v42 = vld [vmem:[%s3616_s26 + $0x1dd0] sm:$0xff] }
  0x44   : > { %385 = vst [vmem:[%s3621_s27 + $0x340] sm:$0xff] %v384_v40  ;;  %v390_v43 = vld [vmem:[%s3616_s26 + $0x1dd8] sm:$0xff]  ;;  %387 = vst [vmem:[%s3621_s27 + $0x348] sm:$0xff] %v386_v41  ;;  %v392_v44 = vld [vmem:[%s3616_s26 + $0x1e60] sm:$0xff] }
  0x45   : > { %389 = vst [vmem:[%s3621_s27 + $0x350] sm:$0xff] %v388_v42  ;;  %391 = vst [vmem:[%s3621_s27 + $0x358] sm:$0xff] %v390_v43  ;;  %v394_v45 = vld [vmem:[%s3616_s26 + $0x1e68] sm:$0xff]  ;;  %v396_v46 = vld [vmem:[%s3616_s26 + $0x1ef0] sm:$0xff] }
  0x46   : > { %393 = vst [vmem:[%s3621_s27 + $0x360] sm:$0xff] %v392_v44  ;;  %395 = vst [vmem:[%s3621_s27 + $0x368] sm:$0xff] %v394_v45  ;;  %v398_v47 = vld [vmem:[%s3616_s26 + $0x1ef8] sm:$0xff]  ;;  %v400_v48 = vld [vmem:[%s3616_s26 + $0x1f80] sm:$0xff] }
  0x47   : > { %397 = vst [vmem:[%s3621_s27 + $0x370] sm:$0xff] %v396_v46  ;;  %v402_v49 = vld [vmem:[%s3616_s26 + $0x1f88] sm:$0xff]  ;;  %399 = vst [vmem:[%s3621_s27 + $0x378] sm:$0xff] %v398_v47  ;;  %v404_v50 = vld [vmem:[%s3616_s26 + $0x2010] sm:$0xff] }
  0x48   : > { %401 = vst [vmem:[%s3621_s27 + $0x380] sm:$0xff] %v400_v48  ;;  %403 = vst [vmem:[%s3621_s27 + $0x388] sm:$0xff] %v402_v49  ;;  %v406_v51 = vld [vmem:[%s3616_s26 + $0x2018] sm:$0xff]  ;;  %v408_v52 = vld [vmem:[%s3616_s26 + $0x20a0] sm:$0xff] }
  0x49   : > { %405 = vst [vmem:[%s3621_s27 + $0x390] sm:$0xff] %v404_v50  ;;  %407 = vst [vmem:[%s3621_s27 + $0x398] sm:$0xff] %v406_v51  ;;  %v410_v53 = vld [vmem:[%s3616_s26 + $0x20a8] sm:$0xff]  ;;  %v412_v54 = vld [vmem:[%s3616_s26 + $0x2130] sm:$0xff] }
  0x4a   : > { %409 = vst [vmem:[%s3621_s27 + $0x3a0] sm:$0xff] %v408_v52  ;;  %v414_v55 = vld [vmem:[%s3616_s26 + $0x2138] sm:$0xff]  ;;  %411 = vst [vmem:[%s3621_s27 + $0x3a8] sm:$0xff] %v410_v53  ;;  %v416_v56 = vld [vmem:[%s3616_s26 + $0x21c0] sm:$0xff] }
  0x4b   : > { %413 = vst [vmem:[%s3621_s27 + $0x3b0] sm:$0xff] %v412_v54  ;;  %415 = vst [vmem:[%s3621_s27 + $0x3b8] sm:$0xff] %v414_v55  ;;  %v418_v57 = vld [vmem:[%s3616_s26 + $0x21c8] sm:$0xff]  ;;  %v420_v58 = vld [vmem:[%s3616_s26 + $0x2250] sm:$0xff] }
  0x4c   : > { %417 = vst [vmem:[%s3621_s27 + $0x3c0] sm:$0xff] %v416_v56  ;;  %419 = vst [vmem:[%s3621_s27 + $0x3c8] sm:$0xff] %v418_v57  ;;  %v422_v59 = vld [vmem:[%s3616_s26 + $0x2258] sm:$0xff]  ;;  %v424_v60 = vld [vmem:[%s3616_s26 + $0x22e0] sm:$0xff] }
  0x4d   : > { %421 = vst [vmem:[%s3621_s27 + $0x3d0] sm:$0xff] %v420_v58  ;;  %v426_v61 = vld [vmem:[%s3616_s26 + $0x22e8] sm:$0xff]  ;;  %423 = vst [vmem:[%s3621_s27 + $0x3d8] sm:$0xff] %v422_v59  ;;  %v428_v62 = vld [vmem:[%s3616_s26 + $0x2370] sm:$0xff] }
  0x4e   : > { %425 = vst [vmem:[%s3621_s27 + $0x3e0] sm:$0xff] %v424_v60  ;;  %427 = vst [vmem:[%s3621_s27 + $0x3e8] sm:$0xff] %v426_v61  ;;  %v430_v63 = vld [vmem:[%s3616_s26 + $0x2378] sm:$0xff]  ;;  %v432_v0 = vld [vmem:[%s3616_s26 + $0x2400] sm:$0xff] }
  0x4f   : > { %429 = vst [vmem:[%s3621_s27 + $0x3f0] sm:$0xff] %v428_v62  ;;  %431 = vst [vmem:[%s3621_s27 + $0x3f8] sm:$0xff] %v430_v63  ;;  %v434_v1 = vld [vmem:[%s3616_s26 + $0x2408] sm:$0xff]  ;;  %v436_v2 = vld [vmem:[%s3616_s26 + $0x2490] sm:$0xff] }
  0x50   : > { %433 = vst [vmem:[%s3621_s27 + $0x400] sm:$0xff] %v432_v0  ;;  %v438_v3 = vld [vmem:[%s3616_s26 + $0x2498] sm:$0xff]  ;;  %435 = vst [vmem:[%s3621_s27 + $0x408] sm:$0xff] %v434_v1  ;;  %v440_v4 = vld [vmem:[%s3616_s26 + $0x2520] sm:$0xff] }
  0x51   : > { %437 = vst [vmem:[%s3621_s27 + $0x410] sm:$0xff] %v436_v2  ;;  %439 = vst [vmem:[%s3621_s27 + $0x418] sm:$0xff] %v438_v3  ;;  %v442_v5 = vld [vmem:[%s3616_s26 + $0x2528] sm:$0xff]  ;;  %v444_v6 = vld [vmem:[%s3616_s26 + $0x25b0] sm:$0xff] }
  0x52   : > { %441 = vst [vmem:[%s3621_s27 + $0x420] sm:$0xff] %v440_v4  ;;  %443 = vst [vmem:[%s3621_s27 + $0x428] sm:$0xff] %v442_v5  ;;  %v446_v7 = vld [vmem:[%s3616_s26 + $0x25b8] sm:$0xff]  ;;  %v448_v8 = vld [vmem:[%s3616_s26 + $0x2640] sm:$0xff] }
  0x53   : > { %445 = vst [vmem:[%s3621_s27 + $0x430] sm:$0xff] %v444_v6  ;;  %v450_v9 = vld [vmem:[%s3616_s26 + $0x2648] sm:$0xff]  ;;  %447 = vst [vmem:[%s3621_s27 + $0x438] sm:$0xff] %v446_v7  ;;  %v452_v10 = vld [vmem:[%s3616_s26 + $0x26d0] sm:$0xff] }
  0x54   : > { %449 = vst [vmem:[%s3621_s27 + $0x440] sm:$0xff] %v448_v8  ;;  %451 = vst [vmem:[%s3621_s27 + $0x448] sm:$0xff] %v450_v9  ;;  %v454_v11 = vld [vmem:[%s3616_s26 + $0x26d8] sm:$0xff]  ;;  %v456_v12 = vld [vmem:[%s3616_s26 + $0x2760] sm:$0xff] }
  0x55   : > { %453 = vst [vmem:[%s3621_s27 + $0x450] sm:$0xff] %v452_v10  ;;  %455 = vst [vmem:[%s3621_s27 + $0x458] sm:$0xff] %v454_v11  ;;  %v458_v13 = vld [vmem:[%s3616_s26 + $0x2768] sm:$0xff]  ;;  %v460_v14 = vld [vmem:[%s3616_s26 + $0x27f0] sm:$0xff] }
  0x56   : > { %457 = vst [vmem:[%s3621_s27 + $0x460] sm:$0xff] %v456_v12  ;;  %v462_v15 = vld [vmem:[%s3616_s26 + $0x27f8] sm:$0xff]  ;;  %459 = vst [vmem:[%s3621_s27 + $0x468] sm:$0xff] %v458_v13  ;;  %v464_v16 = vld [vmem:[%s3616_s26 + $0x2880] sm:$0xff] }
  0x57   : > { %461 = vst [vmem:[%s3621_s27 + $0x470] sm:$0xff] %v460_v14  ;;  %463 = vst [vmem:[%s3621_s27 + $0x478] sm:$0xff] %v462_v15  ;;  %v466_v17 = vld [vmem:[%s3616_s26 + $0x2888] sm:$0xff]  ;;  %v468_v18 = vld [vmem:[%s3616_s26 + $0x2910] sm:$0xff] }
  0x58   : > { %465 = vst [vmem:[%s3621_s27 + $0x480] sm:$0xff] %v464_v16  ;;  %467 = vst [vmem:[%s3621_s27 + $0x488] sm:$0xff] %v466_v17  ;;  %v470_v19 = vld [vmem:[%s3616_s26 + $0x2918] sm:$0xff]  ;;  %v472_v20 = vld [vmem:[%s3616_s26 + $0x29a0] sm:$0xff] }
  0x59   : > { %469 = vst [vmem:[%s3621_s27 + $0x490] sm:$0xff] %v468_v18  ;;  %v474_v21 = vld [vmem:[%s3616_s26 + $0x29a8] sm:$0xff]  ;;  %471 = vst [vmem:[%s3621_s27 + $0x498] sm:$0xff] %v470_v19  ;;  %v476_v22 = vld [vmem:[%s3616_s26 + $0x2a30] sm:$0xff] }
  0x5a   : > { %473 = vst [vmem:[%s3621_s27 + $0x4a0] sm:$0xff] %v472_v20  ;;  %475 = vst [vmem:[%s3621_s27 + $0x4a8] sm:$0xff] %v474_v21  ;;  %v478_v23 = vld [vmem:[%s3616_s26 + $0x2a38] sm:$0xff]  ;;  %v480_v24 = vld [vmem:[%s3616_s26 + $0x2ac0] sm:$0xff] }
  0x5b   : > { %477 = vst [vmem:[%s3621_s27 + $0x4b0] sm:$0xff] %v476_v22  ;;  %479 = vst [vmem:[%s3621_s27 + $0x4b8] sm:$0xff] %v478_v23  ;;  %v482_v25 = vld [vmem:[%s3616_s26 + $0x2ac8] sm:$0xff]  ;;  %v484_v26 = vld [vmem:[%s3616_s26 + $0x2b50] sm:$0xff] }
  0x5c   : > { %481 = vst [vmem:[%s3621_s27 + $0x4c0] sm:$0xff] %v480_v24  ;;  %v486_v27 = vld [vmem:[%s3616_s26 + $0x2b58] sm:$0xff]  ;;  %483 = vst [vmem:[%s3621_s27 + $0x4c8] sm:$0xff] %v482_v25  ;;  %v488_v28 = vld [vmem:[%s3616_s26 + $0x2be0] sm:$0xff] }
  0x5d   : > { %485 = vst [vmem:[%s3621_s27 + $0x4d0] sm:$0xff] %v484_v26  ;;  %487 = vst [vmem:[%s3621_s27 + $0x4d8] sm:$0xff] %v486_v27  ;;  %v490_v29 = vld [vmem:[%s3616_s26 + $0x2be8] sm:$0xff]  ;;  %v492_v30 = vld [vmem:[%s3616_s26 + $0x2c70] sm:$0xff] }
  0x5e   : > { %489 = vst [vmem:[%s3621_s27 + $0x4e0] sm:$0xff] %v488_v28  ;;  %491 = vst [vmem:[%s3621_s27 + $0x4e8] sm:$0xff] %v490_v29  ;;  %v494_v31 = vld [vmem:[%s3616_s26 + $0x2c78] sm:$0xff]  ;;  %v496_v32 = vld [vmem:[%s3616_s26 + $0x2d00] sm:$0xff] }
  0x5f   : > { %493 = vst [vmem:[%s3621_s27 + $0x4f0] sm:$0xff] %v492_v30  ;;  %v498_v33 = vld [vmem:[%s3616_s26 + $0x2d08] sm:$0xff]  ;;  %495 = vst [vmem:[%s3621_s27 + $0x4f8] sm:$0xff] %v494_v31  ;;  %v500_v34 = vld [vmem:[%s3616_s26 + $0x2d90] sm:$0xff] }
  0x60   : > { %497 = vst [vmem:[%s3621_s27 + $0x500] sm:$0xff] %v496_v32  ;;  %499 = vst [vmem:[%s3621_s27 + $0x508] sm:$0xff] %v498_v33  ;;  %v502_v35 = vld [vmem:[%s3616_s26 + $0x2d98] sm:$0xff]  ;;  %v504_v36 = vld [vmem:[%s3616_s26 + $0x2e20] sm:$0xff] }
  0x61   : > { %501 = vst [vmem:[%s3621_s27 + $0x510] sm:$0xff] %v500_v34  ;;  %503 = vst [vmem:[%s3621_s27 + $0x518] sm:$0xff] %v502_v35  ;;  %v506_v37 = vld [vmem:[%s3616_s26 + $0x2e28] sm:$0xff]  ;;  %v508_v38 = vld [vmem:[%s3616_s26 + $0x2eb0] sm:$0xff] }
  0x62   : > { %505 = vst [vmem:[%s3621_s27 + $0x520] sm:$0xff] %v504_v36  ;;  %v510_v39 = vld [vmem:[%s3616_s26 + $0x2eb8] sm:$0xff]  ;;  %507 = vst [vmem:[%s3621_s27 + $0x528] sm:$0xff] %v506_v37  ;;  %v512_v40 = vld [vmem:[%s3616_s26 + $0x2f40] sm:$0xff] }
  0x63   : > { %509 = vst [vmem:[%s3621_s27 + $0x530] sm:$0xff] %v508_v38  ;;  %511 = vst [vmem:[%s3621_s27 + $0x538] sm:$0xff] %v510_v39  ;;  %v514_v41 = vld [vmem:[%s3616_s26 + $0x2f48] sm:$0xff]  ;;  %v516_v42 = vld [vmem:[%s3616_s26 + $0x2fd0] sm:$0xff] }
  0x64   : > { %513 = vst [vmem:[%s3621_s27 + $0x540] sm:$0xff] %v512_v40  ;;  %515 = vst [vmem:[%s3621_s27 + $0x548] sm:$0xff] %v514_v41  ;;  %v518_v43 = vld [vmem:[%s3616_s26 + $0x2fd8] sm:$0xff]  ;;  %v520_v44 = vld [vmem:[%s3616_s26 + $0x3060] sm:$0xff] }
  0x65   : > { %517 = vst [vmem:[%s3621_s27 + $0x550] sm:$0xff] %v516_v42  ;;  %v522_v45 = vld [vmem:[%s3616_s26 + $0x3068] sm:$0xff]  ;;  %519 = vst [vmem:[%s3621_s27 + $0x558] sm:$0xff] %v518_v43  ;;  %v524_v46 = vld [vmem:[%s3616_s26 + $0x30f0] sm:$0xff] }
  0x66   : > { %521 = vst [vmem:[%s3621_s27 + $0x560] sm:$0xff] %v520_v44  ;;  %523 = vst [vmem:[%s3621_s27 + $0x568] sm:$0xff] %v522_v45  ;;  %v526_v47 = vld [vmem:[%s3616_s26 + $0x30f8] sm:$0xff]  ;;  %v528_v48 = vld [vmem:[%s3616_s26 + $0x3180] sm:$0xff] }
  0x67   : > { %525 = vst [vmem:[%s3621_s27 + $0x570] sm:$0xff] %v524_v46  ;;  %527 = vst [vmem:[%s3621_s27 + $0x578] sm:$0xff] %v526_v47  ;;  %v530_v49 = vld [vmem:[%s3616_s26 + $0x3188] sm:$0xff]  ;;  %v532_v50 = vld [vmem:[%s3616_s26 + $0x3210] sm:$0xff] }
  0x68   : > { %529 = vst [vmem:[%s3621_s27 + $0x580] sm:$0xff] %v528_v48  ;;  %v534_v51 = vld [vmem:[%s3616_s26 + $0x3218] sm:$0xff]  ;;  %531 = vst [vmem:[%s3621_s27 + $0x588] sm:$0xff] %v530_v49  ;;  %v536_v52 = vld [vmem:[%s3616_s26 + $0x32a0] sm:$0xff] }
  0x69   : > { %533 = vst [vmem:[%s3621_s27 + $0x590] sm:$0xff] %v532_v50  ;;  %535 = vst [vmem:[%s3621_s27 + $0x598] sm:$0xff] %v534_v51  ;;  %v538_v53 = vld [vmem:[%s3616_s26 + $0x32a8] sm:$0xff]  ;;  %v540_v54 = vld [vmem:[%s3616_s26 + $0x3330] sm:$0xff] }
  0x6a   : > { %537 = vst [vmem:[%s3621_s27 + $0x5a0] sm:$0xff] %v536_v52  ;;  %539 = vst [vmem:[%s3621_s27 + $0x5a8] sm:$0xff] %v538_v53  ;;  %v542_v55 = vld [vmem:[%s3616_s26 + $0x3338] sm:$0xff]  ;;  %v544_v56 = vld [vmem:[%s3616_s26 + $0x33c0] sm:$0xff] }
  0x6b   : > { %541 = vst [vmem:[%s3621_s27 + $0x5b0] sm:$0xff] %v540_v54  ;;  %v546_v57 = vld [vmem:[%s3616_s26 + $0x33c8] sm:$0xff]  ;;  %543 = vst [vmem:[%s3621_s27 + $0x5b8] sm:$0xff] %v542_v55  ;;  %v548_v58 = vld [vmem:[%s3616_s26 + $0x3450] sm:$0xff] }
  0x6c   : > { %545 = vst [vmem:[%s3621_s27 + $0x5c0] sm:$0xff] %v544_v56  ;;  %547 = vst [vmem:[%s3621_s27 + $0x5c8] sm:$0xff] %v546_v57  ;;  %v550_v59 = vld [vmem:[%s3616_s26 + $0x3458] sm:$0xff]  ;;  %v552_v60 = vld [vmem:[%s3616_s26 + $0x34e0] sm:$0xff] }
  0x6d   : > { %549 = vst [vmem:[%s3621_s27 + $0x5d0] sm:$0xff] %v548_v58  ;;  %551 = vst [vmem:[%s3621_s27 + $0x5d8] sm:$0xff] %v550_v59  ;;  %v554_v61 = vld [vmem:[%s3616_s26 + $0x34e8] sm:$0xff]  ;;  %v556_v62 = vld [vmem:[%s3616_s26 + $0x3570] sm:$0xff] }
  0x6e   : > { %553 = vst [vmem:[%s3621_s27 + $0x5e0] sm:$0xff] %v552_v60  ;;  %v558_v63 = vld [vmem:[%s3616_s26 + $0x3578] sm:$0xff]  ;;  %555 = vst [vmem:[%s3621_s27 + $0x5e8] sm:$0xff] %v554_v61  ;;  %v560_v0 = vld [vmem:[%s3616_s26 + $0x3600] sm:$0xff] }
  0x6f   : > { %557 = vst [vmem:[%s3621_s27 + $0x5f0] sm:$0xff] %v556_v62  ;;  %559 = vst [vmem:[%s3621_s27 + $0x5f8] sm:$0xff] %v558_v63  ;;  %v562_v1 = vld [vmem:[%s3616_s26 + $0x3608] sm:$0xff]  ;;  %v564_v2 = vld [vmem:[%s3616_s26 + $0x3690] sm:$0xff] }
  0x70   : > { %561 = vst [vmem:[%s3621_s27 + $0x600] sm:$0xff] %v560_v0  ;;  %563 = vst [vmem:[%s3621_s27 + $0x608] sm:$0xff] %v562_v1  ;;  %v566_v3 = vld [vmem:[%s3616_s26 + $0x3698] sm:$0xff]  ;;  %v568_v4 = vld [vmem:[%s3616_s26 + $0x3720] sm:$0xff] }
  0x71   : > { %565 = vst [vmem:[%s3621_s27 + $0x610] sm:$0xff] %v564_v2  ;;  %v570_v5 = vld [vmem:[%s3616_s26 + $0x3728] sm:$0xff]  ;;  %567 = vst [vmem:[%s3621_s27 + $0x618] sm:$0xff] %v566_v3  ;;  %v572_v6 = vld [vmem:[%s3616_s26 + $0x37b0] sm:$0xff] }
  0x72   : > { %569 = vst [vmem:[%s3621_s27 + $0x620] sm:$0xff] %v568_v4  ;;  %571 = vst [vmem:[%s3621_s27 + $0x628] sm:$0xff] %v570_v5  ;;  %v574_v7 = vld [vmem:[%s3616_s26 + $0x37b8] sm:$0xff]  ;;  %v576_v8 = vld [vmem:[%s3616_s26 + $0x3840] sm:$0xff] }
  0x73   : > { %573 = vst [vmem:[%s3621_s27 + $0x630] sm:$0xff] %v572_v6  ;;  %575 = vst [vmem:[%s3621_s27 + $0x638] sm:$0xff] %v574_v7  ;;  %v578_v9 = vld [vmem:[%s3616_s26 + $0x3848] sm:$0xff]  ;;  %v580_v10 = vld [vmem:[%s3616_s26 + $0x38d0] sm:$0xff] }
  0x74   : > { %577 = vst [vmem:[%s3621_s27 + $0x640] sm:$0xff] %v576_v8  ;;  %v582_v11 = vld [vmem:[%s3616_s26 + $0x38d8] sm:$0xff]  ;;  %579 = vst [vmem:[%s3621_s27 + $0x648] sm:$0xff] %v578_v9  ;;  %v584_v12 = vld [vmem:[%s3616_s26 + $0x3960] sm:$0xff] }
  0x75   : > { %581 = vst [vmem:[%s3621_s27 + $0x650] sm:$0xff] %v580_v10  ;;  %583 = vst [vmem:[%s3621_s27 + $0x658] sm:$0xff] %v582_v11  ;;  %v586_v13 = vld [vmem:[%s3616_s26 + $0x3968] sm:$0xff]  ;;  %v588_v14 = vld [vmem:[%s3616_s26 + $0x39f0] sm:$0xff] }
  0x76   : > { %585 = vst [vmem:[%s3621_s27 + $0x660] sm:$0xff] %v584_v12  ;;  %587 = vst [vmem:[%s3621_s27 + $0x668] sm:$0xff] %v586_v13  ;;  %v590_v15 = vld [vmem:[%s3616_s26 + $0x39f8] sm:$0xff]  ;;  %v592_v16 = vld [vmem:[%s3616_s26 + $0x3a80] sm:$0xff] }
  0x77   : > { %589 = vst [vmem:[%s3621_s27 + $0x670] sm:$0xff] %v588_v14  ;;  %v594_v17 = vld [vmem:[%s3616_s26 + $0x3a88] sm:$0xff]  ;;  %591 = vst [vmem:[%s3621_s27 + $0x678] sm:$0xff] %v590_v15  ;;  %v596_v18 = vld [vmem:[%s3616_s26 + $0x3b10] sm:$0xff] }
  0x78   : > { %593 = vst [vmem:[%s3621_s27 + $0x680] sm:$0xff] %v592_v16  ;;  %595 = vst [vmem:[%s3621_s27 + $0x688] sm:$0xff] %v594_v17  ;;  %v598_v19 = vld [vmem:[%s3616_s26 + $0x3b18] sm:$0xff]  ;;  %v600_v20 = vld [vmem:[%s3616_s26 + $0x3ba0] sm:$0xff] }
  0x79   : > { %597 = vst [vmem:[%s3621_s27 + $0x690] sm:$0xff] %v596_v18  ;;  %599 = vst [vmem:[%s3621_s27 + $0x698] sm:$0xff] %v598_v19  ;;  %v602_v21 = vld [vmem:[%s3616_s26 + $0x3ba8] sm:$0xff]  ;;  %v604_v22 = vld [vmem:[%s3616_s26 + $0x3c30] sm:$0xff] }
  0x7a   : > { %601 = vst [vmem:[%s3621_s27 + $0x6a0] sm:$0xff] %v600_v20  ;;  %v606_v23 = vld [vmem:[%s3616_s26 + $0x3c38] sm:$0xff]  ;;  %603 = vst [vmem:[%s3621_s27 + $0x6a8] sm:$0xff] %v602_v21  ;;  %v608_v24 = vld [vmem:[%s3616_s26 + $0x3cc0] sm:$0xff] }
  0x7b   : > { %605 = vst [vmem:[%s3621_s27 + $0x6b0] sm:$0xff] %v604_v22  ;;  %607 = vst [vmem:[%s3621_s27 + $0x6b8] sm:$0xff] %v606_v23  ;;  %v610_v25 = vld [vmem:[%s3616_s26 + $0x3cc8] sm:$0xff]  ;;  %v612_v26 = vld [vmem:[%s3616_s26 + $0x3d50] sm:$0xff] }
  0x7c   : > { %609 = vst [vmem:[%s3621_s27 + $0x6c0] sm:$0xff] %v608_v24  ;;  %611 = vst [vmem:[%s3621_s27 + $0x6c8] sm:$0xff] %v610_v25  ;;  %v614_v27 = vld [vmem:[%s3616_s26 + $0x3d58] sm:$0xff]  ;;  %v616_v28 = vld [vmem:[%s3616_s26 + $0x3de0] sm:$0xff] }
  0x7d   : > { %613 = vst [vmem:[%s3621_s27 + $0x6d0] sm:$0xff] %v612_v26  ;;  %v618_v29 = vld [vmem:[%s3616_s26 + $0x3de8] sm:$0xff]  ;;  %615 = vst [vmem:[%s3621_s27 + $0x6d8] sm:$0xff] %v614_v27  ;;  %v620_v30 = vld [vmem:[%s3616_s26 + $0x3e70] sm:$0xff] }
  0x7e   : > { %617 = vst [vmem:[%s3621_s27 + $0x6e0] sm:$0xff] %v616_v28  ;;  %619 = vst [vmem:[%s3621_s27 + $0x6e8] sm:$0xff] %v618_v29  ;;  %v622_v31 = vld [vmem:[%s3616_s26 + $0x3e78] sm:$0xff]  ;;  %v624_v32 = vld [vmem:[%s3616_s26 + $0x3f00] sm:$0xff] }
  0x7f   : > { %621 = vst [vmem:[%s3621_s27 + $0x6f0] sm:$0xff] %v620_v30  ;;  %623 = vst [vmem:[%s3621_s27 + $0x6f8] sm:$0xff] %v622_v31  ;;  %v626_v33 = vld [vmem:[%s3616_s26 + $0x3f08] sm:$0xff]  ;;  %v628_v34 = vld [vmem:[%s3616_s26 + $0x3f90] sm:$0xff] }
  0x80   : > { %625 = vst [vmem:[%s3621_s27 + $0x700] sm:$0xff] %v624_v32  ;;  %v630_v35 = vld [vmem:[%s3616_s26 + $0x3f98] sm:$0xff]  ;;  %627 = vst [vmem:[%s3621_s27 + $0x708] sm:$0xff] %v626_v33  ;;  %v632_v36 = vld [vmem:[%s3616_s26 + $0x4020] sm:$0xff] }
  0x81   : > { %629 = vst [vmem:[%s3621_s27 + $0x710] sm:$0xff] %v628_v34  ;;  %631 = vst [vmem:[%s3621_s27 + $0x718] sm:$0xff] %v630_v35  ;;  %v634_v37 = vld [vmem:[%s3616_s26 + $0x4028] sm:$0xff]  ;;  %v636_v38 = vld [vmem:[%s3616_s26 + $0x40b0] sm:$0xff] }
  0x82   : > { %633 = vst [vmem:[%s3621_s27 + $0x720] sm:$0xff] %v632_v36  ;;  %635 = vst [vmem:[%s3621_s27 + $0x728] sm:$0xff] %v634_v37  ;;  %v638_v39 = vld [vmem:[%s3616_s26 + $0x40b8] sm:$0xff]  ;;  %v640_v40 = vld [vmem:[%s3616_s26 + $0x4140] sm:$0xff] }
  0x83   : > { %637 = vst [vmem:[%s3621_s27 + $0x730] sm:$0xff] %v636_v38  ;;  %v642_v41 = vld [vmem:[%s3616_s26 + $0x4148] sm:$0xff]  ;;  %639 = vst [vmem:[%s3621_s27 + $0x738] sm:$0xff] %v638_v39  ;;  %v644_v42 = vld [vmem:[%s3616_s26 + $0x41d0] sm:$0xff] }
  0x84   : > { %641 = vst [vmem:[%s3621_s27 + $0x740] sm:$0xff] %v640_v40  ;;  %643 = vst [vmem:[%s3621_s27 + $0x748] sm:$0xff] %v642_v41  ;;  %v646_v43 = vld [vmem:[%s3616_s26 + $0x41d8] sm:$0xff]  ;;  %v648_v44 = vld [vmem:[%s3616_s26 + $0x4260] sm:$0xff] }
  0x85   : > { %645 = vst [vmem:[%s3621_s27 + $0x750] sm:$0xff] %v644_v42  ;;  %647 = vst [vmem:[%s3621_s27 + $0x758] sm:$0xff] %v646_v43  ;;  %v650_v45 = vld [vmem:[%s3616_s26 + $0x4268] sm:$0xff]  ;;  %v652_v46 = vld [vmem:[%s3616_s26 + $0x42f0] sm:$0xff] }
  0x86   : > { %649 = vst [vmem:[%s3621_s27 + $0x760] sm:$0xff] %v648_v44  ;;  %v654_v47 = vld [vmem:[%s3616_s26 + $0x42f8] sm:$0xff]  ;;  %651 = vst [vmem:[%s3621_s27 + $0x768] sm:$0xff] %v650_v45  ;;  %v656_v48 = vld [vmem:[%s3616_s26 + $0x4380] sm:$0xff] }
  0x87   : > { %653 = vst [vmem:[%s3621_s27 + $0x770] sm:$0xff] %v652_v46  ;;  %655 = vst [vmem:[%s3621_s27 + $0x778] sm:$0xff] %v654_v47  ;;  %v658_v49 = vld [vmem:[%s3616_s26 + $0x4388] sm:$0xff]  ;;  %v660_v50 = vld [vmem:[%s3616_s26 + $0x4410] sm:$0xff] }
  0x88   : > { %657 = vst [vmem:[%s3621_s27 + $0x780] sm:$0xff] %v656_v48  ;;  %659 = vst [vmem:[%s3621_s27 + $0x788] sm:$0xff] %v658_v49  ;;  %v662_v51 = vld [vmem:[%s3616_s26 + $0x4418] sm:$0xff]  ;;  %v664_v52 = vld [vmem:[%s3616_s26 + $0x44a0] sm:$0xff] }
  0x89   : > { %661 = vst [vmem:[%s3621_s27 + $0x790] sm:$0xff] %v660_v50  ;;  %v666_v53 = vld [vmem:[%s3616_s26 + $0x44a8] sm:$0xff]  ;;  %663 = vst [vmem:[%s3621_s27 + $0x798] sm:$0xff] %v662_v51  ;;  %v668_v54 = vld [vmem:[%s3616_s26 + $0x4530] sm:$0xff] }
  0x8a   : > { %665 = vst [vmem:[%s3621_s27 + $0x7a0] sm:$0xff] %v664_v52  ;;  %667 = vst [vmem:[%s3621_s27 + $0x7a8] sm:$0xff] %v666_v53  ;;  %v670_v55 = vld [vmem:[%s3616_s26 + $0x4538] sm:$0xff]  ;;  %v672_v56 = vld [vmem:[%s3616_s26 + $0x45c0] sm:$0xff] }
  0x8b   : > { %669 = vst [vmem:[%s3621_s27 + $0x7b0] sm:$0xff] %v668_v54  ;;  %671 = vst [vmem:[%s3621_s27 + $0x7b8] sm:$0xff] %v670_v55  ;;  %v674_v57 = vld [vmem:[%s3616_s26 + $0x45c8] sm:$0xff]  ;;  %v676_v58 = vld [vmem:[%s3616_s26 + $0x4650] sm:$0xff] }
  0x8c   : > { %673 = vst [vmem:[%s3621_s27 + $0x7c0] sm:$0xff] %v672_v56  ;;  %v678_v59 = vld [vmem:[%s3616_s26 + $0x4658] sm:$0xff]  ;;  %675 = vst [vmem:[%s3621_s27 + $0x7c8] sm:$0xff] %v674_v57  ;;  %v680_v60 = vld [vmem:[%s3616_s26 + $0x46e0] sm:$0xff] }
  0x8d   : > { %677 = vst [vmem:[%s3621_s27 + $0x7d0] sm:$0xff] %v676_v58  ;;  %679 = vst [vmem:[%s3621_s27 + $0x7d8] sm:$0xff] %v678_v59  ;;  %v682_v61 = vld [vmem:[%s3616_s26 + $0x46e8] sm:$0xff]  ;;  %v684_v62 = vld [vmem:[%s3616_s26 + $0x4770] sm:$0xff] }
  0x8e   : > { %681 = vst [vmem:[%s3621_s27 + $0x7e0] sm:$0xff] %v680_v60  ;;  %683 = vst [vmem:[%s3621_s27 + $0x7e8] sm:$0xff] %v682_v61  ;;  %v686_v63 = vld [vmem:[%s3616_s26 + $0x4778] sm:$0xff] }
  0x8f   : > { %685 = vst [vmem:[%s3621_s27 + $0x7f0] sm:$0xff] %v684_v62  ;;  %687 = vst [vmem:[%s3621_s27 + $0x7f8] sm:$0xff] %v686_v63 }
  0x90 PF: > { %p2809_p6 = scmp.ge.s32.totalorder %s3551_s16, 1  ;;  %p700_p7 = scmp.lt.s32.totalorder %s3551_s16, 10 }
  0x92   : > { %p701_p8 = pnand %p2809_p6, %p700_p7 }
  0x93   : > { %s707_s28 = sand.u32 (!%p701_p8), 1, %s3535_s12   ;;  %s2811_s12 = sshll.u32 (!%p701_p8), %s3543_s14, 2 }
  0x94   : > { %704 = sbr.rel (%p701_p8) target bundleno = 614 (0x266), region = 51  ;;  %s2810_s6 = sshll.u32 (!%p701_p8), %s707_s28, 11 }
  0x95   : > { %s4153_s7 = scalar_lea.vmem (!%p701_p8), [#allocation2], %s2810_s6  ;;  %p750_p9 = scmp.lt.s32.totalorder (!%p701_p8), %s2811_s12, 35 }
  0x99   : > { %v4138_v0 = vld [vmem:[%s4489_s0] sm:$0xff]  ;;  %v4143_v1 = vld [vmem:[%s4489_s0 + $0x8] sm:$0xff]  ;;  %s4500_s12 = smov (!%p750_p9, %s2811_s12), 35 }
  0x9a   : > { %v4147_v2 = vcombine.high %v4138_v0, %v4138_v0  ;;  %v4151_v3 = vcombine.high %v4143_v1, %v4143_v1  ;;  %v3121_v4 = vld [vmem:[%s4153_s7 + $0xe4] ss:$16 sps:$4 sm:$0xff]   ;;  %v3125_v6 = vld [vmem:[%s4153_s7 + $0xe0] ss:$16 sps:$4 sm:$0xff]   ;;  %s752_s21 = scalar_lea.vmem %s4491_s2, %s4500_s12  ;;  %s2813_s14 = sshll.u32 %s4500_s12, 3 }
  0x9b   : > { %v3123_v5 = vld [vmem:[%s4153_s7 + $0x2e4] ss:$16 sps:$4 sm:$0xff]   ;;  %2354 = vmatprep.subr.bf16.mxu0 %v3121_v4  ;;  %v3126_v7 = vld [vmem:[%s4153_s7 + $0x2e0] ss:$16 sps:$4 sm:$0xff]   ;;  %s4468_s24 = scalar_lea.vmem %s4492_s3, %s2813_s14 }
  0x9c   : > { %2386 = vmatprep.mubr.bf16.mxu0 %v4147_v2  ;;  %2427 = vmatprep.mubr.bf16.mxu1 %v4151_v3  ;;  %v3127_v8 = vld [vmem:[%s4153_s7 + $0xc4] ss:$16 sps:$4 sm:$0xff]   ;;  %v3131_v10 = vld [vmem:[%s4153_s7 + $0xc0] ss:$16 sps:$4 sm:$0xff]  }
  0x9d   : > { %2395 = vmatprep.subr.bf16.mxu1 %v3123_v5  ;;  %2355 = vmatpush1.bf16.msra.mxu0 %v3125_v6  ;;  %v3129_v9 = vld [vmem:[%s4153_s7 + $0x2c4] ss:$16 sps:$4 sm:$0xff]   ;;  %v3132_v11 = vld [vmem:[%s4153_s7 + $0x2c0] ss:$16 sps:$4 sm:$0xff]  }
  0x9e   : > { %2396 = vmatpush1.bf16.msra.mxu1 %v3126_v7  ;;  %2356 = vmatprep.subr.bf16.mxu0 %v3127_v8  ;;  %v3133_v12 = vld [vmem:[%s4153_s7 + $0xa4] ss:$16 sps:$4 sm:$0xff]   ;;  %v3137_v14 = vld [vmem:[%s4153_s7 + $0xa0] ss:$16 sps:$4 sm:$0xff]  }
  0x9f   : > { %2397 = vmatprep.subr.bf16.mxu1 %v3129_v9  ;;  %v3135_v13 = vld [vmem:[%s4153_s7 + $0x2a4] ss:$16 sps:$4 sm:$0xff]   ;;  %v3138_v15 = vld [vmem:[%s4153_s7 + $0x2a0] ss:$16 sps:$4 sm:$0xff]  }
  0xa0   : > { %v3139_v16 = vld [vmem:[%s4153_s7 + $0x84] ss:$16 sps:$4 sm:$0xff]   ;;  %v3143_v18 = vld [vmem:[%s4153_s7 + $0x80] ss:$16 sps:$4 sm:$0xff]  }
  0xa1   : > { %2357 = vmatpush1.bf16.msra.mxu0 %v3131_v10  ;;  %v3141_v17 = vld [vmem:[%s4153_s7 + $0x284] ss:$16 sps:$4 sm:$0xff]   ;;  %v3144_v19 = vld [vmem:[%s4153_s7 + $0x280] ss:$16 sps:$4 sm:$0xff]   ;;  %v4226_v10 = vld [vmem:[%s4489_s0 + $0x10] sm:$0xff] }
  0xa2   : > { %2398 = vmatpush1.bf16.msra.mxu1 %v3132_v11  ;;  %2358 = vmatprep.subr.bf16.mxu0 %v3133_v12  ;;  %v3145_v20 = vld [vmem:[%s4153_s7 + $0x64] ss:$16 sps:$4 sm:$0xff]   ;;  %v3149_v22 = vld [vmem:[%s4153_s7 + $0x60] ss:$16 sps:$4 sm:$0xff]   ;;  %v4235_v12 = vcombine.low %v4138_v0, %v4138_v0  ;;  %v4247_v0 = vcombine.high %v4226_v10, %v4226_v10 }
  0xa3   : > { %2399 = vmatprep.subr.bf16.mxu1 %v3135_v13  ;;  %v3147_v21 = vld [vmem:[%s4153_s7 + $0x264] ss:$16 sps:$4 sm:$0xff]   ;;  %v3150_v23 = vld [vmem:[%s4153_s7 + $0x260] ss:$16 sps:$4 sm:$0xff]   ;;  %v4239_v13 = vcombine.low %v4143_v1, %v4143_v1 }
  0xa4   : > { %v3151_v24 = vld [vmem:[%s4153_s7 + $0x44] ss:$16 sps:$4 sm:$0xff]   ;;  %v3155_v26 = vld [vmem:[%s4153_s7 + $0x40] ss:$16 sps:$4 sm:$0xff]  }
  0xa5   : > { %2359 = vmatpush1.bf16.msra.mxu0 %v3137_v14  ;;  %v3153_v25 = vld [vmem:[%s4153_s7 + $0x244] ss:$16 sps:$4 sm:$0xff]   ;;  %v3156_v27 = vld [vmem:[%s4153_s7 + $0x240] ss:$16 sps:$4 sm:$0xff]  }
  0xa6   : > { %2400 = vmatpush1.bf16.msra.mxu1 %v3138_v15  ;;  %2360 = vmatprep.subr.bf16.mxu0 %v3139_v16  ;;  %v3157_v28 = vld [vmem:[%s4153_s7 + $0x24] ss:$16 sps:$4 sm:$0xff]   ;;  %v3161_v30 = vld [vmem:[%s4153_s7 + $0x20] ss:$16 sps:$4 sm:$0xff]  }
  0xa7   : > { %2401 = vmatprep.subr.bf16.mxu1 %v3141_v17  ;;  %v3159_v29 = vld [vmem:[%s4153_s7 + $0x224] ss:$16 sps:$4 sm:$0xff]   ;;  %v3162_v31 = vld [vmem:[%s4153_s7 + $0x220] ss:$16 sps:$4 sm:$0xff]  }
  0xa8   : > { %v3163_v32 = vld [vmem:[%s4153_s7 + $0x4] ss:$16 sps:$4 sm:$0xff]   ;;  %v3167_v34 = vld [vmem:[%s4153_s7] ss:$16 sps:$4 sm:$0xff]  }
  0xa9   : > { %2361 = vmatpush1.bf16.msra.mxu0 %v3143_v18  ;;  %v3165_v33 = vld [vmem:[%s4153_s7 + $0x204] ss:$16 sps:$4 sm:$0xff]   ;;  %v3168_v35 = vld [vmem:[%s4153_s7 + $0x200] ss:$16 sps:$4 sm:$0xff]  }
  0xaa   : > { %2402 = vmatpush1.bf16.msra.mxu1 %v3144_v19  ;;  %2362 = vmatprep.subr.bf16.mxu0 %v3145_v20  ;;  %v3169_v36 = vld [vmem:[%s4153_s7 + $0x1e4] ss:$16 sps:$4 sm:$0xff]   ;;  %v3173_v38 = vld [vmem:[%s4153_s7 + $0x1e0] ss:$16 sps:$4 sm:$0xff]  }
  0xab   : > { %2403 = vmatprep.subr.bf16.mxu1 %v3147_v21  ;;  %v3171_v37 = vld [vmem:[%s4153_s7 + $0x3e4] ss:$16 sps:$4 sm:$0xff]   ;;  %v3174_v39 = vld [vmem:[%s4153_s7 + $0x3e0] ss:$16 sps:$4 sm:$0xff]  }
  0xac   : > { %v3175_v40 = vld [vmem:[%s4153_s7 + $0x1c4] ss:$16 sps:$4 sm:$0xff]   ;;  %v3179_v42 = vld [vmem:[%s4153_s7 + $0x1c0] ss:$16 sps:$4 sm:$0xff]  }
  0xad   : > { %2363 = vmatpush1.bf16.msra.mxu0 %v3149_v22  ;;  %v3177_v41 = vld [vmem:[%s4153_s7 + $0x3c4] ss:$16 sps:$4 sm:$0xff]   ;;  %v3180_v43 = vld [vmem:[%s4153_s7 + $0x3c0] ss:$16 sps:$4 sm:$0xff]  }
  0xae   : > { %2404 = vmatpush1.bf16.msra.mxu1 %v3150_v23  ;;  %2364 = vmatprep.subr.bf16.mxu0 %v3151_v24  ;;  %v3181_v44 = vld [vmem:[%s4153_s7 + $0x1a4] ss:$16 sps:$4 sm:$0xff]   ;;  %v3185_v46 = vld [vmem:[%s4153_s7 + $0x1a0] ss:$16 sps:$4 sm:$0xff]  }
  0xaf   : > { %2405 = vmatprep.subr.bf16.mxu1 %v3153_v25  ;;  %v3183_v45 = vld [vmem:[%s4153_s7 + $0x3a4] ss:$16 sps:$4 sm:$0xff]   ;;  %v3186_v47 = vld [vmem:[%s4153_s7 + $0x3a0] ss:$16 sps:$4 sm:$0xff]  }
  0xb0   : > { %v3187_v48 = vld [vmem:[%s4153_s7 + $0x184] ss:$16 sps:$4 sm:$0xff]   ;;  %v3191_v50 = vld [vmem:[%s4153_s7 + $0x180] ss:$16 sps:$4 sm:$0xff]  }
  0xb1   : > { %2365 = vmatpush1.bf16.msra.mxu0 %v3155_v26  ;;  %v3189_v49 = vld [vmem:[%s4153_s7 + $0x384] ss:$16 sps:$4 sm:$0xff]   ;;  %v3192_v51 = vld [vmem:[%s4153_s7 + $0x380] ss:$16 sps:$4 sm:$0xff]  }
  0xb2   : > { %2406 = vmatpush1.bf16.msra.mxu1 %v3156_v27  ;;  %2366 = vmatprep.subr.bf16.mxu0 %v3157_v28  ;;  %v3193_v52 = vld [vmem:[%s4153_s7 + $0x164] ss:$16 sps:$4 sm:$0xff]   ;;  %v3197_v54 = vld [vmem:[%s4153_s7 + $0x160] ss:$16 sps:$4 sm:$0xff]  }
  0xb3   : > { %2407 = vmatprep.subr.bf16.mxu1 %v3159_v29  ;;  %v3195_v53 = vld [vmem:[%s4153_s7 + $0x364] ss:$16 sps:$4 sm:$0xff]   ;;  %v3198_v55 = vld [vmem:[%s4153_s7 + $0x360] ss:$16 sps:$4 sm:$0xff]  }
  0xb4   : > { %v3199_v56 = vld [vmem:[%s4153_s7 + $0x144] ss:$16 sps:$4 sm:$0xff]   ;;  %v3203_v58 = vld [vmem:[%s4153_s7 + $0x140] ss:$16 sps:$4 sm:$0xff]  }
  0xb5   : > { %2367 = vmatpush1.bf16.msra.mxu0 %v3161_v30  ;;  %v3201_v57 = vld [vmem:[%s4153_s7 + $0x344] ss:$16 sps:$4 sm:$0xff]   ;;  %v3204_v59 = vld [vmem:[%s4153_s7 + $0x340] ss:$16 sps:$4 sm:$0xff]  }
  0xb6   : > { %2408 = vmatpush1.bf16.msra.mxu1 %v3162_v31  ;;  %2368 = vmatprep.subr.bf16.mxu0 %v3163_v32  ;;  %v3205_v60 = vld [vmem:[%s4153_s7 + $0x124] ss:$16 sps:$4 sm:$0xff]   ;;  %v3209_v62 = vld [vmem:[%s4153_s7 + $0x120] ss:$16 sps:$4 sm:$0xff]  }
  0xb7   : > { %2409 = vmatprep.subr.bf16.mxu1 %v3165_v33  ;;  %v3207_v61 = vld [vmem:[%s4153_s7 + $0x324] ss:$16 sps:$4 sm:$0xff]   ;;  %v3210_v63 = vld [vmem:[%s4153_s7 + $0x320] ss:$16 sps:$4 sm:$0xff]  }
  0xb8   : > { %v3211_v4 = vld [vmem:[%s4153_s7 + $0x104] ss:$16 sps:$4 sm:$0xff]   ;;  %v3215_v6 = vld [vmem:[%s4153_s7 + $0x100] ss:$16 sps:$4 sm:$0xff]  }
  0xb9   : > { %2369 = vmatpush1.bf16.msra.mxu0 %v3167_v34  ;;  %v3213_v5 = vld [vmem:[%s4153_s7 + $0x304] ss:$16 sps:$4 sm:$0xff]   ;;  %v3216_v7 = vld [vmem:[%s4153_s7 + $0x300] ss:$16 sps:$4 sm:$0xff]  }
  0xba   : > { %2410 = vmatpush1.bf16.msra.mxu1 %v3168_v35  ;;  %2370 = vmatprep.subr.bf16.mxu0 %v3169_v36  ;;  %v3223_v8 = vld [vmem:[%s4153_s7 + $0x4e4] ss:$16 sps:$4 sm:$0xff]   ;;  %v3221_v14 = vld [vmem:[%s4153_s7 + $0x4e0] ss:$16 sps:$4 sm:$0xff]  }
  0xbb   : > { %2411 = vmatprep.subr.bf16.mxu1 %v3171_v37  ;;  %v3226_v9 = vld [vmem:[%s4153_s7 + $0x6e4] ss:$16 sps:$4 sm:$0xff]   ;;  %v3224_v15 = vld [vmem:[%s4153_s7 + $0x6e0] ss:$16 sps:$4 sm:$0xff]  }
  0xbc   : > { %v4231_v11 = vld [vmem:[%s4489_s0 + $0x18] sm:$0xff] }
  0xbd   : > { %2371 = vmatpush2.bf16.msra.mxu0 %v3173_v38  ;;  %v3229_v16 = vld [vmem:[%s4153_s7 + $0x4c4] ss:$16 sps:$4 sm:$0xff]   ;;  %v4251_v1 = vcombine.high %v4231_v11, %v4231_v11  ;;  %v3227_v18 = vld [vmem:[%s4153_s7 + $0x4c0] ss:$16 sps:$4 sm:$0xff]  }
  0xbe   : > { %2412 = vmatpush2.bf16.msra.mxu1 %v3174_v39  ;;  %2372 = vmatprep.subr.bf16.mxu0 %v3175_v40  ;;  %v3232_v17 = vld [vmem:[%s4153_s7 + $0x6c4] ss:$16 sps:$4 sm:$0xff]   ;;  %v3230_v19 = vld [vmem:[%s4153_s7 + $0x6c0] ss:$16 sps:$4 sm:$0xff]  }
  0xbf   : > { %2413 = vmatprep.subr.bf16.mxu1 %v3177_v41  ;;  %v3235_v20 = vld [vmem:[%s4153_s7 + $0x4a4] ss:$16 sps:$4 sm:$0xff]   ;;  %v3233_v22 = vld [vmem:[%s4153_s7 + $0x4a0] ss:$16 sps:$4 sm:$0xff]  }
  0xc0   : > { %v3238_v21 = vld [vmem:[%s4153_s7 + $0x6a4] ss:$16 sps:$4 sm:$0xff]   ;;  %v3236_v23 = vld [vmem:[%s4153_s7 + $0x6a0] ss:$16 sps:$4 sm:$0xff]  }
  0xc1   : > { %2373 = vmatpush2.bf16.msra.mxu0 %v3179_v42  ;;  %v3241_v24 = vld [vmem:[%s4153_s7 + $0x484] ss:$16 sps:$4 sm:$0xff]   ;;  %v3239_v26 = vld [vmem:[%s4153_s7 + $0x480] ss:$16 sps:$4 sm:$0xff]  }
  0xc2   : > { %2414 = vmatpush2.bf16.msra.mxu1 %v3180_v43  ;;  %2374 = vmatprep.subr.bf16.mxu0 %v3181_v44  ;;  %v3244_v25 = vld [vmem:[%s4153_s7 + $0x684] ss:$16 sps:$4 sm:$0xff]   ;;  %v3242_v27 = vld [vmem:[%s4153_s7 + $0x680] ss:$16 sps:$4 sm:$0xff]  }
  0xc3   : > { %2415 = vmatprep.subr.bf16.mxu1 %v3183_v45  ;;  %v3247_v28 = vld [vmem:[%s4153_s7 + $0x464] ss:$16 sps:$4 sm:$0xff]   ;;  %v3245_v30 = vld [vmem:[%s4153_s7 + $0x460] ss:$16 sps:$4 sm:$0xff]  }
  0xc4   : > { %v3250_v29 = vld [vmem:[%s4153_s7 + $0x664] ss:$16 sps:$4 sm:$0xff]   ;;  %v3248_v31 = vld [vmem:[%s4153_s7 + $0x660] ss:$16 sps:$4 sm:$0xff]  }
  0xc5   : > { %2375 = vmatpush2.bf16.msra.mxu0 %v3185_v46  ;;  %v3253_v32 = vld [vmem:[%s4153_s7 + $0x444] ss:$16 sps:$4 sm:$0xff]   ;;  %v3251_v34 = vld [vmem:[%s4153_s7 + $0x440] ss:$16 sps:$4 sm:$0xff]  }
  0xc6   : > { %2416 = vmatpush2.bf16.msra.mxu1 %v3186_v47  ;;  %2376 = vmatprep.subr.bf16.mxu0 %v3187_v48  ;;  %v3256_v33 = vld [vmem:[%s4153_s7 + $0x644] ss:$16 sps:$4 sm:$0xff]   ;;  %v3254_v35 = vld [vmem:[%s4153_s7 + $0x640] ss:$16 sps:$4 sm:$0xff]  }
  0xc7   : > { %2417 = vmatprep.subr.bf16.mxu1 %v3189_v49  ;;  %v3259_v36 = vld [vmem:[%s4153_s7 + $0x424] ss:$16 sps:$4 sm:$0xff]   ;;  %v3257_v38 = vld [vmem:[%s4153_s7 + $0x420] ss:$16 sps:$4 sm:$0xff]  }
  0xc8   : > { %v3262_v37 = vld [vmem:[%s4153_s7 + $0x624] ss:$16 sps:$4 sm:$0xff]   ;;  %v3260_v39 = vld [vmem:[%s4153_s7 + $0x620] ss:$16 sps:$4 sm:$0xff]  }
  0xc9   : > { %2377 = vmatpush2.bf16.msra.mxu0 %v3191_v50  ;;  %v3265_v40 = vld [vmem:[%s4153_s7 + $0x404] ss:$16 sps:$4 sm:$0xff]   ;;  %v3263_v42 = vld [vmem:[%s4153_s7 + $0x400] ss:$16 sps:$4 sm:$0xff]  }
  0xca   : > { %2418 = vmatpush2.bf16.msra.mxu1 %v3192_v51  ;;  %2378 = vmatprep.subr.bf16.mxu0 %v3193_v52  ;;  %v3268_v41 = vld [vmem:[%s4153_s7 + $0x604] ss:$16 sps:$4 sm:$0xff]   ;;  %v3266_v43 = vld [vmem:[%s4153_s7 + $0x600] ss:$16 sps:$4 sm:$0xff]  }
  0xcb   : > { %2419 = vmatprep.subr.bf16.mxu1 %v3195_v53  ;;  %v3271_v44 = vld [vmem:[%s4153_s7 + $0x5e4] ss:$16 sps:$4 sm:$0xff]   ;;  %v3269_v46 = vld [vmem:[%s4153_s7 + $0x5e0] ss:$16 sps:$4 sm:$0xff]  }
  0xcc   : > { %v3274_v45 = vld [vmem:[%s4153_s7 + $0x7e4] ss:$16 sps:$4 sm:$0xff]   ;;  %v3272_v47 = vld [vmem:[%s4153_s7 + $0x7e0] ss:$16 sps:$4 sm:$0xff]  }
  0xcd   : > { %2379 = vmatpush2.bf16.msra.mxu0 %v3197_v54  ;;  %v3277_v48 = vld [vmem:[%s4153_s7 + $0x5c4] ss:$16 sps:$4 sm:$0xff]   ;;  %v3275_v50 = vld [vmem:[%s4153_s7 + $0x5c0] ss:$16 sps:$4 sm:$0xff]  }
  0xce   : > { %2420 = vmatpush2.bf16.msra.mxu1 %v3198_v55  ;;  %2380 = vmatprep.subr.bf16.mxu0 %v3199_v56  ;;  %v3280_v49 = vld [vmem:[%s4153_s7 + $0x7c4] ss:$16 sps:$4 sm:$0xff]   ;;  %v3278_v51 = vld [vmem:[%s4153_s7 + $0x7c0] ss:$16 sps:$4 sm:$0xff]  }
  0xcf   : > { %2421 = vmatprep.subr.bf16.mxu1 %v3201_v57  ;;  %v3283_v52 = vld [vmem:[%s4153_s7 + $0x5a4] ss:$16 sps:$4 sm:$0xff]   ;;  %v3281_v54 = vld [vmem:[%s4153_s7 + $0x5a0] ss:$16 sps:$4 sm:$0xff]  }
  0xd0   : > { %v3286_v53 = vld [vmem:[%s4153_s7 + $0x7a4] ss:$16 sps:$4 sm:$0xff]   ;;  %v3284_v55 = vld [vmem:[%s4153_s7 + $0x7a0] ss:$16 sps:$4 sm:$0xff]  }
  0xd1   : > { %2381 = vmatpush2.bf16.msra.mxu0 %v3203_v58  ;;  %v3289_v56 = vld [vmem:[%s4153_s7 + $0x584] ss:$16 sps:$4 sm:$0xff]   ;;  %v3287_v58 = vld [vmem:[%s4153_s7 + $0x580] ss:$16 sps:$4 sm:$0xff]  }
  0xd2   : > { %2422 = vmatpush2.bf16.msra.mxu1 %v3204_v59  ;;  %2382 = vmatprep.subr.bf16.mxu0 %v3205_v60  ;;  %v3292_v57 = vld [vmem:[%s4153_s7 + $0x784] ss:$16 sps:$4 sm:$0xff]   ;;  %v3290_v59 = vld [vmem:[%s4153_s7 + $0x780] ss:$16 sps:$4 sm:$0xff]  }
  0xd3   : > { %2423 = vmatprep.subr.bf16.mxu1 %v3207_v61  ;;  %v3295_v60 = vld [vmem:[%s4153_s7 + $0x564] ss:$16 sps:$4 sm:$0xff]  }
  0xd4   : > { %v3298_v61 = vld [vmem:[%s4153_s7 + $0x764] ss:$16 sps:$4 sm:$0xff]  }
  0xd5   : > { %2383 = vmatpush2.bf16.msra.mxu0 %v3209_v62  ;;  %v3293_v62 = vld [vmem:[%s4153_s7 + $0x560] ss:$16 sps:$4 sm:$0xff]  }
  0xd6   : > { %2424 = vmatpush2.bf16.msra.mxu1 %v3210_v63  ;;  %2384 = vmatprep.subr.bf16.mxu0 %v3211_v4  ;;  %v3296_v63 = vld [vmem:[%s4153_s7 + $0x760] ss:$16 sps:$4 sm:$0xff]   ;;  %v3301_v4 = vld [vmem:[%s4153_s7 + $0x544] ss:$16 sps:$4 sm:$0xff]  }
  0xd7   : > { %2425 = vmatprep.subr.bf16.mxu1 %v3213_v5  ;;  %v3304_v5 = vld [vmem:[%s4153_s7 + $0x744] ss:$16 sps:$4 sm:$0xff]  }
  0xd9   : > { %2385 = vmatpush2.bf16.msra.mxu0 %v3215_v6  ;;  %v3299_v6 = vld [vmem:[%s4153_s7 + $0x540] ss:$16 sps:$4 sm:$0xff]  }
  0xda   : > { %2426 = vmatpush2.bf16.msra.mxu1 %v3216_v7  ;;  %2436 = vmatprep.subr.bf16.mxu0 %v3223_v8  ;;  %v3302_v7 = vld [vmem:[%s4153_s7 + $0x740] ss:$16 sps:$4 sm:$0xff]   ;;  %v3307_v8 = vld [vmem:[%s4153_s7 + $0x524] ss:$16 sps:$4 sm:$0xff]  }
  0xdb   : > { %2477 = vmatprep.subr.bf16.mxu1 %v3226_v9  ;;  %v3310_v9 = vld [vmem:[%s4153_s7 + $0x724] ss:$16 sps:$4 sm:$0xff]  }
  0xdc   : > { %2387 = vmatmul.mubr.bf16.vlgmr.msra.gmra.mxu0 %v4235_v12 }
  0xdd   : > { %2428 = vmatmul.mubr.bf16.vlgmr.msra.gmra.mxu1 %v4239_v13  ;;  %2437 = vmatpush1.bf16.msra.mxu0 %v3221_v14  ;;  %v3305_v14 = vld [vmem:[%s4153_s7 + $0x520] ss:$16 sps:$4 sm:$0xff]  }
  0xde   : > { %2478 = vmatpush1.bf16.msra.mxu1 %v3224_v15  ;;  %2438 = vmatprep.subr.bf16.mxu0 %v3229_v16  ;;  %v3308_v15 = vld [vmem:[%s4153_s7 + $0x720] ss:$16 sps:$4 sm:$0xff]   ;;  %v3313_v16 = vld [vmem:[%s4153_s7 + $0x504] ss:$16 sps:$4 sm:$0xff]  }
  0xdf   : > { %2479 = vmatprep.subr.bf16.mxu1 %v3232_v17  ;;  %2468 = vmatprep.mubr.bf16.mxu0 %v4247_v0  ;;  %v3316_v17 = vld [vmem:[%s4153_s7 + $0x704] ss:$16 sps:$4 sm:$0xff]  }
  0xe0   : > { %2509 = vmatprep.mubr.bf16.mxu1 %v4251_v1 }
  0xe1   : > { %2439 = vmatpush1.bf16.msra.mxu0 %v3227_v18  ;;  %v3311_v18 = vld [vmem:[%s4153_s7 + $0x500] ss:$16 sps:$4 sm:$0xff]  }
  0xe2   : > { %2480 = vmatpush1.bf16.msra.mxu1 %v3230_v19  ;;  %2440 = vmatprep.subr.bf16.mxu0 %v3235_v20  ;;  %v3314_v19 = vld [vmem:[%s4153_s7 + $0x700] ss:$16 sps:$4 sm:$0xff]   ;;  %v3323_v20 = vld [vmem:[%s4153_s7 + $0xec] ss:$16 sps:$4 sm:$0xff]  }
  0xe3   : > { %2481 = vmatprep.subr.bf16.mxu1 %v3238_v21  ;;  %v3326_v21 = vld [vmem:[%s4153_s7 + $0x2ec] ss:$16 sps:$4 sm:$0xff]  }
  0xe5   : > { %2441 = vmatpush1.bf16.msra.mxu0 %v3233_v22  ;;  %v4319_v22 = vcombine.low %v4226_v10, %v4226_v10  ;;  %v3327_v10 = vld [vmem:[%s4153_s7 + $0xc8] ss:$16 sps:$4 sm:$0xff]  }
  0xe6   : > { %2482 = vmatpush1.bf16.msra.mxu1 %v3236_v23  ;;  %2442 = vmatprep.subr.bf16.mxu0 %v3241_v24  ;;  %v4323_v23 = vcombine.low %v4231_v11, %v4231_v11  ;;  %v3321_v24 = vld [vmem:[%s4153_s7 + $0xe8] ss:$16 sps:$4 sm:$0xff]   ;;  %v3335_v11 = vld [vmem:[%s4153_s7 + $0xac] ss:$16 sps:$4 sm:$0xff]  }
  0xe7   : > { %2483 = vmatprep.subr.bf16.mxu1 %v3244_v25  ;;  %v3324_v25 = vld [vmem:[%s4153_s7 + $0x2e8] ss:$16 sps:$4 sm:$0xff]  }
  0xe9   : > { %2443 = vmatpush1.bf16.msra.mxu0 %v3239_v26  ;;  %v3329_v26 = vld [vmem:[%s4153_s7 + $0xcc] ss:$16 sps:$4 sm:$0xff]  }
  0xea   : > { %2484 = vmatpush1.bf16.msra.mxu1 %v3242_v27  ;;  %2444 = vmatprep.subr.bf16.mxu0 %v3247_v28  ;;  %v3332_v27 = vld [vmem:[%s4153_s7 + $0x2cc] ss:$16 sps:$4 sm:$0xff]   ;;  %v3330_v28 = vld [vmem:[%s4153_s7 + $0x2c8] ss:$16 sps:$4 sm:$0xff]  }
  0xeb   : > { %2485 = vmatprep.subr.bf16.mxu1 %v3250_v29  ;;  %v3338_v29 = vld [vmem:[%s4153_s7 + $0x2ac] ss:$16 sps:$4 sm:$0xff]  }
  0xed   : > { %2445 = vmatpush1.bf16.msra.mxu0 %v3245_v30  ;;  %v3333_v30 = vld [vmem:[%s4153_s7 + $0xa8] ss:$16 sps:$4 sm:$0xff]  }
  0xee   : > { %2486 = vmatpush1.bf16.msra.mxu1 %v3248_v31  ;;  %2446 = vmatprep.subr.bf16.mxu0 %v3253_v32  ;;  %v3336_v31 = vld [vmem:[%s4153_s7 + $0x2a8] ss:$16 sps:$4 sm:$0xff]   ;;  %v3341_v32 = vld [vmem:[%s4153_s7 + $0x8c] ss:$16 sps:$4 sm:$0xff]  }
  0xef   : > { %2487 = vmatprep.subr.bf16.mxu1 %v3256_v33  ;;  %v3344_v33 = vld [vmem:[%s4153_s7 + $0x28c] ss:$16 sps:$4 sm:$0xff]  }
  0xf1   : > { %2447 = vmatpush1.bf16.msra.mxu0 %v3251_v34  ;;  %v3339_v34 = vld [vmem:[%s4153_s7 + $0x88] ss:$16 sps:$4 sm:$0xff]  }
  0xf2   : > { %2488 = vmatpush1.bf16.msra.mxu1 %v3254_v35  ;;  %2448 = vmatprep.subr.bf16.mxu0 %v3259_v36  ;;  %v3342_v35 = vld [vmem:[%s4153_s7 + $0x288] ss:$16 sps:$4 sm:$0xff]  }
  0xf3   : > { %2489 = vmatprep.subr.bf16.mxu1 %v3262_v37  ;;  %v3345_v36 = vld [vmem:[%s4153_s7 + $0x68] ss:$16 sps:$4 sm:$0xff]  }
  0xf4   : > { %v3348_v37 = vld [vmem:[%s4153_s7 + $0x268] ss:$16 sps:$4 sm:$0xff]  }
  0xf5   : > { %2449 = vmatpush1.bf16.msra.mxu0 %v3257_v38  ;;  %v3353_v38 = vld [vmem:[%s4153_s7 + $0x4c] ss:$16 sps:$4 sm:$0xff]  }
  0xf6   : > { %2490 = vmatpush1.bf16.msra.mxu1 %v3260_v39  ;;  %2450 = vmatprep.subr.bf16.mxu0 %v3265_v40  ;;  %v3356_v39 = vld [vmem:[%s4153_s7 + $0x24c] ss:$16 sps:$4 sm:$0xff]   ;;  %v3351_v40 = vld [vmem:[%s4153_s7 + $0x48] ss:$16 sps:$4 sm:$0xff]  }
  0xf7   : > { %2491 = vmatprep.subr.bf16.mxu1 %v3268_v41  ;;  %v3354_v41 = vld [vmem:[%s4153_s7 + $0x248] ss:$16 sps:$4 sm:$0xff]  }
  0xf9   : > { %2451 = vmatpush1.bf16.msra.mxu0 %v3263_v42  ;;  %v3359_v42 = vld [vmem:[%s4153_s7 + $0x2c] ss:$16 sps:$4 sm:$0xff]  }
  0xfa   : > { %2492 = vmatpush1.bf16.msra.mxu1 %v3266_v43  ;;  %2452 = vmatprep.subr.bf16.mxu0 %v3271_v44  ;;  %v3362_v43 = vld [vmem:[%s4153_s7 + $0x22c] ss:$16 sps:$4 sm:$0xff]   ;;  %v3357_v44 = vld [vmem:[%s4153_s7 + $0x28] ss:$16 sps:$4 sm:$0xff]  }
  0xfb   : > { %2493 = vmatprep.subr.bf16.mxu1 %v3274_v45  ;;  %v3360_v45 = vld [vmem:[%s4153_s7 + $0x228] ss:$16 sps:$4 sm:$0xff]  }
  0xfd   : > { %2453 = vmatpush2.bf16.msra.mxu0 %v3269_v46  ;;  %v3365_v46 = vld [vmem:[%s4153_s7 + $0xc] ss:$16 sps:$4 sm:$0xff]  }
  0xfe   : > { %2494 = vmatpush2.bf16.msra.mxu1 %v3272_v47  ;;  %2454 = vmatprep.subr.bf16.mxu0 %v3277_v48  ;;  %v3368_v47 = vld [vmem:[%s4153_s7 + $0x20c] ss:$16 sps:$4 sm:$0xff]   ;;  %v3363_v48 = vld [vmem:[%s4153_s7 + $0x8] ss:$16 sps:$4 sm:$0xff]  }
  0xff   : > { %2495 = vmatprep.subr.bf16.mxu1 %v3280_v49  ;;  %v3366_v49 = vld [vmem:[%s4153_s7 + $0x208] ss:$16 sps:$4 sm:$0xff]  }
 0x101   : > { %2455 = vmatpush2.bf16.msra.mxu0 %v3275_v50  ;;  %v3371_v50 = vld [vmem:[%s4153_s7 + $0x1ec] ss:$16 sps:$4 sm:$0xff]  }
 0x102   : > { %2496 = vmatpush2.bf16.msra.mxu1 %v3278_v51  ;;  %2456 = vmatprep.subr.bf16.mxu0 %v3283_v52  ;;  %v3374_v51 = vld [vmem:[%s4153_s7 + $0x3ec] ss:$16 sps:$4 sm:$0xff]   ;;  %v3369_v52 = vld [vmem:[%s4153_s7 + $0x1e8] ss:$16 sps:$4 sm:$0xff]  }
 0x103   : > { %2497 = vmatprep.subr.bf16.mxu1 %v3286_v53  ;;  %v3372_v53 = vld [vmem:[%s4153_s7 + $0x3e8] ss:$16 sps:$4 sm:$0xff]  }
 0x105   : > { %2457 = vmatpush2.bf16.msra.mxu0 %v3281_v54  ;;  %v3377_v54 = vld [vmem:[%s4153_s7 + $0x1cc] ss:$16 sps:$4 sm:$0xff]  }
 0x106   : > { %2498 = vmatpush2.bf16.msra.mxu1 %v3284_v55  ;;  %2458 = vmatprep.subr.bf16.mxu0 %v3289_v56  ;;  %v3380_v55 = vld [vmem:[%s4153_s7 + $0x3cc] ss:$16 sps:$4 sm:$0xff]   ;;  %v3375_v56 = vld [vmem:[%s4153_s7 + $0x1c8] ss:$16 sps:$4 sm:$0xff]  }
 0x107   : > { %2499 = vmatprep.subr.bf16.mxu1 %v3292_v57  ;;  %v3378_v57 = vld [vmem:[%s4153_s7 + $0x3c8] ss:$16 sps:$4 sm:$0xff]  }
 0x109   : > { %2459 = vmatpush2.bf16.msra.mxu0 %v3287_v58  ;;  %v3383_v58 = vld [vmem:[%s4153_s7 + $0x1ac] ss:$16 sps:$4 sm:$0xff]  }
 0x10a   : > { %2500 = vmatpush2.bf16.msra.mxu1 %v3290_v59  ;;  %2460 = vmatprep.subr.bf16.mxu0 %v3295_v60  ;;  %v3386_v59 = vld [vmem:[%s4153_s7 + $0x3ac] ss:$16 sps:$4 sm:$0xff]   ;;  %v3381_v60 = vld [vmem:[%s4153_s7 + $0x1a8] ss:$16 sps:$4 sm:$0xff]  }
 0x10b   : > { %2501 = vmatprep.subr.bf16.mxu1 %v3298_v61  ;;  %v3384_v61 = vld [vmem:[%s4153_s7 + $0x3a8] ss:$16 sps:$4 sm:$0xff]  }
 0x10d   : > { %2461 = vmatpush2.bf16.msra.mxu0 %v3293_v62  ;;  %v3389_v62 = vld [vmem:[%s4153_s7 + $0x18c] ss:$16 sps:$4 sm:$0xff]  }
 0x10e   : > { %2502 = vmatpush2.bf16.msra.mxu1 %v3296_v63  ;;  %2462 = vmatprep.subr.bf16.mxu0 %v3301_v4  ;;  %v3392_v63 = vld [vmem:[%s4153_s7 + $0x38c] ss:$16 sps:$4 sm:$0xff]   ;;  %v3387_v4 = vld [vmem:[%s4153_s7 + $0x188] ss:$16 sps:$4 sm:$0xff]  }
 0x10f   : > { %2503 = vmatprep.subr.bf16.mxu1 %v3304_v5  ;;  %v3390_v5 = vld [vmem:[%s4153_s7 + $0x388] ss:$16 sps:$4 sm:$0xff]  }
 0x111   : > { %2463 = vmatpush2.bf16.msra.mxu0 %v3299_v6  ;;  %v3395_v6 = vld [vmem:[%s4153_s7 + $0x16c] ss:$16 sps:$4 sm:$0xff]  }
 0x112   : > { %2504 = vmatpush2.bf16.msra.mxu1 %v3302_v7  ;;  %2464 = vmatprep.subr.bf16.mxu0 %v3307_v8  ;;  %v3398_v7 = vld [vmem:[%s4153_s7 + $0x36c] ss:$16 sps:$4 sm:$0xff]   ;;  %v3393_v8 = vld [vmem:[%s4153_s7 + $0x168] ss:$16 sps:$4 sm:$0xff]  }
 0x113   : > { %2505 = vmatprep.subr.bf16.mxu1 %v3310_v9  ;;  %v3396_v9 = vld [vmem:[%s4153_s7 + $0x368] ss:$16 sps:$4 sm:$0xff]  }
 0x115   : > { %2465 = vmatpush2.bf16.msra.mxu0 %v3305_v14  ;;  %v3401_v14 = vld [vmem:[%s4153_s7 + $0x14c] ss:$16 sps:$4 sm:$0xff]  }
 0x116   : > { %2506 = vmatpush2.bf16.msra.mxu1 %v3308_v15  ;;  %2466 = vmatprep.subr.bf16.mxu0 %v3313_v16  ;;  %v3404_v15 = vld [vmem:[%s4153_s7 + $0x34c] ss:$16 sps:$4 sm:$0xff]   ;;  %v3399_v16 = vld [vmem:[%s4153_s7 + $0x148] ss:$16 sps:$4 sm:$0xff]  }
 0x117   : > { %2507 = vmatprep.subr.bf16.mxu1 %v3316_v17  ;;  %v3402_v17 = vld [vmem:[%s4153_s7 + $0x348] ss:$16 sps:$4 sm:$0xff]  }
 0x119   : > { %2467 = vmatpush2.bf16.msra.mxu0 %v3311_v18  ;;  %v3407_v18 = vld [vmem:[%s4153_s7 + $0x12c] ss:$16 sps:$4 sm:$0xff]  }
 0x11a   : > { %2508 = vmatpush2.bf16.msra.mxu1 %v3314_v19  ;;  %2518 = vmatprep.subr.bf16.mxu0 %v3323_v20  ;;  %v3410_v19 = vld [vmem:[%s4153_s7 + $0x32c] ss:$16 sps:$4 sm:$0xff]   ;;  %v3405_v20 = vld [vmem:[%s4153_s7 + $0x128] ss:$16 sps:$4 sm:$0xff]  }
 0x11b   : > { %2559 = vmatprep.subr.bf16.mxu1 %v3326_v21  ;;  %v3408_v21 = vld [vmem:[%s4153_s7 + $0x328] ss:$16 sps:$4 sm:$0xff]  }
 0x11c   : > { %2469 = vmatmul.mubr.bf16.vlgmr.msra.gmra.mxu0 %v4319_v22 }
 0x11d   : > { %2510 = vmatmul.mubr.bf16.vlgmr.msra.gmra.mxu1 %v4323_v23  ;;  %2519 = vmatpush1.bf16.msra.mxu0 %v3321_v24  ;;  %v3413_v24 = vld [vmem:[%s4153_s7 + $0x10c] ss:$16 sps:$4 sm:$0xff]  }
 0x11e   : > { %2560 = vmatpush1.bf16.msra.mxu1 %v3324_v25  ;;  %2520 = vmatprep.subr.bf16.mxu0 %v3329_v26  ;;  %v3416_v25 = vld [vmem:[%s4153_s7 + $0x30c] ss:$16 sps:$4 sm:$0xff]   ;;  %v3411_v26 = vld [vmem:[%s4153_s7 + $0x108] ss:$16 sps:$4 sm:$0xff]  }
 0x11f   : > { %2561 = vmatprep.subr.bf16.mxu1 %v3332_v27  ;;  %2550 = vmatprep.mubr.bf16.mxu0 %v4147_v2  ;;  %v3347_v2 = vld [vmem:[%s4153_s7 + $0x6c] ss:$16 sps:$4 sm:$0xff]   ;;  %v3414_v27 = vld [vmem:[%s4153_s7 + $0x308] ss:$16 sps:$4 sm:$0xff]  }
 0x120   : > { %2591 = vmatprep.mubr.bf16.mxu1 %v4151_v3  ;;  %v3350_v3 = vld [vmem:[%s4153_s7 + $0x26c] ss:$16 sps:$4 sm:$0xff]  }
 0x121   : > { %2521 = vmatpush1.bf16.msra.mxu0 %v3327_v10  ;;  %v3419_v10 = vld [vmem:[%s4153_s7 + $0x4ec] ss:$16 sps:$4 sm:$0xff]  }
 0x122   : > { %2562 = vmatpush1.bf16.msra.mxu1 %v3330_v28  ;;  %2522 = vmatprep.subr.bf16.mxu0 %v3335_v11  ;;  %v3422_v28 = vld [vmem:[%s4153_s7 + $0x6ec] ss:$16 sps:$4 sm:$0xff]   ;;  %v3417_v11 = vld [vmem:[%s4153_s7 + $0x4e8] ss:$16 sps:$4 sm:$0xff]  }
 0x123   : > { %2563 = vmatprep.subr.bf16.mxu1 %v3338_v29  ;;  %v3420_v29 = vld [vmem:[%s4153_s7 + $0x6e8] ss:$16 sps:$4 sm:$0xff]  }
 0x125   : > { %2523 = vmatpush1.bf16.msra.mxu0 %v3333_v30  ;;  %v3425_v30 = vld [vmem:[%s4153_s7 + $0x4cc] ss:$16 sps:$4 sm:$0xff]  }
 0x126   : > { %2564 = vmatpush1.bf16.msra.mxu1 %v3336_v31  ;;  %2524 = vmatprep.subr.bf16.mxu0 %v3341_v32  ;;  %v3428_v31 = vld [vmem:[%s4153_s7 + $0x6cc] ss:$16 sps:$4 sm:$0xff]   ;;  %v3423_v32 = vld [vmem:[%s4153_s7 + $0x4c8] ss:$16 sps:$4 sm:$0xff]  }
 0x127   : > { %2565 = vmatprep.subr.bf16.mxu1 %v3344_v33  ;;  %v3426_v33 = vld [vmem:[%s4153_s7 + $0x6c8] ss:$16 sps:$4 sm:$0xff]  }
 0x129   : > { %2525 = vmatpush1.bf16.msra.mxu0 %v3339_v34  ;;  %v3431_v34 = vld [vmem:[%s4153_s7 + $0x4ac] ss:$16 sps:$4 sm:$0xff]  }
 0x12a   : > { %2566 = vmatpush1.bf16.msra.mxu1 %v3342_v35  ;;  %2526 = vmatprep.subr.bf16.mxu0 %v3347_v2  ;;  %v3434_v35 = vld [vmem:[%s4153_s7 + $0x6ac] ss:$16 sps:$4 sm:$0xff]  }
 0x12b   : > { %2567 = vmatprep.subr.bf16.mxu1 %v3350_v3  ;;  %v3437_v2 = vld [vmem:[%s4153_s7 + $0x48c] ss:$16 sps:$4 sm:$0xff]  }
 0x12c   : > { %v3440_v3 = vld [vmem:[%s4153_s7 + $0x68c] ss:$16 sps:$4 sm:$0xff]  }
 0x12d   : > { %2527 = vmatpush1.bf16.msra.mxu0 %v3345_v36  ;;  %v3435_v36 = vld [vmem:[%s4153_s7 + $0x488] ss:$16 sps:$4 sm:$0xff]  }
 0x12e   : > { %2568 = vmatpush1.bf16.msra.mxu1 %v3348_v37  ;;  %2528 = vmatprep.subr.bf16.mxu0 %v3353_v38  ;;  %v3446_v37 = vld [vmem:[%s4153_s7 + $0x66c] ss:$16 sps:$4 sm:$0xff]   ;;  %v3441_v38 = vld [vmem:[%s4153_s7 + $0x468] ss:$16 sps:$4 sm:$0xff]  }
 0x12f   : > { %2569 = vmatprep.subr.bf16.mxu1 %v3356_v39  ;;  %v3444_v39 = vld [vmem:[%s4153_s7 + $0x668] ss:$16 sps:$4 sm:$0xff]  }
 0x131   : > { %2529 = vmatpush1.bf16.msra.mxu0 %v3351_v40  ;;  %v3449_v40 = vld [vmem:[%s4153_s7 + $0x44c] ss:$16 sps:$4 sm:$0xff]  }
 0x132   : > { %2570 = vmatpush1.bf16.msra.mxu1 %v3354_v41  ;;  %2530 = vmatprep.subr.bf16.mxu0 %v3359_v42  ;;  %v3452_v41 = vld [vmem:[%s4153_s7 + $0x64c] ss:$16 sps:$4 sm:$0xff]   ;;  %v3447_v42 = vld [vmem:[%s4153_s7 + $0x448] ss:$16 sps:$4 sm:$0xff]  }
 0x133   : > { %2571 = vmatprep.subr.bf16.mxu1 %v3362_v43  ;;  %v3450_v43 = vld [vmem:[%s4153_s7 + $0x648] ss:$16 sps:$4 sm:$0xff]  }
 0x135   : > { %2531 = vmatpush1.bf16.msra.mxu0 %v3357_v44  ;;  %v3455_v44 = vld [vmem:[%s4153_s7 + $0x42c] ss:$16 sps:$4 sm:$0xff]  }
 0x136   : > { %2572 = vmatpush1.bf16.msra.mxu1 %v3360_v45  ;;  %2532 = vmatprep.subr.bf16.mxu0 %v3365_v46  ;;  %v3458_v45 = vld [vmem:[%s4153_s7 + $0x62c] ss:$16 sps:$4 sm:$0xff]   ;;  %v3453_v46 = vld [vmem:[%s4153_s7 + $0x428] ss:$16 sps:$4 sm:$0xff]  }
 0x137   : > { %2573 = vmatprep.subr.bf16.mxu1 %v3368_v47  ;;  %v3456_v47 = vld [vmem:[%s4153_s7 + $0x628] ss:$16 sps:$4 sm:$0xff]  }
 0x139   : > { %2533 = vmatpush1.bf16.msra.mxu0 %v3363_v48  ;;  %v3461_v48 = vld [vmem:[%s4153_s7 + $0x40c] ss:$16 sps:$4 sm:$0xff]  }
 0x13a   : > { %2574 = vmatpush1.bf16.msra.mxu1 %v3366_v49  ;;  %2534 = vmatprep.subr.bf16.mxu0 %v3371_v50  ;;  %v3464_v49 = vld [vmem:[%s4153_s7 + $0x60c] ss:$16 sps:$4 sm:$0xff]   ;;  %v3459_v50 = vld [vmem:[%s4153_s7 + $0x408] ss:$16 sps:$4 sm:$0xff]  }
 0x13b   : > { %2575 = vmatprep.subr.bf16.mxu1 %v3374_v51  ;;  %v3462_v51 = vld [vmem:[%s4153_s7 + $0x608] ss:$16 sps:$4 sm:$0xff]  }
 0x13d   : > { %2535 = vmatpush2.bf16.msra.mxu0 %v3369_v52  ;;  %v3467_v52 = vld [vmem:[%s4153_s7 + $0x5ec] ss:$16 sps:$4 sm:$0xff]  }
 0x13e   : > { %2576 = vmatpush2.bf16.msra.mxu1 %v3372_v53  ;;  %2536 = vmatprep.subr.bf16.mxu0 %v3377_v54  ;;  %v3470_v53 = vld [vmem:[%s4153_s7 + $0x7ec] ss:$16 sps:$4 sm:$0xff]   ;;  %v3465_v54 = vld [vmem:[%s4153_s7 + $0x5e8] ss:$16 sps:$4 sm:$0xff]  }
 0x13f   : > { %2577 = vmatprep.subr.bf16.mxu1 %v3380_v55  ;;  %v3468_v55 = vld [vmem:[%s4153_s7 + $0x7e8] ss:$16 sps:$4 sm:$0xff]  }
 0x141   : > { %2537 = vmatpush2.bf16.msra.mxu0 %v3375_v56  ;;  %v3473_v56 = vld [vmem:[%s4153_s7 + $0x5cc] ss:$16 sps:$4 sm:$0xff]  }
 0x142   : > { %2578 = vmatpush2.bf16.msra.mxu1 %v3378_v57  ;;  %2538 = vmatprep.subr.bf16.mxu0 %v3383_v58  ;;  %v3476_v57 = vld [vmem:[%s4153_s7 + $0x7cc] ss:$16 sps:$4 sm:$0xff]   ;;  %v3471_v58 = vld [vmem:[%s4153_s7 + $0x5c8] ss:$16 sps:$4 sm:$0xff]  }
 0x143   : > { %2579 = vmatprep.subr.bf16.mxu1 %v3386_v59  ;;  %v3474_v59 = vld [vmem:[%s4153_s7 + $0x7c8] ss:$16 sps:$4 sm:$0xff]  }
 0x145   : > { %2539 = vmatpush2.bf16.msra.mxu0 %v3381_v60  ;;  %v3479_v60 = vld [vmem:[%s4153_s7 + $0x5ac] ss:$16 sps:$4 sm:$0xff]  }
 0x146   : > { %2580 = vmatpush2.bf16.msra.mxu1 %v3384_v61  ;;  %2540 = vmatprep.subr.bf16.mxu0 %v3389_v62  ;;  %v3482_v61 = vld [vmem:[%s4153_s7 + $0x7ac] ss:$16 sps:$4 sm:$0xff]   ;;  %v3477_v62 = vld [vmem:[%s4153_s7 + $0x5a8] ss:$16 sps:$4 sm:$0xff]  }
 0x147   : > { %2581 = vmatprep.subr.bf16.mxu1 %v3392_v63  ;;  %v3480_v63 = vld [vmem:[%s4153_s7 + $0x7a8] ss:$16 sps:$4 sm:$0xff]  }
 0x149   : > { %2541 = vmatpush2.bf16.msra.mxu0 %v3387_v4  ;;  %v3485_v4 = vld [vmem:[%s4153_s7 + $0x58c] ss:$16 sps:$4 sm:$0xff]  }
 0x14a   : > { %2582 = vmatpush2.bf16.msra.mxu1 %v3390_v5  ;;  %2542 = vmatprep.subr.bf16.mxu0 %v3395_v6  ;;  %v3488_v5 = vld [vmem:[%s4153_s7 + $0x78c] ss:$16 sps:$4 sm:$0xff]   ;;  %v3483_v6 = vld [vmem:[%s4153_s7 + $0x588] ss:$16 sps:$4 sm:$0xff]  }
 0x14b   : > { %2583 = vmatprep.subr.bf16.mxu1 %v3398_v7  ;;  %v3486_v7 = vld [vmem:[%s4153_s7 + $0x788] ss:$16 sps:$4 sm:$0xff]  }
 0x14d   : > { %2543 = vmatpush2.bf16.msra.mxu0 %v3393_v8  ;;  %v3491_v8 = vld [vmem:[%s4153_s7 + $0x56c] ss:$16 sps:$4 sm:$0xff]  }
 0x14e   : > { %2584 = vmatpush2.bf16.msra.mxu1 %v3396_v9  ;;  %2544 = vmatprep.subr.bf16.mxu0 %v3401_v14  ;;  %v3494_v9 = vld [vmem:[%s4153_s7 + $0x76c] ss:$16 sps:$4 sm:$0xff]   ;;  %v3489_v14 = vld [vmem:[%s4153_s7 + $0x568] ss:$16 sps:$4 sm:$0xff]  }
 0x14f   : > { %2585 = vmatprep.subr.bf16.mxu1 %v3404_v15  ;;  %v3492_v15 = vld [vmem:[%s4153_s7 + $0x768] ss:$16 sps:$4 sm:$0xff]  }
 0x151   : > { %2545 = vmatpush2.bf16.msra.mxu0 %v3399_v16  ;;  %v3497_v16 = vld [vmem:[%s4153_s7 + $0x54c] ss:$16 sps:$4 sm:$0xff]  }
 0x152   : > { %2586 = vmatpush2.bf16.msra.mxu1 %v3402_v17  ;;  %2546 = vmatprep.subr.bf16.mxu0 %v3407_v18  ;;  %v3500_v17 = vld [vmem:[%s4153_s7 + $0x74c] ss:$16 sps:$4 sm:$0xff]   ;;  %v3495_v18 = vld [vmem:[%s4153_s7 + $0x548] ss:$16 sps:$4 sm:$0xff]  }
 0x153   : > { %2587 = vmatprep.subr.bf16.mxu1 %v3410_v19  ;;  %v3498_v19 = vld [vmem:[%s4153_s7 + $0x748] ss:$16 sps:$4 sm:$0xff]  }
 0x155   : > { %2547 = vmatpush2.bf16.msra.mxu0 %v3405_v20  ;;  %v3503_v20 = vld [vmem:[%s4153_s7 + $0x52c] ss:$16 sps:$4 sm:$0xff]  }
 0x156   : > { %2588 = vmatpush2.bf16.msra.mxu1 %v3408_v21  ;;  %2548 = vmatprep.subr.bf16.mxu0 %v3413_v24  ;;  %v3506_v21 = vld [vmem:[%s4153_s7 + $0x72c] ss:$16 sps:$4 sm:$0xff]   ;;  %v3501_v24 = vld [vmem:[%s4153_s7 + $0x528] ss:$16 sps:$4 sm:$0xff]  }
 0x157   : > { %2589 = vmatprep.subr.bf16.mxu1 %v3416_v25  ;;  %v3504_v25 = vld [vmem:[%s4153_s7 + $0x728] ss:$16 sps:$4 sm:$0xff]  }
 0x159   : > { %2549 = vmatpush2.bf16.msra.mxu0 %v3411_v26  ;;  %v3509_v26 = vld [vmem:[%s4153_s7 + $0x50c] ss:$16 sps:$4 sm:$0xff]  }
 0x15a   : > { %2590 = vmatpush2.bf16.msra.mxu1 %v3414_v27  ;;  %2600 = vmatprep.subr.bf16.mxu0 %v3419_v10  ;;  %v3512_v27 = vld [vmem:[%s4153_s7 + $0x70c] ss:$16 sps:$4 sm:$0xff]   ;;  %v3507_v10 = vld [vmem:[%s4153_s7 + $0x508] ss:$16 sps:$4 sm:$0xff]  }
 0x15b   : > { %2641 = vmatprep.subr.bf16.mxu1 %v3422_v28  ;;  %v3510_v28 = vld [vmem:[%s4153_s7 + $0x708] ss:$16 sps:$4 sm:$0xff]  }
 0x15c   : > { %2551 = vmatmul.mubr.bf16.vlgmr.msra.gmra.mxu0 %v4235_v12  ;;  %v3429_v12 = vld [vmem:[%s4153_s7 + $0x4a8] ss:$16 sps:$4 sm:$0xff]  }
 0x15d   : > { %2592 = vmatmul.mubr.bf16.vlgmr.msra.gmra.mxu1 %v4239_v13  ;;  %2601 = vmatpush1.bf16.msra.mxu0 %v3417_v11  ;;  %v3432_v13 = vld [vmem:[%s4153_s7 + $0x6a8] ss:$16 sps:$4 sm:$0xff]  }
 0x15e   : > { %2642 = vmatpush1.bf16.msra.mxu1 %v3420_v29  ;;  %2602 = vmatprep.subr.bf16.mxu0 %v3425_v30 }
 0x15f   : > { %2643 = vmatprep.subr.bf16.mxu1 %v3428_v31  ;;  %2632 = vmatprep.mubr.bf16.mxu0 %v4247_v0  ;;  %v3438_v0 = vld [vmem:[%s4153_s7 + $0x688] ss:$16 sps:$4 sm:$0xff]  }
 0x160   : > { %2673 = vmatprep.mubr.bf16.mxu1 %v4251_v1  ;;  %v3443_v1 = vld [vmem:[%s4153_s7 + $0x46c] ss:$16 sps:$4 sm:$0xff]  }
 0x161   : > { %2603 = vmatpush1.bf16.msra.mxu0 %v3423_v32 }
 0x162   : > { %2644 = vmatpush1.bf16.msra.mxu1 %v3426_v33  ;;  %2604 = vmatprep.subr.bf16.mxu0 %v3431_v34 }
 0x163   : > { %2645 = vmatprep.subr.bf16.mxu1 %v3434_v35 }
 0x165   : > { %2605 = vmatpush1.bf16.msra.mxu0 %v3429_v12  ;;  %v1026_v12 = vlaneseq }
 0x166   : > { %2646 = vmatpush1.bf16.msra.mxu1 %v3432_v13  ;;  %2606 = vmatprep.subr.bf16.mxu0 %v3437_v2 }
 0x167   : > { %2647 = vmatprep.subr.bf16.mxu1 %v3440_v3  ;;  %v1027_v13 = vshrl.u32 %v1026_v12, 7  ;;  %v1024_v3 = vld [vmem:[%s752_s21] sm:$0xf] }
 0x169   : > { %2607 = vmatpush1.bf16.msra.mxu0 %v3435_v36  ;;  %v1028_v2 = vsub.s32 0, %v1027_v13 }
 0x16a   : > { %2648 = vmatpush1.bf16.msra.mxu1 %v3438_v0  ;;  %2608 = vmatprep.subr.bf16.mxu0 %v3443_v1 }
 0x16b   : > { %2649 = vmatprep.subr.bf16.mxu1 %v3446_v37  ;;  %v1029_v36 = vrot.slane %v1024_v3, %v1028_v2 }
 0x16d   : > { %2609 = vmatpush1.bf16.msra.mxu0 %v3441_v38 }
 0x16e   : > { %2650 = vmatpush1.bf16.msra.mxu1 %v3444_v39  ;;  %2610 = vmatprep.subr.bf16.mxu0 %v3449_v40 }
 0x16f   : > { %2651 = vmatprep.subr.bf16.mxu1 %v3452_v41 }
 0x171   : > { %2611 = vmatpush1.bf16.msra.mxu0 %v3447_v42 }
 0x172   : > { %2652 = vmatpush1.bf16.msra.mxu1 %v3450_v43  ;;  %2612 = vmatprep.subr.bf16.mxu0 %v3455_v44 }
 0x173   : > { %2653 = vmatprep.subr.bf16.mxu1 %v3458_v45 }
 0x175   : > { %2613 = vmatpush1.bf16.msra.mxu0 %v3453_v46 }
 0x176   : > { %2654 = vmatpush1.bf16.msra.mxu1 %v3456_v47  ;;  %2614 = vmatprep.subr.bf16.mxu0 %v3461_v48 }
 0x177   : > { %2655 = vmatprep.subr.bf16.mxu1 %v3464_v49 }
 0x179   : > { %2615 = vmatpush1.bf16.msra.mxu0 %v3459_v50 }
 0x17a   : > { %2656 = vmatpush1.bf16.msra.mxu1 %v3462_v51  ;;  %2616 = vmatprep.subr.bf16.mxu0 %v3467_v52 }
 0x17b   : > { %2657 = vmatprep.subr.bf16.mxu1 %v3470_v53 }
 0x17d   : > { %2617 = vmatpush2.bf16.msra.mxu0 %v3465_v54 }
 0x17e   : > { %2658 = vmatpush2.bf16.msra.mxu1 %v3468_v55  ;;  %2618 = vmatprep.subr.bf16.mxu0 %v3473_v56 }
 0x17f   : > { %2659 = vmatprep.subr.bf16.mxu1 %v3476_v57 }
 0x181   : > { %2619 = vmatpush2.bf16.msra.mxu0 %v3471_v58 }
 0x182   : > { %2660 = vmatpush2.bf16.msra.mxu1 %v3474_v59  ;;  %2620 = vmatprep.subr.bf16.mxu0 %v3479_v60 }
 0x183   : > { %2661 = vmatprep.subr.bf16.mxu1 %v3482_v61  ;;  %v1036_v61 = vsub.s32 2, %v1027_v13 }
 0x185   : > { %2621 = vmatpush2.bf16.msra.mxu0 %v3477_v62  ;;  %v1040_v62 = vsub.s32 3, %v1027_v13 }
 0x186   : > { %2662 = vmatpush2.bf16.msra.mxu1 %v3480_v63  ;;  %2622 = vmatprep.subr.bf16.mxu0 %v3485_v4  ;;  %v1037_v63 = vrot.slane %v1024_v3, %v1036_v61 }
 0x187   : > { %2663 = vmatprep.subr.bf16.mxu1 %v3488_v5  ;;  %v1041_v4 = vrot.slane %v1024_v3, %v1040_v62 }
 0x189   : > { %2623 = vmatpush2.bf16.msra.mxu0 %v3483_v6 }
 0x18a   : > { %2664 = vmatpush2.bf16.msra.mxu1 %v3486_v7  ;;  %2624 = vmatprep.subr.bf16.mxu0 %v3491_v8 }
 0x18b   : > { %2665 = vmatprep.subr.bf16.mxu1 %v3494_v9 }
 0x18d   : > { %2625 = vmatpush2.bf16.msra.mxu0 %v3489_v14 }
 0x18e   : > { %2666 = vmatpush2.bf16.msra.mxu1 %v3492_v15  ;;  %2626 = vmatprep.subr.bf16.mxu0 %v3497_v16 }
 0x18f   : > { %2667 = vmatprep.subr.bf16.mxu1 %v3500_v17 }
 0x191   : > { %2627 = vmatpush2.bf16.msra.mxu0 %v3495_v18 }
 0x192   : > { %2668 = vmatpush2.bf16.msra.mxu1 %v3498_v19  ;;  %2628 = vmatprep.subr.bf16.mxu0 %v3503_v20 }
 0x193   : > { %2669 = vmatprep.subr.bf16.mxu1 %v3506_v21 }
 0x195   : > { %2629 = vmatpush2.bf16.msra.mxu0 %v3501_v24 }
 0x196   : > { %2670 = vmatpush2.bf16.msra.mxu1 %v3504_v25  ;;  %2630 = vmatprep.subr.bf16.mxu0 %v3509_v26 }
 0x197   : > { %2671 = vmatprep.subr.bf16.mxu1 %v3512_v27 }
 0x199   : > { %2631 = vmatpush2.bf16.msra.mxu0 %v3507_v10 }
 0x19a   : > { %2672 = vmatpush2.bf16.msra.mxu1 %v3510_v28 }
 0x19c   : > { %v2388_v11 = vpop.f32.mrf.mxu0  ;;  %2633 = vmatmul.mubr.bf16.vlgmr.msra.gmra.mxu0 %v4319_v22  ;;  %v1032_v22 = vsub.s32 1, %v1027_v13 }
 0x19d   : > { %v2429_v29 = vpop.f32.mrf.mxu1  ;;  %2674 = vmatmul.mubr.bf16.vlgmr.msra.gmra.mxu1 %v4323_v23  ;;  %v2389_v0 = vadd.f32 %v2388_v11, %v1029_v36 }
 0x19e   : > { %v2390_v30 = vpop.f32.mrf.mxu0  ;;  %v1033_v23 = vrot.slane %v1024_v3, %v1032_v22 }
 0x19f   : > { %v2431_v31 = vpop.f32.mrf.mxu1  ;;  %v2430_v37 = vadd.f32 %v2429_v29, %v2389_v0 }
 0x1a0   : > { %v2392_v32 = vpop.f32.mrf.mxu0  ;;  %v2391_v1 = vadd.f32 %v2390_v30, %v1033_v23 }
 0x1a1   : > { %v2433_v33 = vpop.f32.mrf.mxu1 }
 0x1a2   : > { %v2393_v34 = vpop.f32.mrf.mxu0  ;;  %v2432_v40 = vadd.f32 %v2431_v31, %v2391_v1 }
 0x1a3   : > { %v2434_v35 = vpop.f32.mrf.mxu1 }
 0x1dc   : > { %v2470_v38 = vpop.f32.mrf.mxu0 }
 0x1dd   : > { %v2511_v39 = vpop.f32.mrf.mxu1  ;;  %v2471_v41 = vadd.f32 %v2470_v38, %v2430_v37 }
 0x1de   : > { %v2472_v42 = vpop.f32.mrf.mxu0 }
 0x1df   : > { %v2513_v43 = vpop.f32.mrf.mxu1  ;;  %v2512_v44 = vadd.f32 %v2511_v39, %v2471_v41  ;;  %v2473_v45 = vadd.f32 %v2472_v42, %v2432_v40 }
 0x1e0   : > { %v2474_v46 = vpop.f32.mrf.mxu0 }
 0x1e1   : > { %v2515_v47 = vpop.f32.mrf.mxu1  ;;  %v2682_v48 = vmax.f32 %v2512_v44, 0.0  ;;  %v2514_v49 = vadd.f32 %v2513_v43, %v2473_v45 }
 0x1e2   : > { %v2475_v50 = vpop.f32.mrf.mxu0 }
 0x1e3   : > { %v2516_v51 = vpop.f32.mrf.mxu1  ;;  %2686 = vst [vmem:[%s4468_s24] sm:$0xff] %v2682_v48  ;;  %v2683_v52 = vmax.f32 %v2514_v49, 0.0 }
 0x1e5   : > { %2687 = vst [vmem:[%s4468_s24 + $0x8] sm:$0xff] %v2683_v52 }
 0x21c   : > { %v2552_v53 = vpop.f32.mrf.mxu0 }
 0x21d   : > { %v2593_v54 = vpop.f32.mrf.mxu1  ;;  %v2553_v5 = vadd.f32 %v2552_v53, %v1037_v63 }
 0x21e   : > { %v2554_v55 = vpop.f32.mrf.mxu0 }
 0x21f   : > { %v2595_v56 = vpop.f32.mrf.mxu1  ;;  %v2555_v6 = vadd.f32 %v2554_v55, %v1041_v4  ;;  %v2594_v7 = vadd.f32 %v2593_v54, %v2553_v5 }
 0x220   : > { %v2556_v57 = vpop.f32.mrf.mxu0 }
 0x221   : > { %v2597_v58 = vpop.f32.mrf.mxu1  ;;  %v2596_v14 = vadd.f32 %v2595_v56, %v2555_v6 }
 0x222   : > { %v2557_v59 = vpop.f32.mrf.mxu0 }
 0x223   : > { %v2598_v60 = vpop.f32.mrf.mxu1 }
 0x25c   : > { %v2634_v8 = vpop.f32.mrf.mxu0 }
 0x25d   : > { %v2675_v9 = vpop.f32.mrf.mxu1  ;;  %v2635_v15 = vadd.f32 %v2634_v8, %v2594_v7 }
 0x25e   : > { %v2636_v16 = vpop.f32.mrf.mxu0 }
 0x25f   : > { %v2677_v17 = vpop.f32.mrf.mxu1  ;;  %v2676_v18 = vadd.f32 %v2675_v9, %v2635_v15  ;;  %v2637_v19 = vadd.f32 %v2636_v16, %v2596_v14 }
 0x260   : > { %v2638_v20 = vpop.f32.mrf.mxu0 }
 0x261   : > { %v2679_v21 = vpop.f32.mrf.mxu1  ;;  %v2684_v24 = vmax.f32 %v2676_v18, 0.0  ;;  %v2678_v25 = vadd.f32 %v2677_v17, %v2637_v19 }
 0x262   : > { %v2639_v26 = vpop.f32.mrf.mxu0 }
 0x263   : > { %v2680_v27 = vpop.f32.mrf.mxu1  ;;  %2688 = vst [vmem:[%s4468_s24 + $0x10] sm:$0xff] %v2684_v24  ;;  %v2685_v10 = vmax.f32 %v2678_v25, 0.0 }
 0x265   : > { %2689 = vst [vmem:[%s4468_s24 + $0x18] sm:$0xff] %v2685_v10 }
 0x266 PF: > { %s13_s16 = sadd.s32 1, %s3551_s16   ;;  %s4493_s12 = smov %s3539_s13 }
 0x267   : > { %p10_p10 = scmp.ge.s32.totalorder %s13_s16, 11   ;;  %s4494_s13 = smov %s3608_s20 }
 0x268   : > { %s4495_s14 = smov %s3547_s15  ;;  %s4496_s15 = smov %s4498_s17 }
 0x269   :  { %12 = sbr.rel (!%p10_p10) target bundleno = 3 (0x3), region = 96 }

// kernel: decoder_forward.6
= control target key start
LH: loop header
LB: loop body
LE: loop exit
PB: predicated region body
PF: predicated region fallthrough
CT: control target
= control target key end

     0   :  { %s2453_s1 = inlined_call_operand.vmem [shape: bf16[512,512], index: 1, kind: input, shape index: {}]   ;;  %s2454_s0 = inlined_call_operand.vmem [shape: bf16[72,512], index: 0, kind: input, shape index: {}]   ;;  %s2455_s2 = inlined_call_operand.vmem [shape: f32[1,512], index: 2, kind: input, shape index: {}]   ;;  %s2456_s3 = inlined_call_operand.vmem [shape: bf16[72,512], index: 3, kind: output, shape index: {}]  }
   0x1   :  { %v1594_v0 = vld [vmem:[%s2453_s1 + $0xe4] ss:$16 sps:$4 sm:$0xff]   ;;  %v1598_v2 = vld [vmem:[%s2453_s1 + $0xe0] ss:$16 sps:$4 sm:$0xff]   ;;  %v1992_v51 = vld [vmem:[%s2454_s0 + $0xc] ss:$16 sps:$4 sm:$0xff]  }
   0x2   :  { %v1596_v1 = vld [vmem:[%s2453_s1 + $0x2e4] ss:$16 sps:$4 sm:$0xff]   ;;  %916 = vmatprep.subr.bf16.mxu0 %v1594_v0  ;;  %v1599_v3 = vld [vmem:[%s2453_s1 + $0x2e0] ss:$16 sps:$4 sm:$0xff]   ;;  %1029 = vmatprep.mubr.bf16.mxu1 %v1992_v51 }
   0x3   :  { %997 = vmatprep.subr.bf16.mxu1 %v1596_v1  ;;  %v1600_v4 = vld [vmem:[%s2453_s1 + $0xc4] ss:$16 sps:$4 sm:$0xff]   ;;  %917 = vmatpush1.bf16.msra.mxu0 %v1598_v2  ;;  %v1604_v6 = vld [vmem:[%s2453_s1 + $0xc0] ss:$16 sps:$4 sm:$0xff]   ;;  %v1698_v2 = vld [vmem:[%s2453_s1 + $0xec] ss:$16 sps:$4 sm:$0xff]  }
   0x4   :  { %998 = vmatpush1.bf16.msra.mxu1 %v1599_v3  ;;  %v1602_v5 = vld [vmem:[%s2453_s1 + $0x2c4] ss:$16 sps:$4 sm:$0xff]   ;;  %918 = vmatprep.subr.bf16.mxu0 %v1600_v4  ;;  %v1605_v7 = vld [vmem:[%s2453_s1 + $0x2c0] ss:$16 sps:$4 sm:$0xff]   ;;  %v1701_v3 = vld [vmem:[%s2453_s1 + $0x2ec] ss:$16 sps:$4 sm:$0xff]  }
   0x5   :  { %999 = vmatprep.subr.bf16.mxu1 %v1602_v5  ;;  %v1606_v8 = vld [vmem:[%s2453_s1 + $0xa4] ss:$16 sps:$4 sm:$0xff]   ;;  %v1610_v10 = vld [vmem:[%s2453_s1 + $0xa0] ss:$16 sps:$4 sm:$0xff]   ;;  %v2052_v5 = vld [vmem:[%s2454_s0 + $0x8] ss:$16 sps:$4 sm:$0xff]  }
   0x6   :  { %v1608_v9 = vld [vmem:[%s2453_s1 + $0x2a4] ss:$16 sps:$4 sm:$0xff]   ;;  %v1611_v11 = vld [vmem:[%s2453_s1 + $0x2a0] ss:$16 sps:$4 sm:$0xff]  }
   0x7   :  { %919 = vmatpush1.bf16.msra.mxu0 %v1604_v6  ;;  %v1612_v12 = vld [vmem:[%s2453_s1 + $0x84] ss:$16 sps:$4 sm:$0xff]   ;;  %v1616_v14 = vld [vmem:[%s2453_s1 + $0x80] ss:$16 sps:$4 sm:$0xff]   ;;  %v1696_v6 = vld [vmem:[%s2453_s1 + $0xe8] ss:$16 sps:$4 sm:$0xff]  }
   0x8   :  { %1000 = vmatpush1.bf16.msra.mxu1 %v1605_v7  ;;  %920 = vmatprep.subr.bf16.mxu0 %v1606_v8  ;;  %v1614_v13 = vld [vmem:[%s2453_s1 + $0x284] ss:$16 sps:$4 sm:$0xff]   ;;  %v1617_v15 = vld [vmem:[%s2453_s1 + $0x280] ss:$16 sps:$4 sm:$0xff]   ;;  %v1699_v7 = vld [vmem:[%s2453_s1 + $0x2e8] ss:$16 sps:$4 sm:$0xff]  }
   0x9   :  { %1001 = vmatprep.subr.bf16.mxu1 %v1608_v9  ;;  %v1618_v16 = vld [vmem:[%s2453_s1 + $0x64] ss:$16 sps:$4 sm:$0xff]   ;;  %v1622_v18 = vld [vmem:[%s2453_s1 + $0x60] ss:$16 sps:$4 sm:$0xff]   ;;  %v1704_v8 = vld [vmem:[%s2453_s1 + $0xcc] ss:$16 sps:$4 sm:$0xff]  }
   0xa   :  { %v1620_v17 = vld [vmem:[%s2453_s1 + $0x264] ss:$16 sps:$4 sm:$0xff]   ;;  %v1623_v19 = vld [vmem:[%s2453_s1 + $0x260] ss:$16 sps:$4 sm:$0xff]   ;;  %v1707_v9 = vld [vmem:[%s2453_s1 + $0x2cc] ss:$16 sps:$4 sm:$0xff]  }
   0xb   :  { %921 = vmatpush1.bf16.msra.mxu0 %v1610_v10  ;;  %v1624_v20 = vld [vmem:[%s2453_s1 + $0x44] ss:$16 sps:$4 sm:$0xff]   ;;  %v1628_v22 = vld [vmem:[%s2453_s1 + $0x40] ss:$16 sps:$4 sm:$0xff]  }
   0xc   :  { %1002 = vmatpush1.bf16.msra.mxu1 %v1611_v11  ;;  %922 = vmatprep.subr.bf16.mxu0 %v1612_v12  ;;  %v1626_v21 = vld [vmem:[%s2453_s1 + $0x244] ss:$16 sps:$4 sm:$0xff]   ;;  %v1629_v23 = vld [vmem:[%s2453_s1 + $0x240] ss:$16 sps:$4 sm:$0xff]   ;;  %v2074_v11 = vld [vmem:[%s2454_s0 + $0x2c] ss:$16 sps:$4 sm:$0xff]  }
   0xd   :  { %1003 = vmatprep.subr.bf16.mxu1 %v1614_v13  ;;  %v1630_v24 = vld [vmem:[%s2453_s1 + $0x24] ss:$16 sps:$4 sm:$0xff]   ;;  %v1634_v26 = vld [vmem:[%s2453_s1 + $0x20] ss:$16 sps:$4 sm:$0xff]   ;;  %v1702_v12 = vld [vmem:[%s2453_s1 + $0xc8] ss:$16 sps:$4 sm:$0xff]  }
   0xe   :  { %v1632_v25 = vld [vmem:[%s2453_s1 + $0x224] ss:$16 sps:$4 sm:$0xff]   ;;  %v1635_v27 = vld [vmem:[%s2453_s1 + $0x220] ss:$16 sps:$4 sm:$0xff]   ;;  %v1705_v13 = vld [vmem:[%s2453_s1 + $0x2c8] ss:$16 sps:$4 sm:$0xff]  }
   0xf   :  { %923 = vmatpush1.bf16.msra.mxu0 %v1616_v14  ;;  %v1636_v28 = vld [vmem:[%s2453_s1 + $0x4] ss:$16 sps:$4 sm:$0xff]   ;;  %v1640_v30 = vld [vmem:[%s2453_s1] ss:$16 sps:$4 sm:$0xff]   ;;  %v1710_v14 = vld [vmem:[%s2453_s1 + $0xac] ss:$16 sps:$4 sm:$0xff]  }
  0x10   :  { %1004 = vmatpush1.bf16.msra.mxu1 %v1617_v15  ;;  %924 = vmatprep.subr.bf16.mxu0 %v1618_v16  ;;  %v1638_v29 = vld [vmem:[%s2453_s1 + $0x204] ss:$16 sps:$4 sm:$0xff]   ;;  %v1641_v31 = vld [vmem:[%s2453_s1 + $0x200] ss:$16 sps:$4 sm:$0xff]   ;;  %v1713_v15 = vld [vmem:[%s2453_s1 + $0x2ac] ss:$16 sps:$4 sm:$0xff]  }
  0x11   :  { %1005 = vmatprep.subr.bf16.mxu1 %v1620_v17  ;;  %v1642_v32 = vld [vmem:[%s2453_s1 + $0x1e4] ss:$16 sps:$4 sm:$0xff]   ;;  %v1646_v34 = vld [vmem:[%s2453_s1 + $0x1e0] ss:$16 sps:$4 sm:$0xff]   ;;  %v1708_v16 = vld [vmem:[%s2453_s1 + $0xa8] ss:$16 sps:$4 sm:$0xff]  }
  0x12   :  { %v1644_v33 = vld [vmem:[%s2453_s1 + $0x3e4] ss:$16 sps:$4 sm:$0xff]   ;;  %v1647_v35 = vld [vmem:[%s2453_s1 + $0x3e0] ss:$16 sps:$4 sm:$0xff]   ;;  %v1711_v17 = vld [vmem:[%s2453_s1 + $0x2a8] ss:$16 sps:$4 sm:$0xff]  }
  0x13   :  { %925 = vmatpush1.bf16.msra.mxu0 %v1622_v18  ;;  %v1648_v36 = vld [vmem:[%s2453_s1 + $0x1c4] ss:$16 sps:$4 sm:$0xff]   ;;  %v1652_v38 = vld [vmem:[%s2453_s1 + $0x1c0] ss:$16 sps:$4 sm:$0xff]  }
  0x14   :  { %1006 = vmatpush1.bf16.msra.mxu1 %v1623_v19  ;;  %926 = vmatprep.subr.bf16.mxu0 %v1624_v20  ;;  %v1650_v37 = vld [vmem:[%s2453_s1 + $0x3c4] ss:$16 sps:$4 sm:$0xff]   ;;  %v1653_v39 = vld [vmem:[%s2453_s1 + $0x3c0] ss:$16 sps:$4 sm:$0xff]   ;;  %v2106_v19 = vld [vmem:[%s2454_s0 + $0x28] ss:$16 sps:$4 sm:$0xff]  }
  0x15   :  { %1007 = vmatprep.subr.bf16.mxu1 %v1626_v21  ;;  %v1654_v40 = vld [vmem:[%s2453_s1 + $0x1a4] ss:$16 sps:$4 sm:$0xff]   ;;  %v1658_v42 = vld [vmem:[%s2453_s1 + $0x1a0] ss:$16 sps:$4 sm:$0xff]   ;;  %v1716_v20 = vld [vmem:[%s2453_s1 + $0x8c] ss:$16 sps:$4 sm:$0xff]  }
  0x16   :  { %v1656_v41 = vld [vmem:[%s2453_s1 + $0x3a4] ss:$16 sps:$4 sm:$0xff]   ;;  %v1659_v43 = vld [vmem:[%s2453_s1 + $0x3a0] ss:$16 sps:$4 sm:$0xff]   ;;  %v1719_v21 = vld [vmem:[%s2453_s1 + $0x28c] ss:$16 sps:$4 sm:$0xff]  }
  0x17   :  { %927 = vmatpush1.bf16.msra.mxu0 %v1628_v22  ;;  %v1660_v44 = vld [vmem:[%s2453_s1 + $0x184] ss:$16 sps:$4 sm:$0xff]   ;;  %v1664_v46 = vld [vmem:[%s2453_s1 + $0x180] ss:$16 sps:$4 sm:$0xff]  }
  0x18   :  { %1008 = vmatpush1.bf16.msra.mxu1 %v1629_v23  ;;  %928 = vmatprep.subr.bf16.mxu0 %v1630_v24  ;;  %v1662_v45 = vld [vmem:[%s2453_s1 + $0x384] ss:$16 sps:$4 sm:$0xff]   ;;  %v1665_v47 = vld [vmem:[%s2453_s1 + $0x380] ss:$16 sps:$4 sm:$0xff]   ;;  %v2122_v23 = vld [vmem:[%s2454_s0 + $0x4c] ss:$16 sps:$4 sm:$0xff]  }
  0x19   :  { %1009 = vmatprep.subr.bf16.mxu1 %v1632_v25  ;;  %v1666_v48 = vld [vmem:[%s2453_s1 + $0x164] ss:$16 sps:$4 sm:$0xff]   ;;  %v1670_v52 = vld [vmem:[%s2453_s1 + $0x160] ss:$16 sps:$4 sm:$0xff]   ;;  %v1714_v24 = vld [vmem:[%s2453_s1 + $0x88] ss:$16 sps:$4 sm:$0xff]  }
  0x1a   :  { %v1984_v49 = vld [vmem:[%s2454_s0 + $0x4] ss:$16 sps:$4 sm:$0xff]   ;;  %v1671_v53 = vld [vmem:[%s2453_s1 + $0x360] ss:$16 sps:$4 sm:$0xff]   ;;  %v1717_v25 = vld [vmem:[%s2453_s1 + $0x288] ss:$16 sps:$4 sm:$0xff]  }
  0x1b   :  { %929 = vmatpush1.bf16.msra.mxu0 %v1634_v26  ;;  %v1668_v50 = vld [vmem:[%s2453_s1 + $0x364] ss:$16 sps:$4 sm:$0xff]   ;;  %948 = vmatprep.mubr.bf16.mxu0 %v1984_v49  ;;  %v1676_v56 = vld [vmem:[%s2453_s1 + $0x140] ss:$16 sps:$4 sm:$0xff]   ;;  %v1722_v26 = vld [vmem:[%s2453_s1 + $0x6c] ss:$16 sps:$4 sm:$0xff]  }
  0x1c   :  { %1010 = vmatpush1.bf16.msra.mxu1 %v1635_v27  ;;  %930 = vmatprep.subr.bf16.mxu0 %v1636_v28  ;;  %v1672_v54 = vld [vmem:[%s2453_s1 + $0x144] ss:$16 sps:$4 sm:$0xff]   ;;  %v1677_v57 = vld [vmem:[%s2453_s1 + $0x340] ss:$16 sps:$4 sm:$0xff]   ;;  %v1725_v27 = vld [vmem:[%s2453_s1 + $0x26c] ss:$16 sps:$4 sm:$0xff]  }
  0x1d   :  { %1011 = vmatprep.subr.bf16.mxu1 %v1638_v29  ;;  %v1674_v55 = vld [vmem:[%s2453_s1 + $0x344] ss:$16 sps:$4 sm:$0xff]   ;;  %v1682_v60 = vld [vmem:[%s2453_s1 + $0x120] ss:$16 sps:$4 sm:$0xff]   ;;  %v1720_v28 = vld [vmem:[%s2453_s1 + $0x68] ss:$16 sps:$4 sm:$0xff]  }
  0x1e   :  { %v1678_v58 = vld [vmem:[%s2453_s1 + $0x124] ss:$16 sps:$4 sm:$0xff]   ;;  %v1683_v61 = vld [vmem:[%s2453_s1 + $0x320] ss:$16 sps:$4 sm:$0xff]   ;;  %v1723_v29 = vld [vmem:[%s2453_s1 + $0x268] ss:$16 sps:$4 sm:$0xff]  }
  0x1f   :  { %931 = vmatpush1.bf16.msra.mxu0 %v1640_v30  ;;  %v1680_v59 = vld [vmem:[%s2453_s1 + $0x324] ss:$16 sps:$4 sm:$0xff]   ;;  %v1688_v0 = vld [vmem:[%s2453_s1 + $0x100] ss:$16 sps:$4 sm:$0xff]  }
  0x20   :  { %1012 = vmatpush1.bf16.msra.mxu1 %v1641_v31  ;;  %932 = vmatprep.subr.bf16.mxu0 %v1642_v32  ;;  %v1684_v62 = vld [vmem:[%s2453_s1 + $0x104] ss:$16 sps:$4 sm:$0xff]   ;;  %v1689_v1 = vld [vmem:[%s2453_s1 + $0x300] ss:$16 sps:$4 sm:$0xff]   ;;  %v2154_v31 = vld [vmem:[%s2454_s0 + $0x48] ss:$16 sps:$4 sm:$0xff]  }
  0x21   :  { %1013 = vmatprep.subr.bf16.mxu1 %v1644_v33  ;;  %v1686_v63 = vld [vmem:[%s2453_s1 + $0x304] ss:$16 sps:$4 sm:$0xff]   ;;  %v2047_v4 = vld [vmem:[%s2454_s0] ss:$16 sps:$4 sm:$0xff]   ;;  %v1728_v32 = vld [vmem:[%s2453_s1 + $0x4c] ss:$16 sps:$4 sm:$0xff]  }
  0x22   :  { %v2069_v10 = vld [vmem:[%s2454_s0 + $0x24] ss:$16 sps:$4 sm:$0xff]   ;;  %v2101_v18 = vld [vmem:[%s2454_s0 + $0x20] ss:$16 sps:$4 sm:$0xff]   ;;  %v1731_v33 = vld [vmem:[%s2453_s1 + $0x24c] ss:$16 sps:$4 sm:$0xff]  }
  0x23   :  { %933 = vmatpush2.bf16.msra.mxu0 %v1646_v34  ;;  %v2117_v22 = vld [vmem:[%s2454_s0 + $0x44] ss:$16 sps:$4 sm:$0xff]   ;;  %v2149_v30 = vld [vmem:[%s2454_s0 + $0x40] ss:$16 sps:$4 sm:$0xff]  }
  0x24   :  { %1014 = vmatpush2.bf16.msra.mxu1 %v1647_v35  ;;  %934 = vmatprep.subr.bf16.mxu0 %v1648_v36  ;;  %v2165_v34 = vld [vmem:[%s2454_s0 + $0x64] ss:$16 sps:$4 sm:$0xff]   ;;  %v2170_v35 = vld [vmem:[%s2454_s0 + $0x6c] ss:$16 sps:$4 sm:$0xff]   ;;  %v1726_v36 = vld [vmem:[%s2453_s1 + $0x48] ss:$16 sps:$4 sm:$0xff]  }
  0x25   :  { %1015 = vmatprep.subr.bf16.mxu1 %v1650_v37  ;;  %v1729_v37 = vld [vmem:[%s2453_s1 + $0x248] ss:$16 sps:$4 sm:$0xff]  }
  0x27   :  { %935 = vmatpush2.bf16.msra.mxu0 %v1652_v38  ;;  %v1734_v38 = vld [vmem:[%s2453_s1 + $0x2c] ss:$16 sps:$4 sm:$0xff]  }
  0x28   :  { %1016 = vmatpush2.bf16.msra.mxu1 %v1653_v39  ;;  %936 = vmatprep.subr.bf16.mxu0 %v1654_v40  ;;  %v1737_v39 = vld [vmem:[%s2453_s1 + $0x22c] ss:$16 sps:$4 sm:$0xff]   ;;  %v1732_v40 = vld [vmem:[%s2453_s1 + $0x28] ss:$16 sps:$4 sm:$0xff]  }
  0x29   :  { %1017 = vmatprep.subr.bf16.mxu1 %v1656_v41  ;;  %v1735_v41 = vld [vmem:[%s2453_s1 + $0x228] ss:$16 sps:$4 sm:$0xff]  }
  0x2b   :  { %937 = vmatpush2.bf16.msra.mxu0 %v1658_v42  ;;  %v2197_v42 = vld [vmem:[%s2454_s0 + $0x60] ss:$16 sps:$4 sm:$0xff]  }
  0x2c   :  { %1018 = vmatpush2.bf16.msra.mxu1 %v1659_v43  ;;  %938 = vmatprep.subr.bf16.mxu0 %v1660_v44  ;;  %v2202_v43 = vld [vmem:[%s2454_s0 + $0x68] ss:$16 sps:$4 sm:$0xff]   ;;  %v30_v44 = vld [vmem:[%s2454_s0 + $0x80] sm:$0xff] }
  0x2d   :  { %1019 = vmatprep.subr.bf16.mxu1 %v1662_v45  ;;  %v31_v45 = vld [vmem:[%s2454_s0 + $0x88] sm:$0xff] }
  0x2f   :  { %939 = vmatpush2.bf16.msra.mxu0 %v1664_v46  ;;  %v1746_v46 = vld [vmem:[%s2453_s1 + $0xc] ss:$16 sps:$4 sm:$0xff]  }
  0x30   :  { %1020 = vmatpush2.bf16.msra.mxu1 %v1665_v47  ;;  %940 = vmatprep.subr.bf16.mxu0 %v1666_v48  ;;  %v1749_v47 = vld [vmem:[%s2453_s1 + $0x20c] ss:$16 sps:$4 sm:$0xff]   ;;  %v2216_v48 = vcombine.high %v30_v44, %v30_v44 }
  0x31   :  { %1021 = vmatprep.subr.bf16.mxu1 %v1668_v50  ;;  %v2218_v50 = vcombine.high %v31_v45, %v31_v45 }
  0x33   :  { %941 = vmatpush2.bf16.msra.mxu0 %v1670_v52  ;;  %v1744_v52 = vld [vmem:[%s2453_s1 + $0x8] ss:$16 sps:$4 sm:$0xff]  }
  0x34   :  { %1022 = vmatpush2.bf16.msra.mxu1 %v1671_v53  ;;  %942 = vmatprep.subr.bf16.mxu0 %v1672_v54  ;;  %v1747_v53 = vld [vmem:[%s2453_s1 + $0x208] ss:$16 sps:$4 sm:$0xff]   ;;  %v1752_v54 = vld [vmem:[%s2453_s1 + $0x1ec] ss:$16 sps:$4 sm:$0xff]  }
  0x35   :  { %1023 = vmatprep.subr.bf16.mxu1 %v1674_v55  ;;  %v1755_v55 = vld [vmem:[%s2453_s1 + $0x3ec] ss:$16 sps:$4 sm:$0xff]  }
  0x37   :  { %943 = vmatpush2.bf16.msra.mxu0 %v1676_v56  ;;  %v2236_v56 = vcombine.low %v30_v44, %v30_v44 }
  0x38   :  { %1024 = vmatpush2.bf16.msra.mxu1 %v1677_v57  ;;  %944 = vmatprep.subr.bf16.mxu0 %v1678_v58  ;;  %v2238_v57 = vcombine.low %v31_v45, %v31_v45  ;;  %v1750_v58 = vld [vmem:[%s2453_s1 + $0x1e8] ss:$16 sps:$4 sm:$0xff]  }
  0x39   :  { %1025 = vmatprep.subr.bf16.mxu1 %v1680_v59  ;;  %v1753_v59 = vld [vmem:[%s2453_s1 + $0x3e8] ss:$16 sps:$4 sm:$0xff]  }
  0x3b   :  { %945 = vmatpush2.bf16.msra.mxu0 %v1682_v60  ;;  %v1764_v60 = vld [vmem:[%s2453_s1 + $0x1cc] ss:$16 sps:$4 sm:$0xff]  }
  0x3c   :  { %1026 = vmatpush2.bf16.msra.mxu1 %v1683_v61  ;;  %946 = vmatprep.subr.bf16.mxu0 %v1684_v62  ;;  %v1767_v61 = vld [vmem:[%s2453_s1 + $0x3cc] ss:$16 sps:$4 sm:$0xff]   ;;  %v1762_v62 = vld [vmem:[%s2453_s1 + $0x1c8] ss:$16 sps:$4 sm:$0xff]  }
  0x3d   :  { %1027 = vmatprep.subr.bf16.mxu1 %v1686_v63  ;;  %v1765_v63 = vld [vmem:[%s2453_s1 + $0x3c8] ss:$16 sps:$4 sm:$0xff]  }
  0x3f   :  { %947 = vmatpush2.bf16.msra.mxu0 %v1688_v0  ;;  %v1770_v0 = vld [vmem:[%s2453_s1 + $0x1ac] ss:$16 sps:$4 sm:$0xff]  }
  0x40   :  { %1028 = vmatpush2.bf16.msra.mxu1 %v1689_v1  ;;  %1078 = vmatprep.subr.bf16.mxu0 %v1698_v2  ;;  %v1773_v1 = vld [vmem:[%s2453_s1 + $0x3ac] ss:$16 sps:$4 sm:$0xff]   ;;  %v1768_v2 = vld [vmem:[%s2453_s1 + $0x1a8] ss:$16 sps:$4 sm:$0xff]  }
  0x41   :  { %1159 = vmatprep.subr.bf16.mxu1 %v1701_v3  ;;  %v1771_v3 = vld [vmem:[%s2453_s1 + $0x3a8] ss:$16 sps:$4 sm:$0xff]  }
  0x42   :  { %949 = vmatmul.mubr.bf16.vlgmr.msra.gmra.mxu0 %v2047_v4 }
  0x43   :  { %1030 = vmatmul.mubr.bf16.vlgmr.msra.gmra.mxu1 %v2052_v5  ;;  %1079 = vmatpush1.bf16.msra.mxu0 %v1696_v6  ;;  %v1782_v6 = vld [vmem:[%s2453_s1 + $0x18c] ss:$16 sps:$4 sm:$0xff]  }
  0x44   :  { %1160 = vmatpush1.bf16.msra.mxu1 %v1699_v7  ;;  %1080 = vmatprep.subr.bf16.mxu0 %v1704_v8  ;;  %v1783_v7 = vld [vmem:[%s2453_s1 + $0x388] ss:$16 sps:$4 sm:$0xff]   ;;  %v1788_v8 = vld [vmem:[%s2453_s1 + $0x16c] ss:$16 sps:$4 sm:$0xff]  }
  0x45   :  { %1161 = vmatprep.subr.bf16.mxu1 %v1707_v9  ;;  %958 = vmatprep.mubr.bf16.mxu0 %v2069_v10  ;;  %v1791_v9 = vld [vmem:[%s2453_s1 + $0x36c] ss:$16 sps:$4 sm:$0xff]  }
  0x46   :  { %1039 = vmatprep.mubr.bf16.mxu1 %v2074_v11 }
  0x47   :  { %1081 = vmatpush1.bf16.msra.mxu0 %v1702_v12  ;;  %v1786_v12 = vld [vmem:[%s2453_s1 + $0x168] ss:$16 sps:$4 sm:$0xff]  }
  0x48   :  { %1162 = vmatpush1.bf16.msra.mxu1 %v1705_v13  ;;  %1082 = vmatprep.subr.bf16.mxu0 %v1710_v14  ;;  %v1789_v13 = vld [vmem:[%s2453_s1 + $0x368] ss:$16 sps:$4 sm:$0xff]   ;;  %v1798_v14 = vld [vmem:[%s2453_s1 + $0x14c] ss:$16 sps:$4 sm:$0xff]  }
  0x49   :  { %1163 = vmatprep.subr.bf16.mxu1 %v1713_v15  ;;  %v1801_v15 = vld [vmem:[%s2453_s1 + $0x34c] ss:$16 sps:$4 sm:$0xff]  }
  0x4a   :  { %959 = vmatmul.mubr.bf16.gmra.mxu0 %v2101_v18 }
  0x4b   :  { %1040 = vmatmul.mubr.bf16.gmra.mxu1 %v2106_v19  ;;  %1083 = vmatpush1.bf16.msra.mxu0 %v1708_v16  ;;  %v1796_v16 = vld [vmem:[%s2453_s1 + $0x148] ss:$16 sps:$4 sm:$0xff]  }
  0x4c   :  { %1164 = vmatpush1.bf16.msra.mxu1 %v1711_v17  ;;  %1084 = vmatprep.subr.bf16.mxu0 %v1716_v20  ;;  %v1799_v17 = vld [vmem:[%s2453_s1 + $0x348] ss:$16 sps:$4 sm:$0xff]   ;;  %v1804_v20 = vld [vmem:[%s2453_s1 + $0x12c] ss:$16 sps:$4 sm:$0xff]  }
  0x4d   :  { %1165 = vmatprep.subr.bf16.mxu1 %v1719_v21  ;;  %968 = vmatprep.mubr.bf16.mxu0 %v2117_v22  ;;  %v1807_v21 = vld [vmem:[%s2453_s1 + $0x32c] ss:$16 sps:$4 sm:$0xff]  }
  0x4e   :  { %1049 = vmatprep.mubr.bf16.mxu1 %v2122_v23 }
  0x4f   :  { %1085 = vmatpush1.bf16.msra.mxu0 %v1714_v24  ;;  %v1802_v24 = vld [vmem:[%s2453_s1 + $0x128] ss:$16 sps:$4 sm:$0xff]  }
  0x50   :  { %1166 = vmatpush1.bf16.msra.mxu1 %v1717_v25  ;;  %1086 = vmatprep.subr.bf16.mxu0 %v1722_v26  ;;  %v1805_v25 = vld [vmem:[%s2453_s1 + $0x328] ss:$16 sps:$4 sm:$0xff]   ;;  %v1810_v26 = vld [vmem:[%s2453_s1 + $0x10c] ss:$16 sps:$4 sm:$0xff]  }
  0x51   :  { %1167 = vmatprep.subr.bf16.mxu1 %v1725_v27  ;;  %v1813_v27 = vld [vmem:[%s2453_s1 + $0x30c] ss:$16 sps:$4 sm:$0xff]  }
  0x52   :  { %969 = vmatmul.mubr.bf16.gmra.mxu0 %v2149_v30 }
  0x53   :  { %1050 = vmatmul.mubr.bf16.gmra.mxu1 %v2154_v31  ;;  %1087 = vmatpush1.bf16.msra.mxu0 %v1720_v28  ;;  %v1808_v28 = vld [vmem:[%s2453_s1 + $0x108] ss:$16 sps:$4 sm:$0xff]  }
  0x54   :  { %1168 = vmatpush1.bf16.msra.mxu1 %v1723_v29  ;;  %1088 = vmatprep.subr.bf16.mxu0 %v1728_v32  ;;  %v1811_v29 = vld [vmem:[%s2453_s1 + $0x308] ss:$16 sps:$4 sm:$0xff]  }
  0x55   :  { %1169 = vmatprep.subr.bf16.mxu1 %v1731_v33  ;;  %978 = vmatprep.mubr.bf16.mxu0 %v2165_v34 }
  0x56   :  { %1059 = vmatprep.mubr.bf16.mxu1 %v2170_v35 }
  0x57   :  { %1089 = vmatpush1.bf16.msra.mxu0 %v1726_v36 }
  0x58   :  { %1170 = vmatpush1.bf16.msra.mxu1 %v1729_v37  ;;  %1090 = vmatprep.subr.bf16.mxu0 %v1734_v38 }
  0x59   :  { %1171 = vmatprep.subr.bf16.mxu1 %v1737_v39 }
  0x5a   :  { %979 = vmatmul.mubr.bf16.gmra.mxu0 %v2197_v42 }
  0x5b   :  { %1060 = vmatmul.mubr.bf16.gmra.mxu1 %v2202_v43  ;;  %1091 = vmatpush1.bf16.msra.mxu0 %v1732_v40 }
  0x5c   :  { %1172 = vmatpush1.bf16.msra.mxu1 %v1735_v41  ;;  %1092 = vmatprep.subr.bf16.mxu0 %v1746_v46 }
  0x5d   :  { %1173 = vmatprep.subr.bf16.mxu1 %v1749_v47  ;;  %988 = vmatprep.mubr.bf16.mxu0 %v2216_v48 }
  0x5e   :  { %1069 = vmatprep.mubr.bf16.mxu1 %v2218_v50 }
  0x5f   :  { %1093 = vmatpush1.bf16.msra.mxu0 %v1744_v52 }
  0x60   :  { %1174 = vmatpush1.bf16.msra.mxu1 %v1747_v53  ;;  %1094 = vmatprep.subr.bf16.mxu0 %v1752_v54 }
  0x61   :  { %1175 = vmatprep.subr.bf16.mxu1 %v1755_v55 }
  0x62   :  { %989 = vmatmul.mubr.bf16.gmra.mxu0 %v2236_v56 }
  0x63   :  { %1070 = vmatmul.mubr.bf16.gmra.mxu1 %v2238_v57  ;;  %1095 = vmatpush2.bf16.msra.mxu0 %v1750_v58 }
  0x64   :  { %1176 = vmatpush2.bf16.msra.mxu1 %v1753_v59  ;;  %1096 = vmatprep.subr.bf16.mxu0 %v1764_v60 }
  0x65   :  { %1177 = vmatprep.subr.bf16.mxu1 %v1767_v61  ;;  %1110 = vmatprep.mubr.bf16.mxu0 %v1984_v49  ;;  %v1785_v49 = vld [vmem:[%s2453_s1 + $0x38c] ss:$16 sps:$4 sm:$0xff]  }
  0x66   :  { %1191 = vmatprep.mubr.bf16.mxu1 %v1992_v51  ;;  %v1780_v51 = vld [vmem:[%s2453_s1 + $0x188] ss:$16 sps:$4 sm:$0xff]  }
  0x67   :  { %1097 = vmatpush2.bf16.msra.mxu0 %v1762_v62 }
  0x68   :  { %1178 = vmatpush2.bf16.msra.mxu1 %v1765_v63  ;;  %1098 = vmatprep.subr.bf16.mxu0 %v1770_v0 }
  0x69   :  { %1179 = vmatprep.subr.bf16.mxu1 %v1773_v1 }
  0x6b   :  { %1099 = vmatpush2.bf16.msra.mxu0 %v1768_v2 }
  0x6c   :  { %1180 = vmatpush2.bf16.msra.mxu1 %v1771_v3  ;;  %1100 = vmatprep.subr.bf16.mxu0 %v1782_v6 }
  0x6d   :  { %1181 = vmatprep.subr.bf16.mxu1 %v1785_v49 }
  0x6f   :  { %1101 = vmatpush2.bf16.msra.mxu0 %v1780_v51 }
  0x70   :  { %1182 = vmatpush2.bf16.msra.mxu1 %v1783_v7  ;;  %1102 = vmatprep.subr.bf16.mxu0 %v1788_v8 }
  0x71   :  { %1183 = vmatprep.subr.bf16.mxu1 %v1791_v9 }
  0x73   :  { %1103 = vmatpush2.bf16.msra.mxu0 %v1786_v12 }
  0x74   :  { %1184 = vmatpush2.bf16.msra.mxu1 %v1789_v13  ;;  %1104 = vmatprep.subr.bf16.mxu0 %v1798_v14 }
  0x75   :  { %1185 = vmatprep.subr.bf16.mxu1 %v1801_v15 }
  0x77   :  { %1105 = vmatpush2.bf16.msra.mxu0 %v1796_v16 }
  0x78   :  { %1186 = vmatpush2.bf16.msra.mxu1 %v1799_v17  ;;  %1106 = vmatprep.subr.bf16.mxu0 %v1804_v20 }
  0x79   :  { %1187 = vmatprep.subr.bf16.mxu1 %v1807_v21 }
  0x7b   :  { %1107 = vmatpush2.bf16.msra.mxu0 %v1802_v24 }
  0x7c   :  { %1188 = vmatpush2.bf16.msra.mxu1 %v1805_v25  ;;  %1108 = vmatprep.subr.bf16.mxu0 %v1810_v26 }
  0x7d   :  { %1189 = vmatprep.subr.bf16.mxu1 %v1813_v27 }
  0x7f   :  { %1109 = vmatpush2.bf16.msra.mxu0 %v1808_v28 }
  0x80   :  { %1190 = vmatpush2.bf16.msra.mxu1 %v1811_v29 }
  0x82   :  { %1111 = vmatmul.mubr.bf16.vlgmr.msra.gmra.mxu0 %v2047_v4  ;;  %v162_v4 = vlaneseq }
  0x83   :  { %1192 = vmatmul.mubr.bf16.vlgmr.msra.gmra.mxu1 %v2052_v5  ;;  %1120 = vmatprep.mubr.bf16.mxu0 %v2069_v10 }
  0x84   :  { %1201 = vmatprep.mubr.bf16.mxu1 %v2074_v11  ;;  %v163_v5 = vshrl.u32 %v162_v4, 7  ;;  %v160_v11 = vld [vmem:[%s2455_s2] sm:$0xf] }
  0x86   :  { %v172_v10 = vsub.s32 2, %v163_v5 }
  0x8a   :  { %1121 = vmatmul.mubr.bf16.gmra.mxu0 %v2101_v18  ;;  %v2355_v18 = vrot.slane %v160_v11, %v172_v10 }
  0x8b   :  { %1202 = vmatmul.mubr.bf16.gmra.mxu1 %v2106_v19  ;;  %1130 = vmatprep.mubr.bf16.mxu0 %v2117_v22  ;;  %v176_v19 = vsub.s32 3, %v163_v5 }
  0x8c   :  { %1211 = vmatprep.mubr.bf16.mxu1 %v2122_v23  ;;  %v164_v23 = vsub.s32 0, %v163_v5 }
  0x8d   :  { %v2357_v22 = vrot.slane %v160_v11, %v176_v19 }
  0x92   :  { %1131 = vmatmul.mubr.bf16.gmra.mxu0 %v2149_v30  ;;  %v168_v30 = vsub.s32 1, %v163_v5 }
  0x93   :  { %1212 = vmatmul.mubr.bf16.gmra.mxu1 %v2154_v31  ;;  %1140 = vmatprep.mubr.bf16.mxu0 %v2165_v34  ;;  %v2359_v31 = vrot.slane %v160_v11, %v164_v23 }
  0x94   :  { %1221 = vmatprep.mubr.bf16.mxu1 %v2170_v35  ;;  %v2361_v32 = vrot.slane %v160_v11, %v168_v30 }
  0x9a   :  { %1141 = vmatmul.mubr.bf16.gmra.mxu0 %v2197_v42 }
  0x9b   :  { %1222 = vmatmul.mubr.bf16.gmra.mxu1 %v2202_v43  ;;  %1150 = vmatprep.mubr.bf16.mxu0 %v2216_v48 }
  0x9c   :  { %1231 = vmatprep.mubr.bf16.mxu1 %v2218_v50 }
  0xa2   :  { %1151 = vmatmul.mubr.bf16.gmra.mxu0 %v2236_v56 }
  0xa3   :  { %1232 = vmatmul.mubr.bf16.gmra.mxu1 %v2238_v57 }
 0x102   :  { %v950_v33 = vpop.f32.mrf.mxu0 }
 0x103   :  { %v1031_v34 = vpop.f32.mrf.mxu1  ;;  %v951_v35 = vadd.f32 %v950_v33, %v2359_v31 }
 0x104   :  { %v952_v36 = vpop.f32.mrf.mxu0 }
 0x105   :  { %v1033_v37 = vpop.f32.mrf.mxu1  ;;  %v1032_v38 = vadd.f32 %v1031_v34, %v951_v35  ;;  %v953_v39 = vadd.f32 %v952_v36, %v2361_v32 }
 0x106   :  { %v954_v40 = vpop.f32.mrf.mxu0 }
 0x107   :  { %v1035_v41 = vpop.f32.mrf.mxu1  ;;  %v1240_v42 = vmax.f32 %v1032_v38, 0.0  ;;  %v1034_v43 = vadd.f32 %v1033_v37, %v953_v39  ;;  %v955_v44 = vadd.f32 %v954_v40, %v2359_v31 }
 0x108   :  { %v956_v45 = vpop.f32.mrf.mxu0 }
 0x109   :  { %v1037_v46 = vpop.f32.mrf.mxu1  ;;  %v1241_v47 = vmax.f32 %v1034_v43, 0.0  ;;  %v1036_v48 = vadd.f32 %v1035_v41, %v955_v44  ;;  %v957_v50 = vadd.f32 %v956_v45, %v2361_v32 }
 0x10a   :  { %v960_v52 = vpop.f32.mrf.mxu0 }
 0x10b   :  { %v1041_v53 = vpop.f32.mrf.mxu1  ;;  %v1576_v54 = vpack.c.bf16 %v1241_v47, %v1240_v42  ;;  %v1038_v55 = vadd.f32 %v1037_v46, %v957_v50  ;;  %v961_v56 = vadd.f32 %v960_v52, %v2359_v31  ;;  %v1244_v59 = vmax.f32 %v1036_v48, 0.0 }
 0x10c   :  { %v962_v57 = vpop.f32.mrf.mxu0 }
 0x10d   :  { %v1043_v58 = vpop.f32.mrf.mxu1  ;;  %1388 = vst [vmem:[%s2456_s3] sm:$0xff] %v1576_v54  ;;  %v1245_v60 = vmax.f32 %v1038_v55, 0.0  ;;  %v963_v61 = vadd.f32 %v962_v57, %v2361_v32  ;;  %v1042_v62 = vadd.f32 %v1041_v53, %v961_v56 }
 0x10e   :  { %v964_v63 = vpop.f32.mrf.mxu0 }
 0x10f   :  { %v1045_v0 = vpop.f32.mrf.mxu1  ;;  %v1578_v1 = vpack.c.bf16 %v1245_v60, %v1244_v59  ;;  %v1248_v2 = vmax.f32 %v1042_v62, 0.0  ;;  %v965_v3 = vadd.f32 %v964_v63, %v2359_v31  ;;  %v1044_v6 = vadd.f32 %v1043_v58, %v963_v61 }
 0x110   :  { %v966_v49 = vpop.f32.mrf.mxu0 }
 0x111   :  { %v1047_v51 = vpop.f32.mrf.mxu1  ;;  %1390 = vst [vmem:[%s2456_s3 + $0x10] sm:$0xff] %v1578_v1  ;;  %v1249_v7 = vmax.f32 %v1044_v6, 0.0  ;;  %v967_v8 = vadd.f32 %v966_v49, %v2361_v32  ;;  %v1046_v9 = vadd.f32 %v1045_v0, %v965_v3 }
 0x112   :  { %v970_v12 = vpop.f32.mrf.mxu0 }
 0x113   :  { %v1051_v13 = vpop.f32.mrf.mxu1  ;;  %v1580_v14 = vpack.c.bf16 %v1249_v7, %v1248_v2  ;;  %v1252_v15 = vmax.f32 %v1046_v9, 0.0  ;;  %v971_v16 = vadd.f32 %v970_v12, %v2359_v31  ;;  %v1048_v17 = vadd.f32 %v1047_v51, %v967_v8 }
 0x114   :  { %v972_v20 = vpop.f32.mrf.mxu0 }
 0x115   :  { %v1053_v21 = vpop.f32.mrf.mxu1  ;;  %1392 = vst [vmem:[%s2456_s3 + $0x20] sm:$0xff] %v1580_v14  ;;  %v1253_v24 = vmax.f32 %v1048_v17, 0.0  ;;  %v973_v25 = vadd.f32 %v972_v20, %v2361_v32  ;;  %v1052_v26 = vadd.f32 %v1051_v13, %v971_v16 }
 0x116   :  { %v974_v27 = vpop.f32.mrf.mxu0 }
 0x117   :  { %v1055_v28 = vpop.f32.mrf.mxu1  ;;  %v1582_v29 = vpack.c.bf16 %v1253_v24, %v1252_v15  ;;  %v1256_v4 = vmax.f32 %v1052_v26, 0.0  ;;  %v975_v5 = vadd.f32 %v974_v27, %v2359_v31  ;;  %v1054_v10 = vadd.f32 %v1053_v21, %v973_v25 }
 0x118   :  { %v976_v11 = vpop.f32.mrf.mxu0 }
 0x119   :  { %v1057_v19 = vpop.f32.mrf.mxu1  ;;  %1394 = vst [vmem:[%s2456_s3 + $0x30] sm:$0xff] %v1582_v29  ;;  %v1257_v23 = vmax.f32 %v1054_v10, 0.0  ;;  %v977_v30 = vadd.f32 %v976_v11, %v2361_v32  ;;  %v1056_v33 = vadd.f32 %v1055_v28, %v975_v5 }
 0x11a   :  { %v980_v34 = vpop.f32.mrf.mxu0 }
 0x11b   :  { %v1061_v35 = vpop.f32.mrf.mxu1  ;;  %v1584_v36 = vpack.c.bf16 %v1257_v23, %v1256_v4  ;;  %v1260_v37 = vmax.f32 %v1056_v33, 0.0  ;;  %v981_v38 = vadd.f32 %v980_v34, %v2359_v31  ;;  %v1058_v39 = vadd.f32 %v1057_v19, %v977_v30 }
 0x11c   :  { %v982_v40 = vpop.f32.mrf.mxu0 }
 0x11d   :  { %v1063_v41 = vpop.f32.mrf.mxu1  ;;  %1396 = vst [vmem:[%s2456_s3 + $0x40] sm:$0xff] %v1584_v36  ;;  %v1261_v42 = vmax.f32 %v1058_v39, 0.0  ;;  %v983_v43 = vadd.f32 %v982_v40, %v2361_v32  ;;  %v1062_v44 = vadd.f32 %v1061_v35, %v981_v38 }
 0x11e   :  { %v984_v45 = vpop.f32.mrf.mxu0 }
 0x11f   :  { %v1065_v46 = vpop.f32.mrf.mxu1  ;;  %v1586_v47 = vpack.c.bf16 %v1261_v42, %v1260_v37  ;;  %v1264_v48 = vmax.f32 %v1062_v44, 0.0  ;;  %v985_v50 = vadd.f32 %v984_v45, %v2359_v31  ;;  %v1064_v52 = vadd.f32 %v1063_v41, %v983_v43 }
 0x120   :  { %v986_v53 = vpop.f32.mrf.mxu0 }
 0x121   :  { %v1067_v54 = vpop.f32.mrf.mxu1  ;;  %1398 = vst [vmem:[%s2456_s3 + $0x50] sm:$0xff] %v1586_v47  ;;  %v1265_v55 = vmax.f32 %v1064_v52, 0.0  ;;  %v987_v56 = vadd.f32 %v986_v53, %v2361_v32  ;;  %v1066_v57 = vadd.f32 %v1065_v46, %v985_v50 }
 0x122   :  { %v990_v58 = vpop.f32.mrf.mxu0 }
 0x123   :  { %v1071_v59 = vpop.f32.mrf.mxu1  ;;  %v1588_v60 = vpack.c.bf16 %v1265_v55, %v1264_v48  ;;  %v1268_v61 = vmax.f32 %v1066_v57, 0.0  ;;  %v991_v62 = vadd.f32 %v990_v58, %v2359_v31  ;;  %v1068_v63 = vadd.f32 %v1067_v54, %v987_v56 }
 0x124   :  { %v992_v0 = vpop.f32.mrf.mxu0 }
 0x125   :  { %v1073_v1 = vpop.f32.mrf.mxu1  ;;  %1400 = vst [vmem:[%s2456_s3 + $0x60] sm:$0xff] %v1588_v60  ;;  %v1269_v2 = vmax.f32 %v1068_v63, 0.0  ;;  %v993_v3 = vadd.f32 %v992_v0, %v2361_v32  ;;  %v1072_v6 = vadd.f32 %v1071_v59, %v991_v62 }
 0x126   :  { %v994_v49 = vpop.f32.mrf.mxu0 }
 0x127   :  { %v1075_v51 = vpop.f32.mrf.mxu1  ;;  %v1590_v7 = vpack.c.bf16 %v1269_v2, %v1268_v61  ;;  %v1272_v8 = vmax.f32 %v1072_v6, 0.0  ;;  %v1074_v9 = vadd.f32 %v1073_v1, %v993_v3 }
 0x128   :  { %v995_v12 = vpop.f32.mrf.mxu0 }
 0x129   :  { %v1076_v13 = vpop.f32.mrf.mxu1  ;;  %1402 = vst [vmem:[%s2456_s3 + $0x70] sm:$0xff] %v1590_v7  ;;  %v1273_v31 = vmax.f32 %v1074_v9, 0.0 }
 0x12b   :  { %v1592_v14 = vpack.c.bf16 %v1273_v31, %v1272_v8 }
 0x12d   :  { %1404 = vst [vmem:[%s2456_s3 + $0x80] sm:$0xff] %v1592_v14 }
 0x142   :  { %v1112_v15 = vpop.f32.mrf.mxu0 }
 0x143   :  { %v1193_v32 = vpop.f32.mrf.mxu1  ;;  %v1113_v16 = vadd.f32 %v1112_v15, %v2355_v18 }
 0x144   :  { %v1114_v17 = vpop.f32.mrf.mxu0 }
 0x145   :  { %v1195_v20 = vpop.f32.mrf.mxu1  ;;  %v1194_v21 = vadd.f32 %v1193_v32, %v1113_v16  ;;  %v1115_v24 = vadd.f32 %v1114_v17, %v2357_v22 }
 0x146   :  { %v1116_v25 = vpop.f32.mrf.mxu0 }
 0x147   :  { %v1197_v26 = vpop.f32.mrf.mxu1  ;;  %v1196_v27 = vadd.f32 %v1195_v20, %v1115_v24  ;;  %v1117_v28 = vadd.f32 %v1116_v25, %v2355_v18  ;;  %v1242_v5 = vmax.f32 %v1194_v21, 0.0 }
 0x148   :  { %v1118_v29 = vpop.f32.mrf.mxu0 }
 0x149   :  { %v1199_v4 = vpop.f32.mrf.mxu1  ;;  %v1243_v10 = vmax.f32 %v1196_v27, 0.0  ;;  %v1198_v11 = vadd.f32 %v1197_v26, %v1117_v28  ;;  %v1119_v19 = vadd.f32 %v1118_v29, %v2357_v22 }
 0x14a   :  { %v1122_v23 = vpop.f32.mrf.mxu0 }
 0x14b   :  { %v1203_v30 = vpop.f32.mrf.mxu1  ;;  %v1577_v33 = vpack.c.bf16 %v1243_v10, %v1242_v5  ;;  %v1200_v34 = vadd.f32 %v1199_v4, %v1119_v19  ;;  %v1123_v35 = vadd.f32 %v1122_v23, %v2355_v18  ;;  %v1246_v38 = vmax.f32 %v1198_v11, 0.0 }
 0x14c   :  { %v1124_v36 = vpop.f32.mrf.mxu0 }
 0x14d   :  { %v1205_v37 = vpop.f32.mrf.mxu1  ;;  %1389 = vst [vmem:[%s2456_s3 + $0x8] sm:$0xff] %v1577_v33  ;;  %v1247_v39 = vmax.f32 %v1200_v34, 0.0  ;;  %v1204_v40 = vadd.f32 %v1203_v30, %v1123_v35  ;;  %v1125_v41 = vadd.f32 %v1124_v36, %v2357_v22 }
 0x14e   :  { %v1126_v42 = vpop.f32.mrf.mxu0 }
 0x14f   :  { %v1207_v43 = vpop.f32.mrf.mxu1  ;;  %v1579_v44 = vpack.c.bf16 %v1247_v39, %v1246_v38  ;;  %v1206_v45 = vadd.f32 %v1205_v37, %v1125_v41  ;;  %v1127_v46 = vadd.f32 %v1126_v42, %v2355_v18  ;;  %v1250_v50 = vmax.f32 %v1204_v40, 0.0 }
 0x150   :  { %v1128_v47 = vpop.f32.mrf.mxu0 }
 0x151   :  { %v1209_v48 = vpop.f32.mrf.mxu1  ;;  %1391 = vst [vmem:[%s2456_s3 + $0x18] sm:$0xff] %v1579_v44  ;;  %v1251_v52 = vmax.f32 %v1206_v45, 0.0  ;;  %v1208_v53 = vadd.f32 %v1207_v43, %v1127_v46  ;;  %v1129_v54 = vadd.f32 %v1128_v47, %v2357_v22 }
 0x152   :  { %v1132_v55 = vpop.f32.mrf.mxu0 }
 0x153   :  { %v1213_v56 = vpop.f32.mrf.mxu1  ;;  %v1581_v57 = vpack.c.bf16 %v1251_v52, %v1250_v50  ;;  %v1210_v58 = vadd.f32 %v1209_v48, %v1129_v54  ;;  %v1133_v59 = vadd.f32 %v1132_v55, %v2355_v18  ;;  %v1254_v62 = vmax.f32 %v1208_v53, 0.0 }
 0x154   :  { %v1134_v60 = vpop.f32.mrf.mxu0 }
 0x155   :  { %v1215_v61 = vpop.f32.mrf.mxu1  ;;  %1393 = vst [vmem:[%s2456_s3 + $0x28] sm:$0xff] %v1581_v57  ;;  %v1255_v63 = vmax.f32 %v1210_v58, 0.0  ;;  %v1214_v0 = vadd.f32 %v1213_v56, %v1133_v59  ;;  %v1135_v1 = vadd.f32 %v1134_v60, %v2357_v22 }
 0x156   :  { %v1136_v2 = vpop.f32.mrf.mxu0 }
 0x157   :  { %v1217_v3 = vpop.f32.mrf.mxu1  ;;  %v1583_v6 = vpack.c.bf16 %v1255_v63, %v1254_v62  ;;  %v1216_v49 = vadd.f32 %v1215_v61, %v1135_v1  ;;  %v1137_v51 = vadd.f32 %v1136_v2, %v2355_v18  ;;  %v1258_v9 = vmax.f32 %v1214_v0, 0.0 }
 0x158   :  { %v1138_v7 = vpop.f32.mrf.mxu0 }
 0x159   :  { %v1219_v8 = vpop.f32.mrf.mxu1  ;;  %1395 = vst [vmem:[%s2456_s3 + $0x38] sm:$0xff] %v1583_v6  ;;  %v1259_v12 = vmax.f32 %v1216_v49, 0.0  ;;  %v1218_v13 = vadd.f32 %v1217_v3, %v1137_v51  ;;  %v1139_v31 = vadd.f32 %v1138_v7, %v2357_v22 }
 0x15a   :  { %v1142_v14 = vpop.f32.mrf.mxu0 }
 0x15b   :  { %v1223_v15 = vpop.f32.mrf.mxu1  ;;  %v1585_v32 = vpack.c.bf16 %v1259_v12, %v1258_v9  ;;  %v1220_v16 = vadd.f32 %v1219_v8, %v1139_v31  ;;  %v1143_v17 = vadd.f32 %v1142_v14, %v2355_v18  ;;  %v1262_v24 = vmax.f32 %v1218_v13, 0.0 }
 0x15c   :  { %v1144_v20 = vpop.f32.mrf.mxu0 }
 0x15d   :  { %v1225_v21 = vpop.f32.mrf.mxu1  ;;  %1397 = vst [vmem:[%s2456_s3 + $0x48] sm:$0xff] %v1585_v32  ;;  %v1263_v25 = vmax.f32 %v1220_v16, 0.0  ;;  %v1224_v26 = vadd.f32 %v1223_v15, %v1143_v17  ;;  %v1145_v27 = vadd.f32 %v1144_v20, %v2357_v22 }
 0x15e   :  { %v1146_v28 = vpop.f32.mrf.mxu0 }
 0x15f   :  { %v1227_v29 = vpop.f32.mrf.mxu1  ;;  %v1587_v4 = vpack.c.bf16 %v1263_v25, %v1262_v24  ;;  %v1226_v5 = vadd.f32 %v1225_v21, %v1145_v27  ;;  %v1147_v10 = vadd.f32 %v1146_v28, %v2355_v18  ;;  %v1266_v23 = vmax.f32 %v1224_v26, 0.0 }
 0x160   :  { %v1148_v11 = vpop.f32.mrf.mxu0 }
 0x161   :  { %v1229_v19 = vpop.f32.mrf.mxu1  ;;  %1399 = vst [vmem:[%s2456_s3 + $0x58] sm:$0xff] %v1587_v4  ;;  %v1267_v30 = vmax.f32 %v1226_v5, 0.0  ;;  %v1228_v33 = vadd.f32 %v1227_v29, %v1147_v10  ;;  %v1149_v34 = vadd.f32 %v1148_v11, %v2357_v22 }
 0x162   :  { %v1152_v35 = vpop.f32.mrf.mxu0 }
 0x163   :  { %v1233_v36 = vpop.f32.mrf.mxu1  ;;  %v1589_v37 = vpack.c.bf16 %v1267_v30, %v1266_v23  ;;  %v1230_v38 = vadd.f32 %v1229_v19, %v1149_v34  ;;  %v1153_v39 = vadd.f32 %v1152_v35, %v2355_v18  ;;  %v1270_v42 = vmax.f32 %v1228_v33, 0.0 }
 0x164   :  { %v1154_v40 = vpop.f32.mrf.mxu0 }
 0x165   :  { %v1235_v41 = vpop.f32.mrf.mxu1  ;;  %1401 = vst [vmem:[%s2456_s3 + $0x68] sm:$0xff] %v1589_v37  ;;  %v1271_v43 = vmax.f32 %v1230_v38, 0.0  ;;  %v1234_v44 = vadd.f32 %v1233_v36, %v1153_v39  ;;  %v1155_v45 = vadd.f32 %v1154_v40, %v2357_v22 }
 0x166   :  { %v1156_v46 = vpop.f32.mrf.mxu0 }
 0x167   :  { %v1237_v47 = vpop.f32.mrf.mxu1  ;;  %v1591_v48 = vpack.c.bf16 %v1271_v43, %v1270_v42  ;;  %v1236_v50 = vadd.f32 %v1235_v41, %v1155_v45  ;;  %v1274_v18 = vmax.f32 %v1234_v44, 0.0 }
 0x168   :  { %v1157_v52 = vpop.f32.mrf.mxu0 }
 0x169   :  { %v1238_v53 = vpop.f32.mrf.mxu1  ;;  %1403 = vst [vmem:[%s2456_s3 + $0x78] sm:$0xff] %v1591_v48  ;;  %v1275_v54 = vmax.f32 %v1236_v50, 0.0 }
 0x16b   :  { %v1593_v55 = vpack.c.bf16 %v1275_v54, %v1274_v18 }
 0x16d   :  { %1405 = vst [vmem:[%s2456_s3 + $0x88] sm:$0xff] %v1593_v55 }

// kernel: decoder_forward.7
= control target key start
LH: loop header
LB: loop body
LE: loop exit
PB: predicated region body
PF: predicated region fallthrough
CT: control target
= control target key end

     0   :  { %s2623_s1 = inlined_call_operand.vmem [shape: bf16[512,256], index: 1, kind: input, shape index: {}]   ;;  %s2624_s0 = inlined_call_operand.vmem [shape: bf16[288,512], index: 0, kind: input, shape index: {}]   ;;  %s2625_s2 = inlined_call_operand.vmem [shape: f32[1,256], index: 2, kind: input, shape index: {}]   ;;  %s2626_s3 = inlined_call_operand.vmem [shape: bf16[288,256], index: 3, kind: output, shape index: {}]  }
   0x1   :  { %v1804_v0 = vld [vmem:[%s2623_s1 + $0x74] ss:$8 sps:$4 sm:$0xff]   ;;  %v1808_v2 = vld [vmem:[%s2623_s1 + $0x70] ss:$8 sps:$4 sm:$0xff]   ;;  %v1810_v4 = vld [vmem:[%s2623_s1 + $0x64] ss:$8 sps:$4 sm:$0xff]  }
   0x2   :  { %v1806_v1 = vld [vmem:[%s2623_s1 + $0x174] ss:$8 sps:$4 sm:$0xff]   ;;  %842 = vmatprep.subr.bf16.mxu0 %v1804_v0  ;;  %v1809_v3 = vld [vmem:[%s2623_s1 + $0x170] ss:$8 sps:$4 sm:$0xff]   ;;  %v1812_v5 = vld [vmem:[%s2623_s1 + $0x164] ss:$8 sps:$4 sm:$0xff]  }
   0x3   :  { %1055 = vmatprep.subr.bf16.mxu1 %v1806_v1  ;;  %843 = vmatpush1.bf16.msra.mxu0 %v1808_v2  ;;  %v1814_v6 = vld [vmem:[%s2623_s1 + $0x60] ss:$8 sps:$4 sm:$0xff]   ;;  %v1816_v8 = vld [vmem:[%s2623_s1 + $0x54] ss:$8 sps:$4 sm:$0xff]   ;;  %v1820_v10 = vld [vmem:[%s2623_s1 + $0x50] ss:$8 sps:$4 sm:$0xff]  }
   0x4   :  { %1056 = vmatpush1.bf16.msra.mxu1 %v1809_v3  ;;  %844 = vmatprep.subr.bf16.mxu0 %v1810_v4  ;;  %v1815_v7 = vld [vmem:[%s2623_s1 + $0x160] ss:$8 sps:$4 sm:$0xff]   ;;  %v1818_v9 = vld [vmem:[%s2623_s1 + $0x154] ss:$8 sps:$4 sm:$0xff]   ;;  %v1821_v11 = vld [vmem:[%s2623_s1 + $0x150] ss:$8 sps:$4 sm:$0xff]  }
   0x5   :  { %1057 = vmatprep.subr.bf16.mxu1 %v1812_v5  ;;  %v1822_v12 = vld [vmem:[%s2623_s1 + $0x44] ss:$8 sps:$4 sm:$0xff]   ;;  %v1826_v14 = vld [vmem:[%s2623_s1 + $0x40] ss:$8 sps:$4 sm:$0xff]   ;;  %v1828_v16 = vld [vmem:[%s2623_s1 + $0x34] ss:$8 sps:$4 sm:$0xff]  }
   0x6   :  { %v1824_v13 = vld [vmem:[%s2623_s1 + $0x144] ss:$8 sps:$4 sm:$0xff]   ;;  %v1827_v15 = vld [vmem:[%s2623_s1 + $0x140] ss:$8 sps:$4 sm:$0xff]   ;;  %v1830_v17 = vld [vmem:[%s2623_s1 + $0x134] ss:$8 sps:$4 sm:$0xff]  }
   0x7   :  { %845 = vmatpush1.bf16.msra.mxu0 %v1814_v6  ;;  %v1832_v18 = vld [vmem:[%s2623_s1 + $0x30] ss:$8 sps:$4 sm:$0xff]   ;;  %v1834_v20 = vld [vmem:[%s2623_s1 + $0x24] ss:$8 sps:$4 sm:$0xff]   ;;  %v1838_v22 = vld [vmem:[%s2623_s1 + $0x20] ss:$8 sps:$4 sm:$0xff]  }
   0x8   :  { %1058 = vmatpush1.bf16.msra.mxu1 %v1815_v7  ;;  %846 = vmatprep.subr.bf16.mxu0 %v1816_v8  ;;  %v1833_v19 = vld [vmem:[%s2623_s1 + $0x130] ss:$8 sps:$4 sm:$0xff]   ;;  %v1836_v21 = vld [vmem:[%s2623_s1 + $0x124] ss:$8 sps:$4 sm:$0xff]   ;;  %v1839_v23 = vld [vmem:[%s2623_s1 + $0x120] ss:$8 sps:$4 sm:$0xff]  }
   0x9   :  { %1059 = vmatprep.subr.bf16.mxu1 %v1818_v9  ;;  %v1840_v24 = vld [vmem:[%s2623_s1 + $0x14] ss:$8 sps:$4 sm:$0xff]   ;;  %v1844_v26 = vld [vmem:[%s2623_s1 + $0x10] ss:$8 sps:$4 sm:$0xff]   ;;  %v1846_v28 = vld [vmem:[%s2623_s1 + $0x4] ss:$8 sps:$4 sm:$0xff]  }
   0xa   :  { %v1842_v25 = vld [vmem:[%s2623_s1 + $0x114] ss:$8 sps:$4 sm:$0xff]   ;;  %v1845_v27 = vld [vmem:[%s2623_s1 + $0x110] ss:$8 sps:$4 sm:$0xff]   ;;  %v1848_v29 = vld [vmem:[%s2623_s1 + $0x104] ss:$8 sps:$4 sm:$0xff]  }
   0xb   :  { %847 = vmatpush1.bf16.msra.mxu0 %v1820_v10  ;;  %v1850_v30 = vld [vmem:[%s2623_s1] ss:$8 sps:$4 sm:$0xff]   ;;  %v1852_v32 = vld [vmem:[%s2623_s1 + $0xf4] ss:$8 sps:$4 sm:$0xff]   ;;  %v1856_v34 = vld [vmem:[%s2623_s1 + $0xf0] ss:$8 sps:$4 sm:$0xff]  }
   0xc   :  { %1060 = vmatpush1.bf16.msra.mxu1 %v1821_v11  ;;  %848 = vmatprep.subr.bf16.mxu0 %v1822_v12  ;;  %v1851_v31 = vld [vmem:[%s2623_s1 + $0x100] ss:$8 sps:$4 sm:$0xff]   ;;  %v1854_v33 = vld [vmem:[%s2623_s1 + $0x1f4] ss:$8 sps:$4 sm:$0xff]   ;;  %v1857_v35 = vld [vmem:[%s2623_s1 + $0x1f0] ss:$8 sps:$4 sm:$0xff]  }
   0xd   :  { %1061 = vmatprep.subr.bf16.mxu1 %v1824_v13  ;;  %v1858_v36 = vld [vmem:[%s2623_s1 + $0xe4] ss:$8 sps:$4 sm:$0xff]   ;;  %v1862_v38 = vld [vmem:[%s2623_s1 + $0xe0] ss:$8 sps:$4 sm:$0xff]   ;;  %v1864_v40 = vld [vmem:[%s2623_s1 + $0xd4] ss:$8 sps:$4 sm:$0xff]  }
   0xe   :  { %v1860_v37 = vld [vmem:[%s2623_s1 + $0x1e4] ss:$8 sps:$4 sm:$0xff]   ;;  %v1863_v39 = vld [vmem:[%s2623_s1 + $0x1e0] ss:$8 sps:$4 sm:$0xff]   ;;  %v1866_v41 = vld [vmem:[%s2623_s1 + $0x1d4] ss:$8 sps:$4 sm:$0xff]  }
   0xf   :  { %849 = vmatpush1.bf16.msra.mxu0 %v1826_v14  ;;  %v1868_v42 = vld [vmem:[%s2623_s1 + $0xd0] ss:$8 sps:$4 sm:$0xff]   ;;  %v1870_v44 = vld [vmem:[%s2623_s1 + $0xc4] ss:$8 sps:$4 sm:$0xff]   ;;  %v1874_v46 = vld [vmem:[%s2623_s1 + $0xc0] ss:$8 sps:$4 sm:$0xff]  }
  0x10   :  { %1062 = vmatpush1.bf16.msra.mxu1 %v1827_v15  ;;  %850 = vmatprep.subr.bf16.mxu0 %v1828_v16  ;;  %v1869_v43 = vld [vmem:[%s2623_s1 + $0x1d0] ss:$8 sps:$4 sm:$0xff]   ;;  %v1872_v45 = vld [vmem:[%s2623_s1 + $0x1c4] ss:$8 sps:$4 sm:$0xff]   ;;  %v1875_v47 = vld [vmem:[%s2623_s1 + $0x1c0] ss:$8 sps:$4 sm:$0xff]  }
  0x11   :  { %1063 = vmatprep.subr.bf16.mxu1 %v1830_v17  ;;  %v1876_v48 = vld [vmem:[%s2623_s1 + $0xb4] ss:$8 sps:$4 sm:$0xff]   ;;  %v1880_v52 = vld [vmem:[%s2623_s1 + $0xb0] ss:$8 sps:$4 sm:$0xff]   ;;  %v1882_v54 = vld [vmem:[%s2623_s1 + $0xa4] ss:$8 sps:$4 sm:$0xff]  }
  0x12   :  { %v1902_v49 = vld [vmem:[%s2624_s0 + $0x4] ss:$16 sps:$4 sm:$0xff]   ;;  %v1905_v51 = vld [vmem:[%s2624_s0 + $0xc] ss:$16 sps:$4 sm:$0xff]   ;;  %v1881_v53 = vld [vmem:[%s2623_s1 + $0x1b0] ss:$8 sps:$4 sm:$0xff]  }
  0x13   :  { %851 = vmatpush1.bf16.msra.mxu0 %v1832_v18  ;;  %v1878_v50 = vld [vmem:[%s2623_s1 + $0x1b4] ss:$8 sps:$4 sm:$0xff]   ;;  %874 = vmatprep.mubr.bf16.mxu0 %v1902_v49  ;;  %v1884_v55 = vld [vmem:[%s2623_s1 + $0x1a4] ss:$8 sps:$4 sm:$0xff]   ;;  %v1886_v56 = vld [vmem:[%s2623_s1 + $0xa0] ss:$8 sps:$4 sm:$0xff]  }
  0x14   :  { %1064 = vmatpush1.bf16.msra.mxu1 %v1833_v19  ;;  %852 = vmatprep.subr.bf16.mxu0 %v1834_v20  ;;  %v1887_v57 = vld [vmem:[%s2623_s1 + $0x1a0] ss:$8 sps:$4 sm:$0xff]   ;;  %v1888_v58 = vld [vmem:[%s2623_s1 + $0x94] ss:$8 sps:$4 sm:$0xff]   ;;  %v1892_v60 = vld [vmem:[%s2623_s1 + $0x90] ss:$8 sps:$4 sm:$0xff]  }
  0x15   :  { %1065 = vmatprep.subr.bf16.mxu1 %v1836_v21  ;;  %1087 = vmatprep.mubr.bf16.mxu1 %v1905_v51  ;;  %v1890_v59 = vld [vmem:[%s2623_s1 + $0x194] ss:$8 sps:$4 sm:$0xff]   ;;  %v1893_v61 = vld [vmem:[%s2623_s1 + $0x190] ss:$8 sps:$4 sm:$0xff]   ;;  %v1894_v62 = vld [vmem:[%s2623_s1 + $0x84] ss:$8 sps:$4 sm:$0xff]  }
  0x16   :  { %v1896_v63 = vld [vmem:[%s2623_s1 + $0x184] ss:$8 sps:$4 sm:$0xff]   ;;  %v1898_v0 = vld [vmem:[%s2623_s1 + $0x80] ss:$8 sps:$4 sm:$0xff]  }
  0x17   :  { %853 = vmatpush1.bf16.msra.mxu0 %v1838_v22  ;;  %v1899_v1 = vld [vmem:[%s2623_s1 + $0x180] ss:$8 sps:$4 sm:$0xff]   ;;  %v1906_v4 = vld [vmem:[%s2624_s0 + $0x24] ss:$16 sps:$4 sm:$0xff]   ;;  %v1908_v5 = vld [vmem:[%s2624_s0 + $0x2c] ss:$16 sps:$4 sm:$0xff]  }
  0x18   :  { %1066 = vmatpush1.bf16.msra.mxu1 %v1839_v23  ;;  %854 = vmatprep.subr.bf16.mxu0 %v1840_v24  ;;  %v1900_v2 = vld [vmem:[%s2624_s0] ss:$16 sps:$4 sm:$0xff]   ;;  %v1903_v3 = vld [vmem:[%s2624_s0 + $0x8] ss:$16 sps:$4 sm:$0xff]   ;;  %v1912_v8 = vld [vmem:[%s2624_s0 + $0x44] ss:$16 sps:$4 sm:$0xff]  }
  0x19   :  { %1067 = vmatprep.subr.bf16.mxu1 %v1842_v25  ;;  %v1910_v6 = vld [vmem:[%s2624_s0 + $0x20] ss:$16 sps:$4 sm:$0xff]   ;;  %v1911_v7 = vld [vmem:[%s2624_s0 + $0x28] ss:$16 sps:$4 sm:$0xff]   ;;  %v1914_v9 = vld [vmem:[%s2624_s0 + $0x4c] ss:$16 sps:$4 sm:$0xff]  }
  0x1a   :  { %v1916_v10 = vld [vmem:[%s2624_s0 + $0x40] ss:$16 sps:$4 sm:$0xff]   ;;  %v1917_v11 = vld [vmem:[%s2624_s0 + $0x48] ss:$16 sps:$4 sm:$0xff]   ;;  %v1918_v12 = vld [vmem:[%s2624_s0 + $0x64] ss:$16 sps:$4 sm:$0xff]  }
  0x1b   :  { %855 = vmatpush1.bf16.msra.mxu0 %v1844_v26  ;;  %v1920_v13 = vld [vmem:[%s2624_s0 + $0x6c] ss:$16 sps:$4 sm:$0xff]   ;;  %v1922_v14 = vld [vmem:[%s2624_s0 + $0x60] ss:$16 sps:$4 sm:$0xff]   ;;  %v1923_v15 = vld [vmem:[%s2624_s0 + $0x68] ss:$16 sps:$4 sm:$0xff]  }
  0x1c   :  { %1068 = vmatpush1.bf16.msra.mxu1 %v1845_v27  ;;  %856 = vmatprep.subr.bf16.mxu0 %v1846_v28  ;;  %v1924_v16 = vld [vmem:[%s2624_s0 + $0x84] ss:$16 sps:$4 sm:$0xff]   ;;  %v1926_v17 = vld [vmem:[%s2624_s0 + $0x8c] ss:$16 sps:$4 sm:$0xff]   ;;  %v1928_v18 = vld [vmem:[%s2624_s0 + $0x80] ss:$16 sps:$4 sm:$0xff]  }
  0x1d   :  { %1069 = vmatprep.subr.bf16.mxu1 %v1848_v29  ;;  %v1929_v19 = vld [vmem:[%s2624_s0 + $0x88] ss:$16 sps:$4 sm:$0xff]   ;;  %v1930_v20 = vld [vmem:[%s2624_s0 + $0xa4] ss:$16 sps:$4 sm:$0xff]   ;;  %v1932_v21 = vld [vmem:[%s2624_s0 + $0xac] ss:$16 sps:$4 sm:$0xff]  }
  0x1e   :  { %v1934_v22 = vld [vmem:[%s2624_s0 + $0xa0] ss:$16 sps:$4 sm:$0xff]   ;;  %v1935_v23 = vld [vmem:[%s2624_s0 + $0xa8] ss:$16 sps:$4 sm:$0xff]   ;;  %v1936_v24 = vld [vmem:[%s2624_s0 + $0xc4] ss:$16 sps:$4 sm:$0xff]  }
  0x1f   :  { %857 = vmatpush1.bf16.msra.mxu0 %v1850_v30  ;;  %v1938_v25 = vld [vmem:[%s2624_s0 + $0xcc] ss:$16 sps:$4 sm:$0xff]   ;;  %v1940_v26 = vld [vmem:[%s2624_s0 + $0xc0] ss:$16 sps:$4 sm:$0xff]   ;;  %v1941_v27 = vld [vmem:[%s2624_s0 + $0xc8] ss:$16 sps:$4 sm:$0xff]  }
  0x20   :  { %1070 = vmatpush1.bf16.msra.mxu1 %v1851_v31  ;;  %858 = vmatprep.subr.bf16.mxu0 %v1852_v32  ;;  %v1942_v28 = vld [vmem:[%s2624_s0 + $0xe4] ss:$16 sps:$4 sm:$0xff]   ;;  %v1944_v29 = vld [vmem:[%s2624_s0 + $0xec] ss:$16 sps:$4 sm:$0xff]   ;;  %v1946_v30 = vld [vmem:[%s2624_s0 + $0xe0] ss:$16 sps:$4 sm:$0xff]  }
  0x21   :  { %1071 = vmatprep.subr.bf16.mxu1 %v1854_v33  ;;  %v1947_v31 = vld [vmem:[%s2624_s0 + $0xe8] ss:$16 sps:$4 sm:$0xff]   ;;  %v1948_v32 = vld [vmem:[%s2624_s0 + $0x104] ss:$16 sps:$4 sm:$0xff]   ;;  %v1950_v33 = vld [vmem:[%s2624_s0 + $0x10c] ss:$16 sps:$4 sm:$0xff]  }
  0x22   :  { %v1974_v49 = vld [vmem:[%s2624_s0 + $0x18c] ss:$16 sps:$4 sm:$0xff]   ;;  %v1977_v51 = vld [vmem:[%s2624_s0 + $0x188] ss:$16 sps:$4 sm:$0xff]  }
  0x23   :  { %859 = vmatpush2.bf16.msra.mxu0 %v1856_v34  ;;  %v1952_v34 = vld [vmem:[%s2624_s0 + $0x100] ss:$16 sps:$4 sm:$0xff]  }
  0x24   :  { %1072 = vmatpush2.bf16.msra.mxu1 %v1857_v35  ;;  %860 = vmatprep.subr.bf16.mxu0 %v1858_v36  ;;  %v1953_v35 = vld [vmem:[%s2624_s0 + $0x108] ss:$16 sps:$4 sm:$0xff]   ;;  %v1954_v36 = vld [vmem:[%s2624_s0 + $0x124] ss:$16 sps:$4 sm:$0xff]  }
  0x25   :  { %1073 = vmatprep.subr.bf16.mxu1 %v1860_v37  ;;  %v1956_v37 = vld [vmem:[%s2624_s0 + $0x12c] ss:$16 sps:$4 sm:$0xff]  }
  0x27   :  { %861 = vmatpush2.bf16.msra.mxu0 %v1862_v38  ;;  %v1958_v38 = vld [vmem:[%s2624_s0 + $0x120] ss:$16 sps:$4 sm:$0xff]  }
  0x28   :  { %1074 = vmatpush2.bf16.msra.mxu1 %v1863_v39  ;;  %862 = vmatprep.subr.bf16.mxu0 %v1864_v40  ;;  %v1959_v39 = vld [vmem:[%s2624_s0 + $0x128] ss:$16 sps:$4 sm:$0xff]   ;;  %v1960_v40 = vld [vmem:[%s2624_s0 + $0x144] ss:$16 sps:$4 sm:$0xff]  }
  0x29   :  { %1075 = vmatprep.subr.bf16.mxu1 %v1866_v41  ;;  %v1962_v41 = vld [vmem:[%s2624_s0 + $0x14c] ss:$16 sps:$4 sm:$0xff]  }
  0x2b   :  { %863 = vmatpush2.bf16.msra.mxu0 %v1868_v42  ;;  %v1964_v42 = vld [vmem:[%s2624_s0 + $0x140] ss:$16 sps:$4 sm:$0xff]  }
  0x2c   :  { %1076 = vmatpush2.bf16.msra.mxu1 %v1869_v43  ;;  %864 = vmatprep.subr.bf16.mxu0 %v1870_v44  ;;  %v1965_v43 = vld [vmem:[%s2624_s0 + $0x148] ss:$16 sps:$4 sm:$0xff]   ;;  %v1966_v44 = vld [vmem:[%s2624_s0 + $0x164] ss:$16 sps:$4 sm:$0xff]  }
  0x2d   :  { %1077 = vmatprep.subr.bf16.mxu1 %v1872_v45  ;;  %v1968_v45 = vld [vmem:[%s2624_s0 + $0x16c] ss:$16 sps:$4 sm:$0xff]  }
  0x2f   :  { %865 = vmatpush2.bf16.msra.mxu0 %v1874_v46  ;;  %v1970_v46 = vld [vmem:[%s2624_s0 + $0x160] ss:$16 sps:$4 sm:$0xff]  }
  0x30   :  { %1078 = vmatpush2.bf16.msra.mxu1 %v1875_v47  ;;  %866 = vmatprep.subr.bf16.mxu0 %v1876_v48  ;;  %v1971_v47 = vld [vmem:[%s2624_s0 + $0x168] ss:$16 sps:$4 sm:$0xff]   ;;  %v1972_v48 = vld [vmem:[%s2624_s0 + $0x184] ss:$16 sps:$4 sm:$0xff]  }
  0x31   :  { %1079 = vmatprep.subr.bf16.mxu1 %v1878_v50  ;;  %v1976_v50 = vld [vmem:[%s2624_s0 + $0x180] ss:$16 sps:$4 sm:$0xff]  }
  0x33   :  { %867 = vmatpush2.bf16.msra.mxu0 %v1880_v52  ;;  %v1978_v52 = vld [vmem:[%s2624_s0 + $0x1a4] ss:$16 sps:$4 sm:$0xff]  }
  0x34   :  { %1080 = vmatpush2.bf16.msra.mxu1 %v1881_v53  ;;  %868 = vmatprep.subr.bf16.mxu0 %v1882_v54  ;;  %v1980_v53 = vld [vmem:[%s2624_s0 + $0x1ac] ss:$16 sps:$4 sm:$0xff]   ;;  %v1982_v54 = vld [vmem:[%s2624_s0 + $0x1a0] ss:$16 sps:$4 sm:$0xff]  }
  0x35   :  { %1081 = vmatprep.subr.bf16.mxu1 %v1884_v55  ;;  %v1983_v55 = vld [vmem:[%s2624_s0 + $0x1a8] ss:$16 sps:$4 sm:$0xff]  }
  0x37   :  { %869 = vmatpush2.bf16.msra.mxu0 %v1886_v56  ;;  %v1984_v56 = vld [vmem:[%s2624_s0 + $0x1c4] ss:$16 sps:$4 sm:$0xff]  }
  0x38   :  { %1082 = vmatpush2.bf16.msra.mxu1 %v1887_v57  ;;  %870 = vmatprep.subr.bf16.mxu0 %v1888_v58  ;;  %v1986_v57 = vld [vmem:[%s2624_s0 + $0x1cc] ss:$16 sps:$4 sm:$0xff]   ;;  %v1988_v58 = vld [vmem:[%s2624_s0 + $0x1c0] ss:$16 sps:$4 sm:$0xff]  }
  0x39   :  { %1083 = vmatprep.subr.bf16.mxu1 %v1890_v59  ;;  %v1989_v59 = vld [vmem:[%s2624_s0 + $0x1c8] ss:$16 sps:$4 sm:$0xff]  }
  0x3b   :  { %871 = vmatpush2.bf16.msra.mxu0 %v1892_v60  ;;  %v1990_v60 = vld [vmem:[%s2624_s0 + $0x1e4] ss:$16 sps:$4 sm:$0xff]  }
  0x3c   :  { %1084 = vmatpush2.bf16.msra.mxu1 %v1893_v61  ;;  %872 = vmatprep.subr.bf16.mxu0 %v1894_v62  ;;  %v1992_v61 = vld [vmem:[%s2624_s0 + $0x1ec] ss:$16 sps:$4 sm:$0xff]   ;;  %v1994_v62 = vld [vmem:[%s2624_s0 + $0x1e0] ss:$16 sps:$4 sm:$0xff]  }
  0x3d   :  { %1085 = vmatprep.subr.bf16.mxu1 %v1896_v63  ;;  %v1995_v63 = vld [vmem:[%s2624_s0 + $0x1e8] ss:$16 sps:$4 sm:$0xff]  }
  0x3f   :  { %873 = vmatpush2.bf16.msra.mxu0 %v1898_v0  ;;  %v1996_v0 = vld [vmem:[%s2624_s0 + $0x204] ss:$16 sps:$4 sm:$0xff]  }
  0x40   :  { %1086 = vmatpush2.bf16.msra.mxu1 %v1899_v1  ;;  %v1998_v1 = vld [vmem:[%s2624_s0 + $0x20c] ss:$16 sps:$4 sm:$0xff]  }
  0x42   :  { %875 = vmatmul.mubr.bf16.vlgmr.msra.gmra.mxu0 %v1900_v2  ;;  %v2000_v2 = vld [vmem:[%s2624_s0 + $0x200] ss:$16 sps:$4 sm:$0xff]  }
  0x43   :  { %1088 = vmatmul.mubr.bf16.vlgmr.msra.gmra.mxu1 %v1903_v3  ;;  %884 = vmatprep.mubr.bf16.mxu0 %v1906_v4  ;;  %v2001_v3 = vld [vmem:[%s2624_s0 + $0x208] ss:$16 sps:$4 sm:$0xff]   ;;  %v2002_v4 = vld [vmem:[%s2624_s0 + $0x224] ss:$16 sps:$4 sm:$0xff]  }
  0x44   :  { %1097 = vmatprep.mubr.bf16.mxu1 %v1908_v5  ;;  %v2004_v5 = vld [vmem:[%s2624_s0 + $0x22c] ss:$16 sps:$4 sm:$0xff]  }
  0x4a   :  { %885 = vmatmul.mubr.bf16.gmra.mxu0 %v1910_v6  ;;  %v2006_v6 = vld [vmem:[%s2624_s0 + $0x220] ss:$16 sps:$4 sm:$0xff]  }
  0x4b   :  { %1098 = vmatmul.mubr.bf16.gmra.mxu1 %v1911_v7  ;;  %894 = vmatprep.mubr.bf16.mxu0 %v1912_v8  ;;  %v2007_v7 = vld [vmem:[%s2624_s0 + $0x228] ss:$16 sps:$4 sm:$0xff]   ;;  %v152_v8 = vlaneseq }
  0x4c   :  { %1107 = vmatprep.mubr.bf16.mxu1 %v1914_v9 }
  0x4d   :  { %v153_v9 = vshrl.u32 %v152_v8, 7 }
  0x52   :  { %895 = vmatmul.mubr.bf16.gmra.mxu0 %v1916_v10  ;;  %v154_v10 = vsub.s32 0, %v153_v9 }
  0x53   :  { %1108 = vmatmul.mubr.bf16.gmra.mxu1 %v1917_v11  ;;  %904 = vmatprep.mubr.bf16.mxu0 %v1918_v12  ;;  %v150_v11 = vld [vmem:[%s2625_s2] sm:$0x3]  ;;  %v158_v12 = vsub.s32 1, %v153_v9 }
  0x54   :  { %1117 = vmatprep.mubr.bf16.mxu1 %v1920_v13  ;;  %v2439_v13 = vrot.slane %v150_v11, %v154_v10 }
  0x5a   :  { %905 = vmatmul.mubr.bf16.gmra.mxu0 %v1922_v14  ;;  %v2441_v14 = vrot.slane %v150_v11, %v158_v12 }
  0x5b   :  { %1118 = vmatmul.mubr.bf16.gmra.mxu1 %v1923_v15  ;;  %914 = vmatprep.mubr.bf16.mxu0 %v1924_v16 }
  0x5c   :  { %1127 = vmatprep.mubr.bf16.mxu1 %v1926_v17 }
  0x62   :  { %915 = vmatmul.mubr.bf16.gmra.mxu0 %v1928_v18 }
  0x63   :  { %1128 = vmatmul.mubr.bf16.gmra.mxu1 %v1929_v19  ;;  %924 = vmatprep.mubr.bf16.mxu0 %v1930_v20 }
  0x64   :  { %1137 = vmatprep.mubr.bf16.mxu1 %v1932_v21 }
  0x6a   :  { %925 = vmatmul.mubr.bf16.gmra.mxu0 %v1934_v22 }
  0x6b   :  { %1138 = vmatmul.mubr.bf16.gmra.mxu1 %v1935_v23  ;;  %934 = vmatprep.mubr.bf16.mxu0 %v1936_v24 }
  0x6c   :  { %1147 = vmatprep.mubr.bf16.mxu1 %v1938_v25 }
  0x72   :  { %935 = vmatmul.mubr.bf16.gmra.mxu0 %v1940_v26 }
  0x73   :  { %1148 = vmatmul.mubr.bf16.gmra.mxu1 %v1941_v27  ;;  %944 = vmatprep.mubr.bf16.mxu0 %v1942_v28 }
  0x74   :  { %1157 = vmatprep.mubr.bf16.mxu1 %v1944_v29 }
  0x7a   :  { %945 = vmatmul.mubr.bf16.gmra.mxu0 %v1946_v30 }
  0x7b   :  { %1158 = vmatmul.mubr.bf16.gmra.mxu1 %v1947_v31  ;;  %954 = vmatprep.mubr.bf16.mxu0 %v1948_v32 }
  0x7c   :  { %1167 = vmatprep.mubr.bf16.mxu1 %v1950_v33 }
  0x82   :  { %955 = vmatmul.mubr.bf16.gmra.mxu0 %v1952_v34 }
  0x83   :  { %1168 = vmatmul.mubr.bf16.gmra.mxu1 %v1953_v35  ;;  %964 = vmatprep.mubr.bf16.mxu0 %v1954_v36 }
  0x84   :  { %1177 = vmatprep.mubr.bf16.mxu1 %v1956_v37 }
  0x8a   :  { %965 = vmatmul.mubr.bf16.gmra.mxu0 %v1958_v38 }
  0x8b   :  { %1178 = vmatmul.mubr.bf16.gmra.mxu1 %v1959_v39  ;;  %974 = vmatprep.mubr.bf16.mxu0 %v1960_v40 }
  0x8c   :  { %1187 = vmatprep.mubr.bf16.mxu1 %v1962_v41 }
  0x92   :  { %975 = vmatmul.mubr.bf16.gmra.mxu0 %v1964_v42 }
  0x93   :  { %1188 = vmatmul.mubr.bf16.gmra.mxu1 %v1965_v43  ;;  %984 = vmatprep.mubr.bf16.mxu0 %v1966_v44 }
  0x94   :  { %1197 = vmatprep.mubr.bf16.mxu1 %v1968_v45 }
  0x9a   :  { %985 = vmatmul.mubr.bf16.gmra.mxu0 %v1970_v46 }
  0x9b   :  { %1198 = vmatmul.mubr.bf16.gmra.mxu1 %v1971_v47  ;;  %994 = vmatprep.mubr.bf16.mxu0 %v1972_v48 }
  0x9c   :  { %1207 = vmatprep.mubr.bf16.mxu1 %v1974_v49 }
  0xa2   :  { %995 = vmatmul.mubr.bf16.gmra.mxu0 %v1976_v50 }
  0xa3   :  { %1208 = vmatmul.mubr.bf16.gmra.mxu1 %v1977_v51  ;;  %1004 = vmatprep.mubr.bf16.mxu0 %v1978_v52 }
  0xa4   :  { %1217 = vmatprep.mubr.bf16.mxu1 %v1980_v53 }
  0xaa   :  { %1005 = vmatmul.mubr.bf16.gmra.mxu0 %v1982_v54 }
  0xab   :  { %1218 = vmatmul.mubr.bf16.gmra.mxu1 %v1983_v55  ;;  %1014 = vmatprep.mubr.bf16.mxu0 %v1984_v56 }
  0xac   :  { %1227 = vmatprep.mubr.bf16.mxu1 %v1986_v57 }
  0xb2   :  { %1015 = vmatmul.mubr.bf16.gmra.mxu0 %v1988_v58 }
  0xb3   :  { %1228 = vmatmul.mubr.bf16.gmra.mxu1 %v1989_v59  ;;  %1024 = vmatprep.mubr.bf16.mxu0 %v1990_v60 }
  0xb4   :  { %1237 = vmatprep.mubr.bf16.mxu1 %v1992_v61 }
  0xba   :  { %1025 = vmatmul.mubr.bf16.gmra.mxu0 %v1994_v62 }
  0xbb   :  { %1238 = vmatmul.mubr.bf16.gmra.mxu1 %v1995_v63  ;;  %1034 = vmatprep.mubr.bf16.mxu0 %v1996_v0 }
  0xbc   :  { %1247 = vmatprep.mubr.bf16.mxu1 %v1998_v1 }
  0xc2   :  { %1035 = vmatmul.mubr.bf16.gmra.mxu0 %v2000_v2 }
  0xc3   :  { %1248 = vmatmul.mubr.bf16.gmra.mxu1 %v2001_v3  ;;  %1044 = vmatprep.mubr.bf16.mxu0 %v2002_v4 }
  0xc4   :  { %1257 = vmatprep.mubr.bf16.mxu1 %v2004_v5 }
  0xca   :  { %1045 = vmatmul.mubr.bf16.gmra.mxu0 %v2006_v6 }
  0xcb   :  { %1258 = vmatmul.mubr.bf16.gmra.mxu1 %v2007_v7 }
 0x102   :  { %v876_v15 = vpop.f32.mrf.mxu0 }
 0x103   :  { %v1089_v16 = vpop.f32.mrf.mxu1  ;;  %v877_v17 = vadd.f32 %v876_v15, %v2439_v13 }
 0x104   :  { %v878_v18 = vpop.f32.mrf.mxu0 }
 0x105   :  { %v1091_v19 = vpop.f32.mrf.mxu1  ;;  %v1090_v20 = vadd.f32 %v1089_v16, %v877_v17  ;;  %v879_v21 = vadd.f32 %v878_v18, %v2441_v14 }
 0x106   :  { %v880_v22 = vpop.f32.mrf.mxu0 }
 0x107   :  { %v1093_v23 = vpop.f32.mrf.mxu1  ;;  %v1092_v24 = vadd.f32 %v1091_v19, %v879_v21  ;;  %v881_v25 = vadd.f32 %v880_v22, %v2439_v13  ;;  %v1268_v28 = vmax.f32 %v1090_v20, 0.0 }
 0x108   :  { %v882_v26 = vpop.f32.mrf.mxu0 }
 0x109   :  { %v1095_v27 = vpop.f32.mrf.mxu1  ;;  %v1269_v29 = vmax.f32 %v1092_v24, 0.0  ;;  %v1094_v30 = vadd.f32 %v1093_v23, %v881_v25  ;;  %v883_v31 = vadd.f32 %v882_v26, %v2441_v14 }
 0x10a   :  { %v886_v32 = vpop.f32.mrf.mxu0 }
 0x10b   :  { %v1099_v33 = vpop.f32.mrf.mxu1  ;;  %v1768_v34 = vpack.c.bf16 %v1269_v29, %v1268_v28  ;;  %v1096_v35 = vadd.f32 %v1095_v27, %v883_v31  ;;  %v887_v36 = vadd.f32 %v886_v32, %v2439_v13  ;;  %v1270_v39 = vmax.f32 %v1094_v30, 0.0 }
 0x10c   :  { %v888_v37 = vpop.f32.mrf.mxu0 }
 0x10d   :  { %v1101_v38 = vpop.f32.mrf.mxu1  ;;  %1556 = vst [vmem:[%s2626_s3] sm:$0xff] %v1768_v34  ;;  %v1271_v40 = vmax.f32 %v1096_v35, 0.0  ;;  %v1100_v41 = vadd.f32 %v1099_v33, %v887_v36  ;;  %v889_v42 = vadd.f32 %v888_v37, %v2441_v14 }
 0x10e   :  { %v890_v43 = vpop.f32.mrf.mxu0 }
 0x10f   :  { %v1103_v44 = vpop.f32.mrf.mxu1  ;;  %v1769_v45 = vpack.c.bf16 %v1271_v40, %v1270_v39  ;;  %v1102_v46 = vadd.f32 %v1101_v38, %v889_v42  ;;  %v891_v47 = vadd.f32 %v890_v43, %v2439_v13  ;;  %v1272_v50 = vmax.f32 %v1100_v41, 0.0 }
 0x110   :  { %v892_v48 = vpop.f32.mrf.mxu0 }
 0x111   :  { %v1105_v49 = vpop.f32.mrf.mxu1  ;;  %1557 = vst [vmem:[%s2626_s3 + $0x8] sm:$0xff] %v1769_v45  ;;  %v1273_v51 = vmax.f32 %v1102_v46, 0.0  ;;  %v1104_v52 = vadd.f32 %v1103_v44, %v891_v47  ;;  %v893_v53 = vadd.f32 %v892_v48, %v2441_v14 }
 0x112   :  { %v896_v54 = vpop.f32.mrf.mxu0 }
 0x113   :  { %v1109_v55 = vpop.f32.mrf.mxu1  ;;  %v1770_v56 = vpack.c.bf16 %v1273_v51, %v1272_v50  ;;  %v1106_v57 = vadd.f32 %v1105_v49, %v893_v53  ;;  %v897_v58 = vadd.f32 %v896_v54, %v2439_v13  ;;  %v1274_v61 = vmax.f32 %v1104_v52, 0.0 }
 0x114   :  { %v898_v59 = vpop.f32.mrf.mxu0 }
 0x115   :  { %v1111_v60 = vpop.f32.mrf.mxu1  ;;  %1558 = vst [vmem:[%s2626_s3 + $0x10] sm:$0xff] %v1770_v56  ;;  %v1275_v62 = vmax.f32 %v1106_v57, 0.0  ;;  %v1110_v63 = vadd.f32 %v1109_v55, %v897_v58  ;;  %v899_v0 = vadd.f32 %v898_v59, %v2441_v14 }
 0x116   :  { %v900_v1 = vpop.f32.mrf.mxu0 }
 0x117   :  { %v1113_v2 = vpop.f32.mrf.mxu1  ;;  %v1771_v3 = vpack.c.bf16 %v1275_v62, %v1274_v61  ;;  %v1112_v4 = vadd.f32 %v1111_v60, %v899_v0  ;;  %v901_v5 = vadd.f32 %v900_v1, %v2439_v13  ;;  %v1276_v8 = vmax.f32 %v1110_v63, 0.0 }
 0x118   :  { %v902_v6 = vpop.f32.mrf.mxu0 }
 0x119   :  { %v1115_v7 = vpop.f32.mrf.mxu1  ;;  %1559 = vst [vmem:[%s2626_s3 + $0x18] sm:$0xff] %v1771_v3  ;;  %v1277_v9 = vmax.f32 %v1112_v4, 0.0  ;;  %v1114_v10 = vadd.f32 %v1113_v2, %v901_v5  ;;  %v903_v11 = vadd.f32 %v902_v6, %v2441_v14 }
 0x11a   :  { %v906_v12 = vpop.f32.mrf.mxu0 }
 0x11b   :  { %v1119_v15 = vpop.f32.mrf.mxu1  ;;  %v1772_v16 = vpack.c.bf16 %v1277_v9, %v1276_v8  ;;  %v1116_v17 = vadd.f32 %v1115_v7, %v903_v11  ;;  %v907_v18 = vadd.f32 %v906_v12, %v2439_v13  ;;  %v1278_v21 = vmax.f32 %v1114_v10, 0.0 }
 0x11c   :  { %v908_v19 = vpop.f32.mrf.mxu0 }
 0x11d   :  { %v1121_v20 = vpop.f32.mrf.mxu1  ;;  %1560 = vst [vmem:[%s2626_s3 + $0x20] sm:$0xff] %v1772_v16  ;;  %v1279_v22 = vmax.f32 %v1116_v17, 0.0  ;;  %v1120_v23 = vadd.f32 %v1119_v15, %v907_v18  ;;  %v909_v24 = vadd.f32 %v908_v19, %v2441_v14 }
 0x11e   :  { %v910_v25 = vpop.f32.mrf.mxu0 }
 0x11f   :  { %v1123_v26 = vpop.f32.mrf.mxu1  ;;  %v1773_v27 = vpack.c.bf16 %v1279_v22, %v1278_v21  ;;  %v1122_v28 = vadd.f32 %v1121_v20, %v909_v24  ;;  %v911_v29 = vadd.f32 %v910_v25, %v2439_v13  ;;  %v1280_v32 = vmax.f32 %v1120_v23, 0.0 }
 0x120   :  { %v912_v30 = vpop.f32.mrf.mxu0 }
 0x121   :  { %v1125_v31 = vpop.f32.mrf.mxu1  ;;  %1561 = vst [vmem:[%s2626_s3 + $0x28] sm:$0xff] %v1773_v27  ;;  %v1281_v33 = vmax.f32 %v1122_v28, 0.0  ;;  %v1124_v34 = vadd.f32 %v1123_v26, %v911_v29  ;;  %v913_v35 = vadd.f32 %v912_v30, %v2441_v14 }
 0x122   :  { %v916_v36 = vpop.f32.mrf.mxu0 }
 0x123   :  { %v1129_v37 = vpop.f32.mrf.mxu1  ;;  %v1774_v38 = vpack.c.bf16 %v1281_v33, %v1280_v32  ;;  %v1126_v39 = vadd.f32 %v1125_v31, %v913_v35  ;;  %v917_v40 = vadd.f32 %v916_v36, %v2439_v13  ;;  %v1282_v43 = vmax.f32 %v1124_v34, 0.0 }
 0x124   :  { %v918_v41 = vpop.f32.mrf.mxu0 }
 0x125   :  { %v1131_v42 = vpop.f32.mrf.mxu1  ;;  %1562 = vst [vmem:[%s2626_s3 + $0x30] sm:$0xff] %v1774_v38  ;;  %v1283_v44 = vmax.f32 %v1126_v39, 0.0  ;;  %v1130_v45 = vadd.f32 %v1129_v37, %v917_v40  ;;  %v919_v46 = vadd.f32 %v918_v41, %v2441_v14 }
 0x126   :  { %v920_v47 = vpop.f32.mrf.mxu0 }
 0x127   :  { %v1133_v48 = vpop.f32.mrf.mxu1  ;;  %v1775_v49 = vpack.c.bf16 %v1283_v44, %v1282_v43  ;;  %v1132_v50 = vadd.f32 %v1131_v42, %v919_v46  ;;  %v921_v51 = vadd.f32 %v920_v47, %v2439_v13  ;;  %v1284_v54 = vmax.f32 %v1130_v45, 0.0 }
 0x128   :  { %v922_v52 = vpop.f32.mrf.mxu0 }
 0x129   :  { %v1135_v53 = vpop.f32.mrf.mxu1  ;;  %1563 = vst [vmem:[%s2626_s3 + $0x38] sm:$0xff] %v1775_v49  ;;  %v1285_v55 = vmax.f32 %v1132_v50, 0.0  ;;  %v1134_v56 = vadd.f32 %v1133_v48, %v921_v51  ;;  %v923_v57 = vadd.f32 %v922_v52, %v2441_v14 }
 0x12a   :  { %v926_v58 = vpop.f32.mrf.mxu0 }
 0x12b   :  { %v1139_v59 = vpop.f32.mrf.mxu1  ;;  %v1776_v60 = vpack.c.bf16 %v1285_v55, %v1284_v54  ;;  %v1136_v61 = vadd.f32 %v1135_v53, %v923_v57  ;;  %v927_v62 = vadd.f32 %v926_v58, %v2439_v13  ;;  %v1286_v1 = vmax.f32 %v1134_v56, 0.0 }
 0x12c   :  { %v928_v63 = vpop.f32.mrf.mxu0 }
 0x12d   :  { %v1141_v0 = vpop.f32.mrf.mxu1  ;;  %1564 = vst [vmem:[%s2626_s3 + $0x40] sm:$0xff] %v1776_v60  ;;  %v1287_v2 = vmax.f32 %v1136_v61, 0.0  ;;  %v1140_v3 = vadd.f32 %v1139_v59, %v927_v62  ;;  %v929_v4 = vadd.f32 %v928_v63, %v2441_v14 }
 0x12e   :  { %v930_v5 = vpop.f32.mrf.mxu0 }
 0x12f   :  { %v1143_v6 = vpop.f32.mrf.mxu1  ;;  %v1777_v7 = vpack.c.bf16 %v1287_v2, %v1286_v1  ;;  %v1142_v8 = vadd.f32 %v1141_v0, %v929_v4  ;;  %v931_v9 = vadd.f32 %v930_v5, %v2439_v13  ;;  %v1288_v12 = vmax.f32 %v1140_v3, 0.0 }
 0x130   :  { %v932_v10 = vpop.f32.mrf.mxu0 }
 0x131   :  { %v1145_v11 = vpop.f32.mrf.mxu1  ;;  %1565 = vst [vmem:[%s2626_s3 + $0x48] sm:$0xff] %v1777_v7  ;;  %v1289_v15 = vmax.f32 %v1142_v8, 0.0  ;;  %v1144_v16 = vadd.f32 %v1143_v6, %v931_v9  ;;  %v933_v17 = vadd.f32 %v932_v10, %v2441_v14 }
 0x132   :  { %v936_v18 = vpop.f32.mrf.mxu0 }
 0x133   :  { %v1149_v19 = vpop.f32.mrf.mxu1  ;;  %v1778_v20 = vpack.c.bf16 %v1289_v15, %v1288_v12  ;;  %v1146_v21 = vadd.f32 %v1145_v11, %v933_v17  ;;  %v937_v22 = vadd.f32 %v936_v18, %v2439_v13  ;;  %v1290_v25 = vmax.f32 %v1144_v16, 0.0 }
 0x134   :  { %v938_v23 = vpop.f32.mrf.mxu0 }
 0x135   :  { %v1151_v24 = vpop.f32.mrf.mxu1  ;;  %1566 = vst [vmem:[%s2626_s3 + $0x50] sm:$0xff] %v1778_v20  ;;  %v1291_v26 = vmax.f32 %v1146_v21, 0.0  ;;  %v1150_v27 = vadd.f32 %v1149_v19, %v937_v22  ;;  %v939_v28 = vadd.f32 %v938_v23, %v2441_v14 }
 0x136   :  { %v940_v29 = vpop.f32.mrf.mxu0 }
 0x137   :  { %v1153_v30 = vpop.f32.mrf.mxu1  ;;  %v1779_v31 = vpack.c.bf16 %v1291_v26, %v1290_v25  ;;  %v1152_v32 = vadd.f32 %v1151_v24, %v939_v28  ;;  %v941_v33 = vadd.f32 %v940_v29, %v2439_v13  ;;  %v1292_v36 = vmax.f32 %v1150_v27, 0.0 }
 0x138   :  { %v942_v34 = vpop.f32.mrf.mxu0 }
 0x139   :  { %v1155_v35 = vpop.f32.mrf.mxu1  ;;  %1567 = vst [vmem:[%s2626_s3 + $0x58] sm:$0xff] %v1779_v31  ;;  %v1293_v37 = vmax.f32 %v1152_v32, 0.0  ;;  %v1154_v38 = vadd.f32 %v1153_v30, %v941_v33  ;;  %v943_v39 = vadd.f32 %v942_v34, %v2441_v14 }
 0x13a   :  { %v946_v40 = vpop.f32.mrf.mxu0 }
 0x13b   :  { %v1159_v41 = vpop.f32.mrf.mxu1  ;;  %v1780_v42 = vpack.c.bf16 %v1293_v37, %v1292_v36  ;;  %v1156_v43 = vadd.f32 %v1155_v35, %v943_v39  ;;  %v947_v44 = vadd.f32 %v946_v40, %v2439_v13  ;;  %v1294_v47 = vmax.f32 %v1154_v38, 0.0 }
 0x13c   :  { %v948_v45 = vpop.f32.mrf.mxu0 }
 0x13d   :  { %v1161_v46 = vpop.f32.mrf.mxu1  ;;  %1568 = vst [vmem:[%s2626_s3 + $0x60] sm:$0xff] %v1780_v42  ;;  %v1295_v48 = vmax.f32 %v1156_v43, 0.0  ;;  %v1160_v49 = vadd.f32 %v1159_v41, %v947_v44  ;;  %v949_v50 = vadd.f32 %v948_v45, %v2441_v14 }
 0x13e   :  { %v950_v51 = vpop.f32.mrf.mxu0 }
 0x13f   :  { %v1163_v52 = vpop.f32.mrf.mxu1  ;;  %v1781_v53 = vpack.c.bf16 %v1295_v48, %v1294_v47  ;;  %v1162_v54 = vadd.f32 %v1161_v46, %v949_v50  ;;  %v951_v55 = vadd.f32 %v950_v51, %v2439_v13  ;;  %v1296_v58 = vmax.f32 %v1160_v49, 0.0 }
 0x140   :  { %v952_v56 = vpop.f32.mrf.mxu0 }
 0x141   :  { %v1165_v57 = vpop.f32.mrf.mxu1  ;;  %1569 = vst [vmem:[%s2626_s3 + $0x68] sm:$0xff] %v1781_v53  ;;  %v1297_v59 = vmax.f32 %v1162_v54, 0.0  ;;  %v1164_v60 = vadd.f32 %v1163_v52, %v951_v55  ;;  %v953_v61 = vadd.f32 %v952_v56, %v2441_v14 }
 0x142   :  { %v956_v62 = vpop.f32.mrf.mxu0 }
 0x143   :  { %v1169_v63 = vpop.f32.mrf.mxu1  ;;  %v1782_v0 = vpack.c.bf16 %v1297_v59, %v1296_v58  ;;  %v1166_v1 = vadd.f32 %v1165_v57, %v953_v61  ;;  %v957_v2 = vadd.f32 %v956_v62, %v2439_v13  ;;  %v1298_v5 = vmax.f32 %v1164_v60, 0.0 }
 0x144   :  { %v958_v3 = vpop.f32.mrf.mxu0 }
 0x145   :  { %v1171_v4 = vpop.f32.mrf.mxu1  ;;  %1570 = vst [vmem:[%s2626_s3 + $0x70] sm:$0xff] %v1782_v0  ;;  %v1299_v6 = vmax.f32 %v1166_v1, 0.0  ;;  %v1170_v7 = vadd.f32 %v1169_v63, %v957_v2  ;;  %v959_v8 = vadd.f32 %v958_v3, %v2441_v14 }
 0x146   :  { %v960_v9 = vpop.f32.mrf.mxu0 }
 0x147   :  { %v1173_v10 = vpop.f32.mrf.mxu1  ;;  %v1783_v11 = vpack.c.bf16 %v1299_v6, %v1298_v5  ;;  %v1172_v12 = vadd.f32 %v1171_v4, %v959_v8  ;;  %v961_v15 = vadd.f32 %v960_v9, %v2439_v13  ;;  %v1300_v18 = vmax.f32 %v1170_v7, 0.0 }
 0x148   :  { %v962_v16 = vpop.f32.mrf.mxu0 }
 0x149   :  { %v1175_v17 = vpop.f32.mrf.mxu1  ;;  %1571 = vst [vmem:[%s2626_s3 + $0x78] sm:$0xff] %v1783_v11  ;;  %v1301_v19 = vmax.f32 %v1172_v12, 0.0  ;;  %v1174_v20 = vadd.f32 %v1173_v10, %v961_v15  ;;  %v963_v21 = vadd.f32 %v962_v16, %v2441_v14 }
 0x14a   :  { %v966_v22 = vpop.f32.mrf.mxu0 }
 0x14b   :  { %v1179_v23 = vpop.f32.mrf.mxu1  ;;  %v1784_v24 = vpack.c.bf16 %v1301_v19, %v1300_v18  ;;  %v1176_v25 = vadd.f32 %v1175_v17, %v963_v21  ;;  %v967_v26 = vadd.f32 %v966_v22, %v2439_v13  ;;  %v1302_v29 = vmax.f32 %v1174_v20, 0.0 }
 0x14c   :  { %v968_v27 = vpop.f32.mrf.mxu0 }
 0x14d   :  { %v1181_v28 = vpop.f32.mrf.mxu1  ;;  %1572 = vst [vmem:[%s2626_s3 + $0x80] sm:$0xff] %v1784_v24  ;;  %v1303_v30 = vmax.f32 %v1176_v25, 0.0  ;;  %v1180_v31 = vadd.f32 %v1179_v23, %v967_v26  ;;  %v969_v32 = vadd.f32 %v968_v27, %v2441_v14 }
 0x14e   :  { %v970_v33 = vpop.f32.mrf.mxu0 }
 0x14f   :  { %v1183_v34 = vpop.f32.mrf.mxu1  ;;  %v1785_v35 = vpack.c.bf16 %v1303_v30, %v1302_v29  ;;  %v1182_v36 = vadd.f32 %v1181_v28, %v969_v32  ;;  %v971_v37 = vadd.f32 %v970_v33, %v2439_v13  ;;  %v1304_v40 = vmax.f32 %v1180_v31, 0.0 }
 0x150   :  { %v972_v38 = vpop.f32.mrf.mxu0 }
 0x151   :  { %v1185_v39 = vpop.f32.mrf.mxu1  ;;  %1573 = vst [vmem:[%s2626_s3 + $0x88] sm:$0xff] %v1785_v35  ;;  %v1305_v41 = vmax.f32 %v1182_v36, 0.0  ;;  %v1184_v42 = vadd.f32 %v1183_v34, %v971_v37  ;;  %v973_v43 = vadd.f32 %v972_v38, %v2441_v14 }
 0x152   :  { %v976_v44 = vpop.f32.mrf.mxu0 }
 0x153   :  { %v1189_v45 = vpop.f32.mrf.mxu1  ;;  %v1786_v46 = vpack.c.bf16 %v1305_v41, %v1304_v40  ;;  %v1186_v47 = vadd.f32 %v1185_v39, %v973_v43  ;;  %v977_v48 = vadd.f32 %v976_v44, %v2439_v13  ;;  %v1306_v51 = vmax.f32 %v1184_v42, 0.0 }
 0x154   :  { %v978_v49 = vpop.f32.mrf.mxu0 }
 0x155   :  { %v1191_v50 = vpop.f32.mrf.mxu1  ;;  %1574 = vst [vmem:[%s2626_s3 + $0x90] sm:$0xff] %v1786_v46  ;;  %v1307_v52 = vmax.f32 %v1186_v47, 0.0  ;;  %v1190_v53 = vadd.f32 %v1189_v45, %v977_v48  ;;  %v979_v54 = vadd.f32 %v978_v49, %v2441_v14 }
 0x156   :  { %v980_v55 = vpop.f32.mrf.mxu0 }
 0x157   :  { %v1193_v56 = vpop.f32.mrf.mxu1  ;;  %v1787_v57 = vpack.c.bf16 %v1307_v52, %v1306_v51  ;;  %v1192_v58 = vadd.f32 %v1191_v50, %v979_v54  ;;  %v981_v59 = vadd.f32 %v980_v55, %v2439_v13  ;;  %v1308_v62 = vmax.f32 %v1190_v53, 0.0 }
 0x158   :  { %v982_v60 = vpop.f32.mrf.mxu0 }
 0x159   :  { %v1195_v61 = vpop.f32.mrf.mxu1  ;;  %1575 = vst [vmem:[%s2626_s3 + $0x98] sm:$0xff] %v1787_v57  ;;  %v1309_v63 = vmax.f32 %v1192_v58, 0.0  ;;  %v1194_v0 = vadd.f32 %v1193_v56, %v981_v59  ;;  %v983_v1 = vadd.f32 %v982_v60, %v2441_v14 }
 0x15a   :  { %v986_v2 = vpop.f32.mrf.mxu0 }
 0x15b   :  { %v1199_v3 = vpop.f32.mrf.mxu1  ;;  %v1788_v4 = vpack.c.bf16 %v1309_v63, %v1308_v62  ;;  %v1196_v5 = vadd.f32 %v1195_v61, %v983_v1  ;;  %v987_v6 = vadd.f32 %v986_v2, %v2439_v13  ;;  %v1310_v9 = vmax.f32 %v1194_v0, 0.0 }
 0x15c   :  { %v988_v7 = vpop.f32.mrf.mxu0 }
 0x15d   :  { %v1201_v8 = vpop.f32.mrf.mxu1  ;;  %1576 = vst [vmem:[%s2626_s3 + $0xa0] sm:$0xff] %v1788_v4  ;;  %v1311_v10 = vmax.f32 %v1196_v5, 0.0  ;;  %v1200_v11 = vadd.f32 %v1199_v3, %v987_v6  ;;  %v989_v12 = vadd.f32 %v988_v7, %v2441_v14 }
 0x15e   :  { %v990_v15 = vpop.f32.mrf.mxu0 }
 0x15f   :  { %v1203_v16 = vpop.f32.mrf.mxu1  ;;  %v1789_v17 = vpack.c.bf16 %v1311_v10, %v1310_v9  ;;  %v1202_v18 = vadd.f32 %v1201_v8, %v989_v12  ;;  %v991_v19 = vadd.f32 %v990_v15, %v2439_v13  ;;  %v1312_v22 = vmax.f32 %v1200_v11, 0.0 }
 0x160   :  { %v992_v20 = vpop.f32.mrf.mxu0 }
 0x161   :  { %v1205_v21 = vpop.f32.mrf.mxu1  ;;  %1577 = vst [vmem:[%s2626_s3 + $0xa8] sm:$0xff] %v1789_v17  ;;  %v1313_v23 = vmax.f32 %v1202_v18, 0.0  ;;  %v1204_v24 = vadd.f32 %v1203_v16, %v991_v19  ;;  %v993_v25 = vadd.f32 %v992_v20, %v2441_v14 }
 0x162   :  { %v996_v26 = vpop.f32.mrf.mxu0 }
 0x163   :  { %v1209_v27 = vpop.f32.mrf.mxu1  ;;  %v1790_v28 = vpack.c.bf16 %v1313_v23, %v1312_v22  ;;  %v1206_v29 = vadd.f32 %v1205_v21, %v993_v25  ;;  %v997_v30 = vadd.f32 %v996_v26, %v2439_v13  ;;  %v1314_v33 = vmax.f32 %v1204_v24, 0.0 }
 0x164   :  { %v998_v31 = vpop.f32.mrf.mxu0 }
 0x165   :  { %v1211_v32 = vpop.f32.mrf.mxu1  ;;  %1578 = vst [vmem:[%s2626_s3 + $0xb0] sm:$0xff] %v1790_v28  ;;  %v1315_v34 = vmax.f32 %v1206_v29, 0.0  ;;  %v1210_v35 = vadd.f32 %v1209_v27, %v997_v30  ;;  %v999_v36 = vadd.f32 %v998_v31, %v2441_v14 }
 0x166   :  { %v1000_v37 = vpop.f32.mrf.mxu0 }
 0x167   :  { %v1213_v38 = vpop.f32.mrf.mxu1  ;;  %v1791_v39 = vpack.c.bf16 %v1315_v34, %v1314_v33  ;;  %v1212_v40 = vadd.f32 %v1211_v32, %v999_v36  ;;  %v1001_v41 = vadd.f32 %v1000_v37, %v2439_v13  ;;  %v1316_v44 = vmax.f32 %v1210_v35, 0.0 }
 0x168   :  { %v1002_v42 = vpop.f32.mrf.mxu0 }
 0x169   :  { %v1215_v43 = vpop.f32.mrf.mxu1  ;;  %1579 = vst [vmem:[%s2626_s3 + $0xb8] sm:$0xff] %v1791_v39  ;;  %v1317_v45 = vmax.f32 %v1212_v40, 0.0  ;;  %v1214_v46 = vadd.f32 %v1213_v38, %v1001_v41  ;;  %v1003_v47 = vadd.f32 %v1002_v42, %v2441_v14 }
 0x16a   :  { %v1006_v48 = vpop.f32.mrf.mxu0 }
 0x16b   :  { %v1219_v49 = vpop.f32.mrf.mxu1  ;;  %v1792_v50 = vpack.c.bf16 %v1317_v45, %v1316_v44  ;;  %v1216_v51 = vadd.f32 %v1215_v43, %v1003_v47  ;;  %v1007_v52 = vadd.f32 %v1006_v48, %v2439_v13  ;;  %v1318_v55 = vmax.f32 %v1214_v46, 0.0 }
 0x16c   :  { %v1008_v53 = vpop.f32.mrf.mxu0 }
 0x16d   :  { %v1221_v54 = vpop.f32.mrf.mxu1  ;;  %1580 = vst [vmem:[%s2626_s3 + $0xc0] sm:$0xff] %v1792_v50  ;;  %v1319_v56 = vmax.f32 %v1216_v51, 0.0  ;;  %v1220_v57 = vadd.f32 %v1219_v49, %v1007_v52  ;;  %v1009_v58 = vadd.f32 %v1008_v53, %v2441_v14 }
 0x16e   :  { %v1010_v59 = vpop.f32.mrf.mxu0 }
 0x16f   :  { %v1223_v60 = vpop.f32.mrf.mxu1  ;;  %v1793_v61 = vpack.c.bf16 %v1319_v56, %v1318_v55  ;;  %v1222_v62 = vadd.f32 %v1221_v54, %v1009_v58  ;;  %v1011_v63 = vadd.f32 %v1010_v59, %v2439_v13  ;;  %v1320_v2 = vmax.f32 %v1220_v57, 0.0 }
 0x170   :  { %v1012_v0 = vpop.f32.mrf.mxu0 }
 0x171   :  { %v1225_v1 = vpop.f32.mrf.mxu1  ;;  %1581 = vst [vmem:[%s2626_s3 + $0xc8] sm:$0xff] %v1793_v61  ;;  %v1321_v3 = vmax.f32 %v1222_v62, 0.0  ;;  %v1224_v4 = vadd.f32 %v1223_v60, %v1011_v63  ;;  %v1013_v5 = vadd.f32 %v1012_v0, %v2441_v14 }
 0x172   :  { %v1016_v6 = vpop.f32.mrf.mxu0 }
 0x173   :  { %v1229_v7 = vpop.f32.mrf.mxu1  ;;  %v1794_v8 = vpack.c.bf16 %v1321_v3, %v1320_v2  ;;  %v1226_v9 = vadd.f32 %v1225_v1, %v1013_v5  ;;  %v1017_v10 = vadd.f32 %v1016_v6, %v2439_v13  ;;  %v1322_v15 = vmax.f32 %v1224_v4, 0.0 }
 0x174   :  { %v1018_v11 = vpop.f32.mrf.mxu0 }
 0x175   :  { %v1231_v12 = vpop.f32.mrf.mxu1  ;;  %1582 = vst [vmem:[%s2626_s3 + $0xd0] sm:$0xff] %v1794_v8  ;;  %v1323_v16 = vmax.f32 %v1226_v9, 0.0  ;;  %v1230_v17 = vadd.f32 %v1229_v7, %v1017_v10  ;;  %v1019_v18 = vadd.f32 %v1018_v11, %v2441_v14 }
 0x176   :  { %v1020_v19 = vpop.f32.mrf.mxu0 }
 0x177   :  { %v1233_v20 = vpop.f32.mrf.mxu1  ;;  %v1795_v21 = vpack.c.bf16 %v1323_v16, %v1322_v15  ;;  %v1232_v22 = vadd.f32 %v1231_v12, %v1019_v18  ;;  %v1021_v23 = vadd.f32 %v1020_v19, %v2439_v13  ;;  %v1324_v26 = vmax.f32 %v1230_v17, 0.0 }
 0x178   :  { %v1022_v24 = vpop.f32.mrf.mxu0 }
 0x179   :  { %v1235_v25 = vpop.f32.mrf.mxu1  ;;  %1583 = vst [vmem:[%s2626_s3 + $0xd8] sm:$0xff] %v1795_v21  ;;  %v1325_v27 = vmax.f32 %v1232_v22, 0.0  ;;  %v1234_v28 = vadd.f32 %v1233_v20, %v1021_v23  ;;  %v1023_v29 = vadd.f32 %v1022_v24, %v2441_v14 }
 0x17a   :  { %v1026_v30 = vpop.f32.mrf.mxu0 }
 0x17b   :  { %v1239_v31 = vpop.f32.mrf.mxu1  ;;  %v1796_v32 = vpack.c.bf16 %v1325_v27, %v1324_v26  ;;  %v1236_v33 = vadd.f32 %v1235_v25, %v1023_v29  ;;  %v1027_v34 = vadd.f32 %v1026_v30, %v2439_v13  ;;  %v1326_v37 = vmax.f32 %v1234_v28, 0.0 }
 0x17c   :  { %v1028_v35 = vpop.f32.mrf.mxu0 }
 0x17d   :  { %v1241_v36 = vpop.f32.mrf.mxu1  ;;  %1584 = vst [vmem:[%s2626_s3 + $0xe0] sm:$0xff] %v1796_v32  ;;  %v1327_v38 = vmax.f32 %v1236_v33, 0.0  ;;  %v1240_v39 = vadd.f32 %v1239_v31, %v1027_v34  ;;  %v1029_v40 = vadd.f32 %v1028_v35, %v2441_v14 }
 0x17e   :  { %v1030_v41 = vpop.f32.mrf.mxu0 }
 0x17f   :  { %v1243_v42 = vpop.f32.mrf.mxu1  ;;  %v1797_v43 = vpack.c.bf16 %v1327_v38, %v1326_v37  ;;  %v1242_v44 = vadd.f32 %v1241_v36, %v1029_v40  ;;  %v1031_v45 = vadd.f32 %v1030_v41, %v2439_v13  ;;  %v1328_v48 = vmax.f32 %v1240_v39, 0.0 }
 0x180   :  { %v1032_v46 = vpop.f32.mrf.mxu0 }
 0x181   :  { %v1245_v47 = vpop.f32.mrf.mxu1  ;;  %1585 = vst [vmem:[%s2626_s3 + $0xe8] sm:$0xff] %v1797_v43  ;;  %v1329_v49 = vmax.f32 %v1242_v44, 0.0  ;;  %v1244_v50 = vadd.f32 %v1243_v42, %v1031_v45  ;;  %v1033_v51 = vadd.f32 %v1032_v46, %v2441_v14 }
 0x182   :  { %v1036_v52 = vpop.f32.mrf.mxu0 }
 0x183   :  { %v1249_v53 = vpop.f32.mrf.mxu1  ;;  %v1798_v54 = vpack.c.bf16 %v1329_v49, %v1328_v48  ;;  %v1246_v55 = vadd.f32 %v1245_v47, %v1033_v51  ;;  %v1037_v56 = vadd.f32 %v1036_v52, %v2439_v13  ;;  %v1330_v59 = vmax.f32 %v1244_v50, 0.0 }
 0x184   :  { %v1038_v57 = vpop.f32.mrf.mxu0 }
 0x185   :  { %v1251_v58 = vpop.f32.mrf.mxu1  ;;  %1586 = vst [vmem:[%s2626_s3 + $0xf0] sm:$0xff] %v1798_v54  ;;  %v1331_v60 = vmax.f32 %v1246_v55, 0.0  ;;  %v1250_v61 = vadd.f32 %v1249_v53, %v1037_v56  ;;  %v1039_v62 = vadd.f32 %v1038_v57, %v2441_v14 }
 0x186   :  { %v1040_v63 = vpop.f32.mrf.mxu0 }
 0x187   :  { %v1253_v0 = vpop.f32.mrf.mxu1  ;;  %v1799_v1 = vpack.c.bf16 %v1331_v60, %v1330_v59  ;;  %v1252_v2 = vadd.f32 %v1251_v58, %v1039_v62  ;;  %v1041_v3 = vadd.f32 %v1040_v63, %v2439_v13  ;;  %v1332_v6 = vmax.f32 %v1250_v61, 0.0 }
 0x188   :  { %v1042_v4 = vpop.f32.mrf.mxu0 }
 0x189   :  { %v1255_v5 = vpop.f32.mrf.mxu1  ;;  %1587 = vst [vmem:[%s2626_s3 + $0xf8] sm:$0xff] %v1799_v1  ;;  %v1333_v7 = vmax.f32 %v1252_v2, 0.0  ;;  %v1254_v8 = vadd.f32 %v1253_v0, %v1041_v3  ;;  %v1043_v9 = vadd.f32 %v1042_v4, %v2441_v14 }
 0x18a   :  { %v1046_v10 = vpop.f32.mrf.mxu0 }
 0x18b   :  { %v1259_v11 = vpop.f32.mrf.mxu1  ;;  %v1800_v12 = vpack.c.bf16 %v1333_v7, %v1332_v6  ;;  %v1256_v15 = vadd.f32 %v1255_v5, %v1043_v9  ;;  %v1047_v16 = vadd.f32 %v1046_v10, %v2439_v13  ;;  %v1334_v19 = vmax.f32 %v1254_v8, 0.0 }
 0x18c   :  { %v1048_v17 = vpop.f32.mrf.mxu0 }
 0x18d   :  { %v1261_v18 = vpop.f32.mrf.mxu1  ;;  %1588 = vst [vmem:[%s2626_s3 + $0x100] sm:$0xff] %v1800_v12  ;;  %v1335_v20 = vmax.f32 %v1256_v15, 0.0  ;;  %v1260_v21 = vadd.f32 %v1259_v11, %v1047_v16  ;;  %v1049_v22 = vadd.f32 %v1048_v17, %v2441_v14 }
 0x18e   :  { %v1050_v23 = vpop.f32.mrf.mxu0 }
 0x18f   :  { %v1263_v24 = vpop.f32.mrf.mxu1  ;;  %v1801_v25 = vpack.c.bf16 %v1335_v20, %v1334_v19  ;;  %v1262_v26 = vadd.f32 %v1261_v18, %v1049_v22  ;;  %v1051_v27 = vadd.f32 %v1050_v23, %v2439_v13  ;;  %v1336_v29 = vmax.f32 %v1260_v21, 0.0 }
 0x190   :  { %v1052_v28 = vpop.f32.mrf.mxu0 }
 0x191   :  { %1589 = vst [vmem:[%s2626_s3 + $0x108] sm:$0xff] %v1801_v25  ;;  %v1337_v30 = vmax.f32 %v1262_v26, 0.0  ;;  %v1264_v31 = vadd.f32 %v1263_v24, %v1051_v27  ;;  %v1053_v32 = vadd.f32 %v1052_v28, %v2441_v14  ;;  %v1265_v33 = vpop.f32.mrf.mxu1 }
 0x193   :  { %v1802_v34 = vpack.c.bf16 %v1337_v30, %v1336_v29  ;;  %v1266_v35 = vadd.f32 %v1265_v33, %v1053_v32  ;;  %v1338_v36 = vmax.f32 %v1264_v31, 0.0 }
 0x195   :  { %1590 = vst [vmem:[%s2626_s3 + $0x110] sm:$0xff] %v1802_v34  ;;  %v1339_v37 = vmax.f32 %v1266_v35, 0.0 }
 0x197   :  { %v1803_v13 = vpack.c.bf16 %v1339_v37, %v1338_v36 }
 0x199   :  { %1591 = vst [vmem:[%s2626_s3 + $0x118] sm:$0xff] %v1803_v13 }

// kernel: decoder_forward.8
= control target key start
LH: loop header
LB: loop body
LE: loop exit
PB: predicated region body
PF: predicated region fallthrough
CT: control target
= control target key end

     0   :  { %s2152_s12 = smov 0   ;;  %s2154_s13 = smov 0   ;;  %s2438_s0 = inlined_call_operand.vmem [shape: bf16[1536,256], index: 0, kind: input, shape index: {}]   ;;  %s2439_s1 = inlined_call_operand.vmem [shape: bf16[256,128], index: 1, kind: input, shape index: {}]   ;;  %s2440_s2 = inlined_call_operand.vmem [shape: f32[1,128], index: 2, kind: input, shape index: {}]   ;;  %s2441_s3 = inlined_call_operand.vmem [shape: bf16[1536,128], index: 3, kind: output, shape index: {}]  }
   0x1   :  { %s2156_s14 = smov 0  }
   0x2 LB: > { %s25_s15 = sadd.s32 1, %s2125_s13  ;;  %p1529_p0 = scmp.ge.s32.totalorder %s2129_s14, 1  ;;  %s2129_s14 = sphi %s2156_s14, %s13_s14   ;;  %s2125_s13 = sphi %s2154_s13, %s2443_s13   ;;  %s2121_s12 = sphi %s2152_s12, %s2442_s12  }
   0x3   : > { %p27_p1 = scmp.ge.s32.totalorder %s25_s15, 3  ;;  %p170_p2 = scmp.lt.s32.totalorder %s2129_s14, 4 }
   0x5   : > { %s2445_s15 = smov (%p27_p1, %s25_s15), 0  ;;  %p171_p3 = pnand %p1529_p0, %p170_p2 }
   0x6   : > { %s1530_s18 = sshll.u32 (!%p171_p3), %s2121_s12, 6 }
   0x7   : > { %174 = sbr.rel (%p171_p3) target bundleno = 401 (0x191), region = 32  ;;  %p206_p4 = scmp.lt.s32.totalorder (!%p171_p3), %s1530_s18, 191 }
   0xc   : > { %v1995_v0 = vld [vmem:[%s2439_s1 + $0x38] sm:$0xff]   ;;  %v2131_v1 = vmov 0   ;;  %v1996_v2 = vld [vmem:[%s2439_s1 + $0x30] sm:$0xff]   ;;  %v1997_v3 = vld [vmem:[%s2439_s1 + $0x28] sm:$0xff]   ;;  %s2447_s18 = smov (!%p206_p4, %s1530_s18), 191 }
   0xd   : > { %748 = vmatprep.subr.bf16.mxu0 %v2131_v1  ;;  %1938 = vmatprep.subr.bf16.mxu1 %v2131_v1  ;;  %v1998_v4 = vld [vmem:[%s2439_s1 + $0x20] sm:$0xff]   ;;  %s1682_s25 = sshll.u32 %s2447_s18, 3  ;;  %v1999_v5 = vld [vmem:[%s2439_s1 + $0x18] sm:$0xff]   ;;  %v2000_v7 = vld [vmem:[%s2439_s1 + $0x10] sm:$0xff]   ;;  %s1534_s6 = sshll.u32 %s2447_s18, 2 }
   0xe   : > { %749 = vmatpush1.bf16.msra.mxu0 %v1995_v0  ;;  %1954 = vmatpush1.bf16.msra.mxu1 %v1995_v0  ;;  %s2199_s30 = scalar_lea.vmem %s2438_s0, %s1682_s25  ;;  %v2001_v9 = vld [vmem:[%s2439_s1 + $0x8] sm:$0xff]   ;;  %v2002_v10 = vld [vmem:[%s2439_s1] sm:$0xff]   ;;  %v2003_v11 = vld [vmem:[%s2439_s1 + $0x78] sm:$0xff]   ;;  %s2335_s8 = scalar_lea.vmem %s2441_s3, %s1534_s6 }
   0xf   : > { %750 = vmatprep.subr.bf16.mxu0 %v2131_v1  ;;  %1939 = vmatprep.subr.bf16.mxu1 %v2131_v1  ;;  %v2013_v6 = vld [vmem:[%s2199_s30 + $0x4] ss:$8 sps:$4 sm:$0xff]   ;;  %v2004_v12 = vld [vmem:[%s2439_s1 + $0x70] sm:$0xff]   ;;  %v2007_v15 = vld [vmem:[%s2439_s1 + $0x58] sm:$0xff]  }
  0x10   : > { %v2016_v8 = vld [vmem:[%s2199_s30 + $0x104] ss:$8 sps:$4 sm:$0xff]   ;;  %780 = vmatprep.mubr.bf16.mxu0 %v2013_v6  ;;  %v2008_v16 = vld [vmem:[%s2439_s1 + $0x50] sm:$0xff]   ;;  %v2011_v19 = vld [vmem:[%s2199_s30] ss:$8 sps:$4 sm:$0xff]  }
  0x11   : > { %908 = vmatprep.mubr.bf16.mxu1 %v2016_v8  ;;  %v2005_v13 = vld [vmem:[%s2439_s1 + $0x68] sm:$0xff]   ;;  %v2006_v14 = vld [vmem:[%s2439_s1 + $0x60] sm:$0xff]   ;;  %v2017_v21 = vld [vmem:[%s2199_s30 + $0x14] ss:$8 sps:$4 sm:$0xff]  }
  0x12   : > { %751 = vmatpush1.bf16.msra.mxu0 %v1996_v2  ;;  %1955 = vmatpush1.bf16.msra.mxu1 %v1996_v2  ;;  %v2009_v17 = vld [vmem:[%s2439_s1 + $0x48] sm:$0xff]   ;;  %v2010_v18 = vld [vmem:[%s2439_s1 + $0x40] sm:$0xff]   ;;  %v2019_v22 = vld [vmem:[%s2199_s30 + $0x114] ss:$8 sps:$4 sm:$0xff]  }
  0x13   : > { %752 = vmatprep.subr.bf16.mxu0 %v2131_v1  ;;  %1940 = vmatprep.subr.bf16.mxu1 %v2131_v1  ;;  %v2014_v20 = vld [vmem:[%s2199_s30 + $0x100] ss:$8 sps:$4 sm:$0xff]   ;;  %v2021_v23 = vld [vmem:[%s2199_s30 + $0x10] ss:$8 sps:$4 sm:$0xff]   ;;  %v2023_v25 = vld [vmem:[%s2199_s30 + $0x24] ss:$8 sps:$4 sm:$0xff]  }
  0x14   : > { %v2022_v24 = vld [vmem:[%s2199_s30 + $0x110] ss:$8 sps:$4 sm:$0xff]   ;;  %v2025_v26 = vld [vmem:[%s2199_s30 + $0x124] ss:$8 sps:$4 sm:$0xff]   ;;  %v2027_v27 = vld [vmem:[%s2199_s30 + $0x20] ss:$8 sps:$4 sm:$0xff]  }
  0x15   : > { %v2028_v28 = vld [vmem:[%s2199_s30 + $0x120] ss:$8 sps:$4 sm:$0xff]   ;;  %v2029_v29 = vld [vmem:[%s2199_s30 + $0x34] ss:$8 sps:$4 sm:$0xff]   ;;  %v2033_v31 = vld [vmem:[%s2199_s30 + $0x30] ss:$8 sps:$4 sm:$0xff]  }
  0x16   : > { %753 = vmatpush1.bf16.msra.mxu0 %v1997_v3  ;;  %1956 = vmatpush1.bf16.msra.mxu1 %v1997_v3  ;;  %v2031_v30 = vld [vmem:[%s2199_s30 + $0x134] ss:$8 sps:$4 sm:$0xff]   ;;  %v2034_v32 = vld [vmem:[%s2199_s30 + $0x130] ss:$8 sps:$4 sm:$0xff]   ;;  %v2035_v33 = vld [vmem:[%s2199_s30 + $0x44] ss:$8 sps:$4 sm:$0xff]  }
  0x17   : > { %754 = vmatprep.subr.bf16.mxu0 %v2131_v1  ;;  %1941 = vmatprep.subr.bf16.mxu1 %v2131_v1  ;;  %v2037_v34 = vld [vmem:[%s2199_s30 + $0x144] ss:$8 sps:$4 sm:$0xff]   ;;  %v2039_v35 = vld [vmem:[%s2199_s30 + $0x40] ss:$8 sps:$4 sm:$0xff]   ;;  %v2041_v37 = vld [vmem:[%s2199_s30 + $0x54] ss:$8 sps:$4 sm:$0xff]  }
  0x18   : > { %v2040_v36 = vld [vmem:[%s2199_s30 + $0x140] ss:$8 sps:$4 sm:$0xff]   ;;  %v2043_v38 = vld [vmem:[%s2199_s30 + $0x154] ss:$8 sps:$4 sm:$0xff]   ;;  %v2045_v39 = vld [vmem:[%s2199_s30 + $0x50] ss:$8 sps:$4 sm:$0xff]  }
  0x19   : > { %v2046_v40 = vld [vmem:[%s2199_s30 + $0x150] ss:$8 sps:$4 sm:$0xff]   ;;  %v2047_v41 = vld [vmem:[%s2199_s30 + $0x64] ss:$8 sps:$4 sm:$0xff]   ;;  %v2051_v43 = vld [vmem:[%s2199_s30 + $0x60] ss:$8 sps:$4 sm:$0xff]  }
  0x1a   : > { %755 = vmatpush1.bf16.msra.mxu0 %v1998_v4  ;;  %1957 = vmatpush1.bf16.msra.mxu1 %v1998_v4  ;;  %v2049_v42 = vld [vmem:[%s2199_s30 + $0x164] ss:$8 sps:$4 sm:$0xff]   ;;  %v2052_v44 = vld [vmem:[%s2199_s30 + $0x160] ss:$8 sps:$4 sm:$0xff]   ;;  %v2053_v45 = vld [vmem:[%s2199_s30 + $0x74] ss:$8 sps:$4 sm:$0xff]  }
  0x1b   : > { %756 = vmatprep.subr.bf16.mxu0 %v2131_v1  ;;  %1942 = vmatprep.subr.bf16.mxu1 %v2131_v1  ;;  %v2055_v46 = vld [vmem:[%s2199_s30 + $0x174] ss:$8 sps:$4 sm:$0xff]   ;;  %v2057_v47 = vld [vmem:[%s2199_s30 + $0x70] ss:$8 sps:$4 sm:$0xff]   ;;  %v2059_v49 = vld [vmem:[%s2199_s30 + $0x84] ss:$8 sps:$4 sm:$0xff]  }
  0x1c   : > { %v2058_v48 = vld [vmem:[%s2199_s30 + $0x170] ss:$8 sps:$4 sm:$0xff]   ;;  %v2061_v50 = vld [vmem:[%s2199_s30 + $0x184] ss:$8 sps:$4 sm:$0xff]   ;;  %v2063_v51 = vld [vmem:[%s2199_s30 + $0x80] ss:$8 sps:$4 sm:$0xff]  }
  0x1d   : > { %v2064_v52 = vld [vmem:[%s2199_s30 + $0x180] ss:$8 sps:$4 sm:$0xff]   ;;  %v2065_v53 = vld [vmem:[%s2199_s30 + $0x94] ss:$8 sps:$4 sm:$0xff]   ;;  %v2069_v55 = vld [vmem:[%s2199_s30 + $0x90] ss:$8 sps:$4 sm:$0xff]  }
  0x1e   : > { %757 = vmatpush1.bf16.msra.mxu0 %v1999_v5  ;;  %1958 = vmatpush1.bf16.msra.mxu1 %v1999_v5  ;;  %v2067_v54 = vld [vmem:[%s2199_s30 + $0x194] ss:$8 sps:$4 sm:$0xff]   ;;  %v2070_v56 = vld [vmem:[%s2199_s30 + $0x190] ss:$8 sps:$4 sm:$0xff]   ;;  %v2071_v57 = vld [vmem:[%s2199_s30 + $0xa4] ss:$8 sps:$4 sm:$0xff]  }
  0x1f   : > { %758 = vmatprep.subr.bf16.mxu0 %v2131_v1  ;;  %1943 = vmatprep.subr.bf16.mxu1 %v2131_v1  ;;  %v2073_v58 = vld [vmem:[%s2199_s30 + $0x1a4] ss:$8 sps:$4 sm:$0xff]   ;;  %v2075_v59 = vld [vmem:[%s2199_s30 + $0xa0] ss:$8 sps:$4 sm:$0xff]   ;;  %v2077_v61 = vld [vmem:[%s2199_s30 + $0xb4] ss:$8 sps:$4 sm:$0xff]  }
  0x20   : > { %v2076_v60 = vld [vmem:[%s2199_s30 + $0x1a0] ss:$8 sps:$4 sm:$0xff]   ;;  %v2079_v62 = vld [vmem:[%s2199_s30 + $0x1b4] ss:$8 sps:$4 sm:$0xff]   ;;  %v2081_v63 = vld [vmem:[%s2199_s30 + $0xb0] ss:$8 sps:$4 sm:$0xff]  }
  0x21   : > { %v2082_v0 = vld [vmem:[%s2199_s30 + $0x1b0] ss:$8 sps:$4 sm:$0xff]   ;;  %v2085_v2 = vld [vmem:[%s2199_s30 + $0x1c4] ss:$8 sps:$4 sm:$0xff]   ;;  %v2087_v3 = vld [vmem:[%s2199_s30 + $0xc0] ss:$8 sps:$4 sm:$0xff]  }
  0x22   : > { %759 = vmatpush1.bf16.msra.mxu0 %v2000_v7  ;;  %1959 = vmatpush1.bf16.msra.mxu1 %v2000_v7  ;;  %v2088_v4 = vld [vmem:[%s2199_s30 + $0x1c0] ss:$8 sps:$4 sm:$0xff]   ;;  %v2089_v5 = vld [vmem:[%s2199_s30 + $0xd4] ss:$8 sps:$4 sm:$0xff]   ;;  %v2093_v7 = vld [vmem:[%s2199_s30 + $0xd0] ss:$8 sps:$4 sm:$0xff]  }
  0x23   : > { %760 = vmatprep.subr.bf16.mxu0 %v2131_v1  ;;  %1944 = vmatprep.subr.bf16.mxu1 %v2131_v1  ;;  %v2091_v6 = vld [vmem:[%s2199_s30 + $0x1d4] ss:$8 sps:$4 sm:$0xff]   ;;  %v2094_v8 = vld [vmem:[%s2199_s30 + $0x1d0] ss:$8 sps:$4 sm:$0xff]  }
  0x26   : > { %761 = vmatpush1.bf16.msra.mxu0 %v2001_v9  ;;  %1960 = vmatpush1.bf16.msra.mxu1 %v2001_v9  ;;  %v2095_v9 = vld [vmem:[%s2199_s30 + $0xe4] ss:$8 sps:$4 sm:$0xff]  }
  0x27   : > { %762 = vmatprep.subr.bf16.mxu0 %v2131_v1  ;;  %1945 = vmatprep.subr.bf16.mxu1 %v2131_v1 }
  0x2a   : > { %763 = vmatpush1.bf16.msra.mxu0 %v2002_v10  ;;  %1961 = vmatpush1.bf16.msra.mxu1 %v2002_v10  ;;  %v2097_v10 = vld [vmem:[%s2199_s30 + $0x1e4] ss:$8 sps:$4 sm:$0xff]  }
  0x2b   : > { %764 = vmatprep.subr.bf16.mxu0 %v2131_v1  ;;  %1946 = vmatprep.subr.bf16.mxu1 %v2131_v1 }
  0x2e   : > { %765 = vmatpush2.bf16.msra.mxu0 %v2003_v11  ;;  %1962 = vmatpush2.bf16.msra.mxu1 %v2003_v11  ;;  %v2099_v11 = vld [vmem:[%s2199_s30 + $0xe0] ss:$8 sps:$4 sm:$0xff]  }
  0x2f   : > { %766 = vmatprep.subr.bf16.mxu0 %v2131_v1  ;;  %1947 = vmatprep.subr.bf16.mxu1 %v2131_v1 }
  0x32   : > { %767 = vmatpush2.bf16.msra.mxu0 %v2004_v12  ;;  %1963 = vmatpush2.bf16.msra.mxu1 %v2004_v12  ;;  %v2100_v12 = vld [vmem:[%s2199_s30 + $0x1e0] ss:$8 sps:$4 sm:$0xff]  }
  0x33   : > { %768 = vmatprep.subr.bf16.mxu0 %v2131_v1  ;;  %1948 = vmatprep.subr.bf16.mxu1 %v2131_v1 }
  0x36   : > { %769 = vmatpush2.bf16.msra.mxu0 %v2005_v13  ;;  %1964 = vmatpush2.bf16.msra.mxu1 %v2005_v13  ;;  %v2101_v13 = vld [vmem:[%s2199_s30 + $0xf4] ss:$8 sps:$4 sm:$0xff]  }
  0x37   : > { %770 = vmatprep.subr.bf16.mxu0 %v2131_v1  ;;  %1949 = vmatprep.subr.bf16.mxu1 %v2131_v1 }
  0x3a   : > { %771 = vmatpush2.bf16.msra.mxu0 %v2006_v14  ;;  %1965 = vmatpush2.bf16.msra.mxu1 %v2006_v14  ;;  %v2103_v14 = vld [vmem:[%s2199_s30 + $0x1f4] ss:$8 sps:$4 sm:$0xff]  }
  0x3b   : > { %772 = vmatprep.subr.bf16.mxu0 %v2131_v1  ;;  %1950 = vmatprep.subr.bf16.mxu1 %v2131_v1 }
  0x3e   : > { %773 = vmatpush2.bf16.msra.mxu0 %v2007_v15  ;;  %1966 = vmatpush2.bf16.msra.mxu1 %v2007_v15  ;;  %v2105_v15 = vld [vmem:[%s2199_s30 + $0xf0] ss:$8 sps:$4 sm:$0xff]  }
  0x3f   : > { %774 = vmatprep.subr.bf16.mxu0 %v2131_v1  ;;  %1951 = vmatprep.subr.bf16.mxu1 %v2131_v1 }
  0x42   : > { %775 = vmatpush2.bf16.msra.mxu0 %v2008_v16  ;;  %1967 = vmatpush2.bf16.msra.mxu1 %v2008_v16  ;;  %v2106_v16 = vld [vmem:[%s2199_s30 + $0x1f0] ss:$8 sps:$4 sm:$0xff]  }
  0x43   : > { %776 = vmatprep.subr.bf16.mxu0 %v2131_v1  ;;  %1952 = vmatprep.subr.bf16.mxu1 %v2131_v1 }
  0x46   : > { %777 = vmatpush2.bf16.msra.mxu0 %v2009_v17  ;;  %1968 = vmatpush2.bf16.msra.mxu1 %v2009_v17  ;;  %v2325_v17 = vld [vmem:[%s2440_s2] ss:$0 sm:$0xff] }
  0x47   : > { %778 = vmatprep.subr.bf16.mxu0 %v2131_v1  ;;  %1953 = vmatprep.subr.bf16.mxu1 %v2131_v1  ;;  %v2083_v1 = vld [vmem:[%s2199_s30 + $0xc4] ss:$8 sps:$4 sm:$0xff]  }
  0x4a   : > { %779 = vmatpush2.bf16.msra.mxu0 %v2010_v18  ;;  %1969 = vmatpush2.bf16.msra.mxu1 %v2010_v18 }
  0x4d   : > { %781 = vmatmul.mubr.bf16.vlgmr.msra.gmra.mxu0 %v2011_v19  ;;  %909 = vmatmul.mubr.bf16.vlgmr.msra.gmra.mxu1 %v2014_v20 }
  0x4e   : > { %788 = vmatprep.mubr.bf16.mxu0 %v2017_v21  ;;  %916 = vmatprep.mubr.bf16.mxu1 %v2019_v22 }
  0x55   : > { %789 = vmatmul.mubr.bf16.gmra.mxu0 %v2021_v23  ;;  %917 = vmatmul.mubr.bf16.gmra.mxu1 %v2022_v24 }
  0x56   : > { %796 = vmatprep.mubr.bf16.mxu0 %v2023_v25  ;;  %924 = vmatprep.mubr.bf16.mxu1 %v2025_v26 }
  0x5d   : > { %797 = vmatmul.mubr.bf16.gmra.mxu0 %v2027_v27  ;;  %925 = vmatmul.mubr.bf16.gmra.mxu1 %v2028_v28 }
  0x5e   : > { %804 = vmatprep.mubr.bf16.mxu0 %v2029_v29  ;;  %932 = vmatprep.mubr.bf16.mxu1 %v2031_v30 }
  0x65   : > { %805 = vmatmul.mubr.bf16.gmra.mxu0 %v2033_v31  ;;  %933 = vmatmul.mubr.bf16.gmra.mxu1 %v2034_v32 }
  0x66   : > { %812 = vmatprep.mubr.bf16.mxu0 %v2035_v33  ;;  %940 = vmatprep.mubr.bf16.mxu1 %v2037_v34 }
  0x6d   : > { %813 = vmatmul.mubr.bf16.gmra.mxu0 %v2039_v35  ;;  %941 = vmatmul.mubr.bf16.gmra.mxu1 %v2040_v36 }
  0x6e   : > { %820 = vmatprep.mubr.bf16.mxu0 %v2041_v37  ;;  %948 = vmatprep.mubr.bf16.mxu1 %v2043_v38 }
  0x75   : > { %821 = vmatmul.mubr.bf16.gmra.mxu0 %v2045_v39  ;;  %949 = vmatmul.mubr.bf16.gmra.mxu1 %v2046_v40 }
  0x76   : > { %828 = vmatprep.mubr.bf16.mxu0 %v2047_v41  ;;  %956 = vmatprep.mubr.bf16.mxu1 %v2049_v42 }
  0x7d   : > { %829 = vmatmul.mubr.bf16.gmra.mxu0 %v2051_v43  ;;  %957 = vmatmul.mubr.bf16.gmra.mxu1 %v2052_v44 }
  0x7e   : > { %836 = vmatprep.mubr.bf16.mxu0 %v2053_v45  ;;  %964 = vmatprep.mubr.bf16.mxu1 %v2055_v46 }
  0x85   : > { %837 = vmatmul.mubr.bf16.gmra.mxu0 %v2057_v47  ;;  %965 = vmatmul.mubr.bf16.gmra.mxu1 %v2058_v48 }
  0x86   : > { %844 = vmatprep.mubr.bf16.mxu0 %v2059_v49  ;;  %972 = vmatprep.mubr.bf16.mxu1 %v2061_v50 }
  0x8d   : > { %845 = vmatmul.mubr.bf16.gmra.mxu0 %v2063_v51  ;;  %973 = vmatmul.mubr.bf16.gmra.mxu1 %v2064_v52 }
  0x8e   : > { %852 = vmatprep.mubr.bf16.mxu0 %v2065_v53  ;;  %980 = vmatprep.mubr.bf16.mxu1 %v2067_v54 }
  0x95   : > { %853 = vmatmul.mubr.bf16.gmra.mxu0 %v2069_v55  ;;  %981 = vmatmul.mubr.bf16.gmra.mxu1 %v2070_v56 }
  0x96   : > { %860 = vmatprep.mubr.bf16.mxu0 %v2071_v57  ;;  %988 = vmatprep.mubr.bf16.mxu1 %v2073_v58 }
  0x9d   : > { %861 = vmatmul.mubr.bf16.gmra.mxu0 %v2075_v59  ;;  %989 = vmatmul.mubr.bf16.gmra.mxu1 %v2076_v60 }
  0x9e   : > { %868 = vmatprep.mubr.bf16.mxu0 %v2077_v61  ;;  %996 = vmatprep.mubr.bf16.mxu1 %v2079_v62 }
  0xa5   : > { %869 = vmatmul.mubr.bf16.gmra.mxu0 %v2081_v63  ;;  %997 = vmatmul.mubr.bf16.gmra.mxu1 %v2082_v0 }
  0xa6   : > { %876 = vmatprep.mubr.bf16.mxu0 %v2083_v1  ;;  %1004 = vmatprep.mubr.bf16.mxu1 %v2085_v2 }
  0xad   : > { %877 = vmatmul.mubr.bf16.gmra.mxu0 %v2087_v3  ;;  %1005 = vmatmul.mubr.bf16.gmra.mxu1 %v2088_v4 }
  0xae   : > { %884 = vmatprep.mubr.bf16.mxu0 %v2089_v5  ;;  %1012 = vmatprep.mubr.bf16.mxu1 %v2091_v6 }
  0xb5   : > { %885 = vmatmul.mubr.bf16.gmra.mxu0 %v2093_v7  ;;  %1013 = vmatmul.mubr.bf16.gmra.mxu1 %v2094_v8 }
  0xb6   : > { %892 = vmatprep.mubr.bf16.mxu0 %v2095_v9  ;;  %1020 = vmatprep.mubr.bf16.mxu1 %v2097_v10 }
  0xbd   : > { %893 = vmatmul.mubr.bf16.gmra.mxu0 %v2099_v11  ;;  %1021 = vmatmul.mubr.bf16.gmra.mxu1 %v2100_v12 }
  0xbe   : > { %900 = vmatprep.mubr.bf16.mxu0 %v2101_v13  ;;  %1028 = vmatprep.mubr.bf16.mxu1 %v2103_v14 }
  0xc5   : > { %901 = vmatmul.mubr.bf16.gmra.mxu0 %v2105_v15  ;;  %1029 = vmatmul.mubr.bf16.gmra.mxu1 %v2106_v16 }
 0x10d   : > { %v782_v18 = vpop.f32.mrf.mxu0  ;;  %v910_v19 = vpop.f32.mrf.mxu1 }
 0x10e   : > { %v783_v22 = vadd.f32 %v2325_v17, %v782_v18  ;;  %v911_v23 = vadd.f32 %v2325_v17, %v910_v19 }
 0x10f   : > { %v784_v20 = vpop.f32.mrf.mxu0  ;;  %v912_v21 = vpop.f32.mrf.mxu1 }
 0x110   : > { %v1037_v30 = vmax.f32 %v783_v22, 0.0  ;;  %v1069_v31 = vmax.f32 %v911_v23, 0.0 }
 0x111   : > { %v785_v24 = vpop.f32.mrf.mxu0  ;;  %v913_v25 = vpop.f32.mrf.mxu1 }
 0x112   : > { %v786_v26 = vadd.f32 %v2325_v17, %v785_v24  ;;  %v914_v27 = vadd.f32 %v2325_v17, %v913_v25 }
 0x113   : > { %v787_v28 = vpop.f32.mrf.mxu0  ;;  %v915_v29 = vpop.f32.mrf.mxu1 }
 0x114   : > { %v1038_v32 = vmax.f32 %v786_v26, 0.0  ;;  %v1070_v33 = vmax.f32 %v914_v27, 0.0 }
 0x115   : > { %v790_v34 = vpop.f32.mrf.mxu0  ;;  %v918_v35 = vpop.f32.mrf.mxu1 }
 0x116   : > { %v1750_v36 = vpack.c.bf16 %v1038_v32, %v1037_v30  ;;  %v1830_v37 = vpack.c.bf16 %v1070_v33, %v1069_v31  ;;  %v791_v40 = vadd.f32 %v2325_v17, %v790_v34  ;;  %v919_v41 = vadd.f32 %v2325_v17, %v918_v35 }
 0x117   : > { %v792_v38 = vpop.f32.mrf.mxu0  ;;  %v920_v39 = vpop.f32.mrf.mxu1 }
 0x118   : > { %1751 = vst [vmem:[%s2335_s8] sm:$0xff] %v1750_v36   ;;  %1922 = vst [vmem:[%s2335_s8 + $0x80] sm:$0xff] %v1830_v37   ;;  %v1039_v48 = vmax.f32 %v791_v40, 0.0  ;;  %v1071_v49 = vmax.f32 %v919_v41, 0.0 }
 0x119   : > { %v793_v42 = vpop.f32.mrf.mxu0  ;;  %v921_v43 = vpop.f32.mrf.mxu1 }
 0x11a   : > { %v794_v44 = vadd.f32 %v2325_v17, %v793_v42  ;;  %v922_v45 = vadd.f32 %v2325_v17, %v921_v43 }
 0x11b   : > { %v795_v46 = vpop.f32.mrf.mxu0  ;;  %v923_v47 = vpop.f32.mrf.mxu1 }
 0x11c   : > { %v1040_v50 = vmax.f32 %v794_v44, 0.0  ;;  %v1072_v51 = vmax.f32 %v922_v45, 0.0 }
 0x11d   : > { %v798_v52 = vpop.f32.mrf.mxu0  ;;  %v926_v53 = vpop.f32.mrf.mxu1 }
 0x11e   : > { %v1755_v54 = vpack.c.bf16 %v1040_v50, %v1039_v48  ;;  %v1835_v55 = vpack.c.bf16 %v1072_v51, %v1071_v49  ;;  %v799_v58 = vadd.f32 %v2325_v17, %v798_v52  ;;  %v927_v59 = vadd.f32 %v2325_v17, %v926_v53 }
 0x11f   : > { %v800_v56 = vpop.f32.mrf.mxu0  ;;  %v928_v57 = vpop.f32.mrf.mxu1 }
 0x120   : > { %1907 = vst [vmem:[%s2335_s8 + $0x8] sm:$0xff] %v1755_v54   ;;  %1923 = vst [vmem:[%s2335_s8 + $0x88] sm:$0xff] %v1835_v55   ;;  %v1041_v2 = vmax.f32 %v799_v58, 0.0  ;;  %v1073_v3 = vmax.f32 %v927_v59, 0.0 }
 0x121   : > { %v801_v60 = vpop.f32.mrf.mxu0  ;;  %v929_v61 = vpop.f32.mrf.mxu1 }
 0x122   : > { %v802_v62 = vadd.f32 %v2325_v17, %v801_v60  ;;  %v930_v63 = vadd.f32 %v2325_v17, %v929_v61 }
 0x123   : > { %v803_v0 = vpop.f32.mrf.mxu0  ;;  %v931_v1 = vpop.f32.mrf.mxu1 }
 0x124   : > { %v1042_v4 = vmax.f32 %v802_v62, 0.0  ;;  %v1074_v5 = vmax.f32 %v930_v63, 0.0 }
 0x125   : > { %v806_v6 = vpop.f32.mrf.mxu0  ;;  %v934_v7 = vpop.f32.mrf.mxu1 }
 0x126   : > { %v1760_v8 = vpack.c.bf16 %v1042_v4, %v1041_v2  ;;  %v1840_v9 = vpack.c.bf16 %v1074_v5, %v1073_v3  ;;  %v807_v12 = vadd.f32 %v2325_v17, %v806_v6  ;;  %v935_v13 = vadd.f32 %v2325_v17, %v934_v7 }
 0x127   : > { %v808_v10 = vpop.f32.mrf.mxu0  ;;  %v936_v11 = vpop.f32.mrf.mxu1 }
 0x128   : > { %1908 = vst [vmem:[%s2335_s8 + $0x10] sm:$0xff] %v1760_v8   ;;  %1924 = vst [vmem:[%s2335_s8 + $0x90] sm:$0xff] %v1840_v9   ;;  %v1043_v21 = vmax.f32 %v807_v12, 0.0  ;;  %v1075_v22 = vmax.f32 %v935_v13, 0.0 }
 0x129   : > { %v809_v14 = vpop.f32.mrf.mxu0  ;;  %v937_v15 = vpop.f32.mrf.mxu1 }
 0x12a   : > { %v810_v16 = vadd.f32 %v2325_v17, %v809_v14  ;;  %v938_v18 = vadd.f32 %v2325_v17, %v937_v15 }
 0x12b   : > { %v811_v19 = vpop.f32.mrf.mxu0  ;;  %v939_v20 = vpop.f32.mrf.mxu1 }
 0x12c   : > { %v1044_v23 = vmax.f32 %v810_v16, 0.0  ;;  %v1076_v24 = vmax.f32 %v938_v18, 0.0 }
 0x12d   : > { %v814_v25 = vpop.f32.mrf.mxu0  ;;  %v942_v26 = vpop.f32.mrf.mxu1 }
 0x12e   : > { %v1765_v27 = vpack.c.bf16 %v1044_v23, %v1043_v21  ;;  %v1845_v28 = vpack.c.bf16 %v1076_v24, %v1075_v22  ;;  %v815_v31 = vadd.f32 %v2325_v17, %v814_v25  ;;  %v943_v32 = vadd.f32 %v2325_v17, %v942_v26 }
 0x12f   : > { %v816_v29 = vpop.f32.mrf.mxu0  ;;  %v944_v30 = vpop.f32.mrf.mxu1 }
 0x130   : > { %1909 = vst [vmem:[%s2335_s8 + $0x18] sm:$0xff] %v1765_v27   ;;  %1925 = vst [vmem:[%s2335_s8 + $0x98] sm:$0xff] %v1845_v28   ;;  %v1045_v39 = vmax.f32 %v815_v31, 0.0  ;;  %v1077_v40 = vmax.f32 %v943_v32, 0.0 }
 0x131   : > { %v817_v33 = vpop.f32.mrf.mxu0  ;;  %v945_v34 = vpop.f32.mrf.mxu1 }
 0x132   : > { %v818_v35 = vadd.f32 %v2325_v17, %v817_v33  ;;  %v946_v36 = vadd.f32 %v2325_v17, %v945_v34 }
 0x133   : > { %v819_v37 = vpop.f32.mrf.mxu0  ;;  %v947_v38 = vpop.f32.mrf.mxu1 }
 0x134   : > { %v1046_v41 = vmax.f32 %v818_v35, 0.0  ;;  %v1078_v42 = vmax.f32 %v946_v36, 0.0 }
 0x135   : > { %v822_v43 = vpop.f32.mrf.mxu0  ;;  %v950_v44 = vpop.f32.mrf.mxu1 }
 0x136   : > { %v1770_v45 = vpack.c.bf16 %v1046_v41, %v1045_v39  ;;  %v1850_v46 = vpack.c.bf16 %v1078_v42, %v1077_v40  ;;  %v823_v49 = vadd.f32 %v2325_v17, %v822_v43  ;;  %v951_v50 = vadd.f32 %v2325_v17, %v950_v44 }
 0x137   : > { %v824_v47 = vpop.f32.mrf.mxu0  ;;  %v952_v48 = vpop.f32.mrf.mxu1 }
 0x138   : > { %1910 = vst [vmem:[%s2335_s8 + $0x20] sm:$0xff] %v1770_v45   ;;  %1926 = vst [vmem:[%s2335_s8 + $0xa0] sm:$0xff] %v1850_v46   ;;  %v1047_v57 = vmax.f32 %v823_v49, 0.0  ;;  %v1079_v58 = vmax.f32 %v951_v50, 0.0 }
 0x139   : > { %v825_v51 = vpop.f32.mrf.mxu0  ;;  %v953_v52 = vpop.f32.mrf.mxu1 }
 0x13a   : > { %v826_v53 = vadd.f32 %v2325_v17, %v825_v51  ;;  %v954_v54 = vadd.f32 %v2325_v17, %v953_v52 }
 0x13b   : > { %v827_v55 = vpop.f32.mrf.mxu0  ;;  %v955_v56 = vpop.f32.mrf.mxu1 }
 0x13c   : > { %v1048_v59 = vmax.f32 %v826_v53, 0.0  ;;  %v1080_v60 = vmax.f32 %v954_v54, 0.0 }
 0x13d   : > { %v830_v61 = vpop.f32.mrf.mxu0  ;;  %v958_v62 = vpop.f32.mrf.mxu1 }
 0x13e   : > { %v1775_v63 = vpack.c.bf16 %v1048_v59, %v1047_v57  ;;  %v1855_v0 = vpack.c.bf16 %v1080_v60, %v1079_v58  ;;  %v831_v3 = vadd.f32 %v2325_v17, %v830_v61  ;;  %v959_v4 = vadd.f32 %v2325_v17, %v958_v62 }
 0x13f   : > { %v832_v1 = vpop.f32.mrf.mxu0  ;;  %v960_v2 = vpop.f32.mrf.mxu1 }
 0x140   : > { %1911 = vst [vmem:[%s2335_s8 + $0x28] sm:$0xff] %v1775_v63   ;;  %1927 = vst [vmem:[%s2335_s8 + $0xa8] sm:$0xff] %v1855_v0   ;;  %v1049_v11 = vmax.f32 %v831_v3, 0.0  ;;  %v1081_v12 = vmax.f32 %v959_v4, 0.0 }
 0x141   : > { %v833_v5 = vpop.f32.mrf.mxu0  ;;  %v961_v6 = vpop.f32.mrf.mxu1 }
 0x142   : > { %v834_v7 = vadd.f32 %v2325_v17, %v833_v5  ;;  %v962_v8 = vadd.f32 %v2325_v17, %v961_v6 }
 0x143   : > { %v835_v9 = vpop.f32.mrf.mxu0  ;;  %v963_v10 = vpop.f32.mrf.mxu1 }
 0x144   : > { %v1050_v13 = vmax.f32 %v834_v7, 0.0  ;;  %v1082_v14 = vmax.f32 %v962_v8, 0.0 }
 0x145   : > { %v838_v15 = vpop.f32.mrf.mxu0  ;;  %v966_v16 = vpop.f32.mrf.mxu1 }
 0x146   : > { %v1780_v18 = vpack.c.bf16 %v1050_v13, %v1049_v11  ;;  %v1860_v19 = vpack.c.bf16 %v1082_v14, %v1081_v12  ;;  %v839_v22 = vadd.f32 %v2325_v17, %v838_v15  ;;  %v967_v23 = vadd.f32 %v2325_v17, %v966_v16 }
 0x147   : > { %v840_v20 = vpop.f32.mrf.mxu0  ;;  %v968_v21 = vpop.f32.mrf.mxu1 }
 0x148   : > { %1912 = vst [vmem:[%s2335_s8 + $0x30] sm:$0xff] %v1780_v18   ;;  %1928 = vst [vmem:[%s2335_s8 + $0xb0] sm:$0xff] %v1860_v19   ;;  %v1051_v30 = vmax.f32 %v839_v22, 0.0  ;;  %v1083_v31 = vmax.f32 %v967_v23, 0.0 }
 0x149   : > { %v841_v24 = vpop.f32.mrf.mxu0  ;;  %v969_v25 = vpop.f32.mrf.mxu1 }
 0x14a   : > { %v842_v26 = vadd.f32 %v2325_v17, %v841_v24  ;;  %v970_v27 = vadd.f32 %v2325_v17, %v969_v25 }
 0x14b   : > { %v843_v28 = vpop.f32.mrf.mxu0  ;;  %v971_v29 = vpop.f32.mrf.mxu1 }
 0x14c   : > { %v1052_v32 = vmax.f32 %v842_v26, 0.0  ;;  %v1084_v33 = vmax.f32 %v970_v27, 0.0 }
 0x14d   : > { %v846_v34 = vpop.f32.mrf.mxu0  ;;  %v974_v35 = vpop.f32.mrf.mxu1 }
 0x14e   : > { %v1785_v36 = vpack.c.bf16 %v1052_v32, %v1051_v30  ;;  %v1865_v37 = vpack.c.bf16 %v1084_v33, %v1083_v31  ;;  %v847_v40 = vadd.f32 %v2325_v17, %v846_v34  ;;  %v975_v41 = vadd.f32 %v2325_v17, %v974_v35 }
 0x14f   : > { %v848_v38 = vpop.f32.mrf.mxu0  ;;  %v976_v39 = vpop.f32.mrf.mxu1 }
 0x150   : > { %1913 = vst [vmem:[%s2335_s8 + $0x38] sm:$0xff] %v1785_v36   ;;  %1929 = vst [vmem:[%s2335_s8 + $0xb8] sm:$0xff] %v1865_v37   ;;  %v1053_v48 = vmax.f32 %v847_v40, 0.0  ;;  %v1085_v49 = vmax.f32 %v975_v41, 0.0 }
 0x151   : > { %v849_v42 = vpop.f32.mrf.mxu0  ;;  %v977_v43 = vpop.f32.mrf.mxu1 }
 0x152   : > { %v850_v44 = vadd.f32 %v2325_v17, %v849_v42  ;;  %v978_v45 = vadd.f32 %v2325_v17, %v977_v43 }
 0x153   : > { %v851_v46 = vpop.f32.mrf.mxu0  ;;  %v979_v47 = vpop.f32.mrf.mxu1 }
 0x154   : > { %v1054_v50 = vmax.f32 %v850_v44, 0.0  ;;  %v1086_v51 = vmax.f32 %v978_v45, 0.0 }
 0x155   : > { %v854_v52 = vpop.f32.mrf.mxu0  ;;  %v982_v53 = vpop.f32.mrf.mxu1 }
 0x156   : > { %v1790_v54 = vpack.c.bf16 %v1054_v50, %v1053_v48  ;;  %v1870_v55 = vpack.c.bf16 %v1086_v51, %v1085_v49  ;;  %v855_v58 = vadd.f32 %v2325_v17, %v854_v52  ;;  %v983_v59 = vadd.f32 %v2325_v17, %v982_v53 }
 0x157   : > { %v856_v56 = vpop.f32.mrf.mxu0  ;;  %v984_v57 = vpop.f32.mrf.mxu1 }
 0x158   : > { %1914 = vst [vmem:[%s2335_s8 + $0x40] sm:$0xff] %v1790_v54   ;;  %1930 = vst [vmem:[%s2335_s8 + $0xc0] sm:$0xff] %v1870_v55   ;;  %v1055_v2 = vmax.f32 %v855_v58, 0.0  ;;  %v1087_v3 = vmax.f32 %v983_v59, 0.0 }
 0x159   : > { %v857_v60 = vpop.f32.mrf.mxu0  ;;  %v985_v61 = vpop.f32.mrf.mxu1 }
 0x15a   : > { %v858_v62 = vadd.f32 %v2325_v17, %v857_v60  ;;  %v986_v63 = vadd.f32 %v2325_v17, %v985_v61 }
 0x15b   : > { %v859_v0 = vpop.f32.mrf.mxu0  ;;  %v987_v1 = vpop.f32.mrf.mxu1 }
 0x15c   : > { %v1056_v4 = vmax.f32 %v858_v62, 0.0  ;;  %v1088_v5 = vmax.f32 %v986_v63, 0.0 }
 0x15d   : > { %v862_v6 = vpop.f32.mrf.mxu0  ;;  %v990_v7 = vpop.f32.mrf.mxu1 }
 0x15e   : > { %v1795_v8 = vpack.c.bf16 %v1056_v4, %v1055_v2  ;;  %v1875_v9 = vpack.c.bf16 %v1088_v5, %v1087_v3  ;;  %v863_v12 = vadd.f32 %v2325_v17, %v862_v6  ;;  %v991_v13 = vadd.f32 %v2325_v17, %v990_v7 }
 0x15f   : > { %v864_v10 = vpop.f32.mrf.mxu0  ;;  %v992_v11 = vpop.f32.mrf.mxu1 }
 0x160   : > { %1915 = vst [vmem:[%s2335_s8 + $0x48] sm:$0xff] %v1795_v8   ;;  %1931 = vst [vmem:[%s2335_s8 + $0xc8] sm:$0xff] %v1875_v9   ;;  %v1057_v21 = vmax.f32 %v863_v12, 0.0  ;;  %v1089_v22 = vmax.f32 %v991_v13, 0.0 }
 0x161   : > { %v865_v14 = vpop.f32.mrf.mxu0  ;;  %v993_v15 = vpop.f32.mrf.mxu1 }
 0x162   : > { %v866_v16 = vadd.f32 %v2325_v17, %v865_v14  ;;  %v994_v18 = vadd.f32 %v2325_v17, %v993_v15 }
 0x163   : > { %v867_v19 = vpop.f32.mrf.mxu0  ;;  %v995_v20 = vpop.f32.mrf.mxu1 }
 0x164   : > { %v1058_v23 = vmax.f32 %v866_v16, 0.0  ;;  %v1090_v24 = vmax.f32 %v994_v18, 0.0 }
 0x165   : > { %v870_v25 = vpop.f32.mrf.mxu0  ;;  %v998_v26 = vpop.f32.mrf.mxu1 }
 0x166   : > { %v1800_v27 = vpack.c.bf16 %v1058_v23, %v1057_v21  ;;  %v1880_v28 = vpack.c.bf16 %v1090_v24, %v1089_v22  ;;  %v871_v31 = vadd.f32 %v2325_v17, %v870_v25  ;;  %v999_v32 = vadd.f32 %v2325_v17, %v998_v26 }
 0x167   : > { %v872_v29 = vpop.f32.mrf.mxu0  ;;  %v1000_v30 = vpop.f32.mrf.mxu1 }
 0x168   : > { %1916 = vst [vmem:[%s2335_s8 + $0x50] sm:$0xff] %v1800_v27   ;;  %1932 = vst [vmem:[%s2335_s8 + $0xd0] sm:$0xff] %v1880_v28   ;;  %v1059_v39 = vmax.f32 %v871_v31, 0.0  ;;  %v1091_v40 = vmax.f32 %v999_v32, 0.0 }
 0x169   : > { %v873_v33 = vpop.f32.mrf.mxu0  ;;  %v1001_v34 = vpop.f32.mrf.mxu1 }
 0x16a   : > { %v874_v35 = vadd.f32 %v2325_v17, %v873_v33  ;;  %v1002_v36 = vadd.f32 %v2325_v17, %v1001_v34 }
 0x16b   : > { %v875_v37 = vpop.f32.mrf.mxu0  ;;  %v1003_v38 = vpop.f32.mrf.mxu1 }
 0x16c   : > { %v1060_v41 = vmax.f32 %v874_v35, 0.0  ;;  %v1092_v42 = vmax.f32 %v1002_v36, 0.0 }
 0x16d   : > { %v878_v43 = vpop.f32.mrf.mxu0  ;;  %v1006_v44 = vpop.f32.mrf.mxu1 }
 0x16e   : > { %v1805_v45 = vpack.c.bf16 %v1060_v41, %v1059_v39  ;;  %v1885_v46 = vpack.c.bf16 %v1092_v42, %v1091_v40  ;;  %v879_v49 = vadd.f32 %v2325_v17, %v878_v43  ;;  %v1007_v50 = vadd.f32 %v2325_v17, %v1006_v44 }
 0x16f   : > { %v880_v47 = vpop.f32.mrf.mxu0  ;;  %v1008_v48 = vpop.f32.mrf.mxu1 }
 0x170   : > { %1917 = vst [vmem:[%s2335_s8 + $0x58] sm:$0xff] %v1805_v45   ;;  %1933 = vst [vmem:[%s2335_s8 + $0xd8] sm:$0xff] %v1885_v46   ;;  %v1061_v57 = vmax.f32 %v879_v49, 0.0  ;;  %v1093_v58 = vmax.f32 %v1007_v50, 0.0 }
 0x171   : > { %v881_v51 = vpop.f32.mrf.mxu0  ;;  %v1009_v52 = vpop.f32.mrf.mxu1 }
 0x172   : > { %v882_v53 = vadd.f32 %v2325_v17, %v881_v51  ;;  %v1010_v54 = vadd.f32 %v2325_v17, %v1009_v52 }
 0x173   : > { %v883_v55 = vpop.f32.mrf.mxu0  ;;  %v1011_v56 = vpop.f32.mrf.mxu1 }
 0x174   : > { %v1062_v59 = vmax.f32 %v882_v53, 0.0  ;;  %v1094_v60 = vmax.f32 %v1010_v54, 0.0 }
 0x175   : > { %v886_v61 = vpop.f32.mrf.mxu0  ;;  %v1014_v62 = vpop.f32.mrf.mxu1 }
 0x176   : > { %v1810_v63 = vpack.c.bf16 %v1062_v59, %v1061_v57  ;;  %v1890_v0 = vpack.c.bf16 %v1094_v60, %v1093_v58  ;;  %v887_v3 = vadd.f32 %v2325_v17, %v886_v61  ;;  %v1015_v4 = vadd.f32 %v2325_v17, %v1014_v62 }
 0x177   : > { %v888_v1 = vpop.f32.mrf.mxu0  ;;  %v1016_v2 = vpop.f32.mrf.mxu1 }
 0x178   : > { %1918 = vst [vmem:[%s2335_s8 + $0x60] sm:$0xff] %v1810_v63   ;;  %1934 = vst [vmem:[%s2335_s8 + $0xe0] sm:$0xff] %v1890_v0   ;;  %v1063_v11 = vmax.f32 %v887_v3, 0.0  ;;  %v1095_v12 = vmax.f32 %v1015_v4, 0.0 }
 0x179   : > { %v889_v5 = vpop.f32.mrf.mxu0  ;;  %v1017_v6 = vpop.f32.mrf.mxu1 }
 0x17a   : > { %v890_v7 = vadd.f32 %v2325_v17, %v889_v5  ;;  %v1018_v8 = vadd.f32 %v2325_v17, %v1017_v6 }
 0x17b   : > { %v891_v9 = vpop.f32.mrf.mxu0  ;;  %v1019_v10 = vpop.f32.mrf.mxu1 }
 0x17c   : > { %v1064_v13 = vmax.f32 %v890_v7, 0.0  ;;  %v1096_v14 = vmax.f32 %v1018_v8, 0.0 }
 0x17d   : > { %v894_v15 = vpop.f32.mrf.mxu0  ;;  %v1022_v16 = vpop.f32.mrf.mxu1 }
 0x17e   : > { %v1815_v18 = vpack.c.bf16 %v1064_v13, %v1063_v11  ;;  %v1895_v19 = vpack.c.bf16 %v1096_v14, %v1095_v12  ;;  %v895_v22 = vadd.f32 %v2325_v17, %v894_v15  ;;  %v1023_v23 = vadd.f32 %v2325_v17, %v1022_v16 }
 0x17f   : > { %v896_v20 = vpop.f32.mrf.mxu0  ;;  %v1024_v21 = vpop.f32.mrf.mxu1 }
 0x180   : > { %1919 = vst [vmem:[%s2335_s8 + $0x68] sm:$0xff] %v1815_v18   ;;  %1935 = vst [vmem:[%s2335_s8 + $0xe8] sm:$0xff] %v1895_v19   ;;  %v1065_v30 = vmax.f32 %v895_v22, 0.0  ;;  %v1097_v31 = vmax.f32 %v1023_v23, 0.0 }
 0x181   : > { %v897_v24 = vpop.f32.mrf.mxu0  ;;  %v1025_v25 = vpop.f32.mrf.mxu1 }
 0x182   : > { %v898_v26 = vadd.f32 %v2325_v17, %v897_v24  ;;  %v1026_v27 = vadd.f32 %v2325_v17, %v1025_v25 }
 0x183   : > { %v899_v28 = vpop.f32.mrf.mxu0  ;;  %v1027_v29 = vpop.f32.mrf.mxu1 }
 0x184   : > { %v1066_v32 = vmax.f32 %v898_v26, 0.0  ;;  %v1098_v33 = vmax.f32 %v1026_v27, 0.0 }
 0x185   : > { %v902_v34 = vpop.f32.mrf.mxu0  ;;  %v1030_v35 = vpop.f32.mrf.mxu1 }
 0x186   : > { %v1820_v36 = vpack.c.bf16 %v1066_v32, %v1065_v30  ;;  %v1900_v37 = vpack.c.bf16 %v1098_v33, %v1097_v31  ;;  %v903_v40 = vadd.f32 %v2325_v17, %v902_v34  ;;  %v1031_v41 = vadd.f32 %v2325_v17, %v1030_v35 }
 0x187   : > { %v904_v38 = vpop.f32.mrf.mxu0  ;;  %v1032_v39 = vpop.f32.mrf.mxu1 }
 0x188   : > { %1920 = vst [vmem:[%s2335_s8 + $0x70] sm:$0xff] %v1820_v36   ;;  %1936 = vst [vmem:[%s2335_s8 + $0xf0] sm:$0xff] %v1900_v37   ;;  %v1067_v48 = vmax.f32 %v903_v40, 0.0  ;;  %v1099_v49 = vmax.f32 %v1031_v41, 0.0 }
 0x189   : > { %v905_v42 = vpop.f32.mrf.mxu0  ;;  %v1033_v43 = vpop.f32.mrf.mxu1 }
 0x18a   : > { %v906_v44 = vadd.f32 %v2325_v17, %v905_v42  ;;  %v1034_v45 = vadd.f32 %v2325_v17, %v1033_v43 }
 0x18b   : > { %v907_v46 = vpop.f32.mrf.mxu0  ;;  %v1035_v47 = vpop.f32.mrf.mxu1 }
 0x18c   : > { %v1068_v50 = vmax.f32 %v906_v44, 0.0  ;;  %v1100_v51 = vmax.f32 %v1034_v45, 0.0 }
 0x18e   : > { %v1825_v52 = vpack.c.bf16 %v1068_v50, %v1067_v48  ;;  %v1905_v53 = vpack.c.bf16 %v1100_v51, %v1099_v49 }
 0x190   : > { %1921 = vst [vmem:[%s2335_s8 + $0x78] sm:$0xff] %v1825_v52   ;;  %1937 = vst [vmem:[%s2335_s8 + $0xf8] sm:$0xff] %v1905_v53  }
 0x191 PF: > { %s13_s14 = sadd.s32 1, %s2129_s14   ;;  %s2442_s12 = smov %s2125_s13 }
 0x192   : > { %p10_p5 = scmp.ge.s32.totalorder %s13_s14, 5   ;;  %s2443_s13 = smov %s2445_s15 }
 0x194   :  { %12 = sbr.rel (!%p10_p5) target bundleno = 2 (0x2), region = 68 }

// kernel: decoder_forward.9
= control target key start
LH: loop header
LB: loop body
LE: loop exit
PB: predicated region body
PF: predicated region fallthrough
CT: control target
= control target key end

     0   :  { %s2010_s12 = smov 0   ;;  %s2012_s13 = smov 0   ;;  %s2252_s0 = inlined_call_operand.vmem [shape: bf16[4608,128], index: 0, kind: input, shape index: {}]   ;;  %s2253_s1 = inlined_call_operand.vmem [shape: bf16[128,128], index: 1, kind: input, shape index: {}]   ;;  %s2254_s2 = inlined_call_operand.vmem [shape: f32[1,128], index: 2, kind: input, shape index: {}]   ;;  %s2255_s3 = inlined_call_operand.vmem [shape: f32[4608,128], index: 3, kind: output, shape index: {}]  }
   0x1   :  { %s2014_s14 = smov 0  }
   0x2 LB: > { %s25_s15 = sadd.s32 1, %s1984_s13  ;;  %p1398_p0 = scmp.ge.s32.totalorder %s1988_s14, 1  ;;  %s1988_s14 = sphi %s2014_s14, %s13_s14   ;;  %s1984_s13 = sphi %s2012_s13, %s2257_s13   ;;  %s1980_s12 = sphi %s2010_s12, %s2256_s12  }
   0x3   : > { %p27_p1 = scmp.ge.s32.totalorder %s25_s15, 9  ;;  %p169_p2 = scmp.lt.s32.totalorder %s1988_s14, 10 }
   0x5   : > { %s2259_s15 = smov (%p27_p1, %s25_s15), 0  ;;  %p170_p3 = pnand %p1398_p0, %p169_p2 }
   0x6   : > { %s1399_s18 = sshll.u32 (!%p170_p3), %s1980_s12, 6 }
   0x7   : > { %173 = sbr.rel (%p170_p3) target bundleno = 384 (0x180), region = 32  ;;  %p204_p4 = scmp.lt.s32.totalorder (!%p170_p3), %s1399_s18, 575 }
   0xc   : > { %v1670_v0 = vld [vmem:[%s2253_s1 + $0x38] sm:$0xff]   ;;  %v1671_v1 = vld [vmem:[%s2253_s1 + $0x30] sm:$0xff]   ;;  %s2261_s18 = smov (!%p204_p4, %s1399_s18), 575  ;;  %v1672_v2 = vld [vmem:[%s2253_s1 + $0x28] sm:$0xff]  }
   0xd   : > { %1550 = vmatprep.subr.bf16.mxu0 %v1670_v0  ;;  %1630 = vmatprep.subr.bf16.mxu1 %v1670_v0  ;;  %s1400_s23 = sshll.u32 %s2261_s18, 2  ;;  %v1673_v3 = vld [vmem:[%s2253_s1 + $0x20] sm:$0xff]   ;;  %v1674_v6 = vld [vmem:[%s2253_s1 + $0x18] sm:$0xff]   ;;  %v1675_v7 = vld [vmem:[%s2253_s1 + $0x10] sm:$0xff]   ;;  %s1402_s12 = sshll.u32 %s2261_s18, 3 }
   0xe   : > { %1551 = vmatpush3.bf16.msra.mxu0 %v1670_v0  ;;  %1638 = vmatpush3.bf16.msra.mxu1 %v1670_v0  ;;  %s2043_s26 = scalar_lea.vmem %s2252_s0, %s1400_s23  ;;  %v1676_v8 = vld [vmem:[%s2253_s1 + $0x8] sm:$0xff]   ;;  %v1677_v9 = vld [vmem:[%s2253_s1] sm:$0xff]   ;;  %s2120_s18 = scalar_lea.vmem %s2255_s3, %s1402_s12 }
   0xf   : > { %1552 = vmatprep.subr.bf16.mxu0 %v1671_v1  ;;  %1631 = vmatprep.subr.bf16.mxu1 %v1671_v1  ;;  %v1678_v4 = vld [vmem:[%s2043_s26] sm:$0xff]   ;;  %v1680_v10 = vld [vmem:[%s2043_s26 + $0x8] sm:$0xff]   ;;  %v1682_v12 = vld [vmem:[%s2043_s26 + $0x10] sm:$0xff]  }
  0x10   : > { %v1679_v5 = vld [vmem:[%s2043_s26 + $0x80] sm:$0xff]   ;;  %1566 = vmatprep.mubr.bf16.mxu0 %v1678_v4  ;;  %v1681_v11 = vld [vmem:[%s2043_s26 + $0x88] sm:$0xff]   ;;  %v1683_v13 = vld [vmem:[%s2043_s26 + $0x90] sm:$0xff]  }
  0x11   : > { %1598 = vmatprep.mubr.bf16.mxu1 %v1679_v5  ;;  %v1684_v14 = vld [vmem:[%s2043_s26 + $0x18] sm:$0xff]   ;;  %v1686_v16 = vld [vmem:[%s2043_s26 + $0x20] sm:$0xff]   ;;  %v1688_v18 = vld [vmem:[%s2043_s26 + $0x28] sm:$0xff]  }
  0x12   : > { %1553 = vmatpush3.bf16.msra.mxu0 %v1671_v1  ;;  %1639 = vmatpush3.bf16.msra.mxu1 %v1671_v1  ;;  %v1685_v15 = vld [vmem:[%s2043_s26 + $0x98] sm:$0xff]   ;;  %v1687_v17 = vld [vmem:[%s2043_s26 + $0xa0] sm:$0xff]   ;;  %v1689_v19 = vld [vmem:[%s2043_s26 + $0xa8] sm:$0xff]  }
  0x13   : > { %1554 = vmatprep.subr.bf16.mxu0 %v1672_v2  ;;  %1632 = vmatprep.subr.bf16.mxu1 %v1672_v2  ;;  %v1690_v20 = vld [vmem:[%s2043_s26 + $0x30] sm:$0xff]   ;;  %v1692_v22 = vld [vmem:[%s2043_s26 + $0x38] sm:$0xff]   ;;  %v1694_v24 = vld [vmem:[%s2043_s26 + $0x40] sm:$0xff]  }
  0x14   : > { %v1691_v21 = vld [vmem:[%s2043_s26 + $0xb0] sm:$0xff]   ;;  %v1693_v23 = vld [vmem:[%s2043_s26 + $0xb8] sm:$0xff]   ;;  %v1695_v25 = vld [vmem:[%s2043_s26 + $0xc0] sm:$0xff]  }
  0x15   : > { %v1696_v26 = vld [vmem:[%s2043_s26 + $0x48] sm:$0xff]   ;;  %v1698_v28 = vld [vmem:[%s2043_s26 + $0x50] sm:$0xff]   ;;  %v1700_v30 = vld [vmem:[%s2043_s26 + $0x58] sm:$0xff]  }
  0x16   : > { %1555 = vmatpush3.bf16.msra.mxu0 %v1672_v2  ;;  %1640 = vmatpush3.bf16.msra.mxu1 %v1672_v2  ;;  %v1697_v27 = vld [vmem:[%s2043_s26 + $0xc8] sm:$0xff]   ;;  %v1699_v29 = vld [vmem:[%s2043_s26 + $0xd0] sm:$0xff]   ;;  %v1701_v31 = vld [vmem:[%s2043_s26 + $0xd8] sm:$0xff]  }
  0x17   : > { %1556 = vmatprep.subr.bf16.mxu0 %v1673_v3  ;;  %1633 = vmatprep.subr.bf16.mxu1 %v1673_v3  ;;  %v1702_v32 = vld [vmem:[%s2043_s26 + $0x60] sm:$0xff]   ;;  %v1704_v34 = vld [vmem:[%s2043_s26 + $0x68] sm:$0xff]   ;;  %v1706_v36 = vld [vmem:[%s2043_s26 + $0x70] sm:$0xff]  }
  0x18   : > { %v1703_v33 = vld [vmem:[%s2043_s26 + $0xe0] sm:$0xff]   ;;  %v1705_v35 = vld [vmem:[%s2043_s26 + $0xe8] sm:$0xff]   ;;  %v1707_v37 = vld [vmem:[%s2043_s26 + $0xf0] sm:$0xff]  }
  0x19   : > { %v1708_v38 = vld [vmem:[%s2043_s26 + $0x78] sm:$0xff]   ;;  %v2095_v40 = vld [vmem:[%s2254_s2] ss:$0 sm:$0xff] }
  0x1a   : > { %1557 = vmatpush3.bf16.msra.mxu0 %v1673_v3  ;;  %1641 = vmatpush3.bf16.msra.mxu1 %v1673_v3  ;;  %v1709_v39 = vld [vmem:[%s2043_s26 + $0xf8] sm:$0xff]  }
  0x1b   : > { %1558 = vmatprep.subr.bf16.mxu0 %v1674_v6  ;;  %1634 = vmatprep.subr.bf16.mxu1 %v1674_v6 }
  0x1e   : > { %1559 = vmatpush3.bf16.msra.mxu0 %v1674_v6  ;;  %1642 = vmatpush3.bf16.msra.mxu1 %v1674_v6 }
  0x1f   : > { %1560 = vmatprep.subr.bf16.mxu0 %v1675_v7  ;;  %1635 = vmatprep.subr.bf16.mxu1 %v1675_v7 }
  0x22   : > { %1561 = vmatpush3.bf16.msra.mxu0 %v1675_v7  ;;  %1643 = vmatpush3.bf16.msra.mxu1 %v1675_v7 }
  0x23   : > { %1562 = vmatprep.subr.bf16.mxu0 %v1676_v8  ;;  %1636 = vmatprep.subr.bf16.mxu1 %v1676_v8 }
  0x26   : > { %1563 = vmatpush3.bf16.msra.mxu0 %v1676_v8  ;;  %1644 = vmatpush3.bf16.msra.mxu1 %v1676_v8 }
  0x27   : > { %1564 = vmatprep.subr.bf16.mxu0 %v1677_v9  ;;  %1637 = vmatprep.subr.bf16.mxu1 %v1677_v9 }
  0x2a   : > { %1565 = vmatpush3.bf16.msra.mxu0 %v1677_v9  ;;  %1645 = vmatpush3.bf16.msra.mxu1 %v1677_v9 }
  0x2d   : > { %1567 = vmatmul.mubr.bf16.vlgmr.msra.gmra.mxu0 %v1680_v10  ;;  %1599 = vmatmul.mubr.bf16.vlgmr.msra.gmra.mxu1 %v1681_v11 }
  0x2e   : > { %1570 = vmatprep.mubr.bf16.mxu0 %v1682_v12  ;;  %1602 = vmatprep.mubr.bf16.mxu1 %v1683_v13 }
  0x35   : > { %1571 = vmatmul.mubr.bf16.gmra.mxu0 %v1684_v14  ;;  %1603 = vmatmul.mubr.bf16.gmra.mxu1 %v1685_v15 }
  0x36   : > { %1574 = vmatprep.mubr.bf16.mxu0 %v1686_v16  ;;  %1606 = vmatprep.mubr.bf16.mxu1 %v1687_v17 }
  0x3d   : > { %1575 = vmatmul.mubr.bf16.gmra.mxu0 %v1688_v18  ;;  %1607 = vmatmul.mubr.bf16.gmra.mxu1 %v1689_v19 }
  0x3e   : > { %1578 = vmatprep.mubr.bf16.mxu0 %v1690_v20  ;;  %1610 = vmatprep.mubr.bf16.mxu1 %v1691_v21 }
  0x45   : > { %1579 = vmatmul.mubr.bf16.gmra.mxu0 %v1692_v22  ;;  %1611 = vmatmul.mubr.bf16.gmra.mxu1 %v1693_v23 }
  0x46   : > { %1582 = vmatprep.mubr.bf16.mxu0 %v1694_v24  ;;  %1614 = vmatprep.mubr.bf16.mxu1 %v1695_v25 }
  0x4d   : > { %1583 = vmatmul.mubr.bf16.gmra.mxu0 %v1696_v26  ;;  %1615 = vmatmul.mubr.bf16.gmra.mxu1 %v1697_v27 }
  0x4e   : > { %1586 = vmatprep.mubr.bf16.mxu0 %v1698_v28  ;;  %1618 = vmatprep.mubr.bf16.mxu1 %v1699_v29 }
  0x55   : > { %1587 = vmatmul.mubr.bf16.gmra.mxu0 %v1700_v30  ;;  %1619 = vmatmul.mubr.bf16.gmra.mxu1 %v1701_v31 }
  0x56   : > { %1590 = vmatprep.mubr.bf16.mxu0 %v1702_v32  ;;  %1622 = vmatprep.mubr.bf16.mxu1 %v1703_v33 }
  0x5d   : > { %1591 = vmatmul.mubr.bf16.gmra.mxu0 %v1704_v34  ;;  %1623 = vmatmul.mubr.bf16.gmra.mxu1 %v1705_v35 }
  0x5e   : > { %1594 = vmatprep.mubr.bf16.mxu0 %v1706_v36  ;;  %1626 = vmatprep.mubr.bf16.mxu1 %v1707_v37 }
  0x65   : > { %1595 = vmatmul.mubr.bf16.gmra.mxu0 %v1708_v38  ;;  %1627 = vmatmul.mubr.bf16.gmra.mxu1 %v1709_v39 }
  0xed   : > { %v1568_v41 = vpop.f32.mrf.mxu0  ;;  %v1600_v42 = vpop.f32.mrf.mxu1 }
  0xee   : > { %v596_v43 = vadd.f32 %v1568_v41, %v2095_v40  ;;  %v724_v44 = vadd.f32 %v1600_v42, %v2095_v40 }
  0xef   : > { %v587_v45 = vpop.f32.mrf.mxu0  ;;  %v715_v46 = vpop.f32.mrf.mxu1 }
  0xf0   : > { %v1446_v47 = vmul.f32 -1.442695, %v596_v43  ;;  %v1478_v48 = vmul.f32 -1.442695, %v724_v44  ;;  %v588_v49 = vadd.f32 %v2095_v40, %v587_v45  ;;  %v716_v50 = vadd.f32 %v2095_v40, %v715_v46 }
  0xf1   : > { %v1569_v51 = vpop.f32.mrf.mxu0  ;;  %v1601_v52 = vpop.f32.mrf.mxu1 }
  0xf2   : > { %1710 = vpow2.f32 %v1446_v47  ;;  %v1444_v53 = vmul.f32 -1.442695, %v588_v49  ;;  %v1476_v54 = vmul.f32 -1.442695, %v716_v50  ;;  %v599_v55 = vadd.f32 %v1569_v51, %v2095_v40 }
  0xf3   : > { %1712 = vpow2.f32 %v1478_v48  ;;  %v727_v56 = vadd.f32 %v1601_v52, %v2095_v40  ;;  %v590_v57 = vpop.f32.mrf.mxu0  ;;  %v718_v58 = vpop.f32.mrf.mxu1 }
  0xf4   : > { %1714 = vpow2.f32 %v1444_v53  ;;  %v1447_v59 = vmul.f32 -1.442695, %v599_v55  ;;  %v591_v60 = vadd.f32 %v2095_v40, %v590_v57  ;;  %v719_v61 = vadd.f32 %v2095_v40, %v718_v58 }
  0xf5   : > { %1716 = vpow2.f32 %v1476_v54  ;;  %v1479_v62 = vmul.f32 -1.442695, %v727_v56  ;;  %v1572_v63 = vpop.f32.mrf.mxu0  ;;  %v1604_v0 = vpop.f32.mrf.mxu1 }
  0xf6   : > { %1718 = vpow2.f32 %v1447_v59  ;;  %v1445_v1 = vmul.f32 -1.442695, %v591_v60  ;;  %v1477_v2 = vmul.f32 -1.442695, %v719_v61  ;;  %v612_v3 = vadd.f32 %v1572_v63, %v2095_v40 }
  0xf7   : > { %1720 = vpow2.f32 %v1479_v62  ;;  %v740_v4 = vadd.f32 %v1604_v0, %v2095_v40  ;;  %v603_v5 = vpop.f32.mrf.mxu0  ;;  %v731_v6 = vpop.f32.mrf.mxu1 }
  0xf8   : > { %1722 = vpow2.f32 %v1445_v1  ;;  %v1450_v7 = vmul.f32 -1.442695, %v612_v3  ;;  %v604_v8 = vadd.f32 %v2095_v40, %v603_v5  ;;  %v732_v9 = vadd.f32 %v2095_v40, %v731_v6 }
  0xf9   : > { %1724 = vpow2.f32 %v1477_v2  ;;  %v1482_v10 = vmul.f32 -1.442695, %v740_v4  ;;  %v1573_v11 = vpop.f32.mrf.mxu0  ;;  %v1605_v12 = vpop.f32.mrf.mxu1 }
  0xfa   : > { %1726 = vpow2.f32 %v1450_v7  ;;  %v1448_v13 = vmul.f32 -1.442695, %v604_v8  ;;  %v1480_v14 = vmul.f32 -1.442695, %v732_v9  ;;  %v615_v15 = vadd.f32 %v1573_v11, %v2095_v40 }
  0xfb   : > { %1728 = vpow2.f32 %v1482_v10  ;;  %v743_v16 = vadd.f32 %v1605_v12, %v2095_v40  ;;  %v606_v17 = vpop.f32.mrf.mxu0  ;;  %v734_v18 = vpop.f32.mrf.mxu1 }
  0xfc   : > { %1730 = vpow2.f32 %v1448_v13  ;;  %v1451_v19 = vmul.f32 -1.442695, %v615_v15  ;;  %v607_v20 = vadd.f32 %v2095_v40, %v606_v17  ;;  %v735_v21 = vadd.f32 %v2095_v40, %v734_v18 }
  0xfd   : > { %1732 = vpow2.f32 %v1480_v14  ;;  %v1483_v22 = vmul.f32 -1.442695, %v743_v16  ;;  %v1576_v23 = vpop.f32.mrf.mxu0  ;;  %v1608_v24 = vpop.f32.mrf.mxu1 }
  0xfe   : > { %1734 = vpow2.f32 %v1451_v19  ;;  %v1449_v25 = vmul.f32 -1.442695, %v607_v20  ;;  %v1481_v26 = vmul.f32 -1.442695, %v735_v21  ;;  %v628_v58 = vadd.f32 %v1576_v23, %v2095_v40 }
  0xff   : > { %v1711_v27 = vpop.eup %1710  ;;  %1736 = vpow2.f32 %v1483_v22  ;;  %v619_v28 = vpop.f32.mrf.mxu0  ;;  %v756_v62 = vadd.f32 %v1608_v24, %v2095_v40 }
 0x100   : > { %v747_v29 = vpop.f32.mrf.mxu1  ;;  %v1713_v30 = vpop.eup %1712  ;;  %v1036_v31 = vadd.f32 1.0, %v1711_v27  ;;  %1738 = vpow2.f32 %v1449_v25  ;;  %v620_v1 = vadd.f32 %v2095_v40, %v619_v28  ;;  %v1454_v8 = vmul.f32 -1.442695, %v628_v58 }
 0x101   : > { %v1715_v32 = vpop.eup %1714  ;;  %v1068_v33 = vadd.f32 1.0, %v1713_v30  ;;  %1740 = vpow2.f32 %v1481_v26  ;;  %v1577_v34 = vpop.f32.mrf.mxu0  ;;  %v748_v4 = vadd.f32 %v2095_v40, %v747_v29  ;;  %v1486_v13 = vmul.f32 -1.442695, %v756_v62 }
 0x102   : > { %v1717_v35 = vpop.eup %1716  ;;  %1742 = vrcp.f32 %v1036_v31  ;;  %v1034_v36 = vadd.f32 1.0, %v1715_v32  ;;  %v1609_v37 = vpop.f32.mrf.mxu1  ;;  %v631_v9 = vadd.f32 %v1577_v34, %v2095_v40  ;;  %v1452_v16 = vmul.f32 -1.442695, %v620_v1 }
 0x103   : > { %v1719_v38 = vpop.eup %1718  ;;  %1744 = vrcp.f32 %v1068_v33  ;;  %v1066_v39 = vadd.f32 1.0, %v1717_v35  ;;  %v622_v45 = vpop.f32.mrf.mxu0  ;;  %v759_v14 = vadd.f32 %v1609_v37, %v2095_v40  ;;  %v1484_v19 = vmul.f32 -1.442695, %v748_v4 }
 0x104   : > { %v1721_v41 = vpop.eup %1720  ;;  %1746 = vrcp.f32 %v1034_v36  ;;  %v1037_v42 = vadd.f32 1.0, %v1719_v38  ;;  %v750_v48 = vpop.f32.mrf.mxu1  ;;  %v623_v17 = vadd.f32 %v2095_v40, %v622_v45  ;;  %v1455_v23 = vmul.f32 -1.442695, %v631_v9 }
 0x105   : > { %v1723_v43 = vpop.eup %1722  ;;  %1748 = vrcp.f32 %v1066_v39  ;;  %v1069_v44 = vadd.f32 1.0, %v1721_v41  ;;  %v1580_v55 = vpop.f32.mrf.mxu0  ;;  %v751_v20 = vadd.f32 %v2095_v40, %v750_v48  ;;  %v1487_v27 = vmul.f32 -1.442695, %v759_v14 }
 0x106   : > { %v1725_v46 = vpop.eup %1724  ;;  %1750 = vrcp.f32 %v1037_v42  ;;  %v1035_v47 = vadd.f32 1.0, %v1723_v43  ;;  %v1612_v59 = vpop.f32.mrf.mxu1  ;;  %v644_v24 = vadd.f32 %v1580_v55, %v2095_v40  ;;  %v1453_v30 = vmul.f32 -1.442695, %v623_v17 }
 0x107   : > { %v1727_v49 = vpop.eup %1726  ;;  %1752 = vrcp.f32 %v1069_v44  ;;  %v1067_v50 = vadd.f32 1.0, %v1725_v46  ;;  %v635_v5 = vpop.f32.mrf.mxu0  ;;  %v772_v28 = vadd.f32 %v1612_v59, %v2095_v40  ;;  %v1485_v33 = vmul.f32 -1.442695, %v751_v20 }
 0x108   : > { %v1729_v51 = vpop.eup %1728  ;;  %1754 = vrcp.f32 %v1035_v47  ;;  %v1040_v52 = vadd.f32 1.0, %v1727_v49  ;;  %v763_v10 = vpop.f32.mrf.mxu1  ;;  %v636_v31 = vadd.f32 %v2095_v40, %v635_v5  ;;  %v1458_v37 = vmul.f32 -1.442695, %v644_v24 }
 0x109   : > { %v1731_v53 = vpop.eup %1730  ;;  %1756 = vrcp.f32 %v1067_v50  ;;  %v1072_v54 = vadd.f32 1.0, %v1729_v51  ;;  %v1581_v21 = vpop.f32.mrf.mxu0  ;;  %v764_v34 = vadd.f32 %v2095_v40, %v763_v10  ;;  %v1490_v42 = vmul.f32 -1.442695, %v772_v28 }
 0x10a   : > { %v1733_v56 = vpop.eup %1732  ;;  %1758 = vrcp.f32 %v1040_v52  ;;  %v1038_v57 = vadd.f32 1.0, %v1731_v53  ;;  %v1613_v25 = vpop.f32.mrf.mxu1  ;;  %v647_v38 = vadd.f32 %v1581_v21, %v2095_v40  ;;  %v1456_v45 = vmul.f32 -1.442695, %v636_v31 }
 0x10b   : > { %v1735_v60 = vpop.eup %1734  ;;  %1760 = vrcp.f32 %v1072_v54  ;;  %v1070_v61 = vadd.f32 1.0, %v1733_v56  ;;  %v638_v35 = vpop.f32.mrf.mxu0  ;;  %v775_v43 = vadd.f32 %v1613_v25, %v2095_v40  ;;  %v1488_v48 = vmul.f32 -1.442695, %v764_v34 }
 0x10c   : > { %v1737_v63 = vpop.eup %1736  ;;  %1762 = vrcp.f32 %v1038_v57  ;;  %v1041_v0 = vadd.f32 1.0, %v1735_v60  ;;  %v766_v39 = vpop.f32.mrf.mxu1  ;;  %v639_v46 = vadd.f32 %v2095_v40, %v638_v35  ;;  %v1459_v52 = vmul.f32 -1.442695, %v647_v38 }
 0x10d   : > { %v1739_v2 = vpop.eup %1738  ;;  %1764 = vrcp.f32 %v1070_v61  ;;  %v1073_v3 = vadd.f32 1.0, %v1737_v63  ;;  %v767_v49 = vadd.f32 %v2095_v40, %v766_v39  ;;  %v2145_v50 = vpop.f32.mrf.mxu0  ;;  %v1491_v55 = vmul.f32 -1.442695, %v775_v43 }
 0x10e   : > { %v1741_v6 = vpop.eup %1740  ;;  %1766 = vrcp.f32 %v1041_v0  ;;  %v1039_v7 = vadd.f32 1.0, %v1739_v2  ;;  %v2148_v53 = vpop.f32.mrf.mxu1  ;;  %v1457_v57 = vmul.f32 -1.442695, %v639_v46 }
 0x10f   : > { %v1743_v11 = vpop.eup %1742  ;;  %1768 = vrcp.f32 %v1073_v3  ;;  %v1071_v12 = vadd.f32 1.0, %v1741_v6  ;;  %v1489_v59 = vmul.f32 -1.442695, %v767_v49  ;;  %v651_v60 = vpop.f32.mrf.mxu0  ;;  %v788_v31 = vadd.f32 %v2148_v53, %v2095_v40 }
 0x110   : > { %v1745_v15 = vpop.eup %1744  ;;  %1228 = vst [vmem:[%s2120_s18 + $0x10] sm:$0xff] %v1743_v11  ;;  %1770 = vrcp.f32 %v1039_v7  ;;  %v779_v62 = vpop.f32.mrf.mxu1  ;;  %v652_v34 = vadd.f32 %v2095_v40, %v651_v60 }
 0x111   : > { %v1747_v18 = vpop.eup %1746  ;;  %1260 = vst [vmem:[%s2120_s18 + $0x110] sm:$0xff] %v1745_v15  ;;  %1772 = vrcp.f32 %v1071_v12  ;;  %v1585_v4 = vpop.f32.mrf.mxu0 }
 0x112   : > { %v1749_v22 = vpop.eup %1748  ;;  %1226 = vst [vmem:[%s2120_s18] sm:$0xff] %v1747_v18  ;;  %1774 = vpow2.f32 %v1454_v8  ;;  %v1617_v7 = vpop.f32.mrf.mxu1  ;;  %v663_v43 = vadd.f32 %v1585_v4, %v2095_v40 }
 0x113   : > { %v1751_v26 = vpop.eup %1750  ;;  %1258 = vst [vmem:[%s2120_s18 + $0x100] sm:$0xff] %v1749_v22  ;;  %1776 = vpow2.f32 %v1486_v13  ;;  %v654_v14 = vpop.f32.mrf.mxu0 }
 0x114   : > { %v1753_v29 = vpop.eup %1752  ;;  %1229 = vst [vmem:[%s2120_s18 + $0x18] sm:$0xff] %v1751_v26  ;;  %1778 = vpow2.f32 %v1452_v16  ;;  %v782_v17 = vpop.f32.mrf.mxu1 }
 0x115   : > { %v1755_v32 = vpop.eup %1754  ;;  %1261 = vst [vmem:[%s2120_s18 + $0x118] sm:$0xff] %v1753_v29  ;;  %1780 = vpow2.f32 %v1484_v19  ;;  %v1588_v24 = vpop.f32.mrf.mxu0 }
 0x116   : > { %v1757_v36 = vpop.eup %1756  ;;  %1227 = vst [vmem:[%s2120_s18 + $0x8] sm:$0xff] %v1755_v32  ;;  %1782 = vpow2.f32 %v1455_v23  ;;  %v1620_v28 = vpop.f32.mrf.mxu1 }
 0x117   : > { %v1759_v41 = vpop.eup %1758  ;;  %1259 = vst [vmem:[%s2120_s18 + $0x108] sm:$0xff] %v1757_v36  ;;  %1784 = vpow2.f32 %v1487_v27  ;;  %v660_v27 = vadd.f32 %v2145_v50, %v2095_v40  ;;  %v667_v38 = vpop.f32.mrf.mxu0  ;;  %v1460_v50 = vmul.f32 -1.442695, %v652_v34 }
 0x118   : > { %v1761_v44 = vpop.eup %1760  ;;  %1232 = vst [vmem:[%s2120_s18 + $0x30] sm:$0xff] %v1759_v41  ;;  %1786 = vpow2.f32 %v1453_v30 }
 0x119   : > { %v1763_v47 = vpop.eup %1762  ;;  %1264 = vst [vmem:[%s2120_s18 + $0x130] sm:$0xff] %v1761_v44  ;;  %1788 = vpow2.f32 %v1485_v33  ;;  %v795_v44 = vpop.f32.mrf.mxu1 }
 0x11a   : > { %v1765_v51 = vpop.eup %1764  ;;  %1230 = vst [vmem:[%s2120_s18 + $0x20] sm:$0xff] %v1763_v47  ;;  %1790 = vpow2.f32 %v1458_v37  ;;  %v780_v37 = vadd.f32 %v2095_v40, %v779_v62  ;;  %v1494_v47 = vmul.f32 -1.442695, %v788_v31  ;;  %v804_v62 = vadd.f32 %v1620_v28, %v2095_v40 }
 0x11b   : > { %v1767_v54 = vpop.eup %1766  ;;  %1262 = vst [vmem:[%s2120_s18 + $0x120] sm:$0xff] %v1765_v51  ;;  %1792 = vpow2.f32 %v1490_v42  ;;  %v1462_v42 = vmul.f32 -1.442695, %v660_v27  ;;  %v655_v51 = vadd.f32 %v2095_v40, %v654_v14  ;;  %v796_v4 = vadd.f32 %v2095_v40, %v795_v44 }
 0x11c   : > { %v1769_v56 = vpop.eup %1768  ;;  %1233 = vst [vmem:[%s2120_s18 + $0x38] sm:$0xff] %v1767_v54  ;;  %1794 = vpow2.f32 %v1456_v45  ;;  %v1492_v53 = vmul.f32 -1.442695, %v780_v37  ;;  %v783_v54 = vadd.f32 %v2095_v40, %v782_v17 }
 0x11d   : > { %v1771_v58 = vpop.eup %1770  ;;  %1265 = vst [vmem:[%s2120_s18 + $0x138] sm:$0xff] %v1769_v56  ;;  %1796 = vpow2.f32 %v1488_v48  ;;  %v791_v48 = vadd.f32 %v1617_v7, %v2095_v40  ;;  %v1496_v17 = vmul.f32 -1.442695, %v796_v4 }
 0x11e   : > { %v1773_v61 = vpop.eup %1772  ;;  %1231 = vst [vmem:[%s2120_s18 + $0x28] sm:$0xff] %v1771_v58  ;;  %1798 = vpow2.f32 %v1459_v52  ;;  %v676_v58 = vadd.f32 %v1588_v24, %v2095_v40 }
 0x11f   : > { %v1775_v63 = vpop.eup %1774  ;;  %1263 = vst [vmem:[%s2120_s18 + $0x128] sm:$0xff] %v1773_v61  ;;  %1800 = vpow2.f32 %v1491_v55  ;;  %v1589_v55 = vpop.f32.mrf.mxu0  ;;  %v1495_v61 = vmul.f32 -1.442695, %v791_v48 }
 0x120   : > { %v1777_v0 = vpop.eup %1776  ;;  %v1044_v1 = vadd.f32 1.0, %v1775_v63  ;;  %1802 = vpow2.f32 %v1457_v57  ;;  %v1463_v57 = vmul.f32 -1.442695, %v663_v43  ;;  %v1466_v7 = vmul.f32 -1.442695, %v676_v58 }
 0x121   : > { %v1779_v2 = vpop.eup %1778  ;;  %v1076_v3 = vadd.f32 1.0, %v1777_v0  ;;  %1804 = vpow2.f32 %v1489_v59  ;;  %v1621_v59 = vpop.f32.mrf.mxu1  ;;  %v1461_v0 = vmul.f32 -1.442695, %v655_v51 }
 0x122   : > { %v1781_v5 = vpop.eup %1780  ;;  %1806 = vrcp.f32 %v1044_v1  ;;  %v1042_v6 = vadd.f32 1.0, %v1779_v2  ;;  %v668_v1 = vadd.f32 %v2095_v40, %v667_v38 }
 0x123   : > { %v1783_v8 = vpop.eup %1782  ;;  %1808 = vrcp.f32 %v1076_v3  ;;  %v1074_v9 = vadd.f32 1.0, %v1781_v5  ;;  %v1493_v3 = vmul.f32 -1.442695, %v783_v54  ;;  %v670_v5 = vpop.f32.mrf.mxu0 }
 0x124   : > { %v1785_v10 = vpop.eup %1784  ;;  %1810 = vrcp.f32 %v1042_v6  ;;  %v1045_v11 = vadd.f32 1.0, %v1783_v8  ;;  %v679_v8 = vadd.f32 %v1589_v55, %v2095_v40  ;;  %v1464_v14 = vmul.f32 -1.442695, %v668_v1 }
 0x125   : > { %v1787_v12 = vpop.eup %1786  ;;  %1812 = vrcp.f32 %v1074_v9  ;;  %v1077_v13 = vadd.f32 1.0, %v1785_v10  ;;  %v798_v9 = vpop.f32.mrf.mxu1 }
 0x126   : > { %v1789_v15 = vpop.eup %1788  ;;  %1814 = vrcp.f32 %v1045_v11  ;;  %v1043_v16 = vadd.f32 1.0, %v1787_v12  ;;  %v1498_v11 = vmul.f32 -1.442695, %v804_v62  ;;  %v807_v12 = vadd.f32 %v1621_v59, %v2095_v40 }
 0x127   : > { %v1791_v18 = vpop.eup %1790  ;;  %1816 = vrcp.f32 %v1077_v13  ;;  %v1075_v19 = vadd.f32 1.0, %v1789_v15  ;;  %v671_v15 = vadd.f32 %v2095_v40, %v670_v5 }
 0x128   : > { %v1793_v20 = vpop.eup %1792  ;;  %1818 = vrcp.f32 %v1043_v16  ;;  %v1048_v21 = vadd.f32 1.0, %v1791_v18  ;;  %v799_v18 = vadd.f32 %v2095_v40, %v798_v9  ;;  %v1499_v24 = vmul.f32 -1.442695, %v807_v12 }
 0x129   : > { %v1795_v22 = vpop.eup %1794  ;;  %1820 = vrcp.f32 %v1075_v19  ;;  %v1080_v23 = vadd.f32 1.0, %v1793_v20  ;;  %v2183_v19 = vpop.f32.mrf.mxu0 }
 0x12a   : > { %v1797_v25 = vpop.eup %1796  ;;  %1822 = vrcp.f32 %v1048_v21  ;;  %v1046_v26 = vadd.f32 1.0, %v1795_v22  ;;  %v1467_v21 = vmul.f32 -1.442695, %v679_v8  ;;  %v2186_v22 = vpop.f32.mrf.mxu1  ;;  %v1497_v28 = vmul.f32 -1.442695, %v799_v18 }
 0x12b   : > { %v1799_v29 = vpop.eup %1798  ;;  %1824 = vrcp.f32 %v1080_v23  ;;  %v1078_v30 = vadd.f32 1.0, %v1797_v25  ;;  %v820_v1 = vadd.f32 %v2186_v22, %v2095_v40 }
 0x12c   : > { %v1801_v32 = vpop.eup %1800  ;;  %1826 = vrcp.f32 %v1046_v26  ;;  %v1049_v33 = vadd.f32 1.0, %v1799_v29  ;;  %v1465_v26 = vmul.f32 -1.442695, %v671_v15  ;;  %v683_v29 = vpop.f32.mrf.mxu0 }
 0x12d   : > { %v1803_v35 = vpop.eup %1802  ;;  %1828 = vrcp.f32 %v1078_v30  ;;  %v1081_v36 = vadd.f32 1.0, %v1801_v32  ;;  %v811_v31 = vpop.f32.mrf.mxu1  ;;  %v684_v4 = vadd.f32 %v2095_v40, %v683_v29 }
 0x12e   : > { %v1805_v39 = vpop.eup %1804  ;;  %1830 = vrcp.f32 %v1049_v33  ;;  %v1047_v41 = vadd.f32 1.0, %v1803_v35  ;;  %v1593_v37 = vpop.f32.mrf.mxu0 }
 0x12f   : > { %v1807_v45 = vpop.eup %1806  ;;  %1832 = vrcp.f32 %v1081_v36  ;;  %v1079_v46 = vadd.f32 1.0, %v1805_v39  ;;  %v695_v12 = vadd.f32 %v1593_v37, %v2095_v40 }
 0x130   : > { %v1809_v49 = vpop.eup %1808  ;;  %1236 = vst [vmem:[%s2120_s18 + $0x50] sm:$0xff] %v1807_v45  ;;  %1834 = vrcp.f32 %v1047_v41  ;;  %v1625_v41 = vpop.f32.mrf.mxu1 }
 0x131   : > { %v1811_v52 = vpop.eup %1810  ;;  %1268 = vst [vmem:[%s2120_s18 + $0x150] sm:$0xff] %v1809_v49  ;;  %1836 = vrcp.f32 %v1079_v46  ;;  %v686_v48 = vpop.f32.mrf.mxu0 }
 0x132   : > { %v1813_v56 = vpop.eup %1812  ;;  %1234 = vst [vmem:[%s2120_s18 + $0x40] sm:$0xff] %v1811_v52  ;;  %1838 = vpow2.f32 %v1462_v42  ;;  %v814_v51 = vpop.f32.mrf.mxu1 }
 0x133   : > { %v1815_v60 = vpop.eup %1814  ;;  %1266 = vst [vmem:[%s2120_s18 + $0x140] sm:$0xff] %v1813_v56  ;;  %1840 = vpow2.f32 %v1494_v47  ;;  %v1596_v58 = vpop.f32.mrf.mxu0 }
 0x134   : > { %v1817_v63 = vpop.eup %1816  ;;  %1237 = vst [vmem:[%s2120_s18 + $0x58] sm:$0xff] %v1815_v60  ;;  %1842 = vpow2.f32 %v1460_v50  ;;  %v1628_v62 = vpop.f32.mrf.mxu1 }
 0x135   : > { %v1819_v2 = vpop.eup %1818  ;;  %1269 = vst [vmem:[%s2120_s18 + $0x158] sm:$0xff] %v1817_v63  ;;  %1844 = vpow2.f32 %v1492_v53  ;;  %v699_v8 = vpop.f32.mrf.mxu0 }
 0x136   : > { %v1821_v6 = vpop.eup %1820  ;;  %1235 = vst [vmem:[%s2120_s18 + $0x48] sm:$0xff] %v1819_v2  ;;  %1846 = vpow2.f32 %v1463_v57 }
 0x137   : > { %v1823_v10 = vpop.eup %1822  ;;  %1267 = vst [vmem:[%s2120_s18 + $0x148] sm:$0xff] %v1821_v6  ;;  %1848 = vpow2.f32 %v1495_v61  ;;  %v692_v61 = vadd.f32 %v2183_v19, %v2095_v40  ;;  %v1468_v19 = vmul.f32 -1.442695, %v684_v4 }
 0x138   : > { %v1825_v13 = vpop.eup %1824  ;;  %1240 = vst [vmem:[%s2120_s18 + $0x70] sm:$0xff] %v1823_v10  ;;  %1850 = vpow2.f32 %v1461_v0 }
 0x139   : > { %v1827_v16 = vpop.eup %1826  ;;  %1272 = vst [vmem:[%s2120_s18 + $0x170] sm:$0xff] %v1825_v13  ;;  %1852 = vpow2.f32 %v1493_v3  ;;  %v827_v13 = vpop.f32.mrf.mxu1 }
 0x13a   : > { %v1829_v20 = vpop.eup %1828  ;;  %1238 = vst [vmem:[%s2120_s18 + $0x60] sm:$0xff] %v1827_v16  ;;  %1854 = vpow2.f32 %v1466_v7  ;;  %v812_v7 = vadd.f32 %v2095_v40, %v811_v31  ;;  %v1502_v16 = vmul.f32 -1.442695, %v820_v1  ;;  %v836_v31 = vadd.f32 %v1628_v62, %v2095_v40 }
 0x13b   : > { %v1831_v23 = vpop.eup %1830  ;;  %1270 = vst [vmem:[%s2120_s18 + $0x160] sm:$0xff] %v1829_v20  ;;  %1856 = vpow2.f32 %v1498_v11  ;;  %v1470_v11 = vmul.f32 -1.442695, %v692_v61  ;;  %v687_v20 = vadd.f32 %v2095_v40, %v686_v48  ;;  %v828_v37 = vadd.f32 %v2095_v40, %v827_v13 }
 0x13c   : > { %v1833_v25 = vpop.eup %1832  ;;  %1241 = vst [vmem:[%s2120_s18 + $0x78] sm:$0xff] %v1831_v23  ;;  %1858 = vpow2.f32 %v1464_v14  ;;  %v1500_v22 = vmul.f32 -1.442695, %v812_v7  ;;  %v815_v23 = vadd.f32 %v2095_v40, %v814_v51 }
 0x13d   : > { %v1835_v27 = vpop.eup %1834  ;;  %1273 = vst [vmem:[%s2120_s18 + $0x178] sm:$0xff] %v1833_v25  ;;  %1860 = vpow2.f32 %v1496_v17  ;;  %v823_v17 = vadd.f32 %v1625_v41, %v2095_v40  ;;  %v1504_v51 = vmul.f32 -1.442695, %v828_v37 }
 0x13e   : > { %v1837_v30 = vpop.eup %1836  ;;  %1239 = vst [vmem:[%s2120_s18 + $0x68] sm:$0xff] %v1835_v27  ;;  %1862 = vpow2.f32 %v1467_v21  ;;  %v708_v27 = vadd.f32 %v1596_v58, %v2095_v40 }
 0x13f   : > { %v1839_v32 = vpop.eup %1838  ;;  %1271 = vst [vmem:[%s2120_s18 + $0x168] sm:$0xff] %v1837_v30  ;;  %1864 = vpow2.f32 %v1499_v24  ;;  %v1597_v24 = vpop.f32.mrf.mxu0  ;;  %v1503_v30 = vmul.f32 -1.442695, %v823_v17 }
 0x140   : > { %v1841_v33 = vpop.eup %1840  ;;  %v1052_v34 = vadd.f32 1.0, %v1839_v32  ;;  %1866 = vpow2.f32 %v1465_v26  ;;  %v1471_v26 = vmul.f32 -1.442695, %v695_v12  ;;  %v1474_v41 = vmul.f32 -1.442695, %v708_v27 }
 0x141   : > { %v1843_v35 = vpop.eup %1842  ;;  %v1084_v36 = vadd.f32 1.0, %v1841_v33  ;;  %1868 = vpow2.f32 %v1497_v28  ;;  %v1629_v28 = vpop.f32.mrf.mxu1  ;;  %v1469_v33 = vmul.f32 -1.442695, %v687_v20 }
 0x142   : > { %v1845_v38 = vpop.eup %1844  ;;  %1870 = vrcp.f32 %v1052_v34  ;;  %v1050_v39 = vadd.f32 1.0, %v1843_v35  ;;  %v700_v34 = vadd.f32 %v2095_v40, %v699_v8 }
 0x143   : > { %v1847_v42 = vpop.eup %1846  ;;  %1872 = vrcp.f32 %v1084_v36  ;;  %v1082_v43 = vadd.f32 1.0, %v1845_v38  ;;  %v1501_v36 = vmul.f32 -1.442695, %v815_v23  ;;  %v702_v38 = vpop.f32.mrf.mxu0 }
 0x144   : > { %v1849_v44 = vpop.eup %1848  ;;  %1874 = vrcp.f32 %v1050_v39  ;;  %v1053_v45 = vadd.f32 1.0, %v1847_v42  ;;  %v711_v42 = vadd.f32 %v1597_v24, %v2095_v40  ;;  %v1472_v48 = vmul.f32 -1.442695, %v700_v34 }
 0x145   : > { %v1851_v46 = vpop.eup %1850  ;;  %1876 = vrcp.f32 %v1082_v43  ;;  %v1085_v47 = vadd.f32 1.0, %v1849_v44  ;;  %v830_v43 = vpop.f32.mrf.mxu1 }
 0x146   : > { %v1853_v49 = vpop.eup %1852  ;;  %1878 = vrcp.f32 %v1053_v45  ;;  %v1051_v50 = vadd.f32 1.0, %v1851_v46  ;;  %v1506_v45 = vmul.f32 -1.442695, %v836_v31  ;;  %v839_v46 = vadd.f32 %v1629_v28, %v2095_v40 }
 0x147   : > { %v1855_v52 = vpop.eup %1854  ;;  %1880 = vrcp.f32 %v1085_v47  ;;  %v1083_v53 = vadd.f32 1.0, %v1853_v49  ;;  %v703_v49 = vadd.f32 %v2095_v40, %v702_v38 }
 0x148   : > { %v1857_v54 = vpop.eup %1856  ;;  %1882 = vrcp.f32 %v1051_v50  ;;  %v1056_v55 = vadd.f32 1.0, %v1855_v52  ;;  %v831_v52 = vadd.f32 %v2095_v40, %v830_v43 }
 0x149   : > { %v1859_v56 = vpop.eup %1858  ;;  %1884 = vrcp.f32 %v1083_v53  ;;  %v1088_v57 = vadd.f32 1.0, %v1857_v54  ;;  %v1475_v54 = vmul.f32 -1.442695, %v711_v42  ;;  %v1473_v58 = vmul.f32 -1.442695, %v703_v49 }
 0x14a   : > { %v1861_v59 = vpop.eup %1860  ;;  %1886 = vrcp.f32 %v1056_v55  ;;  %v1054_v60 = vadd.f32 1.0, %v1859_v56  ;;  %v1507_v56 = vmul.f32 -1.442695, %v839_v46 }
 0x14b   : > { %v1863_v63 = vpop.eup %1862  ;;  %1888 = vrcp.f32 %v1088_v57  ;;  %v1086_v0 = vadd.f32 1.0, %v1861_v59 }
 0x14c   : > { %v1865_v2 = vpop.eup %1864  ;;  %1890 = vrcp.f32 %v1054_v60  ;;  %v1057_v3 = vadd.f32 1.0, %v1863_v63  ;;  %v1505_v60 = vmul.f32 -1.442695, %v831_v52 }
 0x14d   : > { %v1867_v5 = vpop.eup %1866  ;;  %1892 = vrcp.f32 %v1086_v0  ;;  %v1089_v6 = vadd.f32 1.0, %v1865_v2 }
 0x14e   : > { %v1869_v9 = vpop.eup %1868  ;;  %1894 = vrcp.f32 %v1057_v3  ;;  %v1055_v10 = vadd.f32 1.0, %v1867_v5 }
 0x14f   : > { %v1871_v14 = vpop.eup %1870  ;;  %1896 = vrcp.f32 %v1089_v6  ;;  %v1087_v15 = vadd.f32 1.0, %v1869_v9 }
 0x150   : > { %v1873_v18 = vpop.eup %1872  ;;  %1244 = vst [vmem:[%s2120_s18 + $0x90] sm:$0xff] %v1871_v14  ;;  %1898 = vrcp.f32 %v1055_v10 }
 0x151   : > { %v1875_v21 = vpop.eup %1874  ;;  %1276 = vst [vmem:[%s2120_s18 + $0x190] sm:$0xff] %v1873_v18  ;;  %1900 = vrcp.f32 %v1087_v15 }
 0x152   : > { %v1877_v25 = vpop.eup %1876  ;;  %1242 = vst [vmem:[%s2120_s18 + $0x80] sm:$0xff] %v1875_v21  ;;  %1902 = vpow2.f32 %v1470_v11 }
 0x153   : > { %v1879_v29 = vpop.eup %1878  ;;  %1274 = vst [vmem:[%s2120_s18 + $0x180] sm:$0xff] %v1877_v25  ;;  %1904 = vpow2.f32 %v1502_v16 }
 0x154   : > { %v1881_v32 = vpop.eup %1880  ;;  %1245 = vst [vmem:[%s2120_s18 + $0x98] sm:$0xff] %v1879_v29  ;;  %1906 = vpow2.f32 %v1468_v19 }
 0x155   : > { %v1883_v35 = vpop.eup %1882  ;;  %1277 = vst [vmem:[%s2120_s18 + $0x198] sm:$0xff] %v1881_v32  ;;  %1908 = vpow2.f32 %v1500_v22 }
 0x156   : > { %v1885_v39 = vpop.eup %1884  ;;  %1243 = vst [vmem:[%s2120_s18 + $0x88] sm:$0xff] %v1883_v35  ;;  %1910 = vpow2.f32 %v1471_v26 }
 0x157   : > { %v1887_v44 = vpop.eup %1886  ;;  %1275 = vst [vmem:[%s2120_s18 + $0x188] sm:$0xff] %v1885_v39  ;;  %1912 = vpow2.f32 %v1503_v30 }
 0x158   : > { %v1889_v47 = vpop.eup %1888  ;;  %1248 = vst [vmem:[%s2120_s18 + $0xb0] sm:$0xff] %v1887_v44  ;;  %1914 = vpow2.f32 %v1469_v33 }
 0x159   : > { %v1891_v50 = vpop.eup %1890  ;;  %1280 = vst [vmem:[%s2120_s18 + $0x1b0] sm:$0xff] %v1889_v47  ;;  %1916 = vpow2.f32 %v1501_v36 }
 0x15a   : > { %v1893_v53 = vpop.eup %1892  ;;  %1246 = vst [vmem:[%s2120_s18 + $0xa0] sm:$0xff] %v1891_v50  ;;  %1918 = vpow2.f32 %v1474_v41 }
 0x15b   : > { %v1895_v55 = vpop.eup %1894  ;;  %1278 = vst [vmem:[%s2120_s18 + $0x1a0] sm:$0xff] %v1893_v53  ;;  %1920 = vpow2.f32 %v1506_v45 }
 0x15c   : > { %v1897_v57 = vpop.eup %1896  ;;  %1249 = vst [vmem:[%s2120_s18 + $0xb8] sm:$0xff] %v1895_v55  ;;  %1922 = vpow2.f32 %v1472_v48 }
 0x15d   : > { %v1899_v59 = vpop.eup %1898  ;;  %1281 = vst [vmem:[%s2120_s18 + $0x1b8] sm:$0xff] %v1897_v57  ;;  %1924 = vpow2.f32 %v1504_v51 }
 0x15e   : > { %v1901_v61 = vpop.eup %1900  ;;  %1247 = vst [vmem:[%s2120_s18 + $0xa8] sm:$0xff] %v1899_v59  ;;  %1926 = vpow2.f32 %v1475_v54 }
 0x15f   : > { %v1903_v40 = vpop.eup %1902  ;;  %1279 = vst [vmem:[%s2120_s18 + $0x1a8] sm:$0xff] %v1901_v61  ;;  %1928 = vpow2.f32 %v1507_v56 }
 0x160   : > { %v1905_v62 = vpop.eup %1904  ;;  %v1060_v63 = vadd.f32 1.0, %v1903_v40  ;;  %1930 = vpow2.f32 %v1473_v58 }
 0x161   : > { %v1907_v0 = vpop.eup %1906  ;;  %v1092_v1 = vadd.f32 1.0, %v1905_v62  ;;  %1932 = vpow2.f32 %v1505_v60 }
 0x162   : > { %v1909_v2 = vpop.eup %1908  ;;  %1934 = vrcp.f32 %v1060_v63  ;;  %v1058_v3 = vadd.f32 1.0, %v1907_v0 }
 0x163   : > { %v1911_v4 = vpop.eup %1910  ;;  %1936 = vrcp.f32 %v1092_v1  ;;  %v1090_v5 = vadd.f32 1.0, %v1909_v2 }
 0x164   : > { %v1913_v6 = vpop.eup %1912  ;;  %1938 = vrcp.f32 %v1058_v3  ;;  %v1061_v7 = vadd.f32 1.0, %v1911_v4 }
 0x165   : > { %v1915_v8 = vpop.eup %1914  ;;  %1940 = vrcp.f32 %v1090_v5  ;;  %v1093_v9 = vadd.f32 1.0, %v1913_v6 }
 0x166   : > { %v1917_v10 = vpop.eup %1916  ;;  %1942 = vrcp.f32 %v1061_v7  ;;  %v1059_v11 = vadd.f32 1.0, %v1915_v8 }
 0x167   : > { %v1919_v12 = vpop.eup %1918  ;;  %1944 = vrcp.f32 %v1093_v9  ;;  %v1091_v13 = vadd.f32 1.0, %v1917_v10 }
 0x168   : > { %v1921_v14 = vpop.eup %1920  ;;  %1946 = vrcp.f32 %v1059_v11  ;;  %v1064_v15 = vadd.f32 1.0, %v1919_v12 }
 0x169   : > { %v1923_v16 = vpop.eup %1922  ;;  %1948 = vrcp.f32 %v1091_v13  ;;  %v1096_v17 = vadd.f32 1.0, %v1921_v14 }
 0x16a   : > { %v1925_v18 = vpop.eup %1924  ;;  %1950 = vrcp.f32 %v1064_v15  ;;  %v1062_v19 = vadd.f32 1.0, %v1923_v16 }
 0x16b   : > { %v1927_v20 = vpop.eup %1926  ;;  %1952 = vrcp.f32 %v1096_v17  ;;  %v1094_v21 = vadd.f32 1.0, %v1925_v18 }
 0x16c   : > { %v1929_v22 = vpop.eup %1928  ;;  %1954 = vrcp.f32 %v1062_v19  ;;  %v1065_v23 = vadd.f32 1.0, %v1927_v20 }
 0x16d   : > { %v1931_v24 = vpop.eup %1930  ;;  %1956 = vrcp.f32 %v1094_v21  ;;  %v1097_v25 = vadd.f32 1.0, %v1929_v22 }
 0x16e   : > { %v1933_v26 = vpop.eup %1932  ;;  %1958 = vrcp.f32 %v1065_v23  ;;  %v1063_v27 = vadd.f32 1.0, %v1931_v24 }
 0x16f   : > { %v1935_v28 = vpop.eup %1934  ;;  %1960 = vrcp.f32 %v1097_v25  ;;  %v1095_v29 = vadd.f32 1.0, %v1933_v26 }
 0x170   : > { %v1937_v30 = vpop.eup %1936  ;;  %1252 = vst [vmem:[%s2120_s18 + $0xd0] sm:$0xff] %v1935_v28  ;;  %1962 = vrcp.f32 %v1063_v27 }
 0x171   : > { %v1939_v31 = vpop.eup %1938  ;;  %1284 = vst [vmem:[%s2120_s18 + $0x1d0] sm:$0xff] %v1937_v30  ;;  %1964 = vrcp.f32 %v1095_v29 }
 0x172   : > { %v1941_v32 = vpop.eup %1940  ;;  %1250 = vst [vmem:[%s2120_s18 + $0xc0] sm:$0xff] %v1939_v31 }
 0x173   : > { %v1943_v33 = vpop.eup %1942  ;;  %1282 = vst [vmem:[%s2120_s18 + $0x1c0] sm:$0xff] %v1941_v32 }
 0x174   : > { %v1945_v34 = vpop.eup %1944  ;;  %1253 = vst [vmem:[%s2120_s18 + $0xd8] sm:$0xff] %v1943_v33 }
 0x175   : > { %v1947_v35 = vpop.eup %1946  ;;  %1285 = vst [vmem:[%s2120_s18 + $0x1d8] sm:$0xff] %v1945_v34 }
 0x176   : > { %v1949_v36 = vpop.eup %1948  ;;  %1251 = vst [vmem:[%s2120_s18 + $0xc8] sm:$0xff] %v1947_v35 }
 0x177   : > { %v1951_v37 = vpop.eup %1950  ;;  %1283 = vst [vmem:[%s2120_s18 + $0x1c8] sm:$0xff] %v1949_v36 }
 0x178   : > { %v1953_v38 = vpop.eup %1952  ;;  %1256 = vst [vmem:[%s2120_s18 + $0xf0] sm:$0xff] %v1951_v37 }
 0x179   : > { %v1955_v39 = vpop.eup %1954  ;;  %1288 = vst [vmem:[%s2120_s18 + $0x1f0] sm:$0xff] %v1953_v38 }
 0x17a   : > { %v1957_v41 = vpop.eup %1956  ;;  %1254 = vst [vmem:[%s2120_s18 + $0xe0] sm:$0xff] %v1955_v39 }
 0x17b   : > { %v1959_v42 = vpop.eup %1958  ;;  %1286 = vst [vmem:[%s2120_s18 + $0x1e0] sm:$0xff] %v1957_v41 }
 0x17c   : > { %v1961_v43 = vpop.eup %1960  ;;  %1257 = vst [vmem:[%s2120_s18 + $0xf8] sm:$0xff] %v1959_v42 }
 0x17d   : > { %v1963_v44 = vpop.eup %1962  ;;  %1289 = vst [vmem:[%s2120_s18 + $0x1f8] sm:$0xff] %v1961_v43 }
 0x17e   : > { %v1965_v45 = vpop.eup %1964  ;;  %1255 = vst [vmem:[%s2120_s18 + $0xe8] sm:$0xff] %v1963_v44 }
 0x17f   : > { %1287 = vst [vmem:[%s2120_s18 + $0x1e8] sm:$0xff] %v1965_v45 }
 0x180 PF: > { %s13_s14 = sadd.s32 1, %s1988_s14   ;;  %s2256_s12 = smov %s1984_s13 }
 0x181   : > { %p10_p5 = scmp.ge.s32.totalorder %s13_s14, 11   ;;  %s2257_s13 = smov %s2259_s15 }
 0x183   :  { %12 = sbr.rel (!%p10_p5) target bundleno = 2 (0x2), region = 68 }

</bundles_post_ra>
